<compile_context>
chip_gen: v7x
topology: tpu7x:2x2x1
jax: 0.10.0
libtpu: 0.0.40
codegen_flags: <defaults>
</compile_context>

<pallas_src>
import math
import functools

import jax
import jax.numpy as jnp
import numpy as np
from jax.experimental import pallas as pl
from jax.experimental.pallas import tpu as pltpu

# ---- KAN hyperparameters (match KANLinear defaults) -------------------------
GRID_SIZE = 5
SPLINE_ORDER = 3
COEF = GRID_SIZE + SPLINE_ORDER                 # 8 spline coefficients per (out, in)
NKNOTS = GRID_SIZE + 2 * SPLINE_ORDER + 1       # 12 grid knots per in_feature
NUM_DEN = sum(NKNOTS - k for k in range(1, SPLINE_ORDER + 1))   # 30 reciprocal rows
NFEAT = COEF + 1                                # SiLU + COEF bases per in_feature
GRID_RANGE = (-1.0, 1.0)
SCALE_BASE = 1.0
SCALE_SPLINE = 1.0
LANE = 128


def _round_up(n, m):
    return ((n + m - 1) // m) * m


def _vmem_limit_bytes():
    """Per-generation VMEM budget with ~20% headroom for Mosaic scratch."""
    try:
        info = pltpu.get_tpu_info()
        cap = getattr(info, "vmem_capacity_bytes", None)
        if cap is None:
            cap = 128 * 1024 * 1024
        return int(cap) * 4 // 5            # ~102 MiB on v5e/v6e, ~51 MiB on v7x
    except Exception:
        return 64 * 1024 * 1024


# ---- Shared feature builder (runs on the VPU/EUP inside the kernel) ----------
def _kan_features(x, g_all, inv_all):
    """SiLU + degree-3 B-spline bases, lane-concatenated.

    x:       (TB, IN_pad) f32
    g_all:   (NKNOTS, IN_pad) f32 spline knots (IN on lanes)
    inv_all: (NUM_DEN, IN_pad) f32 precomputed 1/(g[j+k]-g[j]) rows (k-major)
    returns  (TB, NFEAT*IN_pad) f32, columns ordered [silu | c=0 | ... | c=COEF-1]
    """
    silu = x * jax.nn.sigmoid(x)

    g = [g_all[j:j + 1, :] for j in range(NKNOTS)]        # static (1, IN_pad) rows
    inv = {}
    row = 0
    for k in range(1, SPLINE_ORDER + 1):
        for j in range(NKNOTS - k):
            inv[(k, j)] = inv_all[row:row + 1, :]         # 1/(g[j+k] - g[j])
            row += 1

    # x - g[j] once per knot; reused by every recurrence level.
    d = [x - g[j] for j in range(NKNOTS)]
    # Degree-0 bases as step differences == (x >= g[j]) & (x < g[j+1]).
    step = [(x >= g[j]).astype(jnp.float32) for j in range(NKNOTS)]
    bases = [step[j] - step[j + 1] for j in range(NKNOTS - 1)]

    # Cox-de Boor recurrence: divides replaced by precomputed reciprocals; the
    # (g[j+k+1] - x) factor is folded into a subtraction of d[j+k+1]*inv.
    for k in range(1, SPLINE_ORDER + 1):
        bases = [d[j] * inv[(k, j)] * bases[j]
                 - d[j + k + 1] * inv[(k, j + 1)] * bases[j + 1]
                 for j in range(NKNOTS - 1 - k)]
    # len(bases) == COEF, each (TB, IN_pad)

    return jnp.concatenate([silu] + bases, axis=-1)       # (TB, NFEAT*IN_pad)


# ---- Kernels ------------------------------------------------------------------
def _kan_kernel_resident(x_ref, gridT_ref, inv_ref, w_ref, o_ref):
    """Full weight resident in VMEM; one fused MXU matmul, grid = (batch tiles,)."""
    feat = _kan_features(x_ref[...].astype(jnp.float32), gridT_ref[...], inv_ref[...])
    o_ref[...] = jnp.dot(feat.astype(w_ref.dtype), w_ref[...],
                         preferred_element_type=jnp.float32).astype(o_ref.dtype)


def _kan_kernel_tiled(x_ref, gridT_ref, inv_ref, w_ref, o_ref, feat_ref):
    """OUT-tiled fallback: features computed once per batch tile into a VMEM
    scratch and reused for every out tile (OUT is the inner 'arbitrary' axis)."""
    @pl.when(pl.program_id(1) == 0)
    def _():
        feat_ref[...] = _kan_features(
            x_ref[...].astype(jnp.float32), gridT_ref[...], inv_ref[...]
        ).astype(feat_ref.dtype)

    o_ref[...] = jnp.dot(feat_ref[...], w_ref[...],
                         preferred_element_type=jnp.float32).astype(o_ref.dtype)


# ---- Weight preprocessing (run once per weight update, NOT per forward) -------
def prepare_kan_params(grid_knots, base_weight, spline_weight, spline_scaler,
                       *, weight_dtype=jnp.float32):
    """grid_knots: (IN, NKNOTS); base_weight: (OUT, IN);
    spline_weight: (OUT, IN, COEF); spline_scaler: (OUT, IN).

    Returns kernel-ready operands:
      gridT   (NKNOTS, IN_pad) f32
      inv_den (NUM_DEN, IN_pad) f32   precomputed 1/(g[j+k]-g[j])  (assumes
                                      strictly increasing knots; repeated knots
                                      would yield inf here, as 0-div would in torch)
      w_full  (NFEAT*IN_pad, OUT_pad) weight_dtype  — rows [base_wT ; spline(c,i)]
    IN and OUT are zero-padded to multiples of 128 so the in-kernel lane concat
    and the output stores are layout-free / lane-dense.  weight_dtype=bfloat16
    (recommended on v6e/v7x) halves weight HBM/VMEM traffic; accumulation stays f32.
    """
    OUT, IN = base_weight.shape
    assert grid_knots.shape == (IN, NKNOTS)
    IN_pad = _round_up(IN, LANE)
    OUT_pad = _round_up(OUT, LANE)

    if IN_pad != IN:
        # padded in-features: zero weights (-> contribute 0) + valid knot rows
        # (-> finite bases, so 0-weight rows cannot inject NaN into the matmul)
        base_weight = jnp.pad(base_weight, ((0, 0), (0, IN_pad - IN)))
        spline_weight = jnp.pad(spline_weight, ((0, 0), (0, IN_pad - IN), (0, 0)))
        spline_scaler = jnp.pad(spline_scaler, ((0, 0), (0, IN_pad - IN)))
        grid_knots = jnp.concatenate(
            [grid_knots,
             jnp.broadcast_to(grid_knots[-1:], (IN_pad - IN, NKNOTS))], axis=0)

    scaled = spline_weight * spline_scaler[:, :, None]              # (OUT, IN_pad, COEF)
    spline_w = jnp.transpose(scaled, (2, 1, 0)).reshape(COEF * IN_pad, OUT)  # row=c*IN_pad+i
    base_wT = base_weight.T                                         # (IN_pad, OUT)
    w_full = jnp.concatenate([base_wT, spline_w], axis=0)           # (NFEAT*IN_pad, OUT)
    if OUT_pad != OUT:
        w_full = jnp.pad(w_full, ((0, 0), (0, OUT_pad - OUT)))

    gridT = grid_knots.T.astype(jnp.float32)                        # (NKNOTS, IN_pad)
    rows = [1.0 / (grid_knots[:, j + k] - grid_knots[:, j])
            for k in range(1, SPLINE_ORDER + 1) for j in range(NKNOTS - k)]
    inv_den = jnp.stack(rows, axis=0).astype(jnp.float32)           # (NUM_DEN, IN_pad)

    return gridT, inv_den, w_full.astype(weight_dtype)


# ---- Forward -------------------------------------------------------------------
@functools.partial(jax.jit,
                   static_argnames=("out_features", "tb", "out_dtype", "force_out_tiling"))
def kan_linear_forward(x, gridT, inv_den, w_full, *, out_features=None, tb=128,
                       out_dtype=None, force_out_tiling=False):
    """x: (B, IN); remaining operands from prepare_kan_params(). -> (B, out_features)."""
    B, IN = x.shape
    KIN, OUT_pad = w_full.shape
    IN_pad = KIN // NFEAT
    assert KIN == NFEAT * IN_pad and IN_pad % LANE == 0 and OUT_pad % LANE == 0
    assert gridT.shape == (NKNOTS, IN_pad) and inv_den.shape == (NUM_DEN, IN_pad)
    assert IN <= IN_pad
    if out_features is None:
        out_features = OUT_pad
    out_dtype = x.dtype if out_dtype is None else out_dtype

    # Batch tiling; keep >=2 "parallel" grid steps when the batch allows (v7x 2-TC).
    tb_eff = min(tb, _round_up(B, 8))
    B_pad = _round_up(B, tb_eff)
    if B_pad // tb_eff < 2 and B_pad >= 16:
        tb_eff = _round_up(B_pad // 2, 8)
        B_pad = _round_up(B, tb_eff)
    x_p = x
    if B_pad != B or IN_pad != IN:
        x_p = jnp.pad(x, ((0, B_pad - B), (0, IN_pad - IN)))

    vmem_limit = _vmem_limit_bytes()
    w_itemsize = jnp.dtype(w_full.dtype).itemsize
    w_bytes = KIN * OUT_pad * w_itemsize
    feat_bytes = tb_eff * KIN * 4
    # NOTE: gridT / inv_den / w_full have constant block indices; pipeline_mode=
    # pl.Buffered(1) would drop their second buffer.  Left at the default for
    # portability — the residency budget below already counts the weight twice.
    resident_ok = (2 * w_bytes + 2 * tb_eff * IN_pad * 4
                   + 2 * tb_eff * OUT_pad * 4 + feat_bytes
                   + (4 << 20)) <= vmem_limit

    if resident_ok and not force_out_tiling:
        out = pl.pallas_call(
            _kan_kernel_resident,
            out_shape=jax.ShapeDtypeStruct((B_pad, OUT_pad), out_dtype),
            grid=(B_pad // tb_eff,),
            in_specs=[
                pl.BlockSpec((tb_eff, IN_pad), lambda i: (i, 0)),
                pl.BlockSpec((NKNOTS, IN_pad), lambda i: (0, 0)),
                pl.BlockSpec((NUM_DEN, IN_pad), lambda i: (0, 0)),
                pl.BlockSpec((KIN, OUT_pad), lambda i: (0, 0)),
            ],
            out_specs=pl.BlockSpec((tb_eff, OUT_pad), lambda i: (i, 0)),
            compiler_params=pltpu.CompilerParams(
                dimension_semantics=("parallel",),
                vmem_limit_bytes=vmem_limit),
        )(x_p, gridT, inv_den, w_full)
    else:
        # OUT-tiled fallback for weights too large to keep resident (e.g. v7x 64 MiB).
        tn = 256 if (OUT_pad % 256 == 0
                     and 2 * KIN * 256 * w_itemsize + feat_bytes <= vmem_limit // 2) else 128
        out = pl.pallas_call(
            _kan_kernel_tiled,
            out_shape=jax.ShapeDtypeStruct((B_pad, OUT_pad), out_dtype),
            grid=(B_pad // tb_eff, OUT_pad // tn),
            in_specs=[
                pl.BlockSpec((tb_eff, IN_pad), lambda i, j: (i, 0)),
                pl.BlockSpec((NKNOTS, IN_pad), lambda i, j: (0, 0)),
                pl.BlockSpec((NUM_DEN, IN_pad), lambda i, j: (0, 0)),
                pl.BlockSpec((KIN, tn), lambda i, j: (0, j)),
            ],
            out_specs=pl.BlockSpec((tb_eff, tn), lambda i, j: (i, j)),
            scratch_shapes=[pltpu.VMEM((tb_eff, KIN), w_full.dtype)],
            compiler_params=pltpu.CompilerParams(
                dimension_semantics=("parallel", "arbitrary"),
                vmem_limit_bytes=vmem_limit),
        )(x_p, gridT, inv_den, w_full)

    return out[:B, :out_features]


# ---- Pure-JAX reference (same math as the PyTorch module, for verification) ----
def _b_splines_ref(x, grid_knots):
    xe = x[:, :, None]
    g = grid_knots[None, :, :]
    bases = jnp.logical_and(xe >= g[:, :, :-1], xe < g[:, :, 1:]).astype(x.dtype)
    for k in range(1, SPLINE_ORDER + 1):
        bases = ((xe - g[:, :, :-(k + 1)]) / (g[:, :, k:-1] - g[:, :, :-(k + 1)])
                 * bases[:, :, :-1]
                 + (g[:, :, k + 1:] - xe) / (g[:, :, k + 1:] - g[:, :, 1:-k])
                 * bases[:, :, 1:])
    return bases                                            # (B, IN, COEF)


def kan_linear_ref(x, grid_knots, base_weight, spline_weight, spline_scaler):
    hi = jax.lax.Precision.HIGHEST
    base_out = jnp.dot(jax.nn.silu(x), base_weight.T, precision=hi)
    bases = _b_splines_ref(x, grid_knots)
    scaled = spline_weight * spline_scaler[:, :, None]
    spline_out = jnp.dot(bases.reshape(x.shape[0], -1),
                         scaled.reshape(scaled.shape[0], -1).T, precision=hi)
    return base_out + spline_out


# ---- Deterministic parameter init (shapes from KANLinear.__init__) -------------
def init_params(key, in_features, out_features):
    h = (GRID_RANGE[1] - GRID_RANGE[0]) / GRID_SIZE
    knots_1d = (jnp.arange(-SPLINE_ORDER, GRID_SIZE + SPLINE_ORDER + 1,
                           dtype=jnp.float32) * h + GRID_RANGE[0])
    grid_knots = jnp.broadcast_to(knots_1d, (in_features, NKNOTS))   # buffer 'grid'

    k1, k2, k3 = jax.random.split(key, 3)
    # kaiming_uniform(a = sqrt(5)*scale): bound = sqrt(6 / ((1 + a^2) * fan_in))
    a_base = math.sqrt(5) * SCALE_BASE
    bound_base = math.sqrt(6.0 / ((1.0 + a_base ** 2) * in_features))
    base_weight = jax.random.uniform(k1, (out_features, in_features),
                                     jnp.float32, -bound_base, bound_base)

    a_sp = math.sqrt(5) * SCALE_SPLINE
    bound_sp = math.sqrt(6.0 / ((1.0 + a_sp ** 2) * in_features))
    spline_scaler = jax.random.uniform(k2, (out_features, in_features),
                                       jnp.float32, -bound_sp, bound_sp)

    # TODO(synk): original init solves a batched lstsq (curve2coeff) over noise;
    # here we use a small deterministic uniform init of the same shape instead.
    noise_scale = 0.1 / GRID_SIZE
    spline_weight = jax.random.uniform(
        k3, (out_features, in_features, COEF),
        jnp.float32, -0.5 * noise_scale, 0.5 * noise_scale)

    return grid_knots, base_weight, spline_weight, spline_scaler


# ---- Demo ----------------------------------------------------------------------
if __name__ == "__main__":
    B, IN, OUT = 256, 32, 48          # IN padded to 128, OUT padded to 128, 2 batch tiles
    key = jax.random.PRNGKey(0)
    kx, kp = jax.random.split(key)

    x = jax.random.uniform(kx, (B, IN), jnp.float32, -1.0, 1.0)
    grid_knots, base_weight, spline_weight, spline_scaler = init_params(kp, IN, OUT)
    ref = kan_linear_ref(x, grid_knots, base_weight, spline_weight, spline_scaler)

    # (1) f32 weights, fully-resident-weight path (the common case).
    gridT, inv_den, w_full = prepare_kan_params(
        grid_knots, base_weight, spline_weight, spline_scaler)
    out = jax.block_until_ready(
        kan_linear_forward(x, gridT, inv_den, w_full, out_features=OUT))
    np.testing.assert_allclose(np.asarray(out), np.asarray(ref), rtol=1e-4, atol=1e-4)

    # (2) Same weights, forced OUT-tiled path (exercises the cached-feature scratch).
    out_t = jax.block_until_ready(
        kan_linear_forward(x, gridT, inv_den, w_full, out_features=OUT,
                           force_out_tiling=True))
    np.testing.assert_allclose(np.asarray(out_t), np.asarray(ref), rtol=1e-4, atol=1e-4)

    # (3) bf16 weights (recommended on v6e/v7x); looser tolerance is expected
    #     precision loss from the bf16 weight cast, not a kernel bug.
    gridT_b, inv_den_b, w_full_b = prepare_kan_params(
        grid_knots, base_weight, spline_weight, spline_scaler,
        weight_dtype=jnp.bfloat16)
    out_b = jax.block_until_ready(
        kan_linear_forward(x, gridT_b, inv_den_b, w_full_b, out_features=OUT))
    np.testing.assert_allclose(np.asarray(out_b), np.asarray(ref), rtol=3e-2, atol=3e-2)

    print("KERNEL_OK")
</pallas_src>

<mosaic_0001>
module attributes {stable_mosaic.version = 11 : i64} {
  func.func @_kan_kernel_resident(%arg0: i32, %arg1: memref<128x128xf32, #tpu.memory_space<vmem>>, %arg2: memref<12x128xf32, #tpu.memory_space<vmem>>, %arg3: memref<30x128xf32, #tpu.memory_space<vmem>>, %arg4: memref<1152x128xf32, #tpu.memory_space<vmem>>, %arg5: memref<128x128xf32, #tpu.memory_space<vmem>>) attributes {dimension_semantics = [#tpu.dimension_semantics<parallel>], iteration_bounds = array<i64: 2>, scalar_prefetch = 0 : i64, scratch_operands = 0 : i64, tpu.core_type = #tpu.core_type<tc>, window_params = [{transform_indices = @transform_0, window_bounds = array<i64: 128, 128>}, {pipeline_mode = #tpu.pipeline_mode<synchronous>, transform_indices = @transform_1, window_bounds = array<i64: 12, 128>}, {pipeline_mode = #tpu.pipeline_mode<synchronous>, transform_indices = @transform_2, window_bounds = array<i64: 30, 128>}, {pipeline_mode = #tpu.pipeline_mode<synchronous>, transform_indices = @transform_3, window_bounds = array<i64: 1152, 128>}, {transform_indices = @transform_4, window_bounds = array<i64: 128, 128>}]} {
    %c0 = arith.constant 0 : index
    %c0_0 = arith.constant 0 : index
    %0 = vector.load %arg1[%c0, %c0_0] : memref<128x128xf32, #tpu.memory_space<vmem>>, vector<128x128xf32>
    %c0_1 = arith.constant 0 : index
    %c0_2 = arith.constant 0 : index
    %1 = vector.load %arg2[%c0_1, %c0_2] : memref<12x128xf32, #tpu.memory_space<vmem>>, vector<12x128xf32>
    %c0_3 = arith.constant 0 : index
    %c0_4 = arith.constant 0 : index
    %2 = vector.load %arg3[%c0_3, %c0_4] : memref<30x128xf32, #tpu.memory_space<vmem>>, vector<30x128xf32>
    %3 = arith.negf %0 : vector<128x128xf32>
    %4 = math.exp %3 : vector<128x128xf32>
    %cst = arith.constant 1.000000e+00 : f32
    %5 = vector.broadcast %cst : f32 to vector<128x128xf32>
    %6 = arith.addf %5, %4 : vector<128x128xf32>
    %7 = arith.divf %5, %6 : vector<128x128xf32>
    %8 = arith.mulf %0, %7 : vector<128x128xf32>
    %9 = vector.extract_strided_slice %1 {offsets = [0, 0], sizes = [1, 128], strides = [1, 1]} : vector<12x128xf32> to vector<1x128xf32>
    %10 = vector.extract_strided_slice %1 {offsets = [1, 0], sizes = [1, 128], strides = [1, 1]} : vector<12x128xf32> to vector<1x128xf32>
    %11 = vector.extract_strided_slice %1 {offsets = [2, 0], sizes = [1, 128], strides = [1, 1]} : vector<12x128xf32> to vector<1x128xf32>
    %12 = vector.extract_strided_slice %1 {offsets = [3, 0], sizes = [1, 128], strides = [1, 1]} : vector<12x128xf32> to vector<1x128xf32>
    %13 = vector.extract_strided_slice %1 {offsets = [4, 0], sizes = [1, 128], strides = [1, 1]} : vector<12x128xf32> to vector<1x128xf32>
    %14 = vector.extract_strided_slice %1 {offsets = [5, 0], sizes = [1, 128], strides = [1, 1]} : vector<12x128xf32> to vector<1x128xf32>
    %15 = vector.extract_strided_slice %1 {offsets = [6, 0], sizes = [1, 128], strides = [1, 1]} : vector<12x128xf32> to vector<1x128xf32>
    %16 = vector.extract_strided_slice %1 {offsets = [7, 0], sizes = [1, 128], strides = [1, 1]} : vector<12x128xf32> to vector<1x128xf32>
    %17 = vector.extract_strided_slice %1 {offsets = [8, 0], sizes = [1, 128], strides = [1, 1]} : vector<12x128xf32> to vector<1x128xf32>
    %18 = vector.extract_strided_slice %1 {offsets = [9, 0], sizes = [1, 128], strides = [1, 1]} : vector<12x128xf32> to vector<1x128xf32>
    %19 = vector.extract_strided_slice %1 {offsets = [10, 0], sizes = [1, 128], strides = [1, 1]} : vector<12x128xf32> to vector<1x128xf32>
    %20 = vector.extract_strided_slice %1 {offsets = [11, 0], sizes = [1, 128], strides = [1, 1]} : vector<12x128xf32> to vector<1x128xf32>
    %21 = vector.extract_strided_slice %2 {offsets = [0, 0], sizes = [1, 128], strides = [1, 1]} : vector<30x128xf32> to vector<1x128xf32>
    %22 = vector.extract_strided_slice %2 {offsets = [1, 0], sizes = [1, 128], strides = [1, 1]} : vector<30x128xf32> to vector<1x128xf32>
    %23 = vector.extract_strided_slice %2 {offsets = [2, 0], sizes = [1, 128], strides = [1, 1]} : vector<30x128xf32> to vector<1x128xf32>
    %24 = vector.extract_strided_slice %2 {offsets = [3, 0], sizes = [1, 128], strides = [1, 1]} : vector<30x128xf32> to vector<1x128xf32>
    %25 = vector.extract_strided_slice %2 {offsets = [4, 0], sizes = [1, 128], strides = [1, 1]} : vector<30x128xf32> to vector<1x128xf32>
    %26 = vector.extract_strided_slice %2 {offsets = [5, 0], sizes = [1, 128], strides = [1, 1]} : vector<30x128xf32> to vector<1x128xf32>
    %27 = vector.extract_strided_slice %2 {offsets = [6, 0], sizes = [1, 128], strides = [1, 1]} : vector<30x128xf32> to vector<1x128xf32>
    %28 = vector.extract_strided_slice %2 {offsets = [7, 0], sizes = [1, 128], strides = [1, 1]} : vector<30x128xf32> to vector<1x128xf32>
    %29 = vector.extract_strided_slice %2 {offsets = [8, 0], sizes = [1, 128], strides = [1, 1]} : vector<30x128xf32> to vector<1x128xf32>
    %30 = vector.extract_strided_slice %2 {offsets = [9, 0], sizes = [1, 128], strides = [1, 1]} : vector<30x128xf32> to vector<1x128xf32>
    %31 = vector.extract_strided_slice %2 {offsets = [10, 0], sizes = [1, 128], strides = [1, 1]} : vector<30x128xf32> to vector<1x128xf32>
    %32 = vector.extract_strided_slice %2 {offsets = [11, 0], sizes = [1, 128], strides = [1, 1]} : vector<30x128xf32> to vector<1x128xf32>
    %33 = vector.extract_strided_slice %2 {offsets = [12, 0], sizes = [1, 128], strides = [1, 1]} : vector<30x128xf32> to vector<1x128xf32>
    %34 = vector.extract_strided_slice %2 {offsets = [13, 0], sizes = [1, 128], strides = [1, 1]} : vector<30x128xf32> to vector<1x128xf32>
    %35 = vector.extract_strided_slice %2 {offsets = [14, 0], sizes = [1, 128], strides = [1, 1]} : vector<30x128xf32> to vector<1x128xf32>
    %36 = vector.extract_strided_slice %2 {offsets = [15, 0], sizes = [1, 128], strides = [1, 1]} : vector<30x128xf32> to vector<1x128xf32>
    %37 = vector.extract_strided_slice %2 {offsets = [16, 0], sizes = [1, 128], strides = [1, 1]} : vector<30x128xf32> to vector<1x128xf32>
    %38 = vector.extract_strided_slice %2 {offsets = [17, 0], sizes = [1, 128], strides = [1, 1]} : vector<30x128xf32> to vector<1x128xf32>
    %39 = vector.extract_strided_slice %2 {offsets = [18, 0], sizes = [1, 128], strides = [1, 1]} : vector<30x128xf32> to vector<1x128xf32>
    %40 = vector.extract_strided_slice %2 {offsets = [19, 0], sizes = [1, 128], strides = [1, 1]} : vector<30x128xf32> to vector<1x128xf32>
    %41 = vector.extract_strided_slice %2 {offsets = [20, 0], sizes = [1, 128], strides = [1, 1]} : vector<30x128xf32> to vector<1x128xf32>
    %42 = vector.extract_strided_slice %2 {offsets = [21, 0], sizes = [1, 128], strides = [1, 1]} : vector<30x128xf32> to vector<1x128xf32>
    %43 = vector.extract_strided_slice %2 {offsets = [22, 0], sizes = [1, 128], strides = [1, 1]} : vector<30x128xf32> to vector<1x128xf32>
    %44 = vector.extract_strided_slice %2 {offsets = [23, 0], sizes = [1, 128], strides = [1, 1]} : vector<30x128xf32> to vector<1x128xf32>
    %45 = vector.extract_strided_slice %2 {offsets = [24, 0], sizes = [1, 128], strides = [1, 1]} : vector<30x128xf32> to vector<1x128xf32>
    %46 = vector.extract_strided_slice %2 {offsets = [25, 0], sizes = [1, 128], strides = [1, 1]} : vector<30x128xf32> to vector<1x128xf32>
    %47 = vector.extract_strided_slice %2 {offsets = [26, 0], sizes = [1, 128], strides = [1, 1]} : vector<30x128xf32> to vector<1x128xf32>
    %48 = vector.extract_strided_slice %2 {offsets = [27, 0], sizes = [1, 128], strides = [1, 1]} : vector<30x128xf32> to vector<1x128xf32>
    %49 = vector.extract_strided_slice %2 {offsets = [28, 0], sizes = [1, 128], strides = [1, 1]} : vector<30x128xf32> to vector<1x128xf32>
    %50 = vector.extract_strided_slice %2 {offsets = [29, 0], sizes = [1, 128], strides = [1, 1]} : vector<30x128xf32> to vector<1x128xf32>
    %51 = vector.broadcast %9 : vector<1x128xf32> to vector<128x128xf32>
    %52 = arith.subf %0, %51 : vector<128x128xf32>
    %53 = vector.broadcast %10 : vector<1x128xf32> to vector<128x128xf32>
    %54 = arith.subf %0, %53 : vector<128x128xf32>
    %55 = vector.broadcast %11 : vector<1x128xf32> to vector<128x128xf32>
    %56 = arith.subf %0, %55 : vector<128x128xf32>
    %57 = vector.broadcast %12 : vector<1x128xf32> to vector<128x128xf32>
    %58 = arith.subf %0, %57 : vector<128x128xf32>
    %59 = vector.broadcast %13 : vector<1x128xf32> to vector<128x128xf32>
    %60 = arith.subf %0, %59 : vector<128x128xf32>
    %61 = vector.broadcast %14 : vector<1x128xf32> to vector<128x128xf32>
    %62 = arith.subf %0, %61 : vector<128x128xf32>
    %63 = vector.broadcast %15 : vector<1x128xf32> to vector<128x128xf32>
    %64 = arith.subf %0, %63 : vector<128x128xf32>
    %65 = vector.broadcast %16 : vector<1x128xf32> to vector<128x128xf32>
    %66 = arith.subf %0, %65 : vector<128x128xf32>
    %67 = vector.broadcast %17 : vector<1x128xf32> to vector<128x128xf32>
    %68 = arith.subf %0, %67 : vector<128x128xf32>
    %69 = vector.broadcast %18 : vector<1x128xf32> to vector<128x128xf32>
    %70 = arith.subf %0, %69 : vector<128x128xf32>
    %71 = vector.broadcast %19 : vector<1x128xf32> to vector<128x128xf32>
    %72 = arith.subf %0, %71 : vector<128x128xf32>
    %73 = vector.broadcast %20 : vector<1x128xf32> to vector<128x128xf32>
    %74 = arith.subf %0, %73 : vector<128x128xf32>
    %75 = vector.broadcast %9 : vector<1x128xf32> to vector<128x128xf32>
    %76 = arith.cmpf oge, %0, %75 : vector<128x128xf32>
    %77 = arith.extui %76 : vector<128x128xi1> to vector<128x128xi32>
    %78 = arith.sitofp %77 : vector<128x128xi32> to vector<128x128xf32>
    %79 = vector.broadcast %10 : vector<1x128xf32> to vector<128x128xf32>
    %80 = arith.cmpf oge, %0, %79 : vector<128x128xf32>
    %81 = arith.extui %80 : vector<128x128xi1> to vector<128x128xi32>
    %82 = arith.sitofp %81 : vector<128x128xi32> to vector<128x128xf32>
    %83 = vector.broadcast %11 : vector<1x128xf32> to vector<128x128xf32>
    %84 = arith.cmpf oge, %0, %83 : vector<128x128xf32>
    %85 = arith.extui %84 : vector<128x128xi1> to vector<128x128xi32>
    %86 = arith.sitofp %85 : vector<128x128xi32> to vector<128x128xf32>
    %87 = vector.broadcast %12 : vector<1x128xf32> to vector<128x128xf32>
    %88 = arith.cmpf oge, %0, %87 : vector<128x128xf32>
    %89 = arith.extui %88 : vector<128x128xi1> to vector<128x128xi32>
    %90 = arith.sitofp %89 : vector<128x128xi32> to vector<128x128xf32>
    %91 = vector.broadcast %13 : vector<1x128xf32> to vector<128x128xf32>
    %92 = arith.cmpf oge, %0, %91 : vector<128x128xf32>
    %93 = arith.extui %92 : vector<128x128xi1> to vector<128x128xi32>
    %94 = arith.sitofp %93 : vector<128x128xi32> to vector<128x128xf32>
    %95 = vector.broadcast %14 : vector<1x128xf32> to vector<128x128xf32>
    %96 = arith.cmpf oge, %0, %95 : vector<128x128xf32>
    %97 = arith.extui %96 : vector<128x128xi1> to vector<128x128xi32>
    %98 = arith.sitofp %97 : vector<128x128xi32> to vector<128x128xf32>
    %99 = vector.broadcast %15 : vector<1x128xf32> to vector<128x128xf32>
    %100 = arith.cmpf oge, %0, %99 : vector<128x128xf32>
    %101 = arith.extui %100 : vector<128x128xi1> to vector<128x128xi32>
    %102 = arith.sitofp %101 : vector<128x128xi32> to vector<128x128xf32>
    %103 = vector.broadcast %16 : vector<1x128xf32> to vector<128x128xf32>
    %104 = arith.cmpf oge, %0, %103 : vector<128x128xf32>
    %105 = arith.extui %104 : vector<128x128xi1> to vector<128x128xi32>
    %106 = arith.sitofp %105 : vector<128x128xi32> to vector<128x128xf32>
    %107 = vector.broadcast %17 : vector<1x128xf32> to vector<128x128xf32>
    %108 = arith.cmpf oge, %0, %107 : vector<128x128xf32>
    %109 = arith.extui %108 : vector<128x128xi1> to vector<128x128xi32>
    %110 = arith.sitofp %109 : vector<128x128xi32> to vector<128x128xf32>
    %111 = vector.broadcast %18 : vector<1x128xf32> to vector<128x128xf32>
    %112 = arith.cmpf oge, %0, %111 : vector<128x128xf32>
    %113 = arith.extui %112 : vector<128x128xi1> to vector<128x128xi32>
    %114 = arith.sitofp %113 : vector<128x128xi32> to vector<128x128xf32>
    %115 = vector.broadcast %19 : vector<1x128xf32> to vector<128x128xf32>
    %116 = arith.cmpf oge, %0, %115 : vector<128x128xf32>
    %117 = arith.extui %116 : vector<128x128xi1> to vector<128x128xi32>
    %118 = arith.sitofp %117 : vector<128x128xi32> to vector<128x128xf32>
    %119 = vector.broadcast %20 : vector<1x128xf32> to vector<128x128xf32>
    %120 = arith.cmpf oge, %0, %119 : vector<128x128xf32>
    %121 = arith.extui %120 : vector<128x128xi1> to vector<128x128xi32>
    %122 = arith.sitofp %121 : vector<128x128xi32> to vector<128x128xf32>
    %123 = arith.subf %78, %82 : vector<128x128xf32>
    %124 = arith.subf %82, %86 : vector<128x128xf32>
    %125 = arith.subf %86, %90 : vector<128x128xf32>
    %126 = arith.subf %90, %94 : vector<128x128xf32>
    %127 = arith.subf %94, %98 : vector<128x128xf32>
    %128 = arith.subf %98, %102 : vector<128x128xf32>
    %129 = arith.subf %102, %106 : vector<128x128xf32>
    %130 = arith.subf %106, %110 : vector<128x128xf32>
    %131 = arith.subf %110, %114 : vector<128x128xf32>
    %132 = arith.subf %114, %118 : vector<128x128xf32>
    %133 = arith.subf %118, %122 : vector<128x128xf32>
    %134 = vector.broadcast %21 : vector<1x128xf32> to vector<128x128xf32>
    %135 = arith.mulf %52, %134 : vector<128x128xf32>
    %136 = arith.mulf %135, %123 : vector<128x128xf32>
    %137 = vector.broadcast %22 : vector<1x128xf32> to vector<128x128xf32>
    %138 = arith.mulf %56, %137 : vector<128x128xf32>
    %139 = arith.mulf %138, %124 : vector<128x128xf32>
    %140 = arith.subf %136, %139 : vector<128x128xf32>
    %141 = vector.broadcast %22 : vector<1x128xf32> to vector<128x128xf32>
    %142 = arith.mulf %54, %141 : vector<128x128xf32>
    %143 = arith.mulf %142, %124 : vector<128x128xf32>
    %144 = vector.broadcast %23 : vector<1x128xf32> to vector<128x128xf32>
    %145 = arith.mulf %58, %144 : vector<128x128xf32>
    %146 = arith.mulf %145, %125 : vector<128x128xf32>
    %147 = arith.subf %143, %146 : vector<128x128xf32>
    %148 = vector.broadcast %23 : vector<1x128xf32> to vector<128x128xf32>
    %149 = arith.mulf %56, %148 : vector<128x128xf32>
    %150 = arith.mulf %149, %125 : vector<128x128xf32>
    %151 = vector.broadcast %24 : vector<1x128xf32> to vector<128x128xf32>
    %152 = arith.mulf %60, %151 : vector<128x128xf32>
    %153 = arith.mulf %152, %126 : vector<128x128xf32>
    %154 = arith.subf %150, %153 : vector<128x128xf32>
    %155 = vector.broadcast %24 : vector<1x128xf32> to vector<128x128xf32>
    %156 = arith.mulf %58, %155 : vector<128x128xf32>
    %157 = arith.mulf %156, %126 : vector<128x128xf32>
    %158 = vector.broadcast %25 : vector<1x128xf32> to vector<128x128xf32>
    %159 = arith.mulf %62, %158 : vector<128x128xf32>
    %160 = arith.mulf %159, %127 : vector<128x128xf32>
    %161 = arith.subf %157, %160 : vector<128x128xf32>
    %162 = vector.broadcast %25 : vector<1x128xf32> to vector<128x128xf32>
    %163 = arith.mulf %60, %162 : vector<128x128xf32>
    %164 = arith.mulf %163, %127 : vector<128x128xf32>
    %165 = vector.broadcast %26 : vector<1x128xf32> to vector<128x128xf32>
    %166 = arith.mulf %64, %165 : vector<128x128xf32>
    %167 = arith.mulf %166, %128 : vector<128x128xf32>
    %168 = arith.subf %164, %167 : vector<128x128xf32>
    %169 = vector.broadcast %26 : vector<1x128xf32> to vector<128x128xf32>
    %170 = arith.mulf %62, %169 : vector<128x128xf32>
    %171 = arith.mulf %170, %128 : vector<128x128xf32>
    %172 = vector.broadcast %27 : vector<1x128xf32> to vector<128x128xf32>
    %173 = arith.mulf %66, %172 : vector<128x128xf32>
    %174 = arith.mulf %173, %129 : vector<128x128xf32>
    %175 = arith.subf %171, %174 : vector<128x128xf32>
    %176 = vector.broadcast %27 : vector<1x128xf32> to vector<128x128xf32>
    %177 = arith.mulf %64, %176 : vector<128x128xf32>
    %178 = arith.mulf %177, %129 : vector<128x128xf32>
    %179 = vector.broadcast %28 : vector<1x128xf32> to vector<128x128xf32>
    %180 = arith.mulf %68, %179 : vector<128x128xf32>
    %181 = arith.mulf %180, %130 : vector<128x128xf32>
    %182 = arith.subf %178, %181 : vector<128x128xf32>
    %183 = vector.broadcast %28 : vector<1x128xf32> to vector<128x128xf32>
    %184 = arith.mulf %66, %183 : vector<128x128xf32>
    %185 = arith.mulf %184, %130 : vector<128x128xf32>
    %186 = vector.broadcast %29 : vector<1x128xf32> to vector<128x128xf32>
    %187 = arith.mulf %70, %186 : vector<128x128xf32>
    %188 = arith.mulf %187, %131 : vector<128x128xf32>
    %189 = arith.subf %185, %188 : vector<128x128xf32>
    %190 = vector.broadcast %29 : vector<1x128xf32> to vector<128x128xf32>
    %191 = arith.mulf %68, %190 : vector<128x128xf32>
    %192 = arith.mulf %191, %131 : vector<128x128xf32>
    %193 = vector.broadcast %30 : vector<1x128xf32> to vector<128x128xf32>
    %194 = arith.mulf %72, %193 : vector<128x128xf32>
    %195 = arith.mulf %194, %132 : vector<128x128xf32>
    %196 = arith.subf %192, %195 : vector<128x128xf32>
    %197 = vector.broadcast %30 : vector<1x128xf32> to vector<128x128xf32>
    %198 = arith.mulf %70, %197 : vector<128x128xf32>
    %199 = arith.mulf %198, %132 : vector<128x128xf32>
    %200 = vector.broadcast %31 : vector<1x128xf32> to vector<128x128xf32>
    %201 = arith.mulf %74, %200 : vector<128x128xf32>
    %202 = arith.mulf %201, %133 : vector<128x128xf32>
    %203 = arith.subf %199, %202 : vector<128x128xf32>
    %204 = vector.broadcast %32 : vector<1x128xf32> to vector<128x128xf32>
    %205 = arith.mulf %52, %204 : vector<128x128xf32>
    %206 = arith.mulf %205, %140 : vector<128x128xf32>
    %207 = vector.broadcast %33 : vector<1x128xf32> to vector<128x128xf32>
    %208 = arith.mulf %58, %207 : vector<128x128xf32>
    %209 = arith.mulf %208, %147 : vector<128x128xf32>
    %210 = arith.subf %206, %209 : vector<128x128xf32>
    %211 = vector.broadcast %33 : vector<1x128xf32> to vector<128x128xf32>
    %212 = arith.mulf %54, %211 : vector<128x128xf32>
    %213 = arith.mulf %212, %147 : vector<128x128xf32>
    %214 = vector.broadcast %34 : vector<1x128xf32> to vector<128x128xf32>
    %215 = arith.mulf %60, %214 : vector<128x128xf32>
    %216 = arith.mulf %215, %154 : vector<128x128xf32>
    %217 = arith.subf %213, %216 : vector<128x128xf32>
    %218 = vector.broadcast %34 : vector<1x128xf32> to vector<128x128xf32>
    %219 = arith.mulf %56, %218 : vector<128x128xf32>
    %220 = arith.mulf %219, %154 : vector<128x128xf32>
    %221 = vector.broadcast %35 : vector<1x128xf32> to vector<128x128xf32>
    %222 = arith.mulf %62, %221 : vector<128x128xf32>
    %223 = arith.mulf %222, %161 : vector<128x128xf32>
    %224 = arith.subf %220, %223 : vector<128x128xf32>
    %225 = vector.broadcast %35 : vector<1x128xf32> to vector<128x128xf32>
    %226 = arith.mulf %58, %225 : vector<128x128xf32>
    %227 = arith.mulf %226, %161 : vector<128x128xf32>
    %228 = vector.broadcast %36 : vector<1x128xf32> to vector<128x128xf32>
    %229 = arith.mulf %64, %228 : vector<128x128xf32>
    %230 = arith.mulf %229, %168 : vector<128x128xf32>
    %231 = arith.subf %227, %230 : vector<128x128xf32>
    %232 = vector.broadcast %36 : vector<1x128xf32> to vector<128x128xf32>
    %233 = arith.mulf %60, %232 : vector<128x128xf32>
    %234 = arith.mulf %233, %168 : vector<128x128xf32>
    %235 = vector.broadcast %37 : vector<1x128xf32> to vector<128x128xf32>
    %236 = arith.mulf %66, %235 : vector<128x128xf32>
    %237 = arith.mulf %236, %175 : vector<128x128xf32>
    %238 = arith.subf %234, %237 : vector<128x128xf32>
    %239 = vector.broadcast %37 : vector<1x128xf32> to vector<128x128xf32>
    %240 = arith.mulf %62, %239 : vector<128x128xf32>
    %241 = arith.mulf %240, %175 : vector<128x128xf32>
    %242 = vector.broadcast %38 : vector<1x128xf32> to vector<128x128xf32>
    %243 = arith.mulf %68, %242 : vector<128x128xf32>
    %244 = arith.mulf %243, %182 : vector<128x128xf32>
    %245 = arith.subf %241, %244 : vector<128x128xf32>
    %246 = vector.broadcast %38 : vector<1x128xf32> to vector<128x128xf32>
    %247 = arith.mulf %64, %246 : vector<128x128xf32>
    %248 = arith.mulf %247, %182 : vector<128x128xf32>
    %249 = vector.broadcast %39 : vector<1x128xf32> to vector<128x128xf32>
    %250 = arith.mulf %70, %249 : vector<128x128xf32>
    %251 = arith.mulf %250, %189 : vector<128x128xf32>
    %252 = arith.subf %248, %251 : vector<128x128xf32>
    %253 = vector.broadcast %39 : vector<1x128xf32> to vector<128x128xf32>
    %254 = arith.mulf %66, %253 : vector<128x128xf32>
    %255 = arith.mulf %254, %189 : vector<128x128xf32>
    %256 = vector.broadcast %40 : vector<1x128xf32> to vector<128x128xf32>
    %257 = arith.mulf %72, %256 : vector<128x128xf32>
    %258 = arith.mulf %257, %196 : vector<128x128xf32>
    %259 = arith.subf %255, %258 : vector<128x128xf32>
    %260 = vector.broadcast %40 : vector<1x128xf32> to vector<128x128xf32>
    %261 = arith.mulf %68, %260 : vector<128x128xf32>
    %262 = arith.mulf %261, %196 : vector<128x128xf32>
    %263 = vector.broadcast %41 : vector<1x128xf32> to vector<128x128xf32>
    %264 = arith.mulf %74, %263 : vector<128x128xf32>
    %265 = arith.mulf %264, %203 : vector<128x128xf32>
    %266 = arith.subf %262, %265 : vector<128x128xf32>
    %267 = vector.broadcast %42 : vector<1x128xf32> to vector<128x128xf32>
    %268 = arith.mulf %52, %267 : vector<128x128xf32>
    %269 = arith.mulf %268, %210 : vector<128x128xf32>
    %270 = vector.broadcast %43 : vector<1x128xf32> to vector<128x128xf32>
    %271 = arith.mulf %60, %270 : vector<128x128xf32>
    %272 = arith.mulf %271, %217 : vector<128x128xf32>
    %273 = arith.subf %269, %272 : vector<128x128xf32>
    %274 = vector.broadcast %43 : vector<1x128xf32> to vector<128x128xf32>
    %275 = arith.mulf %54, %274 : vector<128x128xf32>
    %276 = arith.mulf %275, %217 : vector<128x128xf32>
    %277 = vector.broadcast %44 : vector<1x128xf32> to vector<128x128xf32>
    %278 = arith.mulf %62, %277 : vector<128x128xf32>
    %279 = arith.mulf %278, %224 : vector<128x128xf32>
    %280 = arith.subf %276, %279 : vector<128x128xf32>
    %281 = vector.broadcast %44 : vector<1x128xf32> to vector<128x128xf32>
    %282 = arith.mulf %56, %281 : vector<128x128xf32>
    %283 = arith.mulf %282, %224 : vector<128x128xf32>
    %284 = vector.broadcast %45 : vector<1x128xf32> to vector<128x128xf32>
    %285 = arith.mulf %64, %284 : vector<128x128xf32>
    %286 = arith.mulf %285, %231 : vector<128x128xf32>
    %287 = arith.subf %283, %286 : vector<128x128xf32>
    %288 = vector.broadcast %45 : vector<1x128xf32> to vector<128x128xf32>
    %289 = arith.mulf %58, %288 : vector<128x128xf32>
    %290 = arith.mulf %289, %231 : vector<128x128xf32>
    %291 = vector.broadcast %46 : vector<1x128xf32> to vector<128x128xf32>
    %292 = arith.mulf %66, %291 : vector<128x128xf32>
    %293 = arith.mulf %292, %238 : vector<128x128xf32>
    %294 = arith.subf %290, %293 : vector<128x128xf32>
    %295 = vector.broadcast %46 : vector<1x128xf32> to vector<128x128xf32>
    %296 = arith.mulf %60, %295 : vector<128x128xf32>
    %297 = arith.mulf %296, %238 : vector<128x128xf32>
    %298 = vector.broadcast %47 : vector<1x128xf32> to vector<128x128xf32>
    %299 = arith.mulf %68, %298 : vector<128x128xf32>
    %300 = arith.mulf %299, %245 : vector<128x128xf32>
    %301 = arith.subf %297, %300 : vector<128x128xf32>
    %302 = vector.broadcast %47 : vector<1x128xf32> to vector<128x128xf32>
    %303 = arith.mulf %62, %302 : vector<128x128xf32>
    %304 = arith.mulf %303, %245 : vector<128x128xf32>
    %305 = vector.broadcast %48 : vector<1x128xf32> to vector<128x128xf32>
    %306 = arith.mulf %70, %305 : vector<128x128xf32>
    %307 = arith.mulf %306, %252 : vector<128x128xf32>
    %308 = arith.subf %304, %307 : vector<128x128xf32>
    %309 = vector.broadcast %48 : vector<1x128xf32> to vector<128x128xf32>
    %310 = arith.mulf %64, %309 : vector<128x128xf32>
    %311 = arith.mulf %310, %252 : vector<128x128xf32>
    %312 = vector.broadcast %49 : vector<1x128xf32> to vector<128x128xf32>
    %313 = arith.mulf %72, %312 : vector<128x128xf32>
    %314 = arith.mulf %313, %259 : vector<128x128xf32>
    %315 = arith.subf %311, %314 : vector<128x128xf32>
    %316 = vector.broadcast %49 : vector<1x128xf32> to vector<128x128xf32>
    %317 = arith.mulf %66, %316 : vector<128x128xf32>
    %318 = arith.mulf %317, %259 : vector<128x128xf32>
    %319 = vector.broadcast %50 : vector<1x128xf32> to vector<128x128xf32>
    %320 = arith.mulf %74, %319 : vector<128x128xf32>
    %321 = arith.mulf %320, %266 : vector<128x128xf32>
    %322 = arith.subf %318, %321 : vector<128x128xf32>
    %323 = tpu.concatenate %8, %273, %280, %287, %294, %301, %308, %315, %322 in 1 : vector<128x128xf32>, vector<128x128xf32>, vector<128x128xf32>, vector<128x128xf32>, vector<128x128xf32>, vector<128x128xf32>, vector<128x128xf32>, vector<128x128xf32>, vector<128x128xf32> -> vector<128x1152xf32>
    %c0_5 = arith.constant 0 : index
    %c0_6 = arith.constant 0 : index
    %324 = vector.load %arg4[%c0_5, %c0_6] : memref<1152x128xf32, #tpu.memory_space<vmem>>, vector<1152x128xf32>
    %cst_7 = arith.constant dense<0.000000e+00> : vector<128x128xf32>
    %325 = tpu.matmul %323, %324, %cst_7 {dimension_numbers = #tpu.dot_dimension_numbers<[1], [0], [0], [1], [0, 0, 1, 1], [], []>} : vector<128x1152xf32>, vector<1152x128xf32>, vector<128x128xf32> -> vector<128x128xf32>
    %c0_8 = arith.constant 0 : index
    %c0_9 = arith.constant 0 : index
    %326 = vector.load %arg5[%c0_8, %c0_9] : memref<128x128xf32, #tpu.memory_space<vmem>>, vector<128x128xf32>
    tpu.vector_store %arg5[%c0_8, %c0_9], %325 {strides = array<i32>} : memref<128x128xf32, #tpu.memory_space<vmem>>, vector<128x128xf32>,
    return
  }
  func.func @transform_0(%arg0: i32) -> (i32, i32) {
    %c0_i32 = arith.constant 0 : i32
    %c0_i32_0 = arith.constant 0 : i32
    return %arg0, %c0_i32 : i32, i32
  }
  func.func @transform_1(%arg0: i32) -> (i32, i32) {
    %c0_i32 = arith.constant 0 : i32
    %c0_i32_0 = arith.constant 0 : i32
    %c0_i32_1 = arith.constant 0 : i32
    return %c0_i32, %c0_i32_0 : i32, i32
  }
  func.func @transform_2(%arg0: i32) -> (i32, i32) {
    %c0_i32 = arith.constant 0 : i32
    %c0_i32_0 = arith.constant 0 : i32
    %c0_i32_1 = arith.constant 0 : i32
    return %c0_i32, %c0_i32_0 : i32, i32
  }
  func.func @transform_3(%arg0: i32) -> (i32, i32) {
    %c0_i32 = arith.constant 0 : i32
    %c0_i32_0 = arith.constant 0 : i32
    %c0_i32_1 = arith.constant 0 : i32
    return %c0_i32, %c0_i32_0 : i32, i32
  }
  func.func @transform_4(%arg0: i32) -> (i32, i32) {
    %c0_i32 = arith.constant 0 : i32
    %c0_i32_0 = arith.constant 0 : i32
    return %arg0, %c0_i32 : i32, i32
  }
}

</mosaic_0001>

<bundles_post_ra>
// kernel: kan_linear_forward.1
= control target key start
LH: loop header
LB: loop body
LE: loop exit
PB: predicated region body
PF: predicated region fallthrough
CT: control target
= control target key end

     0   :  { %9 = vsyncpa [#allocation3], 0  ;;  %s10065_s0 = inlined_call_operand.hbm [shape: f32[256,128], index: 0, kind: input, shape index: {}]   ;;  %s10066_s1 = inlined_call_operand.hbm [shape: f32[12,128], index: 1, kind: input, shape index: {}]   ;;  %s10067_s2 = inlined_call_operand.hbm [shape: f32[30,128], index: 2, kind: input, shape index: {}]   ;;  %s10068_s3 = inlined_call_operand.hbm [shape: f32[1152,128], index: 3, kind: input, shape index: {}]   ;;  %s10069_s4 = inlined_call_operand.hbm [shape: f32[256,128], index: 4, kind: output, shape index: {}]  }
   0x1   :  { %11 = vsyncpa [#allocation3 + $0x1], 0 }
   0x2   :  { %12 = vsyncpa [#allocation6], 0 }
   0x3   :  { %13 = vsyncpa [#allocation9], 0 }
   0x4   :  { %14 = vsyncpa [#allocation4], 0 }
   0x5   :  { %16 = vsyncpa [#allocation4 + $0x1], 0  ;;  %s5885_s15 = smov 0   ;;  %s5887_s16 = smov 0  }
   0x6   :  { %s5889_s17 = smov 0   ;;  %s5891_s18 = smov 0  }
   0x7 LB: > { %s5906_s19 = sadd.s32 4294967295, %s5848_s18   ;;  %s4669_s20 = sadd.s32 4294967294, %s5848_s18   ;;  %s5848_s18 = sphi %s5891_s18, %s10978_s18   ;;  %s5844_s17 = sphi %s5889_s17, %s10977_s17   ;;  %s5840_s16 = sphi %s5887_s16, %s10976_s16   ;;  %s5836_s15 = sphi %s5885_s15, %s10975_s15  }
   0x8   : > { %p42_p0 = scmp.ne.s32.totalorder %s5840_s16, %s5836_s15  ;;  %p10070_p1 = scmp.eq.s32.totalorder %s5906_s19, 0 }
   0x9   : > { %p135_p3 = scmp.eq.s32.totalorder %s4669_s20, 1  ;;  %p4670_p5 = scmp.ge.s32.totalorder %s5848_s18, 1 }
   0xa   : > { %p5915_p4 = por %p10070_p1, %p42_p0  ;;  %p142_p7 = scmp.lt.s32.totalorder %s5848_s18, 3 }
   0xb   : > { %p5920_p6 = por %p135_p3, %p42_p0  ;;  %s5850_s24 = smov [#allocation5]  }
   0xc   : > { %s10344_s21 = scalar_select %p5915_p4, 1, 0 }
   0xd   : > { %s10345_s22 = scalar_select %p5920_p6, 1, 0 }
   0xe   : > { %p5925_p8 = pnand %p4670_p5, %p142_p7  ;;  %s154_s25 = sshll.u32 %s5850_s24, 4  ;;  %s5929_s25 = int_to_ptr.vmem [resolvable:$true] %s154_s25 }
   0xf   : > { %s5851_s27 = smov [#allocation7]   ;;  %s5852_s29 = smov [#allocation8]  }
  0x10   : > { %s10346_s23 = scalar_select %p5925_p8, 1, 0 }
  0x11   : > { %p5499_p9 = pneg %p5925_p8  ;;  %s167_s28 = sshll.u32 %s5851_s27, 4  ;;  %s5940_s28 = int_to_ptr.vmem [resolvable:$true] %s167_s28 }
  0x12   : > { %s5942_s30 = sshll.u32 %s5852_s29, 4  ;;  %s5660_s7 = scalar_lea.hbm %s10066_s1, 256  ;;  %s181_s30 = int_to_ptr.vmem [resolvable:$true] %s5942_s30 }
  0x13   : > { %p5936_p11 = pnand %p5499_p9, %p10070_p1  ;;  %p5661_p12 = scmp.ne.s32.totalorder %s10066_s1, %s5660_s7 }
  0x14   : > { %p5667_p5 = scmp.lt.u32.totalorder %s5660_s7, %s10066_s1 }
  0x15   : > { %p5952_p13 = pneg %p5936_p11 }
  0x17   : > { %p5663_p0 = pnand %p5952_p13, %p5661_p12 }
  0x19   : > { %p5664_p3 = pneg %p5663_p0 }
  0x1b   : > { %p5669_p7 = pnand %p5667_p5, %p5664_p3 }
  0x1d   : > { %5672 = shalt.err (!%p5669_p7)
}
  0x1e   : > { %s5673_s13 = scalar_lea.vmem %s5929_s25, 256  ;;  %p5681_p2 = scmp.lt.s32.totalorder %s5929_s25, %s5929_s25 }
  0x1f   : > { %p5674_p9 = scmp.ne.s32.totalorder %s5929_s25, %s5673_s13  ;;  %p5682_p6 = scmp.lt.s32.totalorder %s5673_s13, %s5673_s13 }
  0x21   : > { %p5676_p10 = pnand %p5674_p9, %p5952_p13  ;;  %p5683_p12 = por %p5682_p6, %p5681_p2 }
  0x23   : > { %p5677_p1 = pneg %p5676_p10 }
  0x25   : > { %p5684_p0 = pnand %p5683_p12, %p5677_p1 }
  0x27   : > { %5687 = shalt.err (!%p5684_p0)
}
  0x28   : > { %s5853_s14 = smov 128   ;;  %s5854_s20 = smov 8  }
  0x29   : > { %5502 = dma.hbm_to_vmem [thread:$0]  (!%p5936_p11), %s10066_s1, 256, %s5929_s25, [#allocation6], %s5853_s14, %s5853_s14, %s5854_s20  }
  0x2a   : > { %s5688_s6 = scalar_lea.hbm %s10067_s2, 512 }
  0x2b   : > { %p5689_p1 = scmp.ne.s32.totalorder %s10067_s2, %s5688_s6  ;;  %p5695_p10 = scmp.lt.u32.totalorder %s5688_s6, %s10067_s2 }
  0x2d   : > { %p5691_p2 = pnand %p5689_p1, %p5952_p13 }
  0x2f   : > { %p5692_p6 = pneg %p5691_p2 }
  0x31   : > { %p5697_p3 = pnand %p5695_p10, %p5692_p6 }
  0x33   : > { %5700 = shalt.err (!%p5697_p3)
}
  0x34   : > { %s5701_s25 = scalar_lea.vmem %s5940_s28, 512  ;;  %p5709_p12 = scmp.lt.s32.totalorder %s5940_s28, %s5940_s28 }
  0x35   : > { %p5702_p5 = scmp.ne.s32.totalorder %s5940_s28, %s5701_s25  ;;  %p5710_p0 = scmp.lt.s32.totalorder %s5701_s25, %s5701_s25 }
  0x37   : > { %p5704_p7 = pnand %p5702_p5, %p5952_p13  ;;  %p5711_p1 = por %p5710_p0, %p5709_p12 }
  0x39   : > { %p5705_p9 = pneg %p5704_p7 }
  0x3b   : > { %p5712_p2 = pnand %p5711_p1, %p5705_p9 }
  0x3d   : > { %5715 = shalt.err (!%p5712_p2)
}
  0x3e   : > { %5505 = dma.hbm_to_vmem [thread:$0]  (!%p5936_p11), %s10067_s2, 512, %s5940_s28, [#allocation6], %s5853_s14, %s5853_s14, %s5854_s20  }
  0x3f   : > { %s5716_s29 = scalar_lea.hbm %s10068_s3, 18432 }
  0x40   : > { %p5717_p6 = scmp.ne.s32.totalorder %s10068_s3, %s5716_s29  ;;  %p5723_p5 = scmp.lt.u32.totalorder %s5716_s29, %s10068_s3 }
  0x42   : > { %p5719_p10 = pnand %p5717_p6, %p5952_p13 }
  0x44   : > { %p5720_p3 = pneg %p5719_p10 }
  0x46   : > { %p5725_p7 = pnand %p5723_p5, %p5720_p3 }
  0x48   : > { %5728 = shalt.err (!%p5725_p7)
}
  0x49   : > { %s5729_s9 = scalar_lea.vmem %s181_s30, 18432  ;;  %p5737_p1 = scmp.lt.s32.totalorder %s181_s30, %s181_s30 }
  0x4a   : > { %p5730_p9 = scmp.ne.s32.totalorder %s181_s30, %s5729_s9  ;;  %p5738_p2 = scmp.lt.s32.totalorder %s5729_s9, %s5729_s9 }
  0x4c   : > { %p5732_p12 = pnand %p5730_p9, %p5952_p13  ;;  %p5739_p4 = por %p5738_p2, %p5737_p1 }
  0x4e   : > { %p5733_p0 = pneg %p5732_p12 }
  0x50   : > { %p5740_p8 = pnand %p5739_p4, %p5733_p0 }
  0x52   : > { %5743 = shalt.err (!%p5740_p8)
}
  0x53   : > { %5508 = dma.hbm_to_vmem [thread:$0]  (!%p5936_p11), %s10068_s3, 18432, %s181_s30, [#allocation9], %s5853_s14, %s5853_s14, %s5854_s20  }
  0x54   : > { %s6025_s10 = sadd.s32 1, %s5848_s18   ;;  %s29_s25 = sadd.s32 1, %s5844_s17 }
  0x55   : > { %s26_s26 = ssub.s32 %s5848_s18, %s6025_s10  ;;  %p36_p8 = scmp.ne.s32.totalorder %s5844_s17, %s5840_s16 }
  0x56   : > { %p27_p4 = scmp.eq.s32.totalorder %s26_s26, 0  ;;  %p37_p13 = scmp.eq.s32.totalorder %s5848_s18, 0 }
  0x57   : > { %p5520_p6 = scmp.lt.s32.totalorder %s5848_s18, 2  ;;  %p10349_p3 = scmp.eq.s32.totalorder %s5906_s19, 1 }
  0x58   : > { %s6035_s12 = scalar_select %p27_p4, %s5844_s17, %s29_s25  }
  0x59   : > { %p38_p10 = por %p37_p13, %p36_p8  ;;  %p6039_p5 = por %p10349_p3, %p36_p8 }
  0x5a   : > { %s194_s24 = sand.u32 1, %s5844_s17   ;;  %s4897_s27 = sshll.u32 %s5848_s18, 11 }
  0x5b   : > { %s4675_s30 = sshll.u32 %s194_s24, 7  ;;  %s6048_s6 = scalar_lea.hbm %s10065_s0, %s4897_s27 }
  0x5c   : > { %s198_s7 = scalar_lea.vmem [#allocation2], %s4675_s30  ;;  %p6050_p11 = pnand %p5520_p6, %p38_p10 }
  0x5d   : > { %s205_s8 = sshll.u32 %s198_s7, 4  ;;  %s6056_s28 = scalar_lea.sflag [#allocation3], %s194_s24  ;;  %s6054_s8 = int_to_ptr.vmem [resolvable:$true] %s205_s8 }
  0x5e   : > { %s5744_s11 = scalar_lea.hbm %s6048_s6, 2048  ;;  %p5746_p9 = pneg %p6050_p11 }
  0x5f   : > { %p5745_p7 = scmp.ne.s32.totalorder %s6048_s6, %s5744_s11  ;;  %s5749_s27 = scalar_lea.hbm %s10065_s0, 4096 }
  0x60   : > { %p5750_p1 = scmp.lt.u32.totalorder %s6048_s6, %s10065_s0  ;;  %p5751_p2 = scmp.lt.u32.totalorder %s5749_s27, %s5744_s11 }
  0x61   : > { %p5747_p12 = pnand %p5746_p9, %p5745_p7  ;;  %p5753_p8 = scmp.lt.u32.totalorder %s5744_s11, %s6048_s6 }
  0x62   : > { %p5752_p4 = por %p5751_p2, %p5750_p1 }
  0x63   : > { %p5748_p0 = pneg %p5747_p12 }
  0x64   : > { %p5754_p13 = por %p5753_p8, %p5752_p4 }
  0x66   : > { %p5755_p6 = pnand %p5754_p13, %p5748_p0 }
  0x68   : > { %5758 = shalt.err (!%p5755_p6)
}
  0x69   : > { %s5759_s24 = scalar_lea.vmem %s6054_s8, 2048  ;;  %s5855_s5 = smov [#allocation2]  }
  0x6a   : > { %p5760_p10 = scmp.ne.s32.totalorder %s6054_s8, %s5759_s24  ;;  %s5764_s7 = sshll.u32 %s5855_s5, 4  ;;  %s5765_s7 = int_to_ptr.vmem [resolvable:$false] %s5764_s7 }
  0x6b   : > { %s5766_s26 = scalar_lea.vmem %s5765_s7, 4096  ;;  %p5767_p12 = scmp.lt.s32.totalorder %s6054_s8, %s5765_s7 }
  0x6c   : > { %p5762_p3 = pnand %p5760_p10, %p5746_p9  ;;  %p5768_p1 = scmp.lt.s32.totalorder %s5766_s26, %s5759_s24 }
  0x6e   : > { %p5763_p7 = pneg %p5762_p3  ;;  %p5769_p2 = por %p5768_p1, %p5767_p12 }
  0x70   : > { %p5770_p4 = pnand %p5769_p2, %p5763_p7 }
  0x72   : > { %5773 = shalt.err (!%p5770_p4)
}
  0x73   : > { %5512 = dma.hbm_to_vmem [thread:$0]  (!%p6050_p11), %s6048_s6, 2048, %s6054_s8, %s6056_s28, %s5853_s14, %s5853_s14, %s5854_s20  }
  0x74   : > { %p10352_p9 = scmp.ne.s32.totalorder %s10346_s23, 0 }
  0x76   : > { %217 = sbr.rel (%p10352_p9) target bundleno = 1182 (0x49e), region = 36 }
  0x7d   : > { %s6090_s11 = sand.u32 1, %s5840_s16   ;;  %p10353_p0 = scmp.ne.s32.totalorder %s10344_s21, 0 }
  0x7e   : > { %s4679_s25 = sshll.u32 %s6090_s11, 7  ;;  %s220_s27 = scalar_lea.sflag [#allocation3], %s6090_s11 }
  0x7f   : > { %s6096_s9 = scalar_lea.vmem [#allocation2], %s4679_s25 }
  0x80   : > { %5819 = dma.done.wait (%p10353_p0), %s220_s27, 2048  }
  0x81   : > { %5821 = vsyncadd (%p10353_p0), %s220_s27, 4294965248  ;;  %p10354_p11 = scmp.eq.s32.totalorder %s5906_s19, 0 }
  0x83   : > { %5823 = dma.done.wait (%p10354_p11), [#allocation6], 768   ;;  %p10355_p8 = pmov %p10354_p11 }
  0x85   : > { %5825 = vsyncadd (%p10355_p8), [#allocation6], 4294966528  ;;  %p10356_p13 = pmov %p10355_p8 }
  0x86   : > { %p10357_p6 = pmov %p10355_p8 }
  0x87   : > { %5827 = dma.done.wait (%p10356_p13), [#allocation9], 18432  }
  0x88   : > { %5829 = vsyncadd (%p10357_p6), [#allocation9], 4294948864  ;;  %v3684_v0 = vld [vmem:[#allocation8 + $0x80] sm:$0xff]  ;;  %v3685_v1 = vld [vmem:[#allocation8 + $0x88] sm:$0xff]  ;;  %v396_v43 = vlaneseq  ;;  %s9988_s21 = scalar_lea.vmem [#allocation10], %s4679_s25  ;;  %s4898_s23 = sshll.u32 %s5906_s19, 11 }
  0x89   : > { %v3716_v2 = vld [vmem:[#allocation8 + $0x180] sm:$0xff]  ;;  %v5307_v3 = vpack.c.bf16 %v3685_v1, %v3684_v0  ;;  %v3717_v4 = vld [vmem:[#allocation8 + $0x188] sm:$0xff]  ;;  %v3686_v11 = vld [vmem:[#allocation8 + $0x90] sm:$0xff]  ;;  %s4567_s14 = sshll.u32 %s9988_s21, 4  ;;  %s10017_s8 = scalar_lea.hbm %s10069_s4, %s4898_s23  ;;  %s10019_s14 = int_to_ptr.vmem [resolvable:$true] %s4567_s14 }
  0x8a   : > { %v3668_v5 = vld [vmem:[#allocation8] sm:$0xff]  ;;  %v3669_v6 = vld [vmem:[#allocation8 + $0x8] sm:$0xff]  ;;  %v5339_v7 = vpack.c.bf16 %v3717_v4, %v3716_v2  ;;  %v3687_v13 = vld [vmem:[#allocation8 + $0x98] sm:$0xff]  ;;  %v397_v60 = vshrl.u32 %v396_v43, 7  ;;  %s4554_s28 = scalar_lea.sflag [#allocation4], %s6090_s11  ;;  %s5774_s19 = scalar_lea.vmem %s10019_s14, 2048 }
  0x8b   : > { %v5309_v8 = vpack.c.bf16 %v3669_v6, %v3668_v5  ;;  %v3700_v9 = vld [vmem:[#allocation8 + $0x100] sm:$0xff]  ;;  %v3701_v10 = vld [vmem:[#allocation8 + $0x108] sm:$0xff]  ;;  %5308 = vmatprep.subr.bf16.mxu0 %v5307_v3  ;;  %v3718_v14 = vld [vmem:[#allocation8 + $0x190] sm:$0xff]  ;;  %v5311_v16 = vpack.c.bf16 %v3687_v13, %v3686_v11  ;;  %p5775_p10 = scmp.ne.s32.totalorder %s10019_s14, %s5774_s19  ;;  %s5857_s30 = smov [#allocation10]  }
  0x8c   : > { %v5341_v12 = vpack.c.bf16 %v3701_v10, %v3700_v9  ;;  %v3719_v15 = vld [vmem:[#allocation8 + $0x198] sm:$0xff]  ;;  %5340 = vmatprep.subr.bf16.mxu1 %v5339_v7  ;;  %v3670_v18 = vld [vmem:[#allocation8 + $0x10] sm:$0xff]  ;;  %v3688_v23 = vld [vmem:[#allocation8 + $0xa0] sm:$0xff]  ;;  %v6118_v13 = vsub.s32 0, %v397_v60  ;;  %s5778_s29 = sshll.u32 %s5857_s30, 4  ;;  %s5779_s29 = int_to_ptr.vmem [resolvable:$false] %s5778_s29 }
  0x8d   : > { %5310 = vmatpush3.bf16.msra.mxu0 %v5309_v8  ;;  %v5343_v17 = vpack.c.bf16 %v3719_v15, %v3718_v14  ;;  %v3671_v19 = vld [vmem:[#allocation8 + $0x18] sm:$0xff]  ;;  %v3702_v20 = vld [vmem:[#allocation8 + $0x110] sm:$0xff]  ;;  %v3689_v24 = vld [vmem:[#allocation8 + $0xa8] sm:$0xff]  ;;  %v6120_v14 = vsub.s32 1, %v397_v60  ;;  %p5776_p3 = pnand %p5775_p10, %p6039_p5  ;;  %s5780_s24 = scalar_lea.vmem %s5779_s29, 4096 }
  0x8e   : > { %5342 = vmatpush3.bf16.msra.mxu1 %v5341_v12  ;;  %v5313_v21 = vpack.c.bf16 %v3671_v19, %v3670_v18  ;;  %v3703_v22 = vld [vmem:[#allocation8 + $0x118] sm:$0xff]  ;;  %5312 = vmatprep.subr.bf16.mxu0 %v5311_v16  ;;  %v5315_v26 = vpack.c.bf16 %v3689_v24, %v3688_v23  ;;  %v3720_v27 = vld [vmem:[#allocation8 + $0x1a0] sm:$0xff]  ;;  %v3721_v28 = vld [vmem:[#allocation8 + $0x1a8] sm:$0xff]  ;;  %v6128_v19 = vsub.s32 2, %v397_v60  ;;  %p5781_p12 = scmp.lt.s32.totalorder %s10019_s14, %s5779_s29  ;;  %p5782_p1 = scmp.lt.s32.totalorder %s5780_s24, %s5774_s19 }
  0x8f   : > { %5344 = vmatprep.subr.bf16.mxu1 %v5343_v17  ;;  %v5345_v25 = vpack.c.bf16 %v3703_v22, %v3702_v20  ;;  %v3672_v29 = vld [vmem:[#allocation8 + $0x20] sm:$0xff]  ;;  %v5347_v30 = vpack.c.bf16 %v3721_v28, %v3720_v27  ;;  %v3673_v31 = vld [vmem:[#allocation8 + $0x28] sm:$0xff]  ;;  %v3690_v35 = vld [vmem:[#allocation8 + $0xb0] sm:$0xff]  ;;  %v6130_v20 = vsub.s32 3, %v397_v60  ;;  %v6139_v27 = vsub.s32 5, %v397_v60  ;;  %p5777_p7 = pneg %p5776_p3 }
  0x90   : > { %v3704_v32 = vld [vmem:[#allocation8 + $0x120] sm:$0xff]  ;;  %v3705_v33 = vld [vmem:[#allocation8 + $0x128] sm:$0xff]  ;;  %v5317_v34 = vpack.c.bf16 %v3673_v31, %v3672_v29  ;;  %v3691_v36 = vld [vmem:[#allocation8 + $0xb8] sm:$0xff]  ;;  %10358 = vst [vmem:[#allocation15_spill] sm:$0xff] %v6128_v19  ;;  %v6141_v28 = vsub.s32 6, %v397_v60  ;;  %p5783_p2 = por %p5782_p1, %p5781_p12 }
  0x91   : > { %5314 = vmatpush3.bf16.msra.mxu0 %v5313_v21  ;;  %v3722_v37 = vld [vmem:[#allocation8 + $0x1b0] sm:$0xff]  ;;  %v5349_v38 = vpack.c.bf16 %v3705_v33, %v3704_v32  ;;  %v5319_v39 = vpack.c.bf16 %v3691_v36, %v3690_v35  ;;  %v3723_v40 = vld [vmem:[#allocation8 + $0x1b8] sm:$0xff]  ;;  %v3692_v47 = vld [vmem:[#allocation8 + $0xc0] sm:$0xff]  ;;  %v6132_v21 = vsub.s32 4, %v397_v60  ;;  %10360 = vst [vmem:[#allocation17_spill] sm:$0xff] %v6139_v27 }
  0x92   : > { %5346 = vmatpush3.bf16.msra.mxu1 %v5345_v25  ;;  %5316 = vmatprep.subr.bf16.mxu0 %v5315_v26  ;;  %v3674_v41 = vld [vmem:[#allocation8 + $0x30] sm:$0xff]  ;;  %v3675_v42 = vld [vmem:[#allocation8 + $0x38] sm:$0xff]  ;;  %v5351_v44 = vpack.c.bf16 %v3723_v40, %v3722_v37  ;;  %v3693_v48 = vld [vmem:[#allocation8 + $0xc8] sm:$0xff]  ;;  %p5784_p4 = pnand %p5783_p2, %p5777_p7 }
  0x93   : > { %5348 = vmatprep.subr.bf16.mxu1 %v5347_v30  ;;  %v3706_v45 = vld [vmem:[#allocation8 + $0x130] sm:$0xff]  ;;  %v3707_v46 = vld [vmem:[#allocation8 + $0x138] sm:$0xff]  ;;  %v3724_v49 = vld [vmem:[#allocation8 + $0x1c0] sm:$0xff]  ;;  %v5321_v51 = vpack.c.bf16 %v3675_v42, %v3674_v41  ;;  %v5323_v56 = vpack.c.bf16 %v3693_v48, %v3692_v47  ;;  %10359 = vst [vmem:[#allocation16_spill] sm:$0xff] %v6132_v21  ;;  %v6159_v41 = vsub.s32 7, %v397_v60 }
  0x94   : > { %v3725_v50 = vld [vmem:[#allocation8 + $0x1c8] sm:$0xff]  ;;  %v3676_v52 = vld [vmem:[#allocation8 + $0x40] sm:$0xff]  ;;  %v5353_v55 = vpack.c.bf16 %v3707_v46, %v3706_v45  ;;  %v3694_v58 = vld [vmem:[#allocation8 + $0xd0] sm:$0xff] }
  0x95   : > { %5318 = vmatpush3.bf16.msra.mxu0 %v5317_v34  ;;  %v3677_v53 = vld [vmem:[#allocation8 + $0x48] sm:$0xff]  ;;  %v3708_v54 = vld [vmem:[#allocation8 + $0x140] sm:$0xff]  ;;  %v3695_v59 = vld [vmem:[#allocation8 + $0xd8] sm:$0xff]  ;;  %v5355_v61 = vpack.c.bf16 %v3725_v50, %v3724_v49 }
  0x96   : > { %5350 = vmatpush3.bf16.msra.mxu1 %v5349_v38  ;;  %5320 = vmatprep.subr.bf16.mxu0 %v5319_v39  ;;  %v3709_v57 = vld [vmem:[#allocation8 + $0x148] sm:$0xff]  ;;  %v3726_v62 = vld [vmem:[#allocation8 + $0x1d0] sm:$0xff]  ;;  %v3727_v63 = vld [vmem:[#allocation8 + $0x1d8] sm:$0xff]  ;;  %v5325_v4 = vpack.c.bf16 %v3677_v53, %v3676_v52  ;;  %v5327_v9 = vpack.c.bf16 %v3695_v59, %v3694_v58 }
  0x97   : > { %5352 = vmatprep.subr.bf16.mxu1 %v5351_v44  ;;  %v3678_v0 = vld [vmem:[#allocation8 + $0x50] sm:$0xff]  ;;  %v3679_v1 = vld [vmem:[#allocation8 + $0x58] sm:$0xff]  ;;  %v3696_v5 = vld [vmem:[#allocation8 + $0xe0] sm:$0xff]  ;;  %v5357_v8 = vpack.c.bf16 %v3709_v57, %v3708_v54  ;;  %v5359_v15 = vpack.c.bf16 %v3727_v63, %v3726_v62 }
  0x98   : > { %v6110_v2 = vld [vmem:[#allocation8 + $0x150] sm:$0xff]  ;;  %v3711_v3 = vld [vmem:[#allocation8 + $0x158] sm:$0xff]  ;;  %v3697_v6 = vld [vmem:[#allocation8 + $0xe8] sm:$0xff]  ;;  %v5329_v22 = vpack.c.bf16 %v3679_v1, %v3678_v0  ;;  %v10073_v0 = vmov 0.0  }
  0x99   : > { %5322 = vmatpush3.bf16.msra.mxu0 %v5321_v51  ;;  %v6112_v7 = vld [vmem:[#allocation8 + $0x1e0] sm:$0xff]  ;;  %v3729_v10 = vld [vmem:[#allocation8 + $0x1e8] sm:$0xff]  ;;  %v6126_v18 = vld [vmem:[#allocation8 + $0xf0] sm:$0xff]  ;;  %v5361_v23 = vpack.c.bf16 %v3711_v3, %v6110_v2  ;;  %v5331_v29 = vpack.c.bf16 %v3697_v6, %v3696_v5 }
  0x9a   : > { %5354 = vmatpush3.bf16.msra.mxu1 %v5353_v55  ;;  %5324 = vmatprep.subr.bf16.mxu0 %v5323_v56  ;;  %v6114_v11 = vld [vmem:[#allocation8 + $0x60] sm:$0xff]  ;;  %v6116_v12 = vld [vmem:[#allocation8 + $0x68] sm:$0xff]  ;;  %v3699_v24 = vld [vmem:[#allocation8 + $0xf8] sm:$0xff]  ;;  %v5363_v30 = vpack.c.bf16 %v3729_v10, %v6112_v7 }
  0x9b   : > { %5356 = vmatprep.subr.bf16.mxu1 %v5355_v61  ;;  %v6122_v16 = vld [vmem:[#allocation8 + $0x160] sm:$0xff]  ;;  %v6124_v17 = vld [vmem:[#allocation8 + $0x168] sm:$0xff]  ;;  %v6135_v25 = vld [vmem:[#allocation8 + $0x1f0] sm:$0xff]  ;;  %v5333_v31 = vpack.c.bf16 %v6116_v12, %v6114_v11  ;;  %v5335_v36 = vpack.c.bf16 %v3699_v24, %v6126_v18 }
  0x9c   : > { %v6137_v26 = vld [vmem:[#allocation8 + $0x1f8] sm:$0xff]  ;;  %v5365_v32 = vpack.c.bf16 %v6124_v17, %v6122_v16  ;;  %v6148_v33 = vld [vmem:[#allocation8 + $0x70] sm:$0xff]  ;;  %v280_v63 = vld [vmem:[#allocation7] sm:$0xff] }
  0x9d   : > { %5326 = vmatpush3.bf16.msra.mxu0 %v5325_v4  ;;  %v6150_v34 = vld [vmem:[#allocation8 + $0x78] sm:$0xff]  ;;  %v6152_v35 = vld [vmem:[#allocation8 + $0x170] sm:$0xff]  ;;  %v5367_v37 = vpack.c.bf16 %v6137_v26, %v6135_v25  ;;  %v6245_v10 = vrot.slane %v280_v63, %v6118_v13  ;;  %v6248_v11 = vrot.slane %v280_v63, %v6120_v14  ;;  %v6251_v12 = vrot.slane %v280_v63, %v6128_v19 }
  0x9e   : > { %5358 = vmatpush3.bf16.msra.mxu1 %v5357_v8  ;;  %5328 = vmatprep.subr.bf16.mxu0 %v5327_v9  ;;  %v5337_v38 = vpack.c.bf16 %v6150_v34, %v6148_v33  ;;  %v3715_v39 = vld [vmem:[#allocation8 + $0x178] sm:$0xff]  ;;  %v278_v40 = vld [vmem:[#allocation5] sm:$0xff]  ;;  %v6257_v16 = vrot.slane %v280_v63, %v6132_v21  ;;  %v6260_v17 = vrot.slane %v280_v63, %v6139_v27 }
  0x9f   : > { %5360 = vmatprep.subr.bf16.mxu1 %v5359_v15  ;;  %v5369_v42 = vpack.c.bf16 %v3715_v39, %v6152_v35  ;;  %v6163_v43 = vld [vmem:[%s6096_s9] sm:$0xff]  ;;  %v279_v44 = vld [vmem:[#allocation5 + $0x8] sm:$0xf]  ;;  %v6166_v45 = vrot.slane %v278_v40, %v6118_v13  ;;  %v6169_v46 = vrot.slane %v278_v40, %v6120_v14  ;;  %v6172_v47 = vrot.slane %v278_v40, %v6128_v19 }
  0xa0   : > { %v6175_v48 = vrot.slane %v278_v40, %v6130_v20  ;;  %v6178_v49 = vrot.slane %v278_v40, %v6132_v21  ;;  %v6181_v50 = vrot.slane %v278_v40, %v6139_v27  ;;  %v6184_v51 = vrot.slane %v278_v40, %v6141_v28 }
  0xa1   : > { %5330 = vmatpush3.bf16.msra.mxu0 %v5329_v22  ;;  %v6188_v52 = vsub.f32 %v6163_v43, %v6166_v45  ;;  %v6192_v53 = vsub.f32 %v6163_v43, %v6169_v46  ;;  %v6196_v54 = vsub.f32 %v6163_v43, %v6172_v47  ;;  %v6199_v55 = vrot.slane %v278_v40, %v6159_v41  ;;  %v281_v22 = vld [vmem:[#allocation7 + $0x8] sm:$0xff] }
  0xa2   : > { %5362 = vmatpush3.bf16.msra.mxu1 %v5361_v23  ;;  %5332 = vmatprep.subr.bf16.mxu0 %v5331_v29  ;;  %v6203_v56 = vsub.f32 %v6163_v43, %v6175_v48  ;;  %v6207_v57 = vsub.f32 %v6163_v43, %v6178_v49  ;;  %v6210_v58 = vrot.slane %v279_v44, %v6118_v13  ;;  %v6213_v59 = vmul.f32 -1.442695, %v6163_v43 }
  0xa3   : > { %10361 = vst [vmem:[#allocation18_spill] sm:$0xff] %v6199_v55  ;;  %5364 = vmatprep.subr.bf16.mxu1 %v5363_v30  ;;  %v6216_v60 = vrot.slane %v279_v44, %v6120_v14  ;;  %v6219_v61 = vrot.slane %v279_v44, %v6128_v19  ;;  %v6222_v62 = vrot.slane %v279_v44, %v6130_v20 }
  0xa4   : > { %10362 = vst [vmem:[#allocation19_spill] sm:$0xff] %v6207_v57  ;;  %vm636_vm0 = vcmp.ge.f32.partialorder %v6163_v43, %v6166_v45  ;;  %vm684_vm1 = vcmp.ge.f32.partialorder %v6163_v43, %v6169_v46  ;;  %vm732_vm2 = vcmp.ge.f32.partialorder %v6163_v43, %v6172_v47  ;;  %vm780_vm3 = vcmp.ge.f32.partialorder %v6163_v43, %v6175_v48 }
  0xa5   : > { %10363 = vst [vmem:[#allocation20_spill] sm:$0xff] %v6216_v60  ;;  %10364 = vst [vmem:[#allocation21_spill] sm:$0xff] %v6219_v61  ;;  %v4700_v1 = vsel %vm636_vm0, 1.0, %v10073_v0  ;;  %5334 = vmatpush3.bf16.msra.mxu0 %v5333_v31  ;;  %v4716_v2 = vsel %vm684_vm1, 1.0, %v10073_v0  ;;  %v4732_v3 = vsel %vm732_vm2, 1.0, %v10073_v0  ;;  %v4748_v4 = vsel %vm780_vm3, 1.0, %v10073_v0 }
  0xa6   : > { %10365 = vst [vmem:[#allocation22_spill] sm:$0xff] %v6222_v62  ;;  %vm828_vm4 = vcmp.ge.f32.partialorder %v6163_v43, %v6178_v49  ;;  %5366 = vmatpush3.bf16.msra.mxu1 %v5365_v32  ;;  %5336 = vmatprep.subr.bf16.mxu0 %v5335_v36  ;;  %v1212_v6 = vsub.f32 %v4700_v1, %v4716_v2  ;;  %5565 = vpow2.f32 %v6213_v59 }
  0xa7   : > { %v6239_v5 = vsel %vm828_vm4, 1.0, %v10073_v0  ;;  %v1228_v7 = vsub.f32 %v4716_v2, %v4732_v3  ;;  %v1244_v8 = vsub.f32 %v4732_v3, %v4748_v4  ;;  %5368 = vmatprep.subr.bf16.mxu1 %v5367_v37  ;;  %v6254_v15 = vrot.slane %v280_v63, %v6130_v20  ;;  %v282_v2 = vld [vmem:[#allocation7 + $0x10] sm:$0xff] }
  0xa8   : > { %v6242_v9 = vsub.f32 %v4748_v4, %v6239_v5  ;;  %v6263_v18 = vrot.slane %v280_v63, %v6141_v28  ;;  %v1392_v23 = vmul.f32 %v6245_v10, %v6188_v52  ;;  %v1428_v24 = vmul.f32 %v6248_v11, %v6196_v54 }
  0xa9   : > { %5338 = vmatpush3.bf16.msra.mxu0 %v5337_v38  ;;  %v1476_v25 = vmul.f32 %v6248_v11, %v6192_v53  ;;  %v1512_v26 = vmul.f32 %v6251_v12, %v6203_v56  ;;  %v1560_v29 = vmul.f32 %v6251_v12, %v6196_v54  ;;  %v1596_v30 = vmul.f32 %v6254_v15, %v6207_v57 }
  0xaa   : > { %5370 = vmatpush3.bf16.msra.mxu1 %v5369_v42  ;;  %v6278_v31 = vrot.slane %v280_v63, %v6159_v41  ;;  %v6281_v32 = vrot.slane %v281_v22, %v6118_v13  ;;  %v1408_v33 = vmul.f32 %v1392_v23, %v1212_v6  ;;  %v1444_v34 = vmul.f32 %v1428_v24, %v1228_v7 }
  0xab   : > { %v1492_v35 = vmul.f32 %v1476_v25, %v1228_v7  ;;  %v1528_v36 = vmul.f32 %v1512_v26, %v1244_v8  ;;  %v1576_v37 = vmul.f32 %v1560_v29, %v1244_v8  ;;  %v1612_v38 = vmul.f32 %v1596_v30, %v6242_v9  ;;  %v283_v8 = vld [vmem:[#allocation7 + $0x18] sm:$0x3f] }
  0xac   : > { %10366 = vst [vmem:[#allocation23_spill] sm:$0xff] %v6281_v32  ;;  %v6285_v39 = vrot.slane %v281_v22, %v6120_v14  ;;  %v6288_v40 = vrot.slane %v281_v22, %v6130_v20  ;;  %v1460_v42 = vsub.f32 %v1408_v33, %v1444_v34  ;;  %v6291_v63 = vrot.slane %v281_v22, %v6132_v21 }
  0xad   : > { %v1544_v44 = vsub.f32 %v1492_v35, %v1528_v36  ;;  %v6294_v1 = vrot.slane %v281_v22, %v6139_v27  ;;  %v1628_v3 = vsub.f32 %v1576_v37, %v1612_v38  ;;  %v6299_v6 = vrot.slane %v281_v22, %v6141_v28 }
  0xae   : > { %10367 = vst [vmem:[#allocation24_spill] sm:$0xff] %v6285_v39  ;;  %v2236_v4 = vmul.f32 %v6288_v40, %v6188_v52  ;;  %v6302_v7 = vrot.slane %v281_v22, %v6159_v41  ;;  %v2272_v23 = vmul.f32 %v6291_v63, %v6203_v56  ;;  %v2320_v24 = vmul.f32 %v6291_v63, %v6192_v53 }
  0xaf   : > { %v2356_v25 = vmul.f32 %v6294_v1, %v6207_v57  ;;  %v6311_v26 = vrot.slane %v282_v2, %v6118_v13  ;;  %v6314_v30 = vrot.slane %v282_v2, %v6120_v14  ;;  %v6317_v22 = vrot.slane %v282_v2, %v6128_v19 }
  0xb0   : > { %v2252_v29 = vmul.f32 %v2236_v4, %v1460_v42  ;;  %v6320_v33 = vrot.slane %v282_v2, %v6130_v20  ;;  %v2288_v34 = vmul.f32 %v2272_v23, %v1544_v44  ;;  %v2336_v35 = vmul.f32 %v2320_v24, %v1544_v44 }
  0xb1   : > { %10368 = vst [vmem:[#allocation25_spill] sm:$0xff] %v6311_v26  ;;  %10369 = vst [vmem:[#allocation26_spill] sm:$0xff] %v6314_v30  ;;  %v2372_v36 = vmul.f32 %v2356_v25, %v1628_v3  ;;  %v6323_v37 = vrot.slane %v282_v2, %v6139_v27  ;;  %v6326_v38 = vrot.slane %v282_v2, %v6141_v28 }
  0xb2   : > { %10370 = vst [vmem:[#allocation27_spill] sm:$0xff] %v6317_v22  ;;  %10371 = vst [vmem:[#allocation28_spill] sm:$0xff] %v6320_v33  ;;  %v6329_v42 = vrot.slane %v282_v2, %v6159_v41  ;;  %v6332_v4 = vrot.slane %v283_v8, %v6118_v13  ;;  %v6335_v0 = vrot.slane %v283_v8, %v6120_v14 }
  0xb3   : > { %v2304_v62 = vsub.f32 %v2252_v29, %v2288_v34  ;;  %v6337_v33 = vsub.f32 %v2336_v35, %v2372_v36  ;;  %v2996_v44 = vmul.f32 %v6323_v37, %v6188_v52  ;;  %v6342_v23 = vrot.slane %v283_v8, %v6128_v19 }
  0xb4   : > { %10372 = vst [vmem:[#allocation29_spill] sm:$0xff] %v6335_v0  ;;  %v3032_v28 = vmul.f32 %v6326_v38, %v6207_v57  ;;  %v6347_v41 = vrot.slane %v283_v8, %v6130_v20  ;;  %v6350_v13 = vrot.slane %v283_v8, %v6132_v21  ;;  %v6354_v14 = vsub.f32 %v6163_v43, %v6181_v50 }
  0xb5   : > { %10373 = vst [vmem:[#allocation30_spill] sm:$0xff] %v6342_v23  ;;  %v3012_v2 = vmul.f32 %v2996_v44, %v2304_v62  ;;  %v6358_v52 = vsub.f32 %v6163_v43, %v6184_v51  ;;  %v6362_v24 = vsub.f32 %v6163_v43, %v6199_v55  ;;  %vm876_vm5 = vcmp.ge.f32.partialorder %v6163_v43, %v6181_v50  ;;  %v6416_v23 = vld [vmem:[#allocation8 + $0x200] sm:$0xff] }
  0xb6   : > { %10374 = vst [vmem:[#allocation31_spill] sm:$0xff] %v6347_v41  ;;  %10375 = vst [vmem:[#allocation32_spill] sm:$0xff] %v6350_v13  ;;  %v3048_v20 = vmul.f32 %v3032_v28, %v6337_v33  ;;  %v10377_v8 = vmov 0.0   ;;  %vm924_vm6 = vcmp.ge.f32.partialorder %v6163_v43, %v6184_v51  ;;  %vm972_vm7 = vcmp.ge.f32.partialorder %v6163_v43, %v6199_v55 }
  0xb7   : > { %10376 = vst [vmem:[#allocation33_spill] sm:$0xff] %v6362_v24  ;;  %v4780_v25 = vsel %vm876_vm5, 1.0, %v10377_v8  ;;  %v4796_v62 = vsel %vm924_vm6, 1.0, %v10377_v8  ;;  %v6374_v29 = vsel %vm972_vm7, 1.0, %v10377_v8  ;;  %v1644_v35 = vmul.f32 %v6254_v15, %v6203_v56 }
  0xb8   : > { %10378 = vst [vmem:[#allocation34_spill] sm:$0xff] %v6374_v29  ;;  %v1276_v34 = vsub.f32 %v6239_v5, %v4780_v25  ;;  %v3064_v36 = vsub.f32 %v3012_v2, %v3048_v20  ;;  %v1292_v44 = vsub.f32 %v4780_v25, %v4796_v62  ;;  %v6380_v28 = vsub.f32 %v4796_v62, %v6374_v29 }
  0xb9   : > { %v1680_v27 = vmul.f32 %v6257_v16, %v6354_v14  ;;  %v1660_v21 = vmul.f32 %v1644_v35, %v6242_v9  ;;  %v1728_v19 = vmul.f32 %v6257_v16, %v6207_v57  ;;  %v1764_v55 = vmul.f32 %v6260_v17, %v6358_v52 }
  0xba   : > { %10379 = vst [vmem:[#allocation35_spill] sm:$0xff] %v6380_v28  ;;  %v1812_v5 = vmul.f32 %v6260_v17, %v6354_v14  ;;  %3876 = vmatprep.mubr.f32.mxu0 %v3064_v36  ;;  %v1848_v20 = vmul.f32 %v6263_v18, %v6362_v24  ;;  %v2404_v25 = vmul.f32 %v6294_v1, %v6196_v54 }
  0xbb   : > { %v1696_v2 = vmul.f32 %v1680_v27, %v1276_v34  ;;  %v2440_v9 = vmul.f32 %v6299_v6, %v6354_v14  ;;  %v1744_v62 = vmul.f32 %v1728_v19, %v1276_v34  ;;  %v1780_v35 = vmul.f32 %v1764_v55, %v1292_v44  ;;  %v3748_v55 = vld [vmem:[#allocation8 + $0x280] sm:$0xff] }
  0xbc   : > { %v1828_v13 = vmul.f32 %v1812_v5, %v1292_v44  ;;  %v2488_v41 = vmul.f32 %v6299_v6, %v6203_v56  ;;  %v1864_v39 = vmul.f32 %v1848_v20, %v6380_v28  ;;  %v2420_v36 = vmul.f32 %v2404_v25, %v1628_v3  ;;  %v3749_v5 = vld [vmem:[#allocation8 + $0x288] sm:$0xff] }
  0xbd   : > { %v1712_v22 = vsub.f32 %v1660_v21, %v1696_v2  ;;  %v2524_v27 = vmul.f32 %v6302_v7, %v6358_v52  ;;  %v1796_v32 = vsub.f32 %v1744_v62, %v1780_v35  ;;  %v2572_v61 = vmul.f32 %v6302_v7, %v6207_v57  ;;  %v3780_v2 = vld [vmem:[#allocation8 + $0x380] sm:$0xff]  ;;  %v3781_v20 = vld [vmem:[#allocation8 + $0x388] sm:$0xff] }
  0xbe   : > { %v2608_v60 = vmul.f32 %v6311_v26, %v6362_v24  ;;  %v3164_v19 = vmul.f32 %v6329_v42, %v6196_v54  ;;  %v6408_v34 = vsub.f32 %v1828_v13, %v1864_v39  ;;  %v3200_v3 = vmul.f32 %v6332_v4, %v6358_v52  ;;  %v6418_v39 = vld [vmem:[#allocation8 + $0x208] sm:$0xff] }
  0xbf   : > { %v2456_v21 = vmul.f32 %v2440_v9, %v1712_v22  ;;  %v2504_v44 = vmul.f32 %v2488_v41, %v1712_v22  ;;  %v2540_v25 = vmul.f32 %v2524_v27, %v1796_v32  ;;  %v2588_v62 = vmul.f32 %v2572_v61, %v1796_v32  ;;  %v6425_v9 = vld [vmem:[%s6096_s9 + $0x8] sm:$0xff] }
  0xc0   : > { %10380 = vst [vmem:[#allocation36_spill] sm:$0xff] %v6408_v34  ;;  %v3248_v35 = vmul.f32 %v6332_v4, %v6203_v56  ;;  %v3284_v54 = vmul.f32 %v6335_v0, %v6362_v24  ;;  %v2624_v22 = vmul.f32 %v2608_v60, %v6408_v34  ;;  %v3080_v41 = vmul.f32 %v6326_v38, %v6192_v53  ;;  %v3764_v24 = vld [vmem:[#allocation8 + $0x300] sm:$0xff]  ;;  %v3765_v0 = vld [vmem:[#allocation8 + $0x308] sm:$0xff] }
  0xc1   : > { %v2472_v13 = vsub.f32 %v2420_v36, %v2456_v21  ;;  %v2556_v61 = vsub.f32 %v2504_v44, %v2540_v25  ;;  %v3116_v56 = vmul.f32 %v6329_v42, %v6354_v14  ;;  %v5371_v32 = vpack.c.bf16 %v3749_v5, %v3748_v55 }
  0xc2   : > { %v5403_v27 = vpack.c.bf16 %v3781_v20, %v3780_v2  ;;  %v6429_v57 = vsub.f32 %v2588_v62, %v2624_v22  ;;  %v3096_v60 = vmul.f32 %v3080_v41, %v6337_v33  ;;  %v6437_v44 = vmul.f32 -1.442695, %v6425_v9 }
  0xc3   : > { %v3180_v36 = vmul.f32 %v3164_v19, %v2472_v13  ;;  %v3216_v21 = vmul.f32 %v3200_v3, %v2556_v61  ;;  %v6434_v53 = vmul.f32 %v3248_v35, %v2556_v61  ;;  %v3132_v30 = vmul.f32 %v3116_v56, %v2472_v13  ;;  %5372 = vmatprep.subr.bf16.mxu0 %v5371_v32  ;;  %v5566_v32 = vpop.eup %5565 }
  0xc4   : > { %10381 = vst [vmem:[#allocation37_spill] sm:$0xff] %v6429_v57  ;;  %5404 = vmatprep.subr.bf16.mxu1 %v5403_v27  ;;  %v6440_v55 = vmul.f32 %v3284_v54, %v6429_v57  ;;  %v5405_v5 = vpack.c.bf16 %v3765_v0, %v3764_v24  ;;  %v401_v19 = vsub.f32 %v6425_v9, %v6166_v45 }
  0xc5   : > { %10382 = vst [vmem:[#allocation38_spill] sm:$0xff] %v6434_v53  ;;  %v6446_v33 = vsub.f32 %v6425_v9, %v6169_v46  ;;  %v3232_v3 = vsub.f32 %v3180_v36, %v3216_v21  ;;  %v3148_v2 = vsub.f32 %v3096_v60, %v3132_v30  ;;  %v6450_v20 = vsub.f32 %v6425_v9, %v6172_v47 }
  0xc6   : > { %10383 = vst [vmem:[#allocation39_spill] sm:$0xff] %v6440_v55  ;;  %v6454_v25 = vsub.f32 %v6425_v9, %v6175_v48  ;;  %v6460_v24 = vsub.f32 %v6425_v9, %v6178_v49  ;;  %vm637_vm8 = vcmp.ge.f32.partialorder %v6425_v9, %v6166_v45  ;;  %vm685_vm9 = vcmp.ge.f32.partialorder %v6425_v9, %v6169_v46 }
  0xc7   : > { %4021 = vmatprep.mubr.f32.mxu1 %v3232_v3  ;;  %v4701_v30 = vsel %vm637_vm8, 1.0, %v10377_v8  ;;  %v4717_v62 = vsel %vm685_vm9, 1.0, %v10377_v8  ;;  %vm733_vm10 = vcmp.ge.f32.partialorder %v6425_v9, %v6172_v47  ;;  %vm781_vm11 = vcmp.ge.f32.partialorder %v6425_v9, %v6175_v48 }
  0xc8   : > { %10384 = vst [vmem:[#allocation40_spill] sm:$0xff] %v6454_v25  ;;  %10385 = vst [vmem:[#allocation41_spill] sm:$0xff] %v6460_v24  ;;  %4022 = vmatmul.mubr.f32.vlgmr.msra.gmra.mrb[0].mxu1 %v3148_v2  ;;  %v4733_v35 = vsel %vm733_vm10, 1.0, %v10377_v8  ;;  %v4749_v54 = vsel %vm781_vm11, 1.0, %v10377_v8  ;;  %vm829_vm12 = vcmp.ge.f32.partialorder %v6425_v9, %v6178_v49  ;;  %v1213_v13 = vsub.f32 %v4701_v30, %v4717_v62 }
  0xc9   : > { %5406 = vmatpush3.bf16.msra.mxu1 %v5405_v5  ;;  %v4765_v22 = vsel %vm829_vm12, 1.0, %v10377_v8  ;;  %v1229_v41 = vsub.f32 %v4717_v62, %v4733_v35  ;;  %v1245_v61 = vsub.f32 %v4733_v35, %v4749_v54  ;;  %v1393_v56 = vmul.f32 %v6245_v10, %v401_v19 }
  0xca   : > { %v1261_v27 = vsub.f32 %v4749_v54, %v4765_v22  ;;  %v1429_v36 = vmul.f32 %v6248_v11, %v6450_v20  ;;  %v1477_v60 = vmul.f32 %v6248_v11, %v6446_v33  ;;  %v1513_v21 = vmul.f32 %v6251_v12, %v6454_v25 }
  0xcb   : > { %v332_v3 = vadd.f32 1.0, %v5566_v32  ;;  %v1409_v2 = vmul.f32 %v1393_v56, %v1213_v13  ;;  %v1561_v5 = vmul.f32 %v6251_v12, %v6450_v20  ;;  %v1597_v30 = vmul.f32 %v6254_v15, %v6460_v24 }
  0xcc   : > { %v1445_v62 = vmul.f32 %v1429_v36, %v1229_v41  ;;  %v1493_v35 = vmul.f32 %v1477_v60, %v1229_v41  ;;  %v1529_v54 = vmul.f32 %v1513_v21, %v1245_v61  ;;  %v2237_v0 = vmul.f32 %v6288_v40, %v401_v19 }
  0xcd   : > { %5567 = vrcp.f32 %v332_v3  ;;  %v1577_v59 = vmul.f32 %v1561_v5, %v1245_v61  ;;  %v1613_v55 = vmul.f32 %v1597_v30, %v1261_v27  ;;  %v2273_v53 = vmul.f32 %v6291_v63, %v6454_v25 }
  0xce   : > { %v1461_v57 = vsub.f32 %v1409_v2, %v1445_v62  ;;  %v1545_v32 = vsub.f32 %v1493_v35, %v1529_v54  ;;  %v2321_v13 = vmul.f32 %v6291_v63, %v6446_v33  ;;  %v2357_v56 = vmul.f32 %v6294_v1, %v6460_v24 }
  0xcf   : > { %v1629_v34 = vsub.f32 %v1577_v59, %v1613_v55  ;;  %v2997_v41 = vmul.f32 %v6323_v37, %v401_v19  ;;  %v3033_v36 = vmul.f32 %v6326_v38, %v6460_v24  ;;  %v6500_v61 = vsub.f32 %v6425_v9, %v6181_v50 }
  0xd0   : > { %v2253_v60 = vmul.f32 %v2237_v0, %v1461_v57  ;;  %v2289_v21 = vmul.f32 %v2273_v53, %v1545_v32  ;;  %v2337_v3 = vmul.f32 %v2321_v13, %v1545_v32  ;;  %v6504_v2 = vsub.f32 %v6425_v9, %v6184_v51 }
  0xd1   : > { %10386 = vst [vmem:[#allocation42_spill] sm:$0xff] %v6500_v61  ;;  %v2373_v5 = vmul.f32 %v2357_v56, %v1629_v34  ;;  %vm877_vm13 = vcmp.ge.f32.partialorder %v6425_v9, %v6181_v50  ;;  %vm925_vm14 = vcmp.ge.f32.partialorder %v6425_v9, %v6184_v51  ;;  %v1645_v59 = vmul.f32 %v6254_v15, %v6454_v25 }
  0xd2   : > { %10387 = vst [vmem:[#allocation43_spill] sm:$0xff] %v6504_v2  ;;  %v2305_v55 = vsub.f32 %v2253_v60, %v2289_v21  ;;  %v4781_v19 = vsel %vm877_vm13, 1.0, %v10377_v8  ;;  %v6514_v57 = vsel %vm925_vm14, 1.0, %v10377_v8  ;;  %v1681_v53 = vmul.f32 %v6257_v16, %v6500_v61 }
  0xd3   : > { %10388 = vst [vmem:[#allocation44_spill] sm:$0xff] %v6514_v57  ;;  %v2389_v0 = vsub.f32 %v2337_v3, %v2373_v5  ;;  %v1277_v30 = vsub.f32 %v4765_v22, %v4781_v19  ;;  %v6519_v62 = vsub.f32 %v4781_v19, %v6514_v57  ;;  %v1661_v35 = vmul.f32 %v1645_v59, %v1261_v27 }
  0xd4   : > { %v3013_v54 = vmul.f32 %v2997_v41, %v2305_v55  ;;  %v1729_v32 = vmul.f32 %v6257_v16, %v6460_v24  ;;  %v1765_v13 = vmul.f32 %v6260_v17, %v6504_v2  ;;  %v2405_v56 = vmul.f32 %v6294_v1, %v6450_v20 }
  0xd5   : > { %10389 = vst [vmem:[#allocation45_spill] sm:$0xff] %v6519_v62  ;;  %v3049_v60 = vmul.f32 %v3033_v36, %v2389_v0  ;;  %v1697_v21 = vmul.f32 %v1681_v53, %v1277_v30  ;;  %v2441_v22 = vmul.f32 %v6299_v6, %v6500_v61  ;;  %v2489_v3 = vmul.f32 %v6299_v6, %v6454_v25 }
  0xd6   : > { %v1745_v27 = vmul.f32 %v1729_v32, %v1277_v30  ;;  %v1781_v41 = vmul.f32 %v1765_v13, %v6519_v62  ;;  %v2421_v5 = vmul.f32 %v2405_v56, %v1629_v34  ;;  %v2525_v59 = vmul.f32 %v6302_v7, %v6504_v2  ;;  %v6545_v30 = vld [vmem:[%s6096_s9 + $0x10] sm:$0xff] }
  0xd7   : > { %v5568_v55 = vpop.eup %5567  ;;  %v3065_v19 = vsub.f32 %v3013_v54, %v3049_v60  ;;  %v1713_v24 = vsub.f32 %v1661_v35, %v1697_v21  ;;  %v3165_v36 = vmul.f32 %v6329_v42, %v6450_v20  ;;  %v3201_v53 = vmul.f32 %v6332_v4, %v6504_v2 }
  0xd8   : > { %v380_v57 = vmul.f32 %v5568_v55, %v6163_v43  ;;  %v6539_v28 = vsub.f32 %v1745_v27, %v1781_v41  ;;  %5569 = vpow2.f32 %v6437_v44  ;;  %v3081_v34 = vmul.f32 %v6326_v38, %v6446_v33 }
  0xd9   : > { %v2457_v32 = vmul.f32 %v2441_v22, %v1713_v24  ;;  %v2505_v54 = vmul.f32 %v2489_v3, %v1713_v24  ;;  %v3117_v35 = vmul.f32 %v6329_v42, %v6500_v61  ;;  %v402_v20 = vsub.f32 %v6545_v30, %v6166_v45 }
  0xda   : > { %10390 = vst [vmem:[#allocation46_spill] sm:$0xff] %v6539_v28  ;;  %3877 = vmatmul.mubr.f32.vlgmr.msra.gmra.mrb[0].mxu0 %v380_v57  ;;  %v2541_v43 = vmul.f32 %v2525_v59, %v6539_v28  ;;  %v3097_v13 = vmul.f32 %v3081_v34, %v2389_v0  ;;  %v6554_v44 = vsub.f32 %v6545_v30, %v6169_v46  ;;  %v6572_v60 = vmul.f32 -1.442695, %v6545_v30 }
  0xdb   : > { %v6558_v33 = vsub.f32 %v6545_v30, %v6172_v47  ;;  %v10391_v24 = vpack.c.bf16 %v6418_v39, %v6416_v23  ;;  %3881 = vmatprep.mubr.f32.mxu0 %v3065_v19  ;;  %v2473_v56 = vsub.f32 %v2421_v5, %v2457_v32  ;;  %v6565_v57 = vsub.f32 %v6545_v30, %v6175_v48 }
  0xdc   : > { %v6569_v0 = vsub.f32 %v6545_v30, %v6178_v49  ;;  %v6574_v21 = vsub.f32 %v2505_v54, %v2541_v43  ;;  %vm638_vm15 = vcmp.ge.f32.partialorder %v6545_v30, %v6166_v45  ;;  %vm686_vm0 = vcmp.ge.f32.partialorder %v6545_v30, %v6169_v46 }
  0xdd   : > { %5374 = vmatpush3.bf16.msra.mxu0 %v10391_v24  ;;  %10392 = vst [vmem:[#allocation47_spill] sm:$0xff] %v6565_v57  ;;  %vm734_vm1 = vcmp.ge.f32.partialorder %v6545_v30, %v6172_v47  ;;  %v3181_v23 = vmul.f32 %v3165_v36, %v2473_v56  ;;  %v3133_v39 = vmul.f32 %v3117_v35, %v2473_v56  ;;  %v4702_v22 = vsel %vm638_vm15, 1.0, %v10377_v8 }
  0xde   : > { %10393 = vst [vmem:[#allocation48_spill] sm:$0xff] %v6569_v0  ;;  %10394 = vst [vmem:[#allocation49_spill] sm:$0xff] %v6574_v21  ;;  %v4718_v3 = vsel %vm686_vm0, 1.0, %v10377_v8  ;;  %v3217_v27 = vmul.f32 %v3201_v53, %v6574_v21  ;;  %v4734_v41 = vsel %vm734_vm1, 1.0, %v10377_v8  ;;  %vm782_vm2 = vcmp.ge.f32.partialorder %v6545_v30, %v6175_v48 }
  0xdf   : > { %vm830_vm3 = vcmp.ge.f32.partialorder %v6545_v30, %v6178_v49  ;;  %v3149_v5 = vsub.f32 %v3097_v13, %v3133_v39  ;;  %v4750_v59 = vsel %vm782_vm2, 1.0, %v10377_v8  ;;  %v1214_v19 = vsub.f32 %v4702_v22, %v4718_v3 }
  0xe0   : > { %v4766_v55 = vsel %vm830_vm3, 1.0, %v10377_v8  ;;  %v3233_v36 = vsub.f32 %v3181_v23, %v3217_v27  ;;  %v1230_v34 = vsub.f32 %v4718_v3, %v4734_v41  ;;  %v1246_v32 = vsub.f32 %v4734_v41, %v4750_v59 }
  0xe1   : > { %v1262_v54 = vsub.f32 %v4750_v59, %v4766_v55  ;;  %v1394_v53 = vmul.f32 %v6245_v10, %v402_v20  ;;  %v1430_v35 = vmul.f32 %v6248_v11, %v6558_v33  ;;  %v1478_v43 = vmul.f32 %v6248_v11, %v6554_v44 }
  0xe2   : > { %v1514_v13 = vmul.f32 %v6251_v12, %v6565_v57  ;;  %v5570_v24 = vpop.eup %5569  ;;  %4026 = vmatprep.mubr.f32.mxu1 %v3233_v36  ;;  %v1562_v56 = vmul.f32 %v6251_v12, %v6558_v33  ;;  %v1598_v23 = vmul.f32 %v6254_v15, %v6569_v0  ;;  %v2238_v39 = vmul.f32 %v6288_v40, %v402_v20 }
  0xe3   : > { %v2274_v22 = vmul.f32 %v6291_v63, %v6565_v57  ;;  %v333_v3 = vadd.f32 1.0, %v5570_v24  ;;  %4027 = vmatmul.mubr.f32.gmra.mrb[2].mxu1 %v3149_v5  ;;  %v1410_v27 = vmul.f32 %v1394_v53, %v1214_v19  ;;  %v1446_v41 = vmul.f32 %v1430_v35, %v1230_v34 }
  0xe4   : > { %v1494_v59 = vmul.f32 %v1478_v43, %v1230_v34  ;;  %v1530_v21 = vmul.f32 %v1514_v13, %v1246_v32  ;;  %v1578_v25 = vmul.f32 %v1562_v56, %v1246_v32  ;;  %v1614_v28 = vmul.f32 %v1598_v23, %v1262_v54 }
  0xe5   : > { %v2322_v36 = vmul.f32 %v6291_v63, %v6554_v44  ;;  %5571 = vrcp.f32 %v333_v3  ;;  %v1462_v2 = vsub.f32 %v1410_v27, %v1446_v41  ;;  %v2358_v62 = vmul.f32 %v6294_v1, %v6569_v0 }
  0xe6   : > { %v2998_v61 = vmul.f32 %v6323_v37, %v402_v20  ;;  %v1546_v29 = vsub.f32 %v1494_v59, %v1530_v21  ;;  %v1630_v26 = vsub.f32 %v1578_v25, %v1614_v28  ;;  %v3034_v5 = vmul.f32 %v6326_v38, %v6569_v0 }
  0xe7   : > { %v6615_v19 = vsub.f32 %v6545_v30, %v6181_v50  ;;  %v2254_v34 = vmul.f32 %v2238_v39, %v1462_v2  ;;  %v6619_v32 = vsub.f32 %v6545_v30, %v6184_v51  ;;  %vm878_vm4 = vcmp.ge.f32.partialorder %v6545_v30, %v6181_v50 }
  0xe8   : > { %vm926_vm5 = vcmp.ge.f32.partialorder %v6545_v30, %v6184_v51  ;;  %v2290_v20 = vmul.f32 %v2274_v22, %v1546_v29  ;;  %v2338_v28 = vmul.f32 %v2322_v36, %v1546_v29  ;;  %v2374_v25 = vmul.f32 %v2358_v62, %v1630_v26 }
  0xe9   : > { %10395 = vst [vmem:[#allocation50_spill] sm:$0xff] %v6619_v32  ;;  %v4782_v21 = vsel %vm878_vm4, 1.0, %v10377_v8  ;;  %v6627_v53 = vsel %vm926_vm5, 1.0, %v10377_v8  ;;  %v1646_v2 = vmul.f32 %v6254_v15, %v6565_v57  ;;  %v1682_v43 = vmul.f32 %v6257_v16, %v6615_v19 }
  0xea   : > { %10396 = vst [vmem:[#allocation51_spill] sm:$0xff] %v6627_v53  ;;  %v1278_v35 = vsub.f32 %v4766_v55, %v4782_v21  ;;  %v2306_v13 = vsub.f32 %v2254_v34, %v2290_v20  ;;  %v2390_v24 = vsub.f32 %v2338_v28, %v2374_v25  ;;  %v6634_v56 = vsub.f32 %v4782_v21, %v6627_v53  ;;  %v3750_v20 = vld [vmem:[#allocation8 + $0x290] sm:$0xff]  ;;  %v3751_v28 = vld [vmem:[#allocation8 + $0x298] sm:$0xff] }
  0xeb   : > { %v1730_v29 = vmul.f32 %v6257_v16, %v6569_v0  ;;  %v1662_v62 = vmul.f32 %v1646_v2, %v1262_v54  ;;  %v1766_v39 = vmul.f32 %v6260_v17, %v6619_v32  ;;  %v2406_v55 = vmul.f32 %v6294_v1, %v6558_v33  ;;  %v3782_v25 = vld [vmem:[#allocation8 + $0x390] sm:$0xff]  ;;  %v3783_v2 = vld [vmem:[#allocation8 + $0x398] sm:$0xff] }
  0xec   : > { %10397 = vst [vmem:[#allocation52_spill] sm:$0xff] %v6634_v56  ;;  %v1698_v23 = vmul.f32 %v1682_v43, %v1278_v35  ;;  %v3014_v22 = vmul.f32 %v2998_v61, %v2306_v13  ;;  %v3050_v3 = vmul.f32 %v3034_v5, %v2390_v24  ;;  %v2442_v41 = vmul.f32 %v6299_v6, %v6615_v19  ;;  %v3735_v43 = vld [vmem:[#allocation8 + $0x218] sm:$0xff] }
  0xed   : > { %v1746_v27 = vmul.f32 %v1730_v29, %v1278_v35  ;;  %v1782_v36 = vmul.f32 %v1766_v39, %v6634_v56  ;;  %v2422_v34 = vmul.f32 %v2406_v55, %v1630_v26  ;;  %v2490_v54 = vmul.f32 %v6299_v6, %v6565_v57  ;;  %v3734_v26 = vld [vmem:[#allocation8 + $0x210] sm:$0xff]  ;;  %v3767_v55 = vld [vmem:[#allocation8 + $0x318] sm:$0xff] }
  0xee   : > { %v1714_v59 = vsub.f32 %v1662_v62, %v1698_v23  ;;  %v3066_v21 = vsub.f32 %v3014_v22, %v3050_v3  ;;  %v2526_v61 = vmul.f32 %v6302_v7, %v6619_v32  ;;  %v3166_v5 = vmul.f32 %v6329_v42, %v6558_v33  ;;  %v3766_v39 = vld [vmem:[#allocation8 + $0x310] sm:$0xff]  ;;  %v6657_v22 = vld [vmem:[%s6096_s9 + $0x18] sm:$0xff] }
  0xef   : > { %v3202_v35 = vmul.f32 %v6332_v4, %v6619_v32  ;;  %v5572_v13 = vpop.eup %5571  ;;  %v6653_v29 = vsub.f32 %v1746_v27, %v1782_v36  ;;  %5573 = vpow2.f32 %v6572_v60  ;;  %v3082_v3 = vmul.f32 %v6326_v38, %v6554_v44  ;;  %v6665_v32 = vld [vmem:[%s6096_s9 + $0x20] sm:$0xff] }
  0xf0   : > { %v2458_v62 = vmul.f32 %v2442_v41, %v1714_v59  ;;  %v2506_v23 = vmul.f32 %v2490_v54, %v1714_v59  ;;  %v381_v33 = vmul.f32 %v5572_v13, %v6425_v9  ;;  %v3118_v57 = vmul.f32 %v6329_v42, %v6615_v19 }
  0xf1   : > { %10398 = vst [vmem:[#allocation53_spill] sm:$0xff] %v6653_v29  ;;  %v5375_v0 = vpack.c.bf16 %v3751_v28, %v3750_v20  ;;  %v2542_v41 = vmul.f32 %v2526_v61, %v6653_v29  ;;  %v5407_v59 = vpack.c.bf16 %v3783_v2, %v3782_v25  ;;  %v5377_v60 = vpack.c.bf16 %v3735_v43, %v3734_v26 }
  0xf2   : > { %v2474_v27 = vsub.f32 %v2422_v34, %v2458_v62  ;;  %3882 = vmatmul.mubr.f32.gmra.mrb[2].mxu0 %v381_v33  ;;  %v3098_v36 = vmul.f32 %v3082_v3, %v2390_v24  ;;  %v5409_v54 = vpack.c.bf16 %v3767_v55, %v3766_v39  ;;  %v403_v9 = vsub.f32 %v6657_v22, %v6166_v45 }
  0xf3   : > { %5376 = vmatprep.subr.bf16.mxu0 %v5375_v0  ;;  %v4687_v44 = vmul.f32 -1.442695, %v6657_v22  ;;  %3886 = vmatprep.mubr.f32.mxu0 %v3066_v21  ;;  %v6671_v13 = vsub.f32 %v2506_v23, %v2542_v41  ;;  %v6674_v34 = vmul.f32 -1.442695, %v6665_v32  ;;  %v6678_v0 = vsub.f32 %v6657_v22, %v6169_v46 }
  0xf4   : > { %v3182_v20 = vmul.f32 %v3166_v5, %v2474_v27  ;;  %v3134_v28 = vmul.f32 %v3118_v57, %v2474_v27  ;;  %5408 = vmatprep.subr.bf16.mxu1 %v5407_v59  ;;  %5378 = vmatpush3.bf16.msra.mxu0 %v5377_v60  ;;  %v6682_v24 = vsub.f32 %v6657_v22, %v6172_v47 }
  0xf5   : > { %10399 = vst [vmem:[#allocation54_spill] sm:$0xff] %v6671_v13  ;;  %5410 = vmatpush3.bf16.msra.mxu1 %v5409_v54  ;;  %v6686_v25 = vsub.f32 %v6657_v22, %v6175_v48  ;;  %5575 = vpow2.f32 %v4687_v44  ;;  %v3218_v57 = vmul.f32 %v3202_v35, %v6671_v13  ;;  %v6691_v61 = vsub.f32 %v6657_v22, %v6178_v49 }
  0xf6   : > { %v3150_v21 = vsub.f32 %v3098_v36, %v3134_v28  ;;  %vm639_vm6 = vcmp.ge.f32.partialorder %v6657_v22, %v6166_v45  ;;  %vm687_vm7 = vcmp.ge.f32.partialorder %v6657_v22, %v6169_v46  ;;  %vm735_vm8 = vcmp.ge.f32.partialorder %v6657_v22, %v6172_v47 }
  0xf7   : > { %10400 = vst [vmem:[#allocation55_spill] sm:$0xff] %v6686_v25  ;;  %10401 = vst [vmem:[#allocation56_spill] sm:$0xff] %v6691_v61  ;;  %v4703_v5 = vsel %vm639_vm6, 1.0, %v10377_v8  ;;  %vm783_vm9 = vcmp.ge.f32.partialorder %v6657_v22, %v6175_v48  ;;  %v3234_v35 = vsub.f32 %v3182_v20, %v3218_v57  ;;  %v4719_v2 = vsel %vm687_vm7, 1.0, %v10377_v8 }
  0xf8   : > { %v4735_v26 = vsel %vm735_vm8, 1.0, %v10377_v8  ;;  %v4751_v43 = vsel %vm783_vm9, 1.0, %v10377_v8  ;;  %vm831_vm10 = vcmp.ge.f32.partialorder %v6657_v22, %v6178_v49  ;;  %v1215_v62 = vsub.f32 %v4703_v5, %v4719_v2 }
  0xf9   : > { %v1231_v23 = vsub.f32 %v4719_v2, %v4735_v26  ;;  %v1247_v39 = vsub.f32 %v4735_v26, %v4751_v43  ;;  %v5574_v55 = vpop.eup %5573  ;;  %4031 = vmatprep.mubr.f32.mxu1 %v3234_v35  ;;  %v4767_v33 = vsel %vm831_vm10, 1.0, %v10377_v8  ;;  %v1395_v3 = vmul.f32 %v6245_v10, %v403_v9 }
  0xfa   : > { %v1431_v27 = vmul.f32 %v6248_v11, %v6682_v24  ;;  %v1479_v41 = vmul.f32 %v6248_v11, %v6678_v0  ;;  %v334_v59 = vadd.f32 1.0, %v5574_v55  ;;  %4032 = vmatmul.mubr.f32.gmra.mrb[4].mxu1 %v3150_v21  ;;  %v1263_v60 = vsub.f32 %v4751_v43, %v4767_v33 }
  0xfb   : > { %v1515_v36 = vmul.f32 %v6251_v12, %v6686_v25  ;;  %v1563_v54 = vmul.f32 %v6251_v12, %v6682_v24  ;;  %v1411_v44 = vmul.f32 %v1395_v3, %v1215_v62  ;;  %v1599_v57 = vmul.f32 %v6254_v15, %v6691_v61 }
  0xfc   : > { %v1447_v20 = vmul.f32 %v1431_v27, %v1231_v23  ;;  %v1495_v28 = vmul.f32 %v1479_v41, %v1231_v23  ;;  %5577 = vrcp.f32 %v334_v59  ;;  %v2239_v2 = vmul.f32 %v6288_v40, %v403_v9 }
  0xfd   : > { %v1531_v5 = vmul.f32 %v1515_v36, %v1247_v39  ;;  %v1579_v35 = vmul.f32 %v1563_v54, %v1247_v39  ;;  %v1615_v21 = vmul.f32 %v1599_v57, %v1263_v60  ;;  %v2275_v43 = vmul.f32 %v6291_v63, %v6686_v25 }
  0xfe   : > { %v1463_v26 = vsub.f32 %v1411_v44, %v1447_v20  ;;  %v2323_v55 = vmul.f32 %v6291_v63, %v6678_v0  ;;  %v2359_v23 = vmul.f32 %v6294_v1, %v6691_v61  ;;  %v2999_v3 = vmul.f32 %v6323_v37, %v403_v9 }
  0xff   : > { %v5576_v13 = vpop.eup %5575  ;;  %v1547_v62 = vsub.f32 %v1495_v28, %v1531_v5  ;;  %v3035_v39 = vmul.f32 %v6326_v38, %v6691_v61  ;;  %v1631_v27 = vsub.f32 %v1579_v35, %v1615_v21  ;;  %v6731_v59 = vsub.f32 %v6657_v22, %v6181_v50 }
 0x100   : > { %v2255_v41 = vmul.f32 %v2239_v2, %v1463_v26  ;;  %v6735_v36 = vsub.f32 %v6657_v22, %v6184_v51  ;;  %vm879_vm11 = vcmp.ge.f32.partialorder %v6657_v22, %v6181_v50  ;;  %vm927_vm12 = vcmp.ge.f32.partialorder %v6657_v22, %v6184_v51 }
 0x101   : > { %10402 = vst [vmem:[#allocation57_spill] sm:$0xff] %v6731_v59  ;;  %v2291_v54 = vmul.f32 %v2275_v43, %v1547_v62  ;;  %v2339_v44 = vmul.f32 %v2323_v55, %v1547_v62  ;;  %v2375_v9 = vmul.f32 %v2359_v23, %v1631_v27  ;;  %v4783_v20 = vsel %vm879_vm11, 1.0, %v10377_v8 }
 0x102   : > { %10403 = vst [vmem:[#allocation58_spill] sm:$0xff] %v6735_v36  ;;  %v6743_v28 = vsel %vm927_vm12, 1.0, %v10377_v8  ;;  %v1647_v57 = vmul.f32 %v6254_v15, %v6686_v25  ;;  %v1279_v35 = vsub.f32 %v4767_v33, %v4783_v20  ;;  %v1683_v26 = vmul.f32 %v6257_v16, %v6731_v59 }
 0x103   : > { %10404 = vst [vmem:[#allocation59_spill] sm:$0xff] %v6743_v28  ;;  %v2307_v5 = vsub.f32 %v2255_v41, %v2291_v54  ;;  %v6748_v2 = vsub.f32 %v4783_v20, %v6743_v28  ;;  %v2391_v21 = vsub.f32 %v2339_v44, %v2375_v9  ;;  %v1731_v55 = vmul.f32 %v6257_v16, %v6691_v61 }
 0x104   : > { %v1663_v43 = vmul.f32 %v1647_v57, %v1263_v60  ;;  %v1767_v62 = vmul.f32 %v6260_v17, %v6735_v36  ;;  %v1699_v29 = vmul.f32 %v1683_v26, %v1279_v35  ;;  %v2407_v41 = vmul.f32 %v6294_v1, %v6682_v24 }
 0x105   : > { %10405 = vst [vmem:[#allocation60_spill] sm:$0xff] %v6748_v2  ;;  %v3015_v23 = vmul.f32 %v2999_v3, %v2307_v5  ;;  %v2443_v33 = vmul.f32 %v6299_v6, %v6731_v59  ;;  %v3051_v54 = vmul.f32 %v3035_v39, %v2391_v21  ;;  %v1747_v20 = vmul.f32 %v1731_v55, %v1279_v35 }
 0x106   : > { %v1783_v28 = vmul.f32 %v1767_v62, %v6748_v2  ;;  %v2491_v60 = vmul.f32 %v6299_v6, %v6686_v25  ;;  %v5578_v44 = vpop.eup %5577  ;;  %v1715_v9 = vsub.f32 %v1663_v43, %v1699_v29  ;;  %v2423_v57 = vmul.f32 %v2407_v41, %v1631_v27 }
 0x107   : > { %v2527_v3 = vmul.f32 %v6302_v7, %v6735_v36  ;;  %v3167_v5 = vmul.f32 %v6329_v42, %v6682_v24  ;;  %v382_v26 = vmul.f32 %v5578_v44, %v6545_v30  ;;  %v3067_v61 = vsub.f32 %v3015_v23, %v3051_v54 }
 0x108   : > { %v6768_v56 = vsub.f32 %v1747_v20, %v1783_v28  ;;  %v3203_v39 = vmul.f32 %v6332_v4, %v6735_v36  ;;  %v2459_v35 = vmul.f32 %v2443_v33, %v1715_v9  ;;  %v2507_v55 = vmul.f32 %v2491_v60, %v1715_v9 }
 0x109   : > { %v335_v62 = vadd.f32 1.0, %v5576_v13  ;;  %v3083_v29 = vmul.f32 %v6326_v38, %v6678_v0  ;;  %3887 = vmatmul.mubr.f32.gmra.mrb[4].mxu0 %v382_v26  ;;  %v3119_v24 = vmul.f32 %v6329_v42, %v6731_v59  ;;  %v404_v30 = vsub.f32 %v6665_v32, %v6166_v45 }
 0x10a   : > { %10406 = vst [vmem:[#allocation61_spill] sm:$0xff] %v6768_v56  ;;  %v2543_v27 = vmul.f32 %v2527_v3, %v6768_v56  ;;  %v6781_v28 = vsub.f32 %v6665_v32, %v6169_v46  ;;  %3891 = vmatprep.mubr.f32.mxu0 %v3067_v61  ;;  %v2475_v43 = vsub.f32 %v2423_v57, %v2459_v35 }
 0x10b   : > { %5579 = vrcp.f32 %v335_v62  ;;  %v3099_v13 = vmul.f32 %v3083_v29, %v2391_v21  ;;  %v6785_v0 = vsub.f32 %v6665_v32, %v6172_v47  ;;  %v6791_v41 = vsub.f32 %v6665_v32, %v6175_v48 }
 0x10c   : > { %v6787_v23 = vsub.f32 %v2507_v55, %v2543_v27  ;;  %v6795_v33 = vsub.f32 %v6665_v32, %v6178_v49  ;;  %vm640_vm13 = vcmp.ge.f32.partialorder %v6665_v32, %v6166_v45  ;;  %v3183_v61 = vmul.f32 %v3167_v5, %v2475_v43 }
 0x10d   : > { %10408 = vst [vmem:[#allocation63_spill] sm:$0xff] %v6791_v41  ;;  %v3135_v54 = vmul.f32 %v3119_v24, %v2475_v43  ;;  %v4704_v21 = vsel %vm640_vm13, 1.0, %v10377_v8  ;;  %vm688_vm14 = vcmp.ge.f32.partialorder %v6665_v32, %v6169_v46  ;;  %vm736_vm15 = vcmp.ge.f32.partialorder %v6665_v32, %v6172_v47 }
 0x10e   : > { %10407 = vst [vmem:[#allocation62_spill] sm:$0xff] %v6787_v23  ;;  %10409 = vst [vmem:[#allocation64_spill] sm:$0xff] %v6795_v33  ;;  %v3219_v20 = vmul.f32 %v3203_v39, %v6787_v23  ;;  %v4720_v60 = vsel %vm688_vm14, 1.0, %v10377_v8  ;;  %vm784_vm0 = vcmp.ge.f32.partialorder %v6665_v32, %v6175_v48  ;;  %v4736_v9 = vsel %vm736_vm15, 1.0, %v10377_v8 }
 0x10f   : > { %v3151_v44 = vsub.f32 %v3099_v13, %v3135_v54  ;;  %v4752_v57 = vsel %vm784_vm0, 1.0, %v10377_v8  ;;  %vm832_vm1 = vcmp.ge.f32.partialorder %v6665_v32, %v6178_v49  ;;  %v1216_v26 = vsub.f32 %v4704_v21, %v4720_v60 }
 0x110   : > { %v3235_v3 = vsub.f32 %v3183_v61, %v3219_v20  ;;  %v4768_v5 = vsel %vm832_vm1, 1.0, %v10377_v8  ;;  %v1232_v39 = vsub.f32 %v4720_v60, %v4736_v9  ;;  %v1248_v35 = vsub.f32 %v4736_v9, %v4752_v57 }
 0x111   : > { %v1264_v55 = vsub.f32 %v4752_v57, %v4768_v5  ;;  %v1396_v62 = vmul.f32 %v6245_v10, %v404_v30  ;;  %v1432_v29 = vmul.f32 %v6248_v11, %v6785_v0  ;;  %v1480_v27 = vmul.f32 %v6248_v11, %v6781_v28 }
 0x112   : > { %4036 = vmatprep.mubr.f32.mxu1 %v3235_v3  ;;  %v1516_v24 = vmul.f32 %v6251_v12, %v6791_v41  ;;  %v1564_v43 = vmul.f32 %v6251_v12, %v6785_v0  ;;  %v1600_v13 = vmul.f32 %v6254_v15, %v6795_v33  ;;  %v2240_v21 = vmul.f32 %v6288_v40, %v404_v30 }
 0x113   : > { %4037 = vmatmul.mubr.f32.gmra.mrb[6].mxu1 %v3151_v44  ;;  %v1412_v61 = vmul.f32 %v1396_v62, %v1216_v26  ;;  %v1448_v54 = vmul.f32 %v1432_v29, %v1232_v39  ;;  %v2276_v20 = vmul.f32 %v6291_v63, %v6791_v41  ;;  %v1496_v60 = vmul.f32 %v1480_v27, %v1232_v39 }
 0x114   : > { %v1532_v9 = vmul.f32 %v1516_v24, %v1248_v35  ;;  %v1580_v57 = vmul.f32 %v1564_v43, %v1248_v35  ;;  %v1616_v3 = vmul.f32 %v1600_v13, %v1264_v55  ;;  %v2324_v56 = vmul.f32 %v6291_v63, %v6781_v28 }
 0x115   : > { %v5580_v23 = vpop.eup %5579  ;;  %v1464_v25 = vsub.f32 %v1412_v61, %v1448_v54  ;;  %v2360_v2 = vmul.f32 %v6294_v1, %v6795_v33  ;;  %v3000_v44 = vmul.f32 %v6323_v37, %v404_v30  ;;  %v3036_v39 = vmul.f32 %v6326_v38, %v6795_v33 }
 0x116   : > { %v383_v26 = vmul.f32 %v5580_v23, %v6657_v22  ;;  %v1548_v62 = vsub.f32 %v1496_v60, %v1532_v9  ;;  %v1632_v29 = vsub.f32 %v1580_v57, %v1616_v3  ;;  %v6837_v35 = vsub.f32 %v6665_v32, %v6181_v50 }
 0x117   : > { %v2256_v27 = vmul.f32 %v2240_v21, %v1464_v25  ;;  %v6841_v24 = vsub.f32 %v6665_v32, %v6184_v51  ;;  %vm880_vm2 = vcmp.ge.f32.partialorder %v6665_v32, %v6181_v50  ;;  %vm928_vm3 = vcmp.ge.f32.partialorder %v6665_v32, %v6184_v51 }
 0x118   : > { %10410 = vst [vmem:[#allocation65_spill] sm:$0xff] %v6837_v35  ;;  %3892 = vmatmul.mubr.f32.gmra.mrb[6].mxu0 %v383_v26  ;;  %v2292_v30 = vmul.f32 %v2276_v20, %v1548_v62  ;;  %v2340_v22 = vmul.f32 %v2324_v56, %v1548_v62  ;;  %v2376_v23 = vmul.f32 %v2360_v2, %v1632_v29  ;;  %v4784_v43 = vsel %vm880_vm2, 1.0, %v10377_v8 }
 0x119   : > { %10411 = vst [vmem:[#allocation66_spill] sm:$0xff] %v6841_v24  ;;  %v1280_v25 = vsub.f32 %v4768_v5, %v4784_v43  ;;  %v1648_v13 = vmul.f32 %v6254_v15, %v6791_v41  ;;  %v1684_v61 = vmul.f32 %v6257_v16, %v6837_v35  ;;  %v6853_v60 = vsel %vm928_vm3, 1.0, %v10377_v8 }
 0x11a   : > { %v2308_v54 = vsub.f32 %v2256_v27, %v2292_v30  ;;  %v2392_v21 = vsub.f32 %v2340_v22, %v2376_v23  ;;  %10412 = vst [vmem:[#allocation67_spill] sm:$0xff] %v6853_v60  ;;  %v1732_v56 = vmul.f32 %v6257_v16, %v6795_v33  ;;  %v6858_v2 = vsub.f32 %v4784_v43, %v6853_v60  ;;  %v3753_v43 = vld [vmem:[#allocation8 + $0x2a8] sm:$0xff] }
 0x11b   : > { %v1664_v20 = vmul.f32 %v1648_v13, %v1264_v55  ;;  %v1700_v9 = vmul.f32 %v1684_v61, %v1280_v25  ;;  %v1768_v5 = vmul.f32 %v6260_v17, %v6841_v24  ;;  %v2408_v62 = vmul.f32 %v6294_v1, %v6785_v0  ;;  %v3752_v55 = vld [vmem:[#allocation8 + $0x2a0] sm:$0xff] }
 0x11c   : > { %10413 = vst [vmem:[#allocation68_spill] sm:$0xff] %v6858_v2  ;;  %v3016_v57 = vmul.f32 %v3000_v44, %v2308_v54  ;;  %v3052_v3 = vmul.f32 %v3036_v39, %v2392_v21  ;;  %v1748_v26 = vmul.f32 %v1732_v56, %v1280_v25  ;;  %v2444_v22 = vmul.f32 %v6299_v6, %v6837_v35  ;;  %v3784_v13 = vld [vmem:[#allocation8 + $0x3a0] sm:$0xff]  ;;  %v3785_v25 = vld [vmem:[#allocation8 + $0x3a8] sm:$0xff] }
 0x11d   : > { %v1716_v27 = vsub.f32 %v1664_v20, %v1700_v9  ;;  %v1784_v30 = vmul.f32 %v1768_v5, %v6858_v2  ;;  %v2492_v23 = vmul.f32 %v6299_v6, %v6791_v41  ;;  %v2424_v33 = vmul.f32 %v2408_v62, %v1632_v29  ;;  %v3736_v54 = vld [vmem:[#allocation8 + $0x220] sm:$0xff]  ;;  %v3737_v56 = vld [vmem:[#allocation8 + $0x228] sm:$0xff]  ;;  %v6883_v62 = vld [vmem:[%s6096_s9 + $0x28] sm:$0xff] }
 0x11e   : > { %v3068_v61 = vsub.f32 %v3016_v57, %v3052_v3  ;;  %v2528_v44 = vmul.f32 %v6302_v7, %v6841_v24  ;;  %v3168_v39 = vmul.f32 %v6329_v42, %v6785_v0  ;;  %v3204_v41 = vmul.f32 %v6332_v4, %v6841_v24  ;;  %v3768_v2 = vld [vmem:[#allocation8 + $0x320] sm:$0xff]  ;;  %v3769_v57 = vld [vmem:[#allocation8 + $0x328] sm:$0xff] }
 0x11f   : > { %v6873_v20 = vsub.f32 %v1748_v26, %v1784_v30  ;;  %v2460_v9 = vmul.f32 %v2444_v22, %v1716_v27  ;;  %v2508_v5 = vmul.f32 %v2492_v23, %v1716_v27  ;;  %5581 = vpow2.f32 %v6674_v34 }
 0x120   : > { %3896 = vmatprep.mubr.f32.mxu0 %v3068_v61  ;;  %v3084_v29 = vmul.f32 %v6326_v38, %v6781_v28  ;;  %v3120_v0 = vmul.f32 %v6329_v42, %v6837_v35  ;;  %v5379_v3 = vpack.c.bf16 %v3753_v43, %v3752_v55  ;;  %v5411_v30 = vpack.c.bf16 %v3785_v25, %v3784_v13 }
 0x121   : > { %10414 = vst [vmem:[#allocation69_spill] sm:$0xff] %v6873_v20  ;;  %v2476_v26 = vsub.f32 %v2424_v33, %v2460_v9  ;;  %v2544_v27 = vmul.f32 %v2528_v44, %v6873_v20  ;;  %v5381_v22 = vpack.c.bf16 %v3737_v56, %v3736_v54  ;;  %v5413_v24 = vpack.c.bf16 %v3769_v57, %v3768_v2 }
 0x122   : > { %v3100_v23 = vmul.f32 %v3084_v29, %v2392_v21  ;;  %5380 = vmatprep.subr.bf16.mxu0 %v5379_v3  ;;  %v405_v34 = vsub.f32 %v6883_v62, %v6166_v45  ;;  %v6890_v28 = vsub.f32 %v6883_v62, %v6169_v46  ;;  %5412 = vmatprep.subr.bf16.mxu1 %v5411_v30  ;;  %v6895_v33 = vmul.f32 -1.442695, %v6883_v62 }
 0x123   : > { %v6892_v61 = vsub.f32 %v2508_v5, %v2544_v27  ;;  %v3184_v55 = vmul.f32 %v3168_v39, %v2476_v26  ;;  %v3136_v43 = vmul.f32 %v3120_v0, %v2476_v26  ;;  %5382 = vmatpush3.bf16.msra.mxu0 %v5381_v22  ;;  %5414 = vmatpush3.bf16.msra.mxu1 %v5413_v24 }
 0x124   : > { %v6899_v21 = vsub.f32 %v6883_v62, %v6172_v47  ;;  %v6903_v2 = vsub.f32 %v6883_v62, %v6175_v48  ;;  %v6907_v13 = vsub.f32 %v6883_v62, %v6178_v49  ;;  %vm641_vm4 = vcmp.ge.f32.partialorder %v6883_v62, %v6166_v45 }
 0x125   : > { %10415 = vst [vmem:[#allocation70_spill] sm:$0xff] %v6892_v61  ;;  %v3220_v44 = vmul.f32 %v3204_v41, %v6892_v61  ;;  %v3152_v39 = vsub.f32 %v3100_v23, %v3136_v43  ;;  %v4705_v24 = vsel %vm641_vm4, 1.0, %v10377_v8  ;;  %vm689_vm5 = vcmp.ge.f32.partialorder %v6883_v62, %v6169_v46 }
 0x126   : > { %10416 = vst [vmem:[#allocation71_spill] sm:$0xff] %v6903_v2  ;;  %10417 = vst [vmem:[#allocation72_spill] sm:$0xff] %v6907_v13  ;;  %v4721_v25 = vsel %vm689_vm5, 1.0, %v10377_v8  ;;  %vm737_vm6 = vcmp.ge.f32.partialorder %v6883_v62, %v6172_v47  ;;  %vm785_vm7 = vcmp.ge.f32.partialorder %v6883_v62, %v6175_v48  ;;  %vm833_vm8 = vcmp.ge.f32.partialorder %v6883_v62, %v6178_v49 }
 0x127   : > { %v3236_v54 = vsub.f32 %v3184_v55, %v3220_v44  ;;  %v4737_v41 = vsel %vm737_vm6, 1.0, %v10377_v8  ;;  %v4753_v56 = vsel %vm785_vm7, 1.0, %v10377_v8  ;;  %v4769_v9 = vsel %vm833_vm8, 1.0, %v10377_v8 }
 0x128   : > { %v1217_v5 = vsub.f32 %v4705_v24, %v4721_v25  ;;  %v1233_v57 = vsub.f32 %v4721_v25, %v4737_v41  ;;  %v1249_v29 = vsub.f32 %v4737_v41, %v4753_v56  ;;  %v1265_v0 = vsub.f32 %v4753_v56, %v4769_v9 }
 0x129   : > { %4041 = vmatprep.mubr.f32.mxu1 %v3236_v54  ;;  %v1397_v3 = vmul.f32 %v6245_v10, %v405_v34  ;;  %v1433_v26 = vmul.f32 %v6248_v11, %v6899_v21  ;;  %v1481_v27 = vmul.f32 %v6248_v11, %v6890_v28  ;;  %v1517_v30 = vmul.f32 %v6251_v12, %v6903_v2  ;;  %v5582_v22 = vpop.eup %5581 }
 0x12a   : > { %4042 = vmatmul.mubr.f32.gmra.mrb[8].mxu1 %v3152_v39  ;;  %v1565_v23 = vmul.f32 %v6251_v12, %v6899_v21  ;;  %v1601_v55 = vmul.f32 %v6254_v15, %v6907_v13  ;;  %v2241_v43 = vmul.f32 %v6288_v40, %v405_v34  ;;  %v2277_v44 = vmul.f32 %v6291_v63, %v6903_v2 }
 0x12b   : > { %v336_v24 = vadd.f32 1.0, %v5582_v22  ;;  %v1413_v25 = vmul.f32 %v1397_v3, %v1217_v5  ;;  %v1449_v54 = vmul.f32 %v1433_v26, %v1233_v57  ;;  %v1497_v41 = vmul.f32 %v1481_v27, %v1233_v57 }
 0x12c   : > { %v1533_v56 = vmul.f32 %v1517_v30, %v1249_v29  ;;  %v1581_v61 = vmul.f32 %v1565_v23, %v1249_v29  ;;  %v1617_v20 = vmul.f32 %v1601_v55, %v1265_v0  ;;  %v2325_v39 = vmul.f32 %v6291_v63, %v6890_v28 }
 0x12d   : > { %5583 = vrcp.f32 %v336_v24  ;;  %v1465_v60 = vsub.f32 %v1413_v25, %v1449_v54  ;;  %v2361_v35 = vmul.f32 %v6294_v1, %v6907_v13  ;;  %v3001_v36 = vmul.f32 %v6323_v37, %v405_v34 }
 0x12e   : > { %v1549_v59 = vsub.f32 %v1497_v41, %v1533_v56  ;;  %v1633_v53 = vsub.f32 %v1581_v61, %v1617_v20  ;;  %v3037_v5 = vmul.f32 %v6326_v38, %v6907_v13  ;;  %v6948_v57 = vsub.f32 %v6883_v62, %v6181_v50 }
 0x12f   : > { %v2257_v29 = vmul.f32 %v2241_v43, %v1465_v60  ;;  %v6952_v3 = vsub.f32 %v6883_v62, %v6184_v51  ;;  %vm881_vm9 = vcmp.ge.f32.partialorder %v6883_v62, %v6181_v50  ;;  %vm929_vm10 = vcmp.ge.f32.partialorder %v6883_v62, %v6184_v51 }
 0x130   : > { %10418 = vst [vmem:[#allocation73_spill] sm:$0xff] %v6948_v57  ;;  %v2293_v34 = vmul.f32 %v2277_v44, %v1549_v59  ;;  %v2341_v20 = vmul.f32 %v2325_v39, %v1549_v59  ;;  %v2377_v61 = vmul.f32 %v2361_v35, %v1633_v53  ;;  %v4785_v26 = vsel %vm881_vm9, 1.0, %v10377_v8 }
 0x131   : > { %10419 = vst [vmem:[#allocation74_spill] sm:$0xff] %v6952_v3  ;;  %v6960_v27 = vsel %vm929_vm10, 1.0, %v10377_v8  ;;  %v1281_v30 = vsub.f32 %v4769_v9, %v4785_v26  ;;  %v1649_v60 = vmul.f32 %v6254_v15, %v6903_v2  ;;  %v1685_v22 = vmul.f32 %v6257_v16, %v6948_v57 }
 0x132   : > { %10420 = vst [vmem:[#allocation75_spill] sm:$0xff] %v6960_v27  ;;  %v2309_v23 = vsub.f32 %v2257_v29, %v2293_v34  ;;  %v2393_v55 = vsub.f32 %v2341_v20, %v2377_v61  ;;  %v6967_v43 = vsub.f32 %v4785_v26, %v6960_v27  ;;  %v1733_v59 = vmul.f32 %v6257_v16, %v6907_v13  ;;  %v7107_v27 = vld [vmem:[%s6096_s9 + $0x40] sm:$0xff] }
 0x133   : > { %v1665_v35 = vmul.f32 %v1649_v60, %v1265_v0  ;;  %v1701_v44 = vmul.f32 %v1685_v22, %v1281_v30  ;;  %v1769_v24 = vmul.f32 %v6260_v17, %v6952_v3  ;;  %v2409_v9 = vmul.f32 %v6294_v1, %v6899_v21 }
 0x134   : > { %10421 = vst [vmem:[#allocation76_spill] sm:$0xff] %v6967_v43  ;;  %v3017_v25 = vmul.f32 %v3001_v36, %v2309_v23  ;;  %v3053_v54 = vmul.f32 %v3037_v5, %v2393_v55  ;;  %v1749_v41 = vmul.f32 %v1733_v59, %v1281_v30  ;;  %v2445_v56 = vmul.f32 %v6299_v6, %v6948_v57 }
 0x135   : > { %v1717_v39 = vsub.f32 %v1665_v35, %v1701_v44  ;;  %v1785_v29 = vmul.f32 %v1769_v24, %v6967_v43  ;;  %v2425_v34 = vmul.f32 %v2409_v9, %v1633_v53  ;;  %v2493_v0 = vmul.f32 %v6299_v6, %v6903_v2  ;;  %v6990_v53 = vld [vmem:[%s6096_s9 + $0x30] sm:$0xff] }
 0x136   : > { %v3069_v20 = vsub.f32 %v3017_v25, %v3053_v54  ;;  %v2529_v61 = vmul.f32 %v6302_v7, %v6952_v3  ;;  %v3169_v36 = vmul.f32 %v6329_v42, %v6899_v21  ;;  %v3205_v5 = vmul.f32 %v6332_v4, %v6952_v3 }
 0x137   : > { %v5584_v26 = vpop.eup %5583  ;;  %v6986_v30 = vsub.f32 %v1749_v41, %v1785_v29  ;;  %v2461_v60 = vmul.f32 %v2445_v56, %v1717_v39  ;;  %v2509_v22 = vmul.f32 %v2493_v0, %v1717_v39  ;;  %5585 = vpow2.f32 %v6895_v33 }
 0x138   : > { %v384_v23 = vmul.f32 %v5584_v26, %v6665_v32  ;;  %v3085_v59 = vmul.f32 %v6326_v38, %v6890_v28  ;;  %v3121_v21 = vmul.f32 %v6329_v42, %v6948_v57  ;;  %v406_v35 = vsub.f32 %v6990_v53, %v6166_v45 }
 0x139   : > { %10422 = vst [vmem:[#allocation77_spill] sm:$0xff] %v6986_v30  ;;  %v2477_v44 = vsub.f32 %v2425_v34, %v2461_v60  ;;  %v2545_v24 = vmul.f32 %v2529_v61, %v6986_v30  ;;  %v7002_v9 = vsub.f32 %v6990_v53, %v6169_v46  ;;  %v7006_v33 = vsub.f32 %v6990_v53, %v6172_v47 }
 0x13a   : > { %3897 = vmatmul.mubr.f32.gmra.mrb[8].mxu0 %v384_v23  ;;  %v3101_v32 = vmul.f32 %v3085_v59, %v2393_v55  ;;  %v7010_v28 = vsub.f32 %v6990_v53, %v6175_v48  ;;  %v7014_v25 = vsub.f32 %v6990_v53, %v6178_v49  ;;  %vm642_vm11 = vcmp.ge.f32.partialorder %v6990_v53, %v6166_v45 }
 0x13b   : > { %3901 = vmatprep.mubr.f32.mxu0 %v3069_v20  ;;  %v7018_v54 = vsub.f32 %v2509_v22, %v2545_v24  ;;  %v3185_v41 = vmul.f32 %v3169_v36, %v2477_v44  ;;  %v3137_v56 = vmul.f32 %v3121_v21, %v2477_v44  ;;  %v4706_v39 = vsel %vm642_vm11, 1.0, %v10377_v8 }
 0x13c   : > { %10423 = vst [vmem:[#allocation78_spill] sm:$0xff] %v7010_v28  ;;  %10424 = vst [vmem:[#allocation79_spill] sm:$0xff] %v7014_v25  ;;  %vm690_vm12 = vcmp.ge.f32.partialorder %v6990_v53, %v6169_v46  ;;  %vm738_vm13 = vcmp.ge.f32.partialorder %v6990_v53, %v6172_v47  ;;  %vm786_vm14 = vcmp.ge.f32.partialorder %v6990_v53, %v6175_v48 }
 0x13d   : > { %10425 = vst [vmem:[#allocation80_spill] sm:$0xff] %v7018_v54  ;;  %vm834_vm15 = vcmp.ge.f32.partialorder %v6990_v53, %v6178_v49  ;;  %v3221_v55 = vmul.f32 %v3205_v5, %v7018_v54  ;;  %v3153_v29 = vsub.f32 %v3101_v32, %v3137_v56  ;;  %v4722_v34 = vsel %vm690_vm12, 1.0, %v10377_v8 }
 0x13e   : > { %v4738_v0 = vsel %vm738_vm13, 1.0, %v10377_v8  ;;  %v4754_v20 = vsel %vm786_vm14, 1.0, %v10377_v8  ;;  %v4770_v61 = vsel %vm834_vm15, 1.0, %v10377_v8  ;;  %v1218_v36 = vsub.f32 %v4706_v39, %v4722_v34 }
 0x13f   : > { %v1234_v26 = vsub.f32 %v4722_v34, %v4738_v0  ;;  %v3237_v60 = vsub.f32 %v3185_v41, %v3221_v55  ;;  %v1250_v22 = vsub.f32 %v4738_v0, %v4754_v20  ;;  %v1266_v23 = vsub.f32 %v4754_v20, %v4770_v61 }
 0x140   : > { %v1398_v59 = vmul.f32 %v6245_v10, %v406_v35  ;;  %v1434_v21 = vmul.f32 %v6248_v11, %v7006_v33  ;;  %v1482_v5 = vmul.f32 %v6248_v11, %v7002_v9  ;;  %v1518_v44 = vmul.f32 %v6251_v12, %v7010_v28 }
 0x141   : > { %v1566_v24 = vmul.f32 %v6251_v12, %v7006_v33  ;;  %v5586_v32 = vpop.eup %5585  ;;  %4046 = vmatprep.mubr.f32.mxu1 %v3237_v60  ;;  %v1602_v41 = vmul.f32 %v6254_v15, %v7014_v25  ;;  %v2242_v39 = vmul.f32 %v6288_v40, %v406_v35  ;;  %v2278_v55 = vmul.f32 %v6291_v63, %v7010_v28 }
 0x142   : > { %v1414_v56 = vmul.f32 %v1398_v59, %v1218_v36  ;;  %v337_v34 = vadd.f32 1.0, %v5586_v32  ;;  %4047 = vmatmul.mubr.f32.gmra.mrb[10].mxu1 %v3153_v29  ;;  %v1450_v0 = vmul.f32 %v1434_v21, %v1234_v26  ;;  %v1498_v20 = vmul.f32 %v1482_v5, %v1234_v26 }
 0x143   : > { %v1534_v54 = vmul.f32 %v1518_v44, %v1250_v22  ;;  %v1582_v2 = vmul.f32 %v1566_v24, %v1250_v22  ;;  %v1618_v30 = vmul.f32 %v1602_v41, %v1266_v23  ;;  %v2326_v13 = vmul.f32 %v6291_v63, %v7002_v9 }
 0x144   : > { %v2362_v36 = vmul.f32 %v6294_v1, %v7014_v25  ;;  %5587 = vrcp.f32 %v337_v34  ;;  %v1466_v60 = vsub.f32 %v1414_v56, %v1450_v0  ;;  %v3002_v3 = vmul.f32 %v6323_v37, %v406_v35 }
 0x145   : > { %v1550_v59 = vsub.f32 %v1498_v20, %v1534_v54  ;;  %v1634_v43 = vsub.f32 %v1582_v2, %v1618_v30  ;;  %v3038_v29 = vmul.f32 %v6326_v38, %v7014_v25  ;;  %v7057_v26 = vsub.f32 %v6990_v53, %v6181_v50 }
 0x146   : > { %v7061_v22 = vsub.f32 %v6990_v53, %v6184_v51  ;;  %v2258_v21 = vmul.f32 %v2242_v39, %v1466_v60  ;;  %vm882_vm0 = vcmp.ge.f32.partialorder %v6990_v53, %v6181_v50  ;;  %vm930_vm1 = vcmp.ge.f32.partialorder %v6990_v53, %v6184_v51 }
 0x147   : > { %10426 = vst [vmem:[#allocation81_spill] sm:$0xff] %v7057_v26  ;;  %v2294_v5 = vmul.f32 %v2278_v55, %v1550_v59  ;;  %v2342_v44 = vmul.f32 %v2326_v13, %v1550_v59  ;;  %v2378_v54 = vmul.f32 %v2362_v36, %v1634_v43  ;;  %v4786_v2 = vsel %vm882_vm0, 1.0, %v10377_v8 }
 0x148   : > { %10427 = vst [vmem:[#allocation82_spill] sm:$0xff] %v7061_v22  ;;  %v1650_v30 = vmul.f32 %v6254_v15, %v7010_v28  ;;  %v7071_v24 = vsel %vm930_vm1, 1.0, %v10377_v8  ;;  %v1282_v32 = vsub.f32 %v4770_v61, %v4786_v2  ;;  %v1686_v13 = vmul.f32 %v6257_v16, %v7057_v26 }
 0x149   : > { %v2310_v35 = vsub.f32 %v2258_v21, %v2294_v5  ;;  %10428 = vst [vmem:[#allocation83_spill] sm:$0xff] %v7071_v24  ;;  %v2394_v56 = vsub.f32 %v2342_v44, %v2378_v54  ;;  %v7076_v41 = vsub.f32 %v4786_v2, %v7071_v24  ;;  %v1734_v55 = vmul.f32 %v6257_v16, %v7014_v25  ;;  %v3754_v54 = vld [vmem:[#allocation8 + $0x2b0] sm:$0xff]  ;;  %v3755_v2 = vld [vmem:[#allocation8 + $0x2b8] sm:$0xff] }
 0x14a   : > { %v1666_v39 = vmul.f32 %v1650_v30, %v1266_v23  ;;  %v1702_v0 = vmul.f32 %v1686_v13, %v1282_v32  ;;  %v1770_v20 = vmul.f32 %v6260_v17, %v7061_v22  ;;  %v2410_v61 = vmul.f32 %v6294_v1, %v7006_v33  ;;  %v7092_v30 = vld [vmem:[%s6096_s9 + $0x38] sm:$0xff]  ;;  %v3770_v25 = vld [vmem:[#allocation8 + $0x330] sm:$0xff] }
 0x14b   : > { %10429 = vst [vmem:[#allocation84_spill] sm:$0xff] %v7076_v41  ;;  %v3018_v34 = vmul.f32 %v3002_v3, %v2310_v35  ;;  %v3054_v36 = vmul.f32 %v3038_v29, %v2394_v56  ;;  %v1750_v60 = vmul.f32 %v1734_v55, %v1282_v32  ;;  %v2446_v59 = vmul.f32 %v6299_v6, %v7057_v26  ;;  %v3787_v55 = vld [vmem:[#allocation8 + $0x3b8] sm:$0xff] }
 0x14c   : > { %v2494_v23 = vmul.f32 %v6299_v6, %v7010_v28  ;;  %v1718_v21 = vsub.f32 %v1666_v39, %v1702_v0  ;;  %v1786_v5 = vmul.f32 %v1770_v20, %v7076_v41  ;;  %v2426_v44 = vmul.f32 %v2410_v61, %v1634_v43  ;;  %v3786_v39 = vld [vmem:[#allocation8 + $0x3b0] sm:$0xff] }
 0x14d   : > { %v2530_v3 = vmul.f32 %v6302_v7, %v7061_v22  ;;  %v3070_v35 = vsub.f32 %v3018_v34, %v3054_v36  ;;  %v3170_v29 = vmul.f32 %v6329_v42, %v7006_v33  ;;  %v3206_v32 = vmul.f32 %v6332_v4, %v7061_v22  ;;  %v3738_v43 = vld [vmem:[#allocation8 + $0x230] sm:$0xff]  ;;  %v3739_v36 = vld [vmem:[#allocation8 + $0x238] sm:$0xff] }
 0x14e   : > { %v4690_v13 = vmul.f32 -1.442695, %v6990_v53  ;;  %v5588_v0 = vpop.eup %5587  ;;  %v7099_v20 = vsub.f32 %v1750_v60, %v1786_v5  ;;  %v2462_v61 = vmul.f32 %v2446_v59, %v1718_v21  ;;  %v2510_v28 = vmul.f32 %v2494_v23, %v1718_v21  ;;  %v3771_v33 = vld [vmem:[#allocation8 + $0x338] sm:$0xff] }
 0x14f   : > { %v3086_v34 = vmul.f32 %v6326_v38, %v7002_v9  ;;  %v385_v41 = vmul.f32 %v5588_v0, %v6883_v62  ;;  %v3122_v22 = vmul.f32 %v6329_v42, %v7057_v26  ;;  %v5383_v24 = vpack.c.bf16 %v3755_v2, %v3754_v54 }
 0x150   : > { %10430 = vst [vmem:[#allocation85_spill] sm:$0xff] %v7099_v20  ;;  %5589 = vpow2.f32 %v4690_v13  ;;  %v2478_v57 = vsub.f32 %v2426_v44, %v2462_v61  ;;  %v2546_v60 = vmul.f32 %v2530_v3, %v7099_v20  ;;  %v5415_v23 = vpack.c.bf16 %v3787_v55, %v3786_v39 }
 0x151   : > { %v3102_v59 = vmul.f32 %v3086_v34, %v2394_v56  ;;  %3902 = vmatmul.mubr.f32.gmra.mrb[10].mxu0 %v385_v41  ;;  %5384 = vmatprep.subr.bf16.mxu0 %v5383_v24  ;;  %v5385_v9 = vpack.c.bf16 %v3739_v36, %v3738_v43  ;;  %v5417_v21 = vpack.c.bf16 %v3771_v33, %v3770_v25  ;;  %v4691_v62 = vmul.f32 -1.442695, %v7092_v30 }
 0x152   : > { %v407_v5 = vsub.f32 %v7092_v30, %v6166_v45  ;;  %3906 = vmatprep.mubr.f32.mxu0 %v3070_v35  ;;  %v7113_v13 = vsub.f32 %v2510_v28, %v2546_v60  ;;  %v3186_v54 = vmul.f32 %v3170_v29, %v2478_v57  ;;  %v3138_v2 = vmul.f32 %v3122_v22, %v2478_v57 }
 0x153   : > { %5416 = vmatprep.subr.bf16.mxu1 %v5415_v23  ;;  %v7116_v44 = vmul.f32 -1.442695, %v7107_v27  ;;  %5386 = vmatpush3.bf16.msra.mxu0 %v5385_v9  ;;  %v7120_v24 = vsub.f32 %v7092_v30, %v6169_v46  ;;  %v7124_v25 = vsub.f32 %v7092_v30, %v6172_v47  ;;  %v7128_v28 = vsub.f32 %v7092_v30, %v6175_v48 }
 0x154   : > { %10431 = vst [vmem:[#allocation86_spill] sm:$0xff] %v7113_v13  ;;  %5418 = vmatpush3.bf16.msra.mxu1 %v5417_v21  ;;  %5591 = vpow2.f32 %v4691_v62  ;;  %v3222_v57 = vmul.f32 %v3206_v32, %v7113_v13  ;;  %v3154_v22 = vsub.f32 %v3102_v59, %v3138_v2  ;;  %v7133_v56 = vsub.f32 %v7092_v30, %v6178_v49 }
 0x155   : > { %10432 = vst [vmem:[#allocation87_spill] sm:$0xff] %v7128_v28  ;;  %vm643_vm2 = vcmp.ge.f32.partialorder %v7092_v30, %v6166_v45  ;;  %vm691_vm3 = vcmp.ge.f32.partialorder %v7092_v30, %v6169_v46  ;;  %vm739_vm4 = vcmp.ge.f32.partialorder %v7092_v30, %v6172_v47  ;;  %vm787_vm5 = vcmp.ge.f32.partialorder %v7092_v30, %v6175_v48 }
 0x156   : > { %10433 = vst [vmem:[#allocation88_spill] sm:$0xff] %v7133_v56  ;;  %v4707_v41 = vsel %vm643_vm2, 1.0, %v10377_v8  ;;  %v3238_v3 = vsub.f32 %v3186_v54, %v3222_v57  ;;  %v4723_v35 = vsel %vm691_vm3, 1.0, %v10377_v8  ;;  %v4739_v29 = vsel %vm739_vm4, 1.0, %v10377_v8 }
 0x157   : > { %v4755_v32 = vsel %vm787_vm5, 1.0, %v10377_v8  ;;  %vm835_vm6 = vcmp.ge.f32.partialorder %v7092_v30, %v6178_v49  ;;  %v1219_v39 = vsub.f32 %v4707_v41, %v4723_v35  ;;  %v1235_v55 = vsub.f32 %v4723_v35, %v4739_v29 }
 0x158   : > { %v1251_v43 = vsub.f32 %v4739_v29, %v4755_v32  ;;  %4051 = vmatprep.mubr.f32.mxu1 %v3238_v3  ;;  %v4771_v0 = vsel %vm835_vm6, 1.0, %v10377_v8  ;;  %v1399_v61 = vmul.f32 %v6245_v10, %v407_v5  ;;  %v1435_v34 = vmul.f32 %v6248_v11, %v7124_v25 }
 0x159   : > { %v1483_v36 = vmul.f32 %v6248_v11, %v7120_v24  ;;  %4052 = vmatmul.mubr.f32.gmra.mrb[12].mxu1 %v3154_v22  ;;  %v1267_v60 = vsub.f32 %v4755_v32, %v4771_v0  ;;  %v1519_v59 = vmul.f32 %v6251_v12, %v7128_v28  ;;  %v1567_v23 = vmul.f32 %v6251_v12, %v7124_v25 }
 0x15a   : > { %v5590_v33 = vpop.eup %5589  ;;  %v1603_v9 = vmul.f32 %v6254_v15, %v7133_v56  ;;  %v1415_v62 = vmul.f32 %v1399_v61, %v1219_v39  ;;  %v1451_v54 = vmul.f32 %v1435_v34, %v1235_v55  ;;  %v2243_v35 = vmul.f32 %v6288_v40, %v407_v5 }
 0x15b   : > { %v338_v21 = vadd.f32 1.0, %v5590_v33  ;;  %v1499_v2 = vmul.f32 %v1483_v36, %v1235_v55  ;;  %v1535_v57 = vmul.f32 %v1519_v59, %v1251_v43  ;;  %v1583_v41 = vmul.f32 %v1567_v23, %v1251_v43 }
 0x15c   : > { %v1619_v3 = vmul.f32 %v1603_v9, %v1267_v60  ;;  %v1467_v22 = vsub.f32 %v1415_v62, %v1451_v54  ;;  %v2279_v29 = vmul.f32 %v6291_v63, %v7128_v28  ;;  %v2327_v32 = vmul.f32 %v6291_v63, %v7120_v24 }
 0x15d   : > { %5593 = vrcp.f32 %v338_v21  ;;  %v1551_v20 = vsub.f32 %v1499_v2, %v1535_v57  ;;  %v2363_v39 = vmul.f32 %v6294_v1, %v7133_v56  ;;  %v3003_v55 = vmul.f32 %v6323_v37, %v407_v5 }
 0x15e   : > { %v5592_v13 = vpop.eup %5591  ;;  %v1635_v26 = vsub.f32 %v1583_v41, %v1619_v3  ;;  %v2259_v43 = vmul.f32 %v2243_v35, %v1467_v22  ;;  %v3039_v61 = vmul.f32 %v6326_v38, %v7133_v56  ;;  %v7173_v34 = vsub.f32 %v7092_v30, %v6181_v50 }
 0x15f   : > { %v7177_v36 = vsub.f32 %v7092_v30, %v6184_v51  ;;  %v2295_v33 = vmul.f32 %v2279_v29, %v1551_v20  ;;  %v2343_v59 = vmul.f32 %v2327_v32, %v1551_v20  ;;  %vm883_vm7 = vcmp.ge.f32.partialorder %v7092_v30, %v6181_v50 }
 0x160   : > { %10434 = vst [vmem:[#allocation89_spill] sm:$0xff] %v7173_v34  ;;  %v2379_v23 = vmul.f32 %v2363_v39, %v1635_v26  ;;  %v4787_v5 = vsel %vm883_vm7, 1.0, %v10377_v8  ;;  %vm931_vm8 = vcmp.ge.f32.partialorder %v7092_v30, %v6184_v51  ;;  %v1651_v9 = vmul.f32 %v6254_v15, %v7128_v28 }
 0x161   : > { %10435 = vst [vmem:[#allocation90_spill] sm:$0xff] %v7177_v36  ;;  %v1687_v21 = vmul.f32 %v6257_v16, %v7173_v34  ;;  %v2311_v62 = vsub.f32 %v2259_v43, %v2295_v33  ;;  %v7189_v2 = vsel %vm931_vm8, 1.0, %v10377_v8  ;;  %v1283_v20 = vsub.f32 %v4771_v0, %v4787_v5 }
 0x162   : > { %v2395_v54 = vsub.f32 %v2343_v59, %v2379_v23  ;;  %10436 = vst [vmem:[#allocation91_spill] sm:$0xff] %v7189_v2  ;;  %v7192_v57 = vsub.f32 %v4787_v5, %v7189_v2  ;;  %v1667_v41 = vmul.f32 %v1651_v9, %v1267_v60  ;;  %v1735_v3 = vmul.f32 %v6257_v16, %v7133_v56 }
 0x163   : > { %v1771_v35 = vmul.f32 %v6260_v17, %v7177_v36  ;;  %v3019_v22 = vmul.f32 %v3003_v55, %v2311_v62  ;;  %v1703_v32 = vmul.f32 %v1687_v21, %v1283_v20  ;;  %v2411_v39 = vmul.f32 %v6294_v1, %v7124_v25 }
 0x164   : > { %10437 = vst [vmem:[#allocation92_spill] sm:$0xff] %v7192_v57  ;;  %v3055_v29 = vmul.f32 %v3039_v61, %v2395_v54  ;;  %v1751_v43 = vmul.f32 %v1735_v3, %v1283_v20  ;;  %v2447_v0 = vmul.f32 %v6299_v6, %v7173_v34  ;;  %v2495_v60 = vmul.f32 %v6299_v6, %v7128_v28 }
 0x165   : > { %v1787_v33 = vmul.f32 %v1771_v35, %v7192_v57  ;;  %v1719_v23 = vsub.f32 %v1667_v41, %v1703_v32  ;;  %v2427_v5 = vmul.f32 %v2411_v39, %v1635_v26  ;;  %v2531_v55 = vmul.f32 %v6302_v7, %v7177_v36 }
 0x166   : > { %v3071_v59 = vsub.f32 %v3019_v22, %v3055_v29  ;;  %v3171_v21 = vmul.f32 %v6329_v42, %v7124_v25  ;;  %v3207_v62 = vmul.f32 %v6332_v4, %v7177_v36  ;;  %v339_v20 = vadd.f32 1.0, %v5592_v13 }
 0x167   : > { %v5594_v61 = vpop.eup %5593  ;;  %v7207_v9 = vsub.f32 %v1751_v43, %v1787_v33  ;;  %v2463_v35 = vmul.f32 %v2447_v0, %v1719_v23  ;;  %v2511_v28 = vmul.f32 %v2495_v60, %v1719_v23  ;;  %v3087_v26 = vmul.f32 %v6326_v38, %v7120_v24 }
 0x168   : > { %v386_v3 = vmul.f32 %v5594_v61, %v6990_v53  ;;  %5595 = vrcp.f32 %v339_v20  ;;  %v3123_v22 = vmul.f32 %v6329_v42, %v7173_v34  ;;  %v408_v25 = vsub.f32 %v7107_v27, %v6166_v45 }
 0x169   : > { %10438 = vst [vmem:[#allocation93_spill] sm:$0xff] %v7207_v9  ;;  %v2547_v41 = vmul.f32 %v2531_v55, %v7207_v9  ;;  %v2479_v29 = vsub.f32 %v2427_v5, %v2463_v35  ;;  %v3103_v32 = vmul.f32 %v3087_v26, %v2395_v54  ;;  %v7223_v53 = vsub.f32 %v7107_v27, %v6169_v46 }
 0x16a   : > { %3907 = vmatmul.mubr.f32.gmra.mrb[12].mxu0 %v386_v3  ;;  %v7227_v13 = vsub.f32 %v7107_v27, %v6172_v47  ;;  %v7233_v39 = vsub.f32 %v7107_v27, %v6175_v48  ;;  %v7237_v43 = vsub.f32 %v7107_v27, %v6178_v49  ;;  %vm644_vm9 = vcmp.ge.f32.partialorder %v7107_v27, %v6166_v45 }
 0x16b   : > { %3911 = vmatprep.mubr.f32.mxu0 %v3071_v59  ;;  %v7229_v24 = vsub.f32 %v2511_v28, %v2547_v41  ;;  %v3187_v54 = vmul.f32 %v3171_v21, %v2479_v29  ;;  %v3139_v33 = vmul.f32 %v3123_v22, %v2479_v29  ;;  %v4708_v0 = vsel %vm644_vm9, 1.0, %v10377_v8 }
 0x16c   : > { %10440 = vst [vmem:[#allocation95_spill] sm:$0xff] %v7233_v39  ;;  %10441 = vst [vmem:[#allocation96_spill] sm:$0xff] %v7237_v43  ;;  %vm692_vm10 = vcmp.ge.f32.partialorder %v7107_v27, %v6169_v46  ;;  %vm740_vm11 = vcmp.ge.f32.partialorder %v7107_v27, %v6172_v47  ;;  %vm788_vm12 = vcmp.ge.f32.partialorder %v7107_v27, %v6175_v48  ;;  %5597 = vpow2.f32 %v7116_v44 }
 0x16d   : > { %10439 = vst [vmem:[#allocation94_spill] sm:$0xff] %v7229_v24  ;;  %v3223_v28 = vmul.f32 %v3207_v62, %v7229_v24  ;;  %v4724_v60 = vsel %vm692_vm10, 1.0, %v10377_v8  ;;  %v3155_v59 = vsub.f32 %v3103_v32, %v3139_v33  ;;  %v4740_v23 = vsel %vm740_vm11, 1.0, %v10377_v8 }
 0x16e   : > { %v4756_v5 = vsel %vm788_vm12, 1.0, %v10377_v8  ;;  %vm836_vm13 = vcmp.ge.f32.partialorder %v7107_v27, %v6178_v49  ;;  %v1220_v21 = vsub.f32 %v4708_v0, %v4724_v60  ;;  %v1236_v62 = vsub.f32 %v4724_v60, %v4740_v23 }
 0x16f   : > { %v3239_v55 = vsub.f32 %v3187_v54, %v3223_v28  ;;  %v4772_v61 = vsel %vm836_vm13, 1.0, %v10377_v8  ;;  %v1252_v20 = vsub.f32 %v4740_v23, %v4756_v5  ;;  %v1400_v35 = vmul.f32 %v6245_v10, %v408_v25 }
 0x170   : > { %v1268_v3 = vsub.f32 %v4756_v5, %v4772_v61  ;;  %v1436_v26 = vmul.f32 %v6248_v11, %v7227_v13  ;;  %v1484_v41 = vmul.f32 %v6248_v11, %v7223_v53  ;;  %v1520_v22 = vmul.f32 %v6251_v12, %v7233_v39 }
 0x171   : > { %4056 = vmatprep.mubr.f32.mxu1 %v3239_v55  ;;  %v1568_v29 = vmul.f32 %v6251_v12, %v7227_v13  ;;  %v1604_v32 = vmul.f32 %v6254_v15, %v7237_v43  ;;  %v1416_v54 = vmul.f32 %v1400_v35, %v1220_v21  ;;  %v2244_v0 = vmul.f32 %v6288_v40, %v408_v25 }
 0x172   : > { %4057 = vmatmul.mubr.f32.gmra.mrb[14].mxu1 %v3155_v59  ;;  %v1452_v33 = vmul.f32 %v1436_v26, %v1236_v62  ;;  %v2280_v28 = vmul.f32 %v6291_v63, %v7233_v39  ;;  %v5596_v60 = vpop.eup %5595  ;;  %v1500_v23 = vmul.f32 %v1484_v41, %v1236_v62  ;;  %v1536_v5 = vmul.f32 %v1520_v22, %v1252_v20 }
 0x173   : > { %v1584_v55 = vmul.f32 %v1568_v29, %v1252_v20  ;;  %v1620_v24 = vmul.f32 %v1604_v32, %v1268_v3  ;;  %v387_v9 = vmul.f32 %v5596_v60, %v7092_v30  ;;  %v2328_v57 = vmul.f32 %v6291_v63, %v7223_v53 }
 0x174   : > { %v1468_v56 = vsub.f32 %v1416_v54, %v1452_v33  ;;  %v2364_v59 = vmul.f32 %v6294_v1, %v7237_v43  ;;  %v1552_v21 = vsub.f32 %v1500_v23, %v1536_v5  ;;  %v3004_v26 = vmul.f32 %v6323_v37, %v408_v25 }
 0x175   : > { %v1636_v35 = vsub.f32 %v1584_v55, %v1620_v24  ;;  %v3040_v36 = vmul.f32 %v6326_v38, %v7237_v43  ;;  %3912 = vmatmul.mubr.f32.gmra.mrb[14].mxu0 %v387_v9  ;;  %v7279_v20 = vsub.f32 %v7107_v27, %v6181_v50  ;;  %v7283_v30 = vsub.f32 %v7107_v27, %v6184_v51 }
 0x176   : > { %v2260_v62 = vmul.f32 %v2244_v0, %v1468_v56  ;;  %vm884_vm14 = vcmp.ge.f32.partialorder %v7107_v27, %v6181_v50  ;;  %v2296_v41 = vmul.f32 %v2280_v28, %v1552_v21  ;;  %v2344_v24 = vmul.f32 %v2328_v57, %v1552_v21 }
 0x177   : > { %10442 = vst [vmem:[#allocation97_spill] sm:$0xff] %v7279_v20  ;;  %10443 = vst [vmem:[#allocation98_spill] sm:$0xff] %v7283_v30  ;;  %v2380_v22 = vmul.f32 %v2364_v59, %v1636_v35  ;;  %v4788_v25 = vsel %vm884_vm14, 1.0, %v10377_v8  ;;  %vm932_vm15 = vcmp.ge.f32.partialorder %v7107_v27, %v6184_v51  ;;  %v1652_v9 = vmul.f32 %v6254_v15, %v7233_v39 }
 0x178   : > { %v1284_v56 = vsub.f32 %v4772_v61, %v4788_v25  ;;  %v1688_v29 = vmul.f32 %v6257_v16, %v7279_v20  ;;  %v2312_v32 = vsub.f32 %v2260_v62, %v2296_v41  ;;  %v7295_v33 = vsel %vm932_vm15, 1.0, %v10377_v8 }
 0x179   : > { %v2396_v54 = vsub.f32 %v2344_v24, %v2380_v22  ;;  %10444 = vst [vmem:[#allocation99_spill] sm:$0xff] %v7295_v33  ;;  %v1736_v57 = vmul.f32 %v6257_v16, %v7237_v43  ;;  %v7300_v0 = vsub.f32 %v4788_v25, %v7295_v33  ;;  %v1668_v28 = vmul.f32 %v1652_v9, %v1268_v3  ;;  %v3756_v3 = vld [vmem:[#allocation8 + $0x2c0] sm:$0xff]  ;;  %v3757_v22 = vld [vmem:[#allocation8 + $0x2c8] sm:$0xff] }
 0x17a   : > { %v1704_v60 = vmul.f32 %v1688_v29, %v1284_v56  ;;  %v1772_v61 = vmul.f32 %v6260_v17, %v7283_v30  ;;  %v3020_v23 = vmul.f32 %v3004_v26, %v2312_v32  ;;  %v2412_v59 = vmul.f32 %v6294_v1, %v7227_v13  ;;  %v3788_v25 = vld [vmem:[#allocation8 + $0x3c0] sm:$0xff] }
 0x17b   : > { %10445 = vst [vmem:[#allocation100_spill] sm:$0xff] %v7300_v0  ;;  %v3056_v5 = vmul.f32 %v3040_v36, %v2396_v54  ;;  %v1752_v55 = vmul.f32 %v1736_v57, %v1284_v56  ;;  %v2448_v41 = vmul.f32 %v6299_v6, %v7279_v20  ;;  %v2496_v24 = vmul.f32 %v6299_v6, %v7233_v39  ;;  %v3789_v56 = vld [vmem:[#allocation8 + $0x3c8] sm:$0xff]  ;;  %v3740_v32 = vld [vmem:[#allocation8 + $0x240] sm:$0xff] }
 0x17c   : > { %v1720_v21 = vsub.f32 %v1668_v28, %v1704_v60  ;;  %v1788_v62 = vmul.f32 %v1772_v61, %v7300_v0  ;;  %v2428_v29 = vmul.f32 %v2412_v59, %v1636_v35  ;;  %v2532_v36 = vmul.f32 %v6302_v7, %v7283_v30  ;;  %v3741_v57 = vld [vmem:[#allocation8 + $0x248] sm:$0xff]  ;;  %v3772_v43 = vld [vmem:[#allocation8 + $0x340] sm:$0xff]  ;;  %v7325_v59 = vld [vmem:[%s6096_s9 + $0x48] sm:$0xff] }
 0x17d   : > { %v3072_v9 = vsub.f32 %v3020_v23, %v3056_v5  ;;  %v3172_v26 = vmul.f32 %v6329_v42, %v7227_v13  ;;  %v3208_v39 = vmul.f32 %v6332_v4, %v7283_v30  ;;  %v3773_v23 = vld [vmem:[#allocation8 + $0x348] sm:$0xff]  ;;  %v3088_v35 = vmul.f32 %v6326_v38, %v7223_v53 }
 0x17e   : > { %v7315_v28 = vsub.f32 %v1752_v55, %v1788_v62  ;;  %v2464_v60 = vmul.f32 %v2448_v41, %v1720_v21  ;;  %v2512_v61 = vmul.f32 %v2496_v24, %v1720_v21  ;;  %v3124_v13 = vmul.f32 %v6329_v42, %v7279_v20 }
 0x17f   : > { %3916 = vmatprep.mubr.f32.mxu0 %v3072_v9  ;;  %v5387_v5 = vpack.c.bf16 %v3757_v22, %v3756_v3  ;;  %v5419_v62 = vpack.c.bf16 %v3789_v56, %v3788_v25  ;;  %v5389_v41 = vpack.c.bf16 %v3741_v57, %v3740_v32  ;;  %v3104_v24 = vmul.f32 %v3088_v35, %v2396_v54 }
 0x180   : > { %10446 = vst [vmem:[#allocation101_spill] sm:$0xff] %v7315_v28  ;;  %v2480_v55 = vsub.f32 %v2428_v29, %v2464_v60  ;;  %v2548_v21 = vmul.f32 %v2532_v36, %v7315_v28  ;;  %v5421_v30 = vpack.c.bf16 %v3773_v23, %v3772_v43  ;;  %v409_v44 = vsub.f32 %v7325_v59, %v6166_v45 }
 0x181   : > { %5388 = vmatprep.subr.bf16.mxu0 %v5387_v5  ;;  %v7332_v53 = vsub.f32 %v7325_v59, %v6169_v46  ;;  %5420 = vmatprep.subr.bf16.mxu1 %v5419_v62  ;;  %v7337_v29 = vmul.f32 -1.442695, %v7325_v59  ;;  %v7341_v43 = vsub.f32 %v7325_v59, %v6172_v47  ;;  %v7345_v54 = vsub.f32 %v7325_v59, %v6175_v48 }
 0x182   : > { %v7334_v9 = vsub.f32 %v2512_v61, %v2548_v21  ;;  %v3188_v3 = vmul.f32 %v3172_v26, %v2480_v55  ;;  %v3140_v22 = vmul.f32 %v3124_v13, %v2480_v55  ;;  %5390 = vmatpush3.bf16.msra.mxu0 %v5389_v41  ;;  %5422 = vmatpush3.bf16.msra.mxu1 %v5421_v30  ;;  %v5598_v41 = vpop.eup %5597 }
 0x183   : > { %10448 = vst [vmem:[#allocation103_spill] sm:$0xff] %v7345_v54  ;;  %v7349_v25 = vsub.f32 %v7325_v59, %v6178_v49  ;;  %vm645_vm0 = vcmp.ge.f32.partialorder %v7325_v59, %v6166_v45  ;;  %vm693_vm1 = vcmp.ge.f32.partialorder %v7325_v59, %v6169_v46  ;;  %vm741_vm2 = vcmp.ge.f32.partialorder %v7325_v59, %v6172_v47 }
 0x184   : > { %10447 = vst [vmem:[#allocation102_spill] sm:$0xff] %v7334_v9  ;;  %v3224_v36 = vmul.f32 %v3208_v39, %v7334_v9  ;;  %v3156_v26 = vsub.f32 %v3104_v24, %v3140_v22  ;;  %v4709_v30 = vsel %vm645_vm0, 1.0, %v10377_v8  ;;  %v4725_v56 = vsel %vm693_vm1, 1.0, %v10377_v8 }
 0x185   : > { %10449 = vst [vmem:[#allocation104_spill] sm:$0xff] %v7349_v25  ;;  %vm789_vm3 = vcmp.ge.f32.partialorder %v7325_v59, %v6175_v48  ;;  %vm837_vm4 = vcmp.ge.f32.partialorder %v7325_v59, %v6178_v49  ;;  %v4741_v39 = vsel %vm741_vm2, 1.0, %v10377_v8  ;;  %v1221_v61 = vsub.f32 %v4709_v30, %v4725_v56 }
 0x186   : > { %v3240_v32 = vsub.f32 %v3188_v3, %v3224_v36  ;;  %v4757_v57 = vsel %vm789_vm3, 1.0, %v10377_v8  ;;  %v4773_v60 = vsel %vm837_vm4, 1.0, %v10377_v8  ;;  %v1237_v23 = vsub.f32 %v4725_v56, %v4741_v39 }
 0x187   : > { %v1253_v35 = vsub.f32 %v4741_v39, %v4757_v57  ;;  %v1269_v13 = vsub.f32 %v4757_v57, %v4773_v60  ;;  %v1401_v5 = vmul.f32 %v6245_v10, %v409_v44  ;;  %v1437_v55 = vmul.f32 %v6248_v11, %v7341_v43 }
 0x188   : > { %4061 = vmatprep.mubr.f32.mxu1 %v3240_v32  ;;  %v1485_v21 = vmul.f32 %v6248_v11, %v7332_v53  ;;  %v1521_v62 = vmul.f32 %v6251_v12, %v7345_v54  ;;  %v1569_v24 = vmul.f32 %v6251_v12, %v7341_v43  ;;  %v1605_v3 = vmul.f32 %v6254_v15, %v7349_v25 }
 0x189   : > { %4062 = vmatmul.mubr.f32.gmra.mrb[16].mxu1 %v3156_v26  ;;  %v2245_v22 = vmul.f32 %v6288_v40, %v409_v44  ;;  %v2281_v36 = vmul.f32 %v6291_v63, %v7345_v54  ;;  %v340_v30 = vadd.f32 1.0, %v5598_v41  ;;  %v1417_v56 = vmul.f32 %v1401_v5, %v1221_v61 }
 0x18a   : > { %v1453_v32 = vmul.f32 %v1437_v55, %v1237_v23  ;;  %v1501_v39 = vmul.f32 %v1485_v21, %v1237_v23  ;;  %v1537_v57 = vmul.f32 %v1521_v62, %v1253_v35  ;;  %v1585_v9 = vmul.f32 %v1569_v24, %v1253_v35 }
 0x18b   : > { %v1621_v28 = vmul.f32 %v1605_v3, %v1269_v13  ;;  %v2329_v26 = vmul.f32 %v6291_v63, %v7332_v53  ;;  %5599 = vrcp.f32 %v340_v30  ;;  %v2365_v33 = vmul.f32 %v6294_v1, %v7349_v25 }
 0x18c   : > { %v1469_v0 = vsub.f32 %v1417_v56, %v1453_v32  ;;  %v3005_v20 = vmul.f32 %v6323_v37, %v409_v44  ;;  %v1553_v34 = vsub.f32 %v1501_v39, %v1537_v57  ;;  %v3041_v61 = vmul.f32 %v6326_v38, %v7349_v25 }
 0x18d   : > { %v1637_v2 = vsub.f32 %v1585_v9, %v1621_v28  ;;  %v7390_v23 = vsub.f32 %v7325_v59, %v6181_v50  ;;  %v7394_v5 = vsub.f32 %v7325_v59, %v6184_v51  ;;  %vm885_vm5 = vcmp.ge.f32.partialorder %v7325_v59, %v6181_v50 }
 0x18e   : > { %v2261_v35 = vmul.f32 %v2245_v22, %v1469_v0  ;;  %vm933_vm6 = vcmp.ge.f32.partialorder %v7325_v59, %v6184_v51  ;;  %v2297_v44 = vmul.f32 %v2281_v36, %v1553_v34  ;;  %v2345_v28 = vmul.f32 %v2329_v26, %v1553_v34 }
 0x18f   : > { %10450 = vst [vmem:[#allocation105_spill] sm:$0xff] %v7390_v23  ;;  %10451 = vst [vmem:[#allocation106_spill] sm:$0xff] %v7394_v5  ;;  %v2381_v9 = vmul.f32 %v2365_v33, %v1637_v2  ;;  %v4789_v55 = vsel %vm885_vm5, 1.0, %v10377_v8  ;;  %v7402_v21 = vsel %vm933_vm6, 1.0, %v10377_v8  ;;  %v1653_v0 = vmul.f32 %v6254_v15, %v7345_v54 }
 0x190   : > { %10452 = vst [vmem:[#allocation107_spill] sm:$0xff] %v7402_v21  ;;  %v1285_v62 = vsub.f32 %v4773_v60, %v4789_v55  ;;  %v1689_v41 = vmul.f32 %v6257_v16, %v7390_v23  ;;  %v2313_v24 = vsub.f32 %v2261_v35, %v2297_v44  ;;  %v7409_v22 = vsub.f32 %v4789_v55, %v7402_v21 }
 0x191   : > { %v2397_v3 = vsub.f32 %v2345_v28, %v2381_v9  ;;  %v1737_v34 = vmul.f32 %v6257_v16, %v7349_v25  ;;  %v1669_v33 = vmul.f32 %v1653_v0, %v1269_v13  ;;  %v1773_v30 = vmul.f32 %v6260_v17, %v7394_v5 }
 0x192   : > { %10453 = vst [vmem:[#allocation108_spill] sm:$0xff] %v7409_v22  ;;  %v1705_v36 = vmul.f32 %v1689_v41, %v1285_v62  ;;  %v2413_v60 = vmul.f32 %v6294_v1, %v7341_v43  ;;  %v3021_v56 = vmul.f32 %v3005_v20, %v2313_v24  ;;  %v2449_v57 = vmul.f32 %v6299_v6, %v7390_v23 }
 0x193   : > { %v3057_v32 = vmul.f32 %v3041_v61, %v2397_v3  ;;  %v1753_v39 = vmul.f32 %v1737_v34, %v1285_v62  ;;  %v1789_v35 = vmul.f32 %v1773_v30, %v7409_v22  ;;  %v2497_v13 = vmul.f32 %v6299_v6, %v7345_v54 }
 0x194   : > { %v1721_v26 = vsub.f32 %v1669_v33, %v1705_v36  ;;  %v2429_v44 = vmul.f32 %v2413_v60, %v1637_v2  ;;  %v2533_v9 = vmul.f32 %v6302_v7, %v7394_v5  ;;  %v3173_v20 = vmul.f32 %v6329_v42, %v7341_v43  ;;  %v7432_v2 = vld [vmem:[%s6096_s9 + $0x50] sm:$0xff] }
 0x195   : > { %v3073_v28 = vsub.f32 %v3021_v56, %v3057_v32  ;;  %v3209_v61 = vmul.f32 %v6332_v4, %v7394_v5  ;;  %v5600_v55 = vpop.eup %5599  ;;  %v7428_v62 = vsub.f32 %v1753_v39, %v1789_v35  ;;  %5601 = vpow2.f32 %v7337_v29 }
 0x196   : > { %v2465_v0 = vmul.f32 %v2449_v57, %v1721_v26  ;;  %v2513_v41 = vmul.f32 %v2497_v13, %v1721_v26  ;;  %v388_v24 = vmul.f32 %v5600_v55, %v7107_v27  ;;  %v3089_v34 = vmul.f32 %v6326_v38, %v7332_v53 }
 0x197   : > { %10454 = vst [vmem:[#allocation109_spill] sm:$0xff] %v7428_v62  ;;  %v3125_v43 = vmul.f32 %v6329_v42, %v7390_v23  ;;  %v410_v33 = vsub.f32 %v7432_v2, %v6166_v45  ;;  %v2549_v30 = vmul.f32 %v2533_v9, %v7428_v62  ;;  %v7444_v60 = vsub.f32 %v7432_v2, %v6169_v46  ;;  %v7549_v23 = vld [vmem:[%s6096_s9 + $0x60] sm:$0xff] }
 0x198   : > { %v2481_v36 = vsub.f32 %v2429_v44, %v2465_v0  ;;  %v7448_v29 = vsub.f32 %v7432_v2, %v6172_v47  ;;  %3917 = vmatmul.mubr.f32.gmra.mrb[16].mxu0 %v388_v24  ;;  %v3105_v27 = vmul.f32 %v3089_v34, %v2397_v3  ;;  %v7452_v53 = vsub.f32 %v7432_v2, %v6175_v48 }
 0x199   : > { %v7456_v56 = vsub.f32 %v7432_v2, %v6178_v49  ;;  %vm646_vm7 = vcmp.ge.f32.partialorder %v7432_v2, %v6166_v45  ;;  %3921 = vmatprep.mubr.f32.mxu0 %v3073_v28  ;;  %v7460_v32 = vsub.f32 %v2513_v41, %v2549_v30  ;;  %vm694_vm8 = vcmp.ge.f32.partialorder %v7432_v2, %v6169_v46 }
 0x19a   : > { %10455 = vst [vmem:[#allocation110_spill] sm:$0xff] %v7452_v53  ;;  %v3189_v39 = vmul.f32 %v3173_v20, %v2481_v36  ;;  %v3141_v57 = vmul.f32 %v3125_v43, %v2481_v36  ;;  %v4710_v26 = vsel %vm646_vm7, 1.0, %v10377_v8  ;;  %vm742_vm9 = vcmp.ge.f32.partialorder %v7432_v2, %v6172_v47 }
 0x19b   : > { %10456 = vst [vmem:[#allocation111_spill] sm:$0xff] %v7456_v56  ;;  %10457 = vst [vmem:[#allocation112_spill] sm:$0xff] %v7460_v32  ;;  %vm790_vm10 = vcmp.ge.f32.partialorder %v7432_v2, %v6175_v48  ;;  %vm838_vm11 = vcmp.ge.f32.partialorder %v7432_v2, %v6178_v49  ;;  %v3225_v3 = vmul.f32 %v3209_v61, %v7460_v32  ;;  %v4726_v44 = vsel %vm694_vm8, 1.0, %v10377_v8 }
 0x19c   : > { %v3157_v35 = vsub.f32 %v3105_v27, %v3141_v57  ;;  %v4742_v13 = vsel %vm742_vm9, 1.0, %v10377_v8  ;;  %v4758_v28 = vsel %vm790_vm10, 1.0, %v10377_v8  ;;  %v4774_v9 = vsel %vm838_vm11, 1.0, %v10377_v8 }
 0x19d   : > { %v1222_v20 = vsub.f32 %v4710_v26, %v4726_v44  ;;  %v1238_v55 = vsub.f32 %v4726_v44, %v4742_v13  ;;  %v3241_v0 = vsub.f32 %v3189_v39, %v3225_v3  ;;  %v1254_v41 = vsub.f32 %v4742_v13, %v4758_v28 }
 0x19e   : > { %v1270_v24 = vsub.f32 %v4758_v28, %v4774_v9  ;;  %v1402_v34 = vmul.f32 %v6245_v10, %v410_v33  ;;  %v1438_v43 = vmul.f32 %v6248_v11, %v7448_v29  ;;  %v1486_v61 = vmul.f32 %v6248_v11, %v7444_v60 }
 0x19f   : > { %v1522_v36 = vmul.f32 %v6251_v12, %v7452_v53  ;;  %v1570_v30 = vmul.f32 %v6251_v12, %v7448_v29  ;;  %v5602_v27 = vpop.eup %5601  ;;  %4066 = vmatprep.mubr.f32.mxu1 %v3241_v0  ;;  %v1606_v39 = vmul.f32 %v6254_v15, %v7456_v56  ;;  %v2246_v26 = vmul.f32 %v6288_v40, %v410_v33 }
 0x1a0   : > { %v1418_v57 = vmul.f32 %v1402_v34, %v1222_v20  ;;  %v2282_v3 = vmul.f32 %v6291_v63, %v7452_v53  ;;  %v341_v44 = vadd.f32 1.0, %v5602_v27  ;;  %4067 = vmatmul.mubr.f32.gmra.mrb[18].mxu1 %v3157_v35  ;;  %v1454_v13 = vmul.f32 %v1438_v43, %v1238_v55 }
 0x1a1   : > { %v1502_v28 = vmul.f32 %v1486_v61, %v1238_v55  ;;  %v1538_v32 = vmul.f32 %v1522_v36, %v1254_v41  ;;  %v1586_v54 = vmul.f32 %v1570_v30, %v1254_v41  ;;  %v1622_v62 = vmul.f32 %v1606_v39, %v1270_v24 }
 0x1a2   : > { %v2330_v25 = vmul.f32 %v6291_v63, %v7444_v60  ;;  %v2366_v20 = vmul.f32 %v6294_v1, %v7456_v56  ;;  %5603 = vrcp.f32 %v341_v44  ;;  %v1470_v0 = vsub.f32 %v1418_v57, %v1454_v13 }
 0x1a3   : > { %v1554_v34 = vsub.f32 %v1502_v28, %v1538_v32  ;;  %v3006_v22 = vmul.f32 %v6323_v37, %v410_v33  ;;  %v1638_v5 = vsub.f32 %v1586_v54, %v1622_v62  ;;  %v3042_v35 = vmul.f32 %v6326_v38, %v7456_v56 }
 0x1a4   : > { %v7499_v55 = vsub.f32 %v7432_v2, %v6181_v50  ;;  %v7503_v41 = vsub.f32 %v7432_v2, %v6184_v51  ;;  %v2262_v43 = vmul.f32 %v2246_v26, %v1470_v0  ;;  %vm886_vm12 = vcmp.ge.f32.partialorder %v7432_v2, %v6181_v50 }
 0x1a5   : > { %v2298_v61 = vmul.f32 %v2282_v3, %v1554_v34  ;;  %v2346_v36 = vmul.f32 %v2330_v25, %v1554_v34  ;;  %v2382_v32 = vmul.f32 %v2366_v20, %v1638_v5  ;;  %v4790_v54 = vsel %vm886_vm12, 1.0, %v10377_v8 }
 0x1a6   : > { %10458 = vst [vmem:[#allocation113_spill] sm:$0xff] %v7499_v55  ;;  %10459 = vst [vmem:[#allocation114_spill] sm:$0xff] %v7503_v41  ;;  %vm934_vm13 = vcmp.ge.f32.partialorder %v7432_v2, %v6184_v51  ;;  %v1654_v62 = vmul.f32 %v6254_v15, %v7452_v53  ;;  %v1286_v27 = vsub.f32 %v4774_v9, %v4790_v54 }
 0x1a7   : > { %v2314_v33 = vsub.f32 %v2262_v43, %v2298_v61  ;;  %v7513_v30 = vsel %vm934_vm13, 1.0, %v10377_v8  ;;  %v1690_v25 = vmul.f32 %v6257_v16, %v7499_v55  ;;  %v2398_v57 = vsub.f32 %v2346_v36, %v2382_v32  ;;  %v3758_v32 = vld [vmem:[#allocation8 + $0x2d0] sm:$0xff] }
 0x1a8   : > { %10460 = vst [vmem:[#allocation115_spill] sm:$0xff] %v7513_v30  ;;  %v7518_v39 = vsub.f32 %v4790_v54, %v7513_v30  ;;  %v1670_v26 = vmul.f32 %v1654_v62, %v1270_v24  ;;  %v1738_v3 = vmul.f32 %v6257_v16, %v7456_v56  ;;  %v1774_v28 = vmul.f32 %v6260_v17, %v7503_v41  ;;  %v3759_v54 = vld [vmem:[#allocation8 + $0x2d8] sm:$0xff]  ;;  %v7534_v62 = vld [vmem:[%s6096_s9 + $0x58] sm:$0xff] }
 0x1a9   : > { %v3022_v44 = vmul.f32 %v3006_v22, %v2314_v33  ;;  %v1706_v13 = vmul.f32 %v1690_v25, %v1286_v27  ;;  %v2414_v9 = vmul.f32 %v6294_v1, %v7448_v29  ;;  %v3058_v20 = vmul.f32 %v3042_v35, %v2398_v57 }
 0x1aa   : > { %10461 = vst [vmem:[#allocation116_spill] sm:$0xff] %v7518_v39  ;;  %v1754_v0 = vmul.f32 %v1738_v3, %v1286_v27  ;;  %v2450_v34 = vmul.f32 %v6299_v6, %v7499_v55  ;;  %v2498_v24 = vmul.f32 %v6299_v6, %v7452_v53  ;;  %v1790_v61 = vmul.f32 %v1774_v28, %v7518_v39  ;;  %v3791_v3 = vld [vmem:[#allocation8 + $0x3d8] sm:$0xff]  ;;  %v3774_v39 = vld [vmem:[#allocation8 + $0x350] sm:$0xff] }
 0x1ab   : > { %v1722_v43 = vsub.f32 %v1670_v26, %v1706_v13  ;;  %v2430_v36 = vmul.f32 %v2414_v9, %v1638_v5  ;;  %v2534_v22 = vmul.f32 %v6302_v7, %v7503_v41  ;;  %v3074_v33 = vsub.f32 %v3022_v44, %v3058_v20  ;;  %v3790_v26 = vld [vmem:[#allocation8 + $0x3d0] sm:$0xff]  ;;  %v3743_v20 = vld [vmem:[#allocation8 + $0x258] sm:$0xff] }
 0x1ac   : > { %v3174_v35 = vmul.f32 %v6329_v42, %v7448_v29  ;;  %v3210_v27 = vmul.f32 %v6332_v4, %v7503_v41  ;;  %v4694_v25 = vmul.f32 -1.442695, %v7432_v2  ;;  %v3742_v5 = vld [vmem:[#allocation8 + $0x250] sm:$0xff]  ;;  %v5604_v13 = vpop.eup %5603  ;;  %v7541_v28 = vsub.f32 %v1754_v0, %v1790_v61  ;;  %v3775_v29 = vld [vmem:[#allocation8 + $0x358] sm:$0xff] }
 0x1ad   : > { %v2466_v9 = vmul.f32 %v2450_v34, %v1722_v43  ;;  %v2514_v53 = vmul.f32 %v2498_v24, %v1722_v43  ;;  %v3090_v44 = vmul.f32 %v6326_v38, %v7444_v60  ;;  %v389_v56 = vmul.f32 %v5604_v13, %v7325_v59 }
 0x1ae   : > { %10462 = vst [vmem:[#allocation117_spill] sm:$0xff] %v7541_v28  ;;  %5605 = vpow2.f32 %v4694_v25  ;;  %v3126_v41 = vmul.f32 %v6329_v42, %v7499_v55  ;;  %v5391_v30 = vpack.c.bf16 %v3759_v54, %v3758_v32  ;;  %v2550_v0 = vmul.f32 %v2534_v22, %v7541_v28 }
 0x1af   : > { %v2482_v21 = vsub.f32 %v2430_v36, %v2466_v9  ;;  %v3106_v34 = vmul.f32 %v3090_v44, %v2398_v57  ;;  %v5423_v24 = vpack.c.bf16 %v3791_v3, %v3790_v26  ;;  %3922 = vmatmul.mubr.f32.gmra.mrb[18].mxu0 %v389_v56  ;;  %v5393_v60 = vpack.c.bf16 %v3743_v20, %v3742_v5 }
 0x1b0   : > { %5392 = vmatprep.subr.bf16.mxu0 %v5391_v30  ;;  %v5425_v43 = vpack.c.bf16 %v3775_v29, %v3774_v39  ;;  %v411_v61 = vsub.f32 %v7534_v62, %v6166_v45  ;;  %v4695_v59 = vmul.f32 -1.442695, %v7534_v62  ;;  %3926 = vmatprep.mubr.f32.mxu0 %v3074_v33  ;;  %v7555_v25 = vsub.f32 %v2514_v53, %v2550_v0 }
 0x1b1   : > { %v3190_v32 = vmul.f32 %v3174_v35, %v2482_v21  ;;  %v3142_v54 = vmul.f32 %v3126_v41, %v2482_v21  ;;  %5424 = vmatprep.subr.bf16.mxu1 %v5423_v24  ;;  %v7558_v36 = vmul.f32 -1.442695, %v7549_v23  ;;  %5394 = vmatpush3.bf16.msra.mxu0 %v5393_v60  ;;  %v7562_v56 = vsub.f32 %v7534_v62, %v6169_v46 }
 0x1b2   : > { %10463 = vst [vmem:[#allocation118_spill] sm:$0xff] %v7555_v25  ;;  %5426 = vmatpush3.bf16.msra.mxu1 %v5425_v43  ;;  %v7566_v30 = vsub.f32 %v7534_v62, %v6172_v47  ;;  %v7570_v53 = vsub.f32 %v7534_v62, %v6175_v48  ;;  %5607 = vpow2.f32 %v4695_v59  ;;  %v3226_v21 = vmul.f32 %v3210_v27, %v7555_v25 }
 0x1b3   : > { %v3158_v41 = vsub.f32 %v3106_v34, %v3142_v54  ;;  %v7575_v57 = vsub.f32 %v7534_v62, %v6178_v49  ;;  %vm647_vm14 = vcmp.ge.f32.partialorder %v7534_v62, %v6166_v45  ;;  %vm695_vm15 = vcmp.ge.f32.partialorder %v7534_v62, %v6169_v46 }
 0x1b4   : > { %10464 = vst [vmem:[#allocation119_spill] sm:$0xff] %v7570_v53  ;;  %v4711_v39 = vsel %vm647_vm14, 1.0, %v10377_v8  ;;  %vm743_vm0 = vcmp.ge.f32.partialorder %v7534_v62, %v6172_v47  ;;  %vm791_vm1 = vcmp.ge.f32.partialorder %v7534_v62, %v6175_v48  ;;  %v3242_v22 = vsub.f32 %v3190_v32, %v3226_v21 }
 0x1b5   : > { %10465 = vst [vmem:[#allocation120_spill] sm:$0xff] %v7575_v57  ;;  %v4727_v33 = vsel %vm695_vm15, 1.0, %v10377_v8  ;;  %v4743_v35 = vsel %vm743_vm0, 1.0, %v10377_v8  ;;  %v4759_v27 = vsel %vm791_vm1, 1.0, %v10377_v8  ;;  %vm839_vm2 = vcmp.ge.f32.partialorder %v7534_v62, %v6178_v49 }
 0x1b6   : > { %v1223_v26 = vsub.f32 %v4711_v39, %v4727_v33  ;;  %v1239_v3 = vsub.f32 %v4727_v33, %v4743_v35  ;;  %v1255_v5 = vsub.f32 %v4743_v35, %v4759_v27  ;;  %4071 = vmatprep.mubr.f32.mxu1 %v3242_v22  ;;  %v4775_v13 = vsel %vm839_vm2, 1.0, %v10377_v8 }
 0x1b7   : > { %v1403_v9 = vmul.f32 %v6245_v10, %v411_v61  ;;  %v1439_v44 = vmul.f32 %v6248_v11, %v7566_v30  ;;  %v1487_v20 = vmul.f32 %v6248_v11, %v7562_v56  ;;  %4072 = vmatmul.mubr.f32.gmra.mrb[20].mxu1 %v3158_v41  ;;  %v1271_v0 = vsub.f32 %v4759_v27, %v4775_v13 }
 0x1b8   : > { %v5606_v29 = vpop.eup %5605  ;;  %v1523_v34 = vmul.f32 %v6251_v12, %v7570_v53  ;;  %v1571_v24 = vmul.f32 %v6251_v12, %v7566_v30  ;;  %v1607_v60 = vmul.f32 %v6254_v15, %v7575_v57  ;;  %v2247_v33 = vmul.f32 %v6288_v40, %v411_v61 }
 0x1b9   : > { %v342_v43 = vadd.f32 1.0, %v5606_v29  ;;  %v1419_v59 = vmul.f32 %v1403_v9, %v1223_v26  ;;  %v1455_v32 = vmul.f32 %v1439_v44, %v1239_v3  ;;  %v1503_v54 = vmul.f32 %v1487_v20, %v1239_v3 }
 0x1ba   : > { %v1539_v21 = vmul.f32 %v1523_v34, %v1255_v5  ;;  %v1587_v39 = vmul.f32 %v1571_v24, %v1255_v5  ;;  %v1623_v22 = vmul.f32 %v1607_v60, %v1271_v0  ;;  %v2283_v35 = vmul.f32 %v6291_v63, %v7570_v53 }
 0x1bb   : > { %5609 = vrcp.f32 %v342_v43  ;;  %v1471_v41 = vsub.f32 %v1419_v59, %v1455_v32  ;;  %v2331_v27 = vmul.f32 %v6291_v63, %v7562_v56  ;;  %v2367_v26 = vmul.f32 %v6294_v1, %v7575_v57 }
 0x1bc   : > { %v5608_v25 = vpop.eup %5607  ;;  %v1555_v28 = vsub.f32 %v1503_v54, %v1539_v21  ;;  %v1639_v55 = vsub.f32 %v1587_v39, %v1623_v22  ;;  %v3007_v3 = vmul.f32 %v6323_v37, %v411_v61  ;;  %v3043_v9 = vmul.f32 %v6326_v38, %v7575_v57 }
 0x1bd   : > { %v2263_v5 = vmul.f32 %v2247_v33, %v1471_v41  ;;  %v7615_v44 = vsub.f32 %v7534_v62, %v6181_v50  ;;  %v7619_v20 = vsub.f32 %v7534_v62, %v6184_v51  ;;  %vm887_vm3 = vcmp.ge.f32.partialorder %v7534_v62, %v6181_v50 }
 0x1be   : > { %v2299_v29 = vmul.f32 %v2283_v35, %v1555_v28  ;;  %v2347_v34 = vmul.f32 %v2331_v27, %v1555_v28  ;;  %v2383_v24 = vmul.f32 %v2367_v26, %v1639_v55  ;;  %v4791_v61 = vsel %vm887_vm3, 1.0, %v10377_v8 }
 0x1bf   : > { %10466 = vst [vmem:[#allocation121_spill] sm:$0xff] %v7615_v44  ;;  %10467 = vst [vmem:[#allocation122_spill] sm:$0xff] %v7619_v20  ;;  %vm935_vm4 = vcmp.ge.f32.partialorder %v7534_v62, %v6184_v51  ;;  %v1655_v60 = vmul.f32 %v6254_v15, %v7570_v53  ;;  %v1691_v43 = vmul.f32 %v6257_v16, %v7615_v44 }
 0x1c0   : > { %v2315_v59 = vsub.f32 %v2263_v5, %v2299_v29  ;;  %v2399_v32 = vsub.f32 %v2347_v34, %v2383_v24  ;;  %v7631_v54 = vsel %vm935_vm4, 1.0, %v10377_v8  ;;  %v1287_v28 = vsub.f32 %v4775_v13, %v4791_v61 }
 0x1c1   : > { %10468 = vst [vmem:[#allocation123_spill] sm:$0xff] %v7631_v54  ;;  %v7634_v21 = vsub.f32 %v4791_v61, %v7631_v54  ;;  %v1671_v39 = vmul.f32 %v1655_v60, %v1271_v0  ;;  %v1739_v22 = vmul.f32 %v6257_v16, %v7575_v57  ;;  %v1775_v33 = vmul.f32 %v6260_v17, %v7619_v20 }
 0x1c2   : > { %v3023_v41 = vmul.f32 %v3007_v3, %v2315_v59  ;;  %v3059_v35 = vmul.f32 %v3043_v9, %v2399_v32  ;;  %v1707_v27 = vmul.f32 %v1691_v43, %v1287_v28  ;;  %v2415_v26 = vmul.f32 %v6294_v1, %v7566_v30 }
 0x1c3   : > { %10469 = vst [vmem:[#allocation124_spill] sm:$0xff] %v7634_v21  ;;  %v1755_v5 = vmul.f32 %v1739_v22, %v1287_v28  ;;  %v1791_v29 = vmul.f32 %v1775_v33, %v7634_v21  ;;  %v2451_v13 = vmul.f32 %v6299_v6, %v7615_v44  ;;  %v2499_v0 = vmul.f32 %v6299_v6, %v7570_v53 }
 0x1c4   : > { %v3075_v34 = vsub.f32 %v3023_v41, %v3059_v35  ;;  %v1723_v24 = vsub.f32 %v1671_v39, %v1707_v27  ;;  %v2431_v61 = vmul.f32 %v2415_v26, %v1639_v55  ;;  %v2535_v3 = vmul.f32 %v6302_v7, %v7619_v20 }
 0x1c5   : > { %v5610_v9 = vpop.eup %5609  ;;  %v7649_v60 = vsub.f32 %v1755_v5, %v1791_v29  ;;  %v3175_v43 = vmul.f32 %v6329_v42, %v7566_v30  ;;  %v3211_v59 = vmul.f32 %v6332_v4, %v7619_v20  ;;  %v343_v28 = vadd.f32 1.0, %v5608_v25 }
 0x1c6   : > { %v390_v22 = vmul.f32 %v5610_v9, %v7432_v2  ;;  %v2467_v33 = vmul.f32 %v2451_v13, %v1723_v24  ;;  %v2515_v53 = vmul.f32 %v2499_v0, %v1723_v24  ;;  %v3091_v55 = vmul.f32 %v6326_v38, %v7562_v56 }
 0x1c7   : > { %10470 = vst [vmem:[#allocation125_spill] sm:$0xff] %v7649_v60  ;;  %v2551_v39 = vmul.f32 %v2535_v3, %v7649_v60  ;;  %5611 = vrcp.f32 %v343_v28  ;;  %v3127_v41 = vmul.f32 %v6329_v42, %v7615_v44  ;;  %v412_v30 = vsub.f32 %v7549_v23, %v6166_v45 }
 0x1c8   : > { %3927 = vmatmul.mubr.f32.gmra.mrb[20].mxu0 %v390_v22  ;;  %v2483_v35 = vsub.f32 %v2431_v61, %v2467_v33  ;;  %v3107_v27 = vmul.f32 %v3091_v55, %v2399_v32  ;;  %v7665_v2 = vsub.f32 %v7549_v23, %v6169_v46  ;;  %v7669_v25 = vsub.f32 %v7549_v23, %v6172_v47 }
 0x1c9   : > { %3931 = vmatprep.mubr.f32.mxu0 %v3075_v34  ;;  %v7671_v56 = vsub.f32 %v2515_v53, %v2551_v39  ;;  %v7675_v26 = vsub.f32 %v7549_v23, %v6175_v48  ;;  %v7679_v5 = vsub.f32 %v7549_v23, %v6178_v49  ;;  %vm648_vm5 = vcmp.ge.f32.partialorder %v7549_v23, %v6166_v45 }
 0x1ca   : > { %v3191_v32 = vmul.f32 %v3175_v43, %v2483_v35  ;;  %v3143_v29 = vmul.f32 %v3127_v41, %v2483_v35  ;;  %v4712_v13 = vsel %vm648_vm5, 1.0, %v10377_v8  ;;  %vm696_vm6 = vcmp.ge.f32.partialorder %v7549_v23, %v6169_v46 }
 0x1cb   : > { %10471 = vst [vmem:[#allocation126_spill] sm:$0xff] %v7671_v56  ;;  %10472 = vst [vmem:[#allocation127_spill] sm:$0xff] %v7675_v26  ;;  %v3227_v53 = vmul.f32 %v3211_v59, %v7671_v56  ;;  %v4728_v0 = vsel %vm696_vm6, 1.0, %v10377_v8  ;;  %vm744_vm7 = vcmp.ge.f32.partialorder %v7549_v23, %v6172_v47  ;;  %vm792_vm8 = vcmp.ge.f32.partialorder %v7549_v23, %v6175_v48 }
 0x1cc   : > { %10473 = vst [vmem:[#allocation128_spill] sm:$0xff] %v7679_v5  ;;  %v3159_v34 = vsub.f32 %v3107_v27, %v3143_v29  ;;  %v4744_v24 = vsel %vm744_vm7, 1.0, %v10377_v8  ;;  %v4760_v61 = vsel %vm792_vm8, 1.0, %v10377_v8  ;;  %vm840_vm9 = vcmp.ge.f32.partialorder %v7549_v23, %v6178_v49 }
 0x1cd   : > { %v3243_v3 = vsub.f32 %v3191_v32, %v3227_v53  ;;  %v4776_v9 = vsel %vm840_vm9, 1.0, %v10377_v8  ;;  %v1224_v43 = vsub.f32 %v4712_v13, %v4728_v0  ;;  %v1240_v59 = vsub.f32 %v4728_v0, %v4744_v24 }
 0x1ce   : > { %v1256_v28 = vsub.f32 %v4744_v24, %v4760_v61  ;;  %v1272_v22 = vsub.f32 %v4760_v61, %v4776_v9  ;;  %v1404_v33 = vmul.f32 %v6245_v10, %v412_v30  ;;  %v1440_v55 = vmul.f32 %v6248_v11, %v7669_v25 }
 0x1cf   : > { %4076 = vmatprep.mubr.f32.mxu1 %v3243_v3  ;;  %v1488_v39 = vmul.f32 %v6248_v11, %v7665_v2  ;;  %v1524_v41 = vmul.f32 %v6251_v12, %v7675_v26  ;;  %v1572_v35 = vmul.f32 %v6251_v12, %v7669_v25  ;;  %v1608_v27 = vmul.f32 %v6254_v15, %v7679_v5 }
 0x1d0   : > { %4077 = vmatmul.mubr.f32.gmra.mrb[22].mxu1 %v3159_v34  ;;  %v1420_v32 = vmul.f32 %v1404_v33, %v1224_v43  ;;  %v1456_v29 = vmul.f32 %v1440_v55, %v1240_v59  ;;  %v2248_v13 = vmul.f32 %v6288_v40, %v412_v30  ;;  %v2284_v53 = vmul.f32 %v6291_v63, %v7675_v26 }
 0x1d1   : > { %v5612_v0 = vpop.eup %5611  ;;  %v1504_v24 = vmul.f32 %v1488_v39, %v1240_v59  ;;  %v1540_v61 = vmul.f32 %v1524_v41, %v1256_v28  ;;  %v1588_v3 = vmul.f32 %v1572_v35, %v1256_v28  ;;  %v1624_v56 = vmul.f32 %v1608_v27, %v1272_v22 }
 0x1d2   : > { %v391_v60 = vmul.f32 %v5612_v0, %v7534_v62  ;;  %v1472_v57 = vsub.f32 %v1420_v32, %v1456_v29  ;;  %v2332_v20 = vmul.f32 %v6291_v63, %v7665_v2  ;;  %v2368_v34 = vmul.f32 %v6294_v1, %v7679_v5 }
 0x1d3   : > { %v1556_v43 = vsub.f32 %v1504_v24, %v1540_v61  ;;  %v1640_v33 = vsub.f32 %v1588_v3, %v1624_v56  ;;  %v3008_v55 = vmul.f32 %v6323_v37, %v412_v30  ;;  %v3044_v21 = vmul.f32 %v6326_v38, %v7679_v5 }
 0x1d4   : > { %3932 = vmatmul.mubr.f32.gmra.mrb[22].mxu0 %v391_v60  ;;  %v2264_v59 = vmul.f32 %v2248_v13, %v1472_v57  ;;  %v7721_v28 = vsub.f32 %v7549_v23, %v6181_v50  ;;  %v7725_v62 = vsub.f32 %v7549_v23, %v6184_v51  ;;  %vm888_vm10 = vcmp.ge.f32.partialorder %v7549_v23, %v6181_v50 }
 0x1d5   : > { %v2300_v39 = vmul.f32 %v2284_v53, %v1556_v43  ;;  %v2348_v56 = vmul.f32 %v2332_v20, %v1556_v43  ;;  %v2384_v41 = vmul.f32 %v2368_v34, %v1640_v33  ;;  %v4792_v30 = vsel %vm888_vm10, 1.0, %v10377_v8 }
 0x1d6   : > { %10474 = vst [vmem:[#allocation129_spill] sm:$0xff] %v7721_v28  ;;  %10475 = vst [vmem:[#allocation130_spill] sm:$0xff] %v7725_v62  ;;  %vm936_vm11 = vcmp.ge.f32.partialorder %v7549_v23, %v6184_v51  ;;  %v1288_v57 = vsub.f32 %v4776_v9, %v4792_v30  ;;  %v1656_v60 = vmul.f32 %v6254_v15, %v7675_v26  ;;  %5613 = vpow2.f32 %v7558_v36 }
 0x1d7   : > { %v1692_v35 = vmul.f32 %v6257_v16, %v7721_v28  ;;  %v2316_v27 = vsub.f32 %v2264_v59, %v2300_v39  ;;  %v2400_v32 = vsub.f32 %v2348_v56, %v2384_v41  ;;  %v7737_v29 = vsel %vm936_vm11, 1.0, %v10377_v8  ;;  %v3761_v41 = vld [vmem:[#allocation8 + $0x2e8] sm:$0xff] }
 0x1d8   : > { %10476 = vst [vmem:[#allocation131_spill] sm:$0xff] %v7737_v29  ;;  %v1740_v20 = vmul.f32 %v6257_v16, %v7679_v5  ;;  %v7742_v13 = vsub.f32 %v4792_v30, %v7737_v29  ;;  %v1672_v53 = vmul.f32 %v1656_v60, %v1272_v22  ;;  %v1776_v9 = vmul.f32 %v6260_v17, %v7725_v62  ;;  %v3760_v22 = vld [vmem:[#allocation8 + $0x2e0] sm:$0xff] }
 0x1d9   : > { %v1708_v0 = vmul.f32 %v1692_v35, %v1288_v57  ;;  %v3024_v24 = vmul.f32 %v3008_v55, %v2316_v27  ;;  %v3060_v61 = vmul.f32 %v3044_v21, %v2400_v32  ;;  %v2416_v34 = vmul.f32 %v6294_v1, %v7669_v25  ;;  %v3792_v30 = vld [vmem:[#allocation8 + $0x3e0] sm:$0xff] }
 0x1da   : > { %10477 = vst [vmem:[#allocation132_spill] sm:$0xff] %v7742_v13  ;;  %v1756_v3 = vmul.f32 %v1740_v20, %v1288_v57  ;;  %v1792_v59 = vmul.f32 %v1776_v9, %v7742_v13  ;;  %v2452_v39 = vmul.f32 %v6299_v6, %v7721_v28  ;;  %v2500_v56 = vmul.f32 %v6299_v6, %v7675_v26  ;;  %v3793_v57 = vld [vmem:[#allocation8 + $0x3e8] sm:$0xff]  ;;  %v3744_v27 = vld [vmem:[#allocation8 + $0x260] sm:$0xff] }
 0x1db   : > { %v1724_v43 = vsub.f32 %v1672_v53, %v1708_v0  ;;  %v3076_v60 = vsub.f32 %v3024_v24, %v3060_v61  ;;  %v2432_v35 = vmul.f32 %v2416_v34, %v1640_v33  ;;  %v2536_v21 = vmul.f32 %v6302_v7, %v7725_v62  ;;  %v3745_v20 = vld [vmem:[#allocation8 + $0x268] sm:$0xff]  ;;  %v3776_v5 = vld [vmem:[#allocation8 + $0x360] sm:$0xff]  ;;  %v7767_v34 = vld [vmem:[%s6096_s9 + $0x68] sm:$0xff] }
 0x1dc   : > { %v3176_v55 = vmul.f32 %v6329_v42, %v7669_v25  ;;  %v7757_v53 = vsub.f32 %v1756_v3, %v1792_v59  ;;  %v3212_v26 = vmul.f32 %v6332_v4, %v7725_v62  ;;  %v3777_v24 = vld [vmem:[#allocation8 + $0x368] sm:$0xff]  ;;  %v3092_v33 = vmul.f32 %v6326_v38, %v7665_v2 }
 0x1dd   : > { %v2468_v0 = vmul.f32 %v2452_v39, %v1724_v43  ;;  %v2516_v9 = vmul.f32 %v2500_v56, %v1724_v43  ;;  %3936 = vmatprep.mubr.f32.mxu0 %v3076_v60  ;;  %v3128_v25 = vmul.f32 %v6329_v42, %v7721_v28  ;;  %v5395_v61 = vpack.c.bf16 %v3761_v41, %v3760_v22 }
 0x1de   : > { %10478 = vst [vmem:[#allocation133_spill] sm:$0xff] %v7757_v53  ;;  %v2552_v43 = vmul.f32 %v2536_v21, %v7757_v53  ;;  %v5427_v59 = vpack.c.bf16 %v3793_v57, %v3792_v30  ;;  %v5397_v39 = vpack.c.bf16 %v3745_v20, %v3744_v27  ;;  %v3108_v56 = vmul.f32 %v3092_v33, %v2400_v32 }
 0x1df   : > { %v2484_v3 = vsub.f32 %v2432_v35, %v2468_v0  ;;  %5396 = vmatprep.subr.bf16.mxu0 %v5395_v61  ;;  %v5429_v62 = vpack.c.bf16 %v3777_v24, %v3776_v5  ;;  %v413_v36 = vsub.f32 %v7767_v34, %v6166_v45  ;;  %v7774_v2 = vsub.f32 %v7767_v34, %v6169_v46 }
 0x1e0   : > { %v7776_v60 = vsub.f32 %v2516_v9, %v2552_v43  ;;  %5428 = vmatprep.subr.bf16.mxu1 %v5427_v59  ;;  %5398 = vmatpush3.bf16.msra.mxu0 %v5397_v39  ;;  %v7779_v35 = vmul.f32 -1.442695, %v7767_v34  ;;  %v7783_v5 = vsub.f32 %v7767_v34, %v6172_v47  ;;  %v7787_v32 = vsub.f32 %v7767_v34, %v6175_v48  ;;  %v5614_v39 = vpop.eup %5613 }
 0x1e1   : > { %v3192_v22 = vmul.f32 %v3176_v55, %v2484_v3  ;;  %v3144_v41 = vmul.f32 %v3128_v25, %v2484_v3  ;;  %5430 = vmatpush3.bf16.msra.mxu1 %v5429_v62  ;;  %v7791_v30 = vsub.f32 %v7767_v34, %v6178_v49  ;;  %vm649_vm12 = vcmp.ge.f32.partialorder %v7767_v34, %v6166_v45 }
 0x1e2   : > { %10479 = vst [vmem:[#allocation134_spill] sm:$0xff] %v7776_v60  ;;  %10480 = vst [vmem:[#allocation135_spill] sm:$0xff] %v7787_v32  ;;  %v3228_v21 = vmul.f32 %v3212_v26, %v7776_v60  ;;  %v4713_v62 = vsel %vm649_vm12, 1.0, %v10377_v8  ;;  %vm697_vm13 = vcmp.ge.f32.partialorder %v7767_v34, %v6169_v46  ;;  %vm745_vm14 = vcmp.ge.f32.partialorder %v7767_v34, %v6172_v47 }
 0x1e3   : > { %10481 = vst [vmem:[#allocation136_spill] sm:$0xff] %v7791_v30  ;;  %v3160_v55 = vsub.f32 %v3108_v56, %v3144_v41  ;;  %v4729_v57 = vsel %vm697_vm13, 1.0, %v10377_v8  ;;  %vm793_vm15 = vcmp.ge.f32.partialorder %v7767_v34, %v6175_v48  ;;  %vm841_vm0 = vcmp.ge.f32.partialorder %v7767_v34, %v6178_v49 }
 0x1e4   : > { %v3244_v27 = vsub.f32 %v3192_v22, %v3228_v21  ;;  %v4745_v26 = vsel %vm745_vm14, 1.0, %v10377_v8  ;;  %v4761_v20 = vsel %vm793_vm15, 1.0, %v10377_v8  ;;  %v4777_v0 = vsel %vm841_vm0, 1.0, %v10377_v8 }
 0x1e5   : > { %v1225_v9 = vsub.f32 %v4713_v62, %v4729_v57  ;;  %v1241_v24 = vsub.f32 %v4729_v57, %v4745_v26  ;;  %v1257_v33 = vsub.f32 %v4745_v26, %v4761_v20  ;;  %v1273_v25 = vsub.f32 %v4761_v20, %v4777_v0 }
 0x1e6   : > { %4081 = vmatprep.mubr.f32.mxu1 %v3244_v27  ;;  %v1405_v61 = vmul.f32 %v6245_v10, %v413_v36  ;;  %v1441_v3 = vmul.f32 %v6248_v11, %v7783_v5  ;;  %v1489_v43 = vmul.f32 %v6248_v11, %v7774_v2  ;;  %v1525_v59 = vmul.f32 %v6251_v12, %v7787_v32 }
 0x1e7   : > { %4082 = vmatmul.mubr.f32.gmra.mrb[24].mxu1 %v3160_v55  ;;  %v1573_v56 = vmul.f32 %v6251_v12, %v7783_v5  ;;  %v1609_v22 = vmul.f32 %v6254_v15, %v7791_v30  ;;  %v2249_v41 = vmul.f32 %v6288_v40, %v413_v36  ;;  %v2285_v21 = vmul.f32 %v6291_v63, %v7787_v32 }
 0x1e8   : > { %v344_v62 = vadd.f32 1.0, %v5614_v39  ;;  %v1421_v57 = vmul.f32 %v1405_v61, %v1225_v9  ;;  %v1457_v27 = vmul.f32 %v1441_v3, %v1241_v24  ;;  %v1505_v26 = vmul.f32 %v1489_v43, %v1241_v24 }
 0x1e9   : > { %v1541_v20 = vmul.f32 %v1525_v59, %v1257_v33  ;;  %v1589_v60 = vmul.f32 %v1573_v56, %v1257_v33  ;;  %v1625_v53 = vmul.f32 %v1609_v22, %v1273_v25  ;;  %v2333_v55 = vmul.f32 %v6291_v63, %v7774_v2 }
 0x1ea   : > { %5615 = vrcp.f32 %v344_v62  ;;  %v1473_v13 = vsub.f32 %v1421_v57, %v1457_v27  ;;  %v2369_v29 = vmul.f32 %v6294_v1, %v7791_v30  ;;  %v3009_v28 = vmul.f32 %v6323_v37, %v413_v36 }
 0x1eb   : > { %v1557_v54 = vsub.f32 %v1505_v26, %v1541_v20  ;;  %v1641_v44 = vsub.f32 %v1589_v60, %v1625_v53  ;;  %v3045_v9 = vmul.f32 %v6326_v38, %v7791_v30  ;;  %v7832_v24 = vsub.f32 %v7767_v34, %v6181_v50 }
 0x1ec   : > { %v2265_v33 = vmul.f32 %v2249_v41, %v1473_v13  ;;  %v7836_v61 = vsub.f32 %v7767_v34, %v6184_v51  ;;  %vm889_vm1 = vcmp.ge.f32.partialorder %v7767_v34, %v6181_v50  ;;  %vm937_vm2 = vcmp.ge.f32.partialorder %v7767_v34, %v6184_v51 }
 0x1ed   : > { %10482 = vst [vmem:[#allocation137_spill] sm:$0xff] %v7832_v24  ;;  %v2301_v36 = vmul.f32 %v2285_v21, %v1557_v54  ;;  %v2349_v53 = vmul.f32 %v2333_v55, %v1557_v54  ;;  %v2385_v60 = vmul.f32 %v2369_v29, %v1641_v44  ;;  %v4793_v3 = vsel %vm889_vm1, 1.0, %v10377_v8 }
 0x1ee   : > { %10483 = vst [vmem:[#allocation138_spill] sm:$0xff] %v7836_v61  ;;  %v7844_v43 = vsel %vm937_vm2, 1.0, %v10377_v8  ;;  %v1289_v59 = vsub.f32 %v4777_v0, %v4793_v3  ;;  %v1657_v13 = vmul.f32 %v6254_v15, %v7787_v32  ;;  %v1693_v39 = vmul.f32 %v6257_v16, %v7832_v24 }
 0x1ef   : > { %10484 = vst [vmem:[#allocation139_spill] sm:$0xff] %v7844_v43  ;;  %v2317_v56 = vsub.f32 %v2265_v33, %v2301_v36  ;;  %v2401_v22 = vsub.f32 %v2349_v53, %v2385_v60  ;;  %v7851_v41 = vsub.f32 %v4793_v3, %v7844_v43  ;;  %v1741_v54 = vmul.f32 %v6257_v16, %v7791_v30 }
 0x1f0   : > { %v1673_v29 = vmul.f32 %v1657_v13, %v1273_v25  ;;  %v1709_v21 = vmul.f32 %v1693_v39, %v1289_v59  ;;  %v1777_v62 = vmul.f32 %v6260_v17, %v7836_v61  ;;  %v2417_v0 = vmul.f32 %v6294_v1, %v7783_v5 }
 0x1f1   : > { %10485 = vst [vmem:[#allocation140_spill] sm:$0xff] %v7851_v41  ;;  %v3025_v57 = vmul.f32 %v3009_v28, %v2317_v56  ;;  %v3061_v27 = vmul.f32 %v3045_v9, %v2401_v22  ;;  %v1757_v26 = vmul.f32 %v1741_v54, %v1289_v59  ;;  %v2453_v20 = vmul.f32 %v6299_v6, %v7832_v24 }
 0x1f2   : > { %v1725_v55 = vsub.f32 %v1673_v29, %v1709_v21  ;;  %v1793_v33 = vmul.f32 %v1777_v62, %v7851_v41  ;;  %v2433_v36 = vmul.f32 %v2417_v0, %v1641_v44  ;;  %v2501_v25 = vmul.f32 %v6299_v6, %v7787_v32  ;;  %v7874_v44 = vld [vmem:[%s6096_s9 + $0x70] sm:$0xff] }
 0x1f3   : > { %v3077_v53 = vsub.f32 %v3025_v57, %v3061_v27  ;;  %v2537_v60 = vmul.f32 %v6302_v7, %v7836_v61  ;;  %v3177_v28 = vmul.f32 %v6329_v42, %v7783_v5  ;;  %v3213_v9 = vmul.f32 %v6332_v4, %v7836_v61 }
 0x1f4   : > { %v5616_v3 = vpop.eup %5615  ;;  %v7870_v59 = vsub.f32 %v1757_v26, %v1793_v33  ;;  %v2469_v13 = vmul.f32 %v2453_v20, %v1725_v55  ;;  %v2517_v39 = vmul.f32 %v2501_v25, %v1725_v55  ;;  %5617 = vpow2.f32 %v7779_v35 }
 0x1f5   : > { %v392_v56 = vmul.f32 %v5616_v3, %v7549_v23  ;;  %v3093_v54 = vmul.f32 %v6326_v38, %v7774_v2  ;;  %v3129_v5 = vmul.f32 %v6329_v42, %v7832_v24  ;;  %v414_v29 = vsub.f32 %v7874_v44, %v6166_v45 }
 0x1f6   : > { %10486 = vst [vmem:[#allocation141_spill] sm:$0xff] %v7870_v59  ;;  %v2485_v21 = vsub.f32 %v2433_v36, %v2469_v13  ;;  %v2553_v62 = vmul.f32 %v2537_v60, %v7870_v59  ;;  %v7886_v0 = vsub.f32 %v7874_v44, %v6169_v46  ;;  %v7890_v35 = vsub.f32 %v7874_v44, %v6172_v47 }
 0x1f7   : > { %3937 = vmatmul.mubr.f32.gmra.mrb[24].mxu0 %v392_v56  ;;  %v3109_v23 = vmul.f32 %v3093_v54, %v2401_v22  ;;  %v7894_v2 = vsub.f32 %v7874_v44, %v6175_v48  ;;  %v7898_v57 = vsub.f32 %v7874_v44, %v6178_v49  ;;  %vm650_vm3 = vcmp.ge.f32.partialorder %v7874_v44, %v6166_v45 }
 0x1f8   : > { %3941 = vmatprep.mubr.f32.mxu0 %v3077_v53  ;;  %v7902_v27 = vsub.f32 %v2517_v39, %v2553_v62  ;;  %v3193_v26 = vmul.f32 %v3177_v28, %v2485_v21  ;;  %v3145_v20 = vmul.f32 %v3129_v5, %v2485_v21  ;;  %v4714_v55 = vsel %vm650_vm3, 1.0, %v10377_v8 }
 0x1f9   : > { %10487 = vst [vmem:[#allocation142_spill] sm:$0xff] %v7894_v2  ;;  %10488 = vst [vmem:[#allocation143_spill] sm:$0xff] %v7898_v57  ;;  %vm698_vm4 = vcmp.ge.f32.partialorder %v7874_v44, %v6169_v46  ;;  %vm746_vm5 = vcmp.ge.f32.partialorder %v7874_v44, %v6172_v47  ;;  %vm794_vm6 = vcmp.ge.f32.partialorder %v7874_v44, %v6175_v48 }
 0x1fa   : > { %10489 = vst [vmem:[#allocation144_spill] sm:$0xff] %v7902_v27  ;;  %vm842_vm7 = vcmp.ge.f32.partialorder %v7874_v44, %v6178_v49  ;;  %v3229_v22 = vmul.f32 %v3213_v9, %v7902_v27  ;;  %v3161_v33 = vsub.f32 %v3109_v23, %v3145_v20  ;;  %v4730_v36 = vsel %vm698_vm4, 1.0, %v10377_v8 }
 0x1fb   : > { %v4746_v25 = vsel %vm746_vm5, 1.0, %v10377_v8  ;;  %v4762_v53 = vsel %vm794_vm6, 1.0, %v10377_v8  ;;  %v4778_v60 = vsel %vm842_vm7, 1.0, %v10377_v8  ;;  %v1226_v28 = vsub.f32 %v4714_v55, %v4730_v36 }
 0x1fc   : > { %v1242_v3 = vsub.f32 %v4730_v36, %v4746_v25  ;;  %v3245_v13 = vsub.f32 %v3193_v26, %v3229_v22  ;;  %v1258_v39 = vsub.f32 %v4746_v25, %v4762_v53  ;;  %v1274_v56 = vsub.f32 %v4762_v53, %v4778_v60 }
 0x1fd   : > { %v1406_v54 = vmul.f32 %v6245_v10, %v414_v29  ;;  %v1442_v5 = vmul.f32 %v6248_v11, %v7890_v35  ;;  %v1490_v9 = vmul.f32 %v6248_v11, %v7886_v0  ;;  %v1526_v21 = vmul.f32 %v6251_v12, %v7894_v2 }
 0x1fe   : > { %v1574_v62 = vmul.f32 %v6251_v12, %v7890_v35  ;;  %v5618_v23 = vpop.eup %5617  ;;  %4086 = vmatprep.mubr.f32.mxu1 %v3245_v13  ;;  %v1610_v26 = vmul.f32 %v6254_v15, %v7898_v57  ;;  %v2250_v55 = vmul.f32 %v6288_v40, %v414_v29  ;;  %v2286_v22 = vmul.f32 %v6291_v63, %v7894_v2 }
 0x1ff   : > { %v1422_v20 = vmul.f32 %v1406_v54, %v1226_v28  ;;  %v345_v36 = vadd.f32 1.0, %v5618_v23  ;;  %4087 = vmatmul.mubr.f32.gmra.mrb[26].mxu1 %v3161_v33  ;;  %v1458_v25 = vmul.f32 %v1442_v5, %v1242_v3  ;;  %v1506_v53 = vmul.f32 %v1490_v9, %v1242_v3 }
 0x200   : > { %v1542_v27 = vmul.f32 %v1526_v21, %v1258_v39  ;;  %v1590_v32 = vmul.f32 %v1574_v62, %v1258_v39  ;;  %v1626_v59 = vmul.f32 %v1610_v26, %v1274_v56  ;;  %v2334_v30 = vmul.f32 %v6291_v63, %v7886_v0 }
 0x201   : > { %v2370_v28 = vmul.f32 %v6294_v1, %v7898_v57  ;;  %5619 = vrcp.f32 %v345_v36  ;;  %v1474_v13 = vsub.f32 %v1422_v20, %v1458_v25  ;;  %v3010_v41 = vmul.f32 %v6323_v37, %v414_v29 }
 0x202   : > { %v1558_v54 = vsub.f32 %v1506_v53, %v1542_v27  ;;  %v1642_v61 = vsub.f32 %v1590_v32, %v1626_v59  ;;  %v3046_v33 = vmul.f32 %v6326_v38, %v7898_v57  ;;  %v7941_v3 = vsub.f32 %v7874_v44, %v6181_v50 }
 0x203   : > { %v7945_v39 = vsub.f32 %v7874_v44, %v6184_v51  ;;  %v2266_v5 = vmul.f32 %v2250_v55, %v1474_v13  ;;  %vm890_vm8 = vcmp.ge.f32.partialorder %v7874_v44, %v6181_v50  ;;  %vm938_vm9 = vcmp.ge.f32.partialorder %v7874_v44, %v6184_v51 }
 0x204   : > { %v2302_v9 = vmul.f32 %v2286_v22, %v1558_v54  ;;  %v2350_v21 = vmul.f32 %v2334_v30, %v1558_v54  ;;  %v2386_v27 = vmul.f32 %v2370_v28, %v1642_v61  ;;  %v4794_v32 = vsel %vm890_vm8, 1.0, %v10377_v8 }
 0x205   : > { %10490 = vst [vmem:[#allocation145_spill] sm:$0xff] %v7945_v39  ;;  %v1658_v59 = vmul.f32 %v6254_v15, %v7894_v2  ;;  %v7955_v62 = vsel %vm938_vm9, 1.0, %v10377_v8  ;;  %v1290_v23 = vsub.f32 %v4778_v60, %v4794_v32  ;;  %v1694_v30 = vmul.f32 %v6257_v16, %v7941_v3 }
 0x206   : > { %v2318_v29 = vsub.f32 %v2266_v5, %v2302_v9  ;;  %10491 = vst [vmem:[#allocation146_spill] sm:$0xff] %v7955_v62  ;;  %v2402_v20 = vsub.f32 %v2350_v21, %v2386_v27  ;;  %v7960_v26 = vsub.f32 %v4794_v32, %v7955_v62  ;;  %v1742_v22 = vmul.f32 %v6257_v16, %v7898_v57  ;;  %v3762_v27 = vld [vmem:[#allocation8 + $0x2f0] sm:$0xff]  ;;  %v3763_v32 = vld [vmem:[#allocation8 + $0x2f8] sm:$0xff] }
 0x207   : > { %v1674_v55 = vmul.f32 %v1658_v59, %v1274_v56  ;;  %v1710_v25 = vmul.f32 %v1694_v30, %v1290_v23  ;;  %v1778_v53 = vmul.f32 %v6260_v17, %v7945_v39  ;;  %v2418_v60 = vmul.f32 %v6294_v1, %v7890_v35  ;;  %v7976_v59 = vld [vmem:[%s6096_s9 + $0x78] sm:$0xff] }
 0x208   : > { %10492 = vst [vmem:[#allocation147_spill] sm:$0xff] %v7960_v26  ;;  %v3026_v36 = vmul.f32 %v3010_v41, %v2318_v29  ;;  %v3062_v28 = vmul.f32 %v3046_v33, %v2402_v20  ;;  %v1758_v13 = vmul.f32 %v1742_v22, %v1290_v23  ;;  %v2454_v54 = vmul.f32 %v6299_v6, %v7941_v3  ;;  %v3795_v22 = vld [vmem:[#allocation8 + $0x3f8] sm:$0xff] }
 0x209   : > { %v2502_v56 = vmul.f32 %v6299_v6, %v7894_v2  ;;  %v1726_v5 = vsub.f32 %v1674_v55, %v1710_v25  ;;  %v1794_v9 = vmul.f32 %v1778_v53, %v7960_v26  ;;  %v2434_v21 = vmul.f32 %v2418_v60, %v1642_v61  ;;  %v3794_v55 = vld [vmem:[#allocation8 + $0x3f0] sm:$0xff]  ;;  %v3779_v26 = vld [vmem:[#allocation8 + $0x378] sm:$0xff] }
 0x20a   : > { %v2538_v41 = vmul.f32 %v6302_v7, %v7945_v39  ;;  %v3078_v29 = vsub.f32 %v3026_v36, %v3062_v28  ;;  %v3178_v33 = vmul.f32 %v6329_v42, %v7890_v35  ;;  %v3214_v23 = vmul.f32 %v6332_v4, %v7945_v39  ;;  %v3746_v25 = vld [vmem:[#allocation8 + $0x270] sm:$0xff]  ;;  %v3747_v36 = vld [vmem:[#allocation8 + $0x278] sm:$0xff] }
 0x20b   : > { %v4698_v30 = vmul.f32 -1.442695, %v7874_v44  ;;  %v5620_v61 = vpop.eup %5619  ;;  %v7983_v53 = vsub.f32 %v1758_v13, %v1794_v9  ;;  %v2470_v60 = vmul.f32 %v2454_v54, %v1726_v5  ;;  %v2518_v2 = vmul.f32 %v2502_v56, %v1726_v5  ;;  %v3778_v28 = vld [vmem:[#allocation8 + $0x370] sm:$0xff] }
 0x20c   : > { %v3094_v57 = vmul.f32 %v6326_v38, %v7886_v0  ;;  %v393_v35 = vmul.f32 %v5620_v61, %v7767_v34  ;;  %v3130_v39 = vmul.f32 %v6329_v42, %v7941_v3  ;;  %v5399_v62 = vpack.c.bf16 %v3763_v32, %v3762_v27 }
 0x20d   : > { %5621 = vpow2.f32 %v4698_v30  ;;  %v2486_v24 = vsub.f32 %v2434_v21, %v2470_v60  ;;  %v2554_v43 = vmul.f32 %v2538_v41, %v7983_v53  ;;  %v5431_v9 = vpack.c.bf16 %v3795_v22, %v3794_v55 }
 0x20e   : > { %v3110_v13 = vmul.f32 %v3094_v57, %v2402_v20  ;;  %3942 = vmatmul.mubr.f32.gmra.mrb[26].mxu0 %v393_v35  ;;  %5400 = vmatprep.subr.bf16.mxu0 %v5399_v62  ;;  %v5401_v54 = vpack.c.bf16 %v3747_v36, %v3746_v25  ;;  %v5433_v56 = vpack.c.bf16 %v3779_v26, %v3778_v28  ;;  %v4699_v5 = vmul.f32 -1.442695, %v7976_v59 }
 0x20f   : > { %v415_v0 = vsub.f32 %v7976_v59, %v6166_v45  ;;  %3946 = vmatprep.mubr.f32.mxu0 %v3078_v29  ;;  %v7994_v34 = vsub.f32 %v2518_v2, %v2554_v43  ;;  %v3194_v30 = vmul.f32 %v3178_v33, %v2486_v24  ;;  %v3146_v61 = vmul.f32 %v3130_v39, %v2486_v24 }
 0x210   : > { %5432 = vmatprep.subr.bf16.mxu1 %v5431_v9  ;;  %5402 = vmatpush3.bf16.msra.mxu0 %v5401_v54  ;;  %v7998_v57 = vsub.f32 %v7976_v59, %v6169_v46  ;;  %v8002_v62 = vsub.f32 %v7976_v59, %v6172_v47  ;;  %v8006_v20 = vsub.f32 %v7976_v59, %v6175_v48  ;;  %5623 = vpow2.f32 %v4699_v5 }
 0x211   : > { %5434 = vmatpush3.bf16.msra.mxu1 %v5433_v56  ;;  %v3230_v43 = vmul.f32 %v3214_v23, %v7994_v34  ;;  %v3162_v2 = vsub.f32 %v3110_v13, %v3146_v61  ;;  %v8011_v24 = vsub.f32 %v7976_v59, %v6178_v49  ;;  %vm651_vm10 = vcmp.ge.f32.partialorder %v7976_v59, %v6166_v45 }
 0x212   : > { %10493 = vst [vmem:[#allocation148_spill] sm:$0xff] %v8006_v20  ;;  %v4715_v39 = vsel %vm651_vm10, 1.0, %v10377_v8  ;;  %vm699_vm11 = vcmp.ge.f32.partialorder %v7976_v59, %v6169_v46  ;;  %vm747_vm12 = vcmp.ge.f32.partialorder %v7976_v59, %v6172_v47  ;;  %vm795_vm13 = vcmp.ge.f32.partialorder %v7976_v59, %v6175_v48 }
 0x213   : > { %v3246_v26 = vsub.f32 %v3194_v30, %v3230_v43  ;;  %v4731_v21 = vsel %vm699_vm11, 1.0, %v10377_v8  ;;  %v4747_v41 = vsel %vm747_vm12, 1.0, %v10377_v8  ;;  %v4763_v27 = vsel %vm795_vm13, 1.0, %v10377_v8 }
 0x214   : > { %vm843_vm14 = vcmp.ge.f32.partialorder %v7976_v59, %v6178_v49  ;;  %v1227_v45 = vsub.f32 %v4715_v39, %v4731_v21  ;;  %v1243_v32 = vsub.f32 %v4731_v21, %v4747_v41  ;;  %v1259_v29 = vsub.f32 %v4747_v41, %v4763_v27 }
 0x215   : > { %4091 = vmatprep.mubr.f32.mxu1 %v3246_v26  ;;  %v4779_v46 = vsel %vm843_vm14, 1.0, %v10377_v8  ;;  %v1407_v47 = vmul.f32 %v6245_v10, %v415_v0  ;;  %v1443_v48 = vmul.f32 %v6248_v11, %v8002_v62  ;;  %v1491_v33 = vmul.f32 %v6248_v11, %v7998_v57 }
 0x216   : > { %4092 = vmatmul.mubr.f32.gmra.mrb[28].mxu1 %v3162_v2  ;;  %v1275_v55 = vsub.f32 %v4763_v27, %v4779_v46  ;;  %v1527_v49 = vmul.f32 %v6251_v12, %v8006_v20  ;;  %v1575_v22 = vmul.f32 %v6251_v12, %v8002_v62  ;;  %v1611_v25 = vmul.f32 %v6254_v15, %v8011_v24 }
 0x217   : > { %v5622_v23 = vpop.eup %5621  ;;  %v1423_v10 = vmul.f32 %v1407_v47, %v1227_v45  ;;  %v1459_v36 = vmul.f32 %v1443_v48, %v1243_v32  ;;  %v1507_v28 = vmul.f32 %v1491_v33, %v1243_v32  ;;  %v2251_v11 = vmul.f32 %v6288_v40, %v415_v0 }
 0x218   : > { %v346_v60 = vadd.f32 1.0, %v5622_v23  ;;  %v1543_v35 = vmul.f32 %v1527_v49, %v1259_v29  ;;  %v1591_v13 = vmul.f32 %v1575_v22, %v1259_v29  ;;  %v1627_v9 = vmul.f32 %v1611_v25, %v1275_v55 }
 0x219   : > { %v1475_v54 = vsub.f32 %v1423_v10, %v1459_v36  ;;  %v2287_v56 = vmul.f32 %v6291_v63, %v8006_v20  ;;  %v2335_v12 = vmul.f32 %v6291_v63, %v7998_v57  ;;  %v2371_v43 = vmul.f32 %v6294_v1, %v8011_v24 }
 0x21a   : > { %5625 = vrcp.f32 %v346_v60  ;;  %v5624_v5 = vpop.eup %5623  ;;  %v1559_v30 = vsub.f32 %v1507_v28, %v1543_v35  ;;  %v1643_v61 = vsub.f32 %v1591_v13, %v1627_v9  ;;  %v3011_v2 = vmul.f32 %v6323_v37, %v415_v0 }
 0x21b   : > { %v2267_v39 = vmul.f32 %v2251_v11, %v1475_v54  ;;  %v3047_v40 = vmul.f32 %v6326_v38, %v8011_v24  ;;  %v8051_v26 = vsub.f32 %v7976_v59, %v6181_v50  ;;  %v8055_v21 = vsub.f32 %v7976_v59, %v6184_v51 }
 0x21c   : > { %v2303_v63 = vmul.f32 %v2287_v56, %v1559_v30  ;;  %v2351_v41 = vmul.f32 %v2335_v12, %v1559_v30  ;;  %v2387_v27 = vmul.f32 %v2371_v43, %v1643_v61  ;;  %vm891_vm15 = vcmp.ge.f32.partialorder %v7976_v59, %v6181_v50 }
 0x21d   : > { %v4795_v37 = vsel %vm891_vm15, 1.0, %v10377_v8  ;;  %vm939_vm0 = vcmp.ge.f32.partialorder %v7976_v59, %v6184_v51  ;;  %v1659_v0 = vmul.f32 %v6254_v15, %v8006_v20  ;;  %v1695_v45 = vmul.f32 %v6257_v16, %v8051_v26 }
 0x21e   : > { %v2319_v32 = vsub.f32 %v2267_v39, %v2303_v63  ;;  %v2403_v29 = vsub.f32 %v2351_v41, %v2387_v27  ;;  %v8067_v47 = vsel %vm939_vm0, 1.0, %v10377_v8  ;;  %v1291_v48 = vsub.f32 %v4779_v46, %v4795_v37 }
 0x21f   : > { %v8070_v33 = vsub.f32 %v4795_v37, %v8067_v47  ;;  %v1675_v50 = vmul.f32 %v1659_v0, %v1275_v55  ;;  %v1743_v23 = vmul.f32 %v6257_v16, %v8011_v24  ;;  %v1779_v51 = vmul.f32 %v6260_v17, %v8055_v21  ;;  %v10497_v37 = vld [vmem:[#allocation34_spill] sm:$0xff] }
 0x220   : > { %v3027_v15 = vmul.f32 %v3011_v2, %v2319_v32  ;;  %v3063_v49 = vmul.f32 %v3047_v40, %v2403_v29  ;;  %v1711_v22 = vmul.f32 %v1695_v45, %v1291_v48  ;;  %v2419_v25 = vmul.f32 %v6294_v1, %v8002_v62  ;;  %v5629_v2 = vld [vmem:[%s6096_s9] sm:$0xff]  ;;  %v10498_v45 = vld [vmem:[#allocation35_spill] sm:$0xff] }
 0x221   : > { %v1759_v60 = vmul.f32 %v1743_v23, %v1291_v48  ;;  %v1795_v10 = vmul.f32 %v1779_v51, %v8070_v33  ;;  %v2455_v46 = vmul.f32 %v6299_v6, %v8051_v26  ;;  %v2503_v55 = vmul.f32 %v6299_v6, %v8006_v20  ;;  %v10496_v40 = vld [vmem:[#allocation25_spill] sm:$0xff]  ;;  %v10499_v48 = vld [vmem:[#allocation36_spill] sm:$0xff]  ;;  %v10500_v23 = vld [vmem:[#allocation26_spill] sm:$0xff] }
 0x222   : > { %v3079_v36 = vsub.f32 %v3027_v15, %v3063_v49  ;;  %v1727_v16 = vsub.f32 %v1675_v50, %v1711_v22  ;;  %v2435_v28 = vmul.f32 %v2419_v25, %v1643_v61  ;;  %v2539_v35 = vmul.f32 %v6302_v7, %v8055_v21  ;;  %v10501_v15 = vld [vmem:[#allocation19_spill] sm:$0xff]  ;;  %v10502_v49 = vld [vmem:[#allocation29_spill] sm:$0xff] }
 0x223   : > { %v8085_v9 = vsub.f32 %v1759_v60, %v1795_v10  ;;  %v3179_v1 = vmul.f32 %v6329_v42, %v8002_v62  ;;  %v3215_v11 = vmul.f32 %v6332_v4, %v8055_v21  ;;  %v347_v54 = vadd.f32 1.0, %v5624_v5  ;;  %v10503_v10 = vld [vmem:[#allocation30_spill] sm:$0xff] }
 0x224   : > { %v5626_v13 = vpop.eup %5625  ;;  %v2471_v6 = vmul.f32 %v2455_v46, %v1727_v16  ;;  %v2519_v12 = vmul.f32 %v2503_v55, %v1727_v16  ;;  %v3095_v30 = vmul.f32 %v6326_v38, %v7998_v57  ;;  %v3131_v43 = vmul.f32 %v6329_v42, %v8051_v26  ;;  %v10504_v16 = vld [vmem:[#allocation37_spill] sm:$0xff] }
 0x225   : > { %v394_v56 = vmul.f32 %v5626_v13, %v7874_v44  ;;  %v2555_v61 = vmul.f32 %v2539_v35, %v8085_v9  ;;  %5627 = vrcp.f32 %v347_v54  ;;  %v8099_v62 = vsub.f32 %v5629_v2, %v6210_v58  ;;  %v10505_v35 = vld [vmem:[#allocation20_spill] sm:$0xff] }
 0x226   : > { %v2487_v39 = vsub.f32 %v2435_v28, %v2471_v6  ;;  %v3111_v5 = vmul.f32 %v3095_v30, %v2403_v29  ;;  %vm1020_vm1 = vcmp.ge.f32.partialorder %v5629_v2, %v6210_v58  ;;  %v1896_v44 = vmul.f32 %v6263_v18, %v6358_v52  ;;  %v10510_v30 = vld [vmem:[#allocation23_spill] sm:$0xff] }
 0x227   : > { %10494 = vst [vmem:[#allocation149_spill] sm:$0xff] %v8099_v62  ;;  %3947 = vmatmul.mubr.f32.gmra.mrb[28].mxu0 %v394_v56  ;;  %v8104_v38 = vsub.f32 %v2519_v12, %v2555_v61  ;;  %v4828_v57 = vsel %vm1020_vm1, 1.0, %v10377_v8  ;;  %v1932_v42 = vmul.f32 %v6278_v31, %v8099_v62  ;;  %v2656_v63 = vmul.f32 %v10496_v40, %v6354_v14  ;;  %v10508_v56 = vld [vmem:[#allocation33_spill] sm:$0xff] }
 0x228   : > { %3951 = vmatprep.mubr.f32.mxu0 %v3079_v36  ;;  %v3195_v41 = vmul.f32 %v3179_v1, %v2487_v39  ;;  %v3147_v27 = vmul.f32 %v3131_v43, %v2487_v39  ;;  %v1324_v0 = vsub.f32 %v10497_v37, %v4828_v57  ;;  %v1912_v32 = vmul.f32 %v1896_v44, %v10498_v45  ;;  %v10507_v1 = vld [vmem:[#allocation21_spill] sm:$0xff]  ;;  %v10513_v37 = vld [vmem:[#allocation27_spill] sm:$0xff] }
 0x229   : > { %10495 = vst [vmem:[#allocation150_spill] sm:$0xff] %v8104_v38  ;;  %v3231_v29 = vmul.f32 %v3215_v11, %v8104_v38  ;;  %v2672_v50 = vmul.f32 %v2656_v63, %v10499_v48  ;;  %v2692_v51 = vmul.f32 %v10500_v23, %v8099_v62  ;;  %v3332_v22 = vmul.f32 %v10502_v49, %v10501_v15  ;;  %v10512_v63 = vld [vmem:[#allocation24_spill] sm:$0xff]  ;;  %v3796_v15 = vld [vmem:[#allocation8 + $0x400] sm:$0xff] }
 0x22a   : > { %v3163_v25 = vsub.f32 %v3111_v5, %v3147_v27  ;;  %v1948_v60 = vmul.f32 %v1932_v42, %v1324_v0  ;;  %v3368_v46 = vmul.f32 %v10503_v10, %v8099_v62  ;;  %v3416_v55 = vmul.f32 %v10503_v10, %v6354_v14 }
 0x22b   : > { %v3247_v36 = vsub.f32 %v3195_v41, %v3231_v29  ;;  %v3348_v28 = vmul.f32 %v3332_v22, %v10504_v16  ;;  %v8125_v13 = vsub.f32 %v5629_v2, %v10505_v35  ;;  %v600_v11 = vsub.f32 %v5629_v2, %v10507_v1  ;;  %v10515_v16 = vld [vmem:[#allocation31_spill] sm:$0xff] }
 0x22c   : > { %v1964_v54 = vsub.f32 %v1912_v32, %v1948_v60  ;;  %vm1068_vm2 = vcmp.ge.f32.partialorder %v5629_v2, %v10505_v35  ;;  %vm1116_vm3 = vcmp.ge.f32.partialorder %v5629_v2, %v10507_v1  ;;  %v1980_v6 = vmul.f32 %v6278_v31, %v10508_v56  ;;  %v10514_v60 = vld [vmem:[#allocation28_spill] sm:$0xff] }
 0x22d   : > { %10506 = vst [vmem:[#allocation25_spill] sm:$0xff] %v8125_v13  ;;  %4096 = vmatprep.mubr.f32.mxu1 %v3247_v36  ;;  %v4844_v12 = vsel %vm1068_vm2, 1.0, %v10377_v8  ;;  %v8134_v14 = vsel %vm1116_vm3, 1.0, %v10377_v8  ;;  %v2016_v61 = vmul.f32 %v10510_v30, %v8125_v13  ;;  %v2064_v43 = vmul.f32 %v10510_v30, %v8099_v62 }
 0x22e   : > { %10509 = vst [vmem:[#allocation34_spill] sm:$0xff] %v8134_v14  ;;  %4097 = vmatmul.mubr.f32.gmra.mrb[30].mxu1 %v3163_v25  ;;  %v2708_v39 = vmul.f32 %v2692_v51, %v1964_v54  ;;  %v1340_v5 = vsub.f32 %v4828_v57, %v4844_v12  ;;  %v8141_v2 = vsub.f32 %v4844_v12, %v8134_v14 }
 0x22f   : > { %v1996_v44 = vmul.f32 %v1980_v6, %v1324_v0  ;;  %v5628_v42 = vpop.eup %5627  ;;  %v2100_v41 = vmul.f32 %v10512_v63, %v600_v11  ;;  %v2740_v27 = vmul.f32 %v10500_v23, %v6358_v52  ;;  %v2776_v45 = vmul.f32 %v10513_v37, %v8125_v13  ;;  %v3797_v0 = vld [vmem:[#allocation8 + $0x408] sm:$0xff] }
 0x230   : > { %10511 = vst [vmem:[#allocation35_spill] sm:$0xff] %v8141_v2  ;;  %v2824_v32 = vmul.f32 %v10513_v37, %v10508_v56  ;;  %v395_v29 = vmul.f32 %v5628_v42, %v7976_v59  ;;  %v2724_v48 = vsub.f32 %v2672_v50, %v2708_v39  ;;  %v2032_v57 = vmul.f32 %v2016_v61, %v1340_v5  ;;  %v10517_v61 = vld [vmem:[#allocation32_spill] sm:$0xff]  ;;  %v10518_v42 = vld [vmem:[#allocation18_spill] sm:$0xff] }
 0x231   : > { %v2080_v51 = vmul.f32 %v2064_v43, %v1340_v5  ;;  %v2116_v22 = vmul.f32 %v2100_v41, %v8141_v2  ;;  %v2756_v25 = vmul.f32 %v2740_v27, %v1964_v54  ;;  %v2860_v36 = vmul.f32 %v10514_v60, %v600_v11  ;;  %v5630_v5 = vld [vmem:[%s6096_s9 + $0x8] sm:$0xff] }
 0x232   : > { %v3452_v6 = vmul.f32 %v10515_v16, %v8125_v13  ;;  %3952 = vmatmul.mubr.f32.gmra.mrb[30].mxu0 %v395_v29  ;;  %v3384_v12 = vmul.f32 %v3368_v46, %v2724_v48  ;;  %v3432_v62 = vmul.f32 %v3416_v55, %v2724_v48  ;;  %v2048_v56 = vsub.f32 %v1996_v44, %v2032_v57  ;;  %v10524_v57 = vld [vmem:[#allocation44_spill] sm:$0xff] }
 0x233   : > { %v3500_v59 = vmul.f32 %v10515_v16, %v6358_v52  ;;  %v8157_v50 = vsub.f32 %v2080_v51, %v2116_v22  ;;  %v3536_v43 = vmul.f32 %v10517_v61, %v600_v11  ;;  %v5435_v39 = vpack.c.bf16 %v3797_v0, %v3796_v15 }
 0x234   : > { %v8162_v54 = vsub.f32 %v5630_v5, %v10518_v42  ;;  %v3400_v41 = vsub.f32 %v3348_v28, %v3384_v12  ;;  %v2792_v27 = vmul.f32 %v2776_v45, %v2048_v56  ;;  %v2840_v2 = vmul.f32 %v2824_v32, %v2048_v56  ;;  %v10519_v28 = vld [vmem:[#allocation42_spill] sm:$0xff]  ;;  %v10522_v32 = vld [vmem:[#allocation39_spill] sm:$0xff] }
 0x235   : > { %10516 = vst [vmem:[#allocation36_spill] sm:$0xff] %v8157_v50  ;;  %v8165_v29 = vsub.f32 %v5630_v5, %v6210_v58  ;;  %v2876_v46 = vmul.f32 %v2860_v36, %v8157_v50  ;;  %5436 = vmatprep.subr.bf16.mxu0 %v5435_v39  ;;  %5467 = vmatprep.subr.bf16.mxu1 %v5435_v39  ;;  %v10521_v45 = vld [vmem:[#allocation38_spill] sm:$0xff]  ;;  %v10525_v36 = vld [vmem:[#allocation45_spill] sm:$0xff] }
 0x236   : > { %vm973_vm4 = vcmp.ge.f32.partialorder %v5630_v5, %v10518_v42  ;;  %vm1021_vm5 = vcmp.ge.f32.partialorder %v5630_v5, %v6210_v58  ;;  %4166 = vmatprep.mubr.f32.mxu0 %v3400_v41  ;;  %v2808_v52 = vsub.f32 %v2756_v25, %v2792_v27  ;;  %v1813_v56 = vmul.f32 %v6260_v17, %v10519_v28  ;;  %v10526_v41 = vld [vmem:[#allocation43_spill] sm:$0xff]  ;;  %v10528_v50 = vld [vmem:[#allocation46_spill] sm:$0xff] }
 0x237   : > { %v4813_v55 = vsel %vm973_vm4, 1.0, %v10377_v8  ;;  %v4829_v11 = vsel %vm1021_vm5, 1.0, %v10377_v8  ;;  %v8174_v44 = vsub.f32 %v2840_v2, %v2876_v46  ;;  %v10523_v48 = vsub.f32 %v10521_v45, %v10522_v32  ;;  %v10527_v32 = vld [vmem:[#allocation41_spill] sm:$0xff] }
 0x238   : > { %v1309_v51 = vsub.f32 %v10524_v57, %v4813_v55  ;;  %v1325_v15 = vsub.f32 %v4813_v55, %v4829_v11  ;;  %v1849_v0 = vmul.f32 %v6263_v18, %v8162_v54  ;;  %v3468_v22 = vmul.f32 %v3452_v6, %v2808_v52 }
 0x239   : > { %10520 = vst [vmem:[#allocation26_spill] sm:$0xff] %v8174_v44  ;;  %4167 = vmatmul.mubr.f32.vlgmr.msra.gmra.mrb[32].mxu0 %v10523_v48  ;;  %v3516_v25 = vmul.f32 %v3500_v59, %v2808_v52  ;;  %v1829_v12 = vmul.f32 %v1813_v56, %v10525_v36  ;;  %v1897_v27 = vmul.f32 %v6263_v18, %v10526_v41 }
 0x23a   : > { %5438 = vmatpush3.bf16.msra.mxu0 %v5435_v39  ;;  %v3552_v2 = vmul.f32 %v3536_v43, %v8174_v44  ;;  %v1865_v46 = vmul.f32 %v1849_v0, %v1309_v51  ;;  %v1933_v45 = vmul.f32 %v6278_v31, %v8165_v29  ;;  %v2573_v55 = vmul.f32 %v6302_v7, %v10527_v32 }
 0x23b   : > { %v3484_v48 = vsub.f32 %v3432_v62, %v3468_v22  ;;  %v1913_v57 = vmul.f32 %v1897_v27, %v1309_v51  ;;  %v2609_v6 = vmul.f32 %v10496_v40, %v8162_v54  ;;  %v2657_v59 = vmul.f32 %v10496_v40, %v10519_v28 }
 0x23c   : > { %v3568_v52 = vsub.f32 %v3516_v25, %v3552_v2  ;;  %v1881_v56 = vsub.f32 %v1829_v12, %v1865_v46  ;;  %v1949_v36 = vmul.f32 %v1933_v45, %v1325_v15  ;;  %v2589_v43 = vmul.f32 %v2573_v55, %v10528_v50  ;;  %v10529_v12 = vld [vmem:[#allocation22_spill] sm:$0xff] }
 0x23d   : > { %v2693_v0 = vmul.f32 %v10500_v23, %v8165_v29  ;;  %v3333_v44 = vmul.f32 %v10502_v49, %v10527_v32  ;;  %v3369_v62 = vmul.f32 %v10503_v10, %v8165_v29  ;;  %v581_v51 = vsub.f32 %v5630_v5, %v10505_v35 }
 0x23e   : > { %4311 = vmatprep.mubr.f32.mxu1 %v3568_v52  ;;  %v1965_v22 = vsub.f32 %v1913_v57, %v1949_v36  ;;  %v2625_v27 = vmul.f32 %v2609_v6, %v1881_v56  ;;  %v2673_v14 = vmul.f32 %v2657_v59, %v1881_v56  ;;  %v601_v25 = vsub.f32 %v5630_v5, %v10507_v1 }
 0x23f   : > { %4312 = vmatmul.mubr.f32.vlgmr.msra.gmra.mrb[32].mxu1 %v3484_v48  ;;  %v8204_v50 = vsub.f32 %v5630_v5, %v10529_v12  ;;  %vm1069_vm6 = vcmp.ge.f32.partialorder %v5630_v5, %v10505_v35  ;;  %vm1117_vm7 = vcmp.ge.f32.partialorder %v5630_v5, %v10507_v1  ;;  %vm1165_vm8 = vcmp.ge.f32.partialorder %v5630_v5, %v10529_v12 }
 0x240   : > { %5475 = vmatpush3.bf16.msra.mxu1 %v5435_v39  ;;  %v2641_v2 = vsub.f32 %v2589_v43, %v2625_v27  ;;  %v2709_v46 = vmul.f32 %v2693_v0, %v1965_v22  ;;  %v4845_v45 = vsel %vm1069_vm6, 1.0, %v10377_v8  ;;  %v4861_v32 = vsel %vm1117_vm7, 1.0, %v10377_v8 }
 0x241   : > { %10530 = vst [vmem:[#allocation19_spill] sm:$0xff] %v8204_v50  ;;  %v4877_v55 = vsel %vm1165_vm8, 1.0, %v10377_v8  ;;  %v1341_v57 = vsub.f32 %v4829_v11, %v4845_v45  ;;  %v1357_v48 = vsub.f32 %v4845_v45, %v4861_v32  ;;  %v1981_v6 = vmul.f32 %v6278_v31, %v8162_v54  ;;  %v5631_v11 = vld [vmem:[#allocation7 + $0x8] sm:$0xff]  ;;  %v10531_v45 = vld [vmem:[#allocation15_spill] sm:$0xff] }
 0x242   : > { %v2725_v59 = vsub.f32 %v2673_v14, %v2709_v46  ;;  %v3349_v52 = vmul.f32 %v3333_v44, %v2641_v2  ;;  %v1373_v56 = vsub.f32 %v4861_v32, %v4877_v55  ;;  %v2017_v36 = vmul.f32 %v10510_v30, %v581_v51 }
 0x243   : > { %v1997_v5 = vmul.f32 %v1981_v6, %v1325_v15  ;;  %v2065_v39 = vmul.f32 %v10510_v30, %v8165_v29  ;;  %v2101_v43 = vmul.f32 %v10512_v63, %v601_v25  ;;  %v2149_v0 = vmul.f32 %v10512_v63, %v581_v51 }
 0x244   : > { %v3385_v27 = vmul.f32 %v3369_v62, %v2725_v59  ;;  %v2033_v13 = vmul.f32 %v2017_v36, %v1341_v57  ;;  %v8220_v38 = vrot.slane %v5631_v11, %v10531_v45  ;;  %v2741_v14 = vmul.f32 %v10500_v23, %v10526_v41 }
 0x245   : > { %v2081_v44 = vmul.f32 %v2065_v39, %v1341_v57  ;;  %v2117_v46 = vmul.f32 %v2101_v43, %v1357_v48  ;;  %v8224_v32 = vmul.f32 %v2149_v0, %v1357_v48  ;;  %v2777_v15 = vmul.f32 %v10513_v37, %v581_v51 }
 0x246   : > { %v3401_v55 = vsub.f32 %v3349_v52, %v3385_v27  ;;  %v2049_v6 = vsub.f32 %v1997_v5, %v2033_v13  ;;  %v2185_v20 = vmul.f32 %v8220_v38, %v8204_v50  ;;  %v2757_v62 = vmul.f32 %v2741_v14, %v1965_v22  ;;  %v10535_v14 = vld [vmem:[#allocation40_spill] sm:$0xff] }
 0x247   : > { %10532 = vst [vmem:[#allocation29_spill] sm:$0xff] %v8224_v32  ;;  %v2133_v36 = vsub.f32 %v2081_v44, %v2117_v46  ;;  %v2825_v11 = vmul.f32 %v10513_v37, %v8162_v54  ;;  %v2861_v45 = vmul.f32 %v10514_v60, %v601_v25  ;;  %v2909_v57 = vmul.f32 %v10514_v60, %v8165_v29  ;;  %v5632_v44 = vld [vmem:[%s6096_s9 + $0x10] sm:$0xff] }
 0x248   : > { %4171 = vmatprep.mubr.f32.mxu0 %v3401_v55  ;;  %v8234_v48 = vmul.f32 %v2185_v20, %v1373_v56  ;;  %v2793_v39 = vmul.f32 %v2777_v15, %v2049_v6  ;;  %v3501_v13 = vmul.f32 %v10515_v16, %v10526_v41  ;;  %v3537_v52 = vmul.f32 %v10517_v61, %v601_v25 }
 0x249   : > { %v2841_v22 = vmul.f32 %v2825_v11, %v2049_v6  ;;  %v2877_v5 = vmul.f32 %v2861_v45, %v2133_v36  ;;  %v8239_v43 = vmul.f32 %v2909_v57, %v2133_v36  ;;  %v3585_v0 = vmul.f32 %v10517_v61, %v8162_v54  ;;  %v10538_v6 = vld [vmem:[#allocation49_spill] sm:$0xff] }
 0x24a   : > { %10533 = vst [vmem:[#allocation30_spill] sm:$0xff] %v8234_v48  ;;  %v2809_v27 = vsub.f32 %v2757_v62, %v2793_v39  ;;  %v3249_v29 = vmul.f32 %v6332_v4, %v10535_v14  ;;  %v3285_v20 = vmul.f32 %v10502_v49, %v8162_v54  ;;  %v3417_v56 = vmul.f32 %v10503_v10, %v10519_v28 }
 0x24b   : > { %10534 = vst [vmem:[#allocation37_spill] sm:$0xff] %v8239_v43  ;;  %v2893_v41 = vsub.f32 %v2841_v22, %v2877_v5  ;;  %v3453_v25 = vmul.f32 %v10515_v16, %v581_v51  ;;  %v8252_v46 = vsub.f32 %v5632_v44, %v10518_v42  ;;  %v8255_v15 = vsub.f32 %v5632_v44, %v6210_v58 }
 0x24c   : > { %v3517_v55 = vmul.f32 %v3501_v13, %v2809_v27  ;;  %v3265_v62 = vmul.f32 %v3249_v29, %v10538_v6  ;;  %v3301_v36 = vmul.f32 %v3285_v20, %v2641_v2  ;;  %v3433_v11 = vmul.f32 %v3417_v56, %v2725_v59  ;;  %v10540_v2 = vld [vmem:[#allocation51_spill] sm:$0xff]  ;;  %v10542_v29 = vld [vmem:[#allocation50_spill] sm:$0xff] }
 0x24d   : > { %10536 = vst [vmem:[#allocation20_spill] sm:$0xff] %v8252_v46  ;;  %10537 = vst [vmem:[#allocation21_spill] sm:$0xff] %v8255_v15  ;;  %v3553_v45 = vmul.f32 %v3537_v52, %v2893_v41  ;;  %v8258_v54 = vmul.f32 %v3585_v0, %v2893_v41  ;;  %v3469_v57 = vmul.f32 %v3453_v25, %v2809_v27  ;;  %v10541_v0 = vld [vmem:[#allocation52_spill] sm:$0xff] }
 0x24e   : > { %vm974_vm9 = vcmp.ge.f32.partialorder %v5632_v44, %v10518_v42  ;;  %v3317_v28 = vsub.f32 %v3265_v62, %v3301_v36  ;;  %vm1022_vm10 = vcmp.ge.f32.partialorder %v5632_v44, %v6210_v58  ;;  %v1814_v39 = vmul.f32 %v6260_v17, %v6615_v19  ;;  %v10543_v41 = vld [vmem:[#allocation48_spill] sm:$0xff] }
 0x24f   : > { %10539 = vst [vmem:[#allocation23_spill] sm:$0xff] %v8258_v54  ;;  %v4814_v51 = vsel %vm974_vm9, 1.0, %v10377_v8  ;;  %v3569_v22 = vsub.f32 %v3517_v55, %v3553_v45  ;;  %v3485_v13 = vsub.f32 %v3433_v11, %v3469_v57  ;;  %v4830_v5 = vsel %vm1022_vm10, 1.0, %v10377_v8 }
 0x250   : > { %v1310_v59 = vsub.f32 %v10540_v2, %v4814_v51  ;;  %4172 = vmatmul.mubr.f32.gmra.mrb[34].mxu0 %v3317_v28  ;;  %v1326_v52 = vsub.f32 %v4814_v51, %v4830_v5  ;;  %v1830_v27 = vmul.f32 %v1814_v39, %v10541_v0  ;;  %v1850_v14 = vmul.f32 %v6263_v18, %v8252_v46  ;;  %v10544_v28 = vld [vmem:[#allocation53_spill] sm:$0xff] }
 0x251   : > { %v1898_v20 = vmul.f32 %v6263_v18, %v10542_v29  ;;  %4316 = vmatprep.mubr.f32.mxu1 %v3569_v22  ;;  %v1934_v56 = vmul.f32 %v6278_v31, %v8255_v15  ;;  %v2574_v25 = vmul.f32 %v6302_v7, %v10543_v41  ;;  %v2610_v55 = vmul.f32 %v10496_v40, %v8252_v46 }
 0x252   : > { %v2658_v6 = vmul.f32 %v10496_v40, %v6615_v19  ;;  %4317 = vmatmul.mubr.f32.gmra.mrb[34].mxu1 %v3485_v13  ;;  %v1866_v62 = vmul.f32 %v1850_v14, %v1310_v59  ;;  %v2694_v11 = vmul.f32 %v10500_v23, %v8255_v15  ;;  %v3334_v45 = vmul.f32 %v10502_v49, %v10543_v41 }
 0x253   : > { %v1914_v36 = vmul.f32 %v1898_v20, %v1310_v59  ;;  %v1950_v57 = vmul.f32 %v1934_v56, %v1326_v52  ;;  %v2590_v51 = vmul.f32 %v2574_v25, %v10544_v28  ;;  %v3370_v39 = vmul.f32 %v10503_v10, %v8255_v15 }
 0x254   : > { %v8288_v22 = vsub.f32 %v5632_v44, %v10505_v35  ;;  %v1882_v2 = vsub.f32 %v1830_v27, %v1866_v62  ;;  %v602_v13 = vsub.f32 %v5632_v44, %v10507_v1  ;;  %vm1070_vm11 = vcmp.ge.f32.partialorder %v5632_v44, %v10505_v35 }
 0x255   : > { %vm1118_vm12 = vcmp.ge.f32.partialorder %v5632_v44, %v10507_v1  ;;  %v1966_v59 = vsub.f32 %v1914_v36, %v1950_v57  ;;  %v4846_v0 = vsel %vm1070_vm11, 1.0, %v10377_v8  ;;  %v1982_v20 = vmul.f32 %v6278_v31, %v8252_v46 }
 0x256   : > { %10545 = vst [vmem:[#allocation24_spill] sm:$0xff] %v8288_v22  ;;  %v8295_v14 = vsel %vm1118_vm12, 1.0, %v10377_v8  ;;  %v2626_v56 = vmul.f32 %v2610_v55, %v1882_v2  ;;  %v2674_v41 = vmul.f32 %v2658_v6, %v1882_v2  ;;  %v1342_v25 = vsub.f32 %v4830_v5, %v4846_v0 }
 0x257   : > { %10546 = vst [vmem:[#allocation27_spill] sm:$0xff] %v8295_v14  ;;  %v8300_v27 = vsub.f32 %v4846_v0, %v8295_v14  ;;  %v2710_v62 = vmul.f32 %v2694_v11, %v1966_v59  ;;  %v1998_v28 = vmul.f32 %v1982_v20, %v1326_v52  ;;  %v2018_v44 = vmul.f32 %v10510_v30, %v8288_v22 }
 0x258   : > { %v2066_v36 = vmul.f32 %v10510_v30, %v8255_v15  ;;  %v2642_v57 = vsub.f32 %v2590_v51, %v2626_v56  ;;  %v2102_v54 = vmul.f32 %v10512_v63, %v602_v13  ;;  %v2742_v43 = vmul.f32 %v10500_v23, %v10542_v29 }
 0x259   : > { %10547 = vst [vmem:[#allocation28_spill] sm:$0xff] %v8300_v27  ;;  %v2778_v5 = vmul.f32 %v10513_v37, %v8288_v22  ;;  %v2726_v55 = vsub.f32 %v2674_v41, %v2710_v62  ;;  %v2034_v6 = vmul.f32 %v2018_v44, %v1342_v25  ;;  %v2826_v52 = vmul.f32 %v10513_v37, %v8252_v46  ;;  %v10549_v41 = vld [vmem:[#allocation47_spill] sm:$0xff]  ;;  %v10550_v44 = vld [vmem:[#allocation54_spill] sm:$0xff] }
 0x25a   : > { %v2082_v2 = vmul.f32 %v2066_v36, %v1342_v25  ;;  %v3350_v11 = vmul.f32 %v3334_v45, %v2642_v57  ;;  %v2118_v0 = vmul.f32 %v2102_v54, %v8300_v27  ;;  %v2758_v20 = vmul.f32 %v2742_v43, %v1966_v59  ;;  %v3798_v54 = vld [vmem:[#allocation8 + $0x410] sm:$0xff]  ;;  %v10564_v27 = vld [vmem:[#allocation55_spill] sm:$0xff] }
 0x25b   : > { %v2862_v51 = vmul.f32 %v10514_v60, %v602_v13  ;;  %v3386_v56 = vmul.f32 %v3370_v39, %v2726_v55  ;;  %v2050_v15 = vsub.f32 %v1998_v28, %v2034_v6  ;;  %v3502_v14 = vmul.f32 %v10515_v16, %v10542_v29  ;;  %v3799_v39 = vld [vmem:[#allocation8 + $0x418] sm:$0xff] }
 0x25c   : > { %v3538_v50 = vmul.f32 %v10517_v61, %v602_v13  ;;  %v8318_v32 = vsub.f32 %v2082_v2, %v2118_v0  ;;  %v3250_v25 = vmul.f32 %v6332_v4, %v10549_v41  ;;  %v3286_v45 = vmul.f32 %v10502_v49, %v8252_v46  ;;  %v5633_v46 = vld [vmem:[%s6096_s9 + $0x18] sm:$0xff] }
 0x25d   : > { %v3418_v43 = vmul.f32 %v10503_v10, %v6615_v19  ;;  %v3402_v59 = vsub.f32 %v3350_v11, %v3386_v56  ;;  %v2794_v62 = vmul.f32 %v2778_v5, %v2050_v15  ;;  %v2842_v28 = vmul.f32 %v2826_v52, %v2050_v15  ;;  %v10554_v56 = vld [vmem:[#allocation59_spill] sm:$0xff] }
 0x25e   : > { %10548 = vst [vmem:[#allocation31_spill] sm:$0xff] %v8318_v32  ;;  %v3454_v29 = vmul.f32 %v10515_v16, %v8288_v22  ;;  %v2878_v13 = vmul.f32 %v2862_v51, %v8318_v32  ;;  %v3266_v36 = vmul.f32 %v3250_v25, %v10550_v44  ;;  %v3302_v6 = vmul.f32 %v3286_v45, %v2642_v57 }
 0x25f   : > { %v3434_v2 = vmul.f32 %v3418_v43, %v2726_v55  ;;  %4176 = vmatprep.mubr.f32.mxu0 %v3402_v59  ;;  %v2810_v0 = vsub.f32 %v2758_v20, %v2794_v62  ;;  %v5439_v41 = vpack.c.bf16 %v3799_v39, %v3798_v54  ;;  %v8332_v19 = vsub.f32 %v5633_v46, %v10518_v42  ;;  %v10555_v54 = vld [vmem:[#allocation57_spill] sm:$0xff]  ;;  %v10556_v59 = vld [vmem:[#allocation58_spill] sm:$0xff] }
 0x260   : > { %v8335_v11 = vsub.f32 %v5633_v46, %v6210_v58  ;;  %v8337_v15 = vsub.f32 %v2842_v28, %v2878_v13  ;;  %v3318_v5 = vsub.f32 %v3266_v36, %v3302_v6  ;;  %vm975_vm13 = vcmp.ge.f32.partialorder %v5633_v46, %v10518_v42  ;;  %v10558_v36 = vld [vmem:[#allocation60_spill] sm:$0xff] }
 0x261   : > { %10551 = vst [vmem:[#allocation32_spill] sm:$0xff] %v8332_v19  ;;  %vm1023_vm14 = vcmp.ge.f32.partialorder %v5633_v46, %v6210_v58  ;;  %v3518_v52 = vmul.f32 %v3502_v14, %v2810_v0  ;;  %v3470_v57 = vmul.f32 %v3454_v29, %v2810_v0  ;;  %5440 = vmatprep.subr.bf16.mxu0 %v5439_v41  ;;  %v4815_v55 = vsel %vm975_vm13, 1.0, %v10377_v8  ;;  %v10557_v29 = vld [vmem:[#allocation56_spill] sm:$0xff] }
 0x262   : > { %10552 = vst [vmem:[#allocation18_spill] sm:$0xff] %v8335_v11  ;;  %10553 = vst [vmem:[#allocation42_spill] sm:$0xff] %v8337_v15  ;;  %5468 = vmatprep.subr.bf16.mxu1 %v5439_v41  ;;  %v4831_v20 = vsel %vm1023_vm14, 1.0, %v10377_v8  ;;  %v3554_v51 = vmul.f32 %v3538_v50, %v8337_v15  ;;  %4177 = vmatmul.mubr.f32.gmra.mrb[36].mxu0 %v3318_v5  ;;  %v1311_v25 = vsub.f32 %v10554_v56, %v4815_v55 }
 0x263   : > { %5476 = vmatpush3.bf16.msra.mxu1 %v5439_v41  ;;  %v1327_v45 = vsub.f32 %v4815_v55, %v4831_v20  ;;  %v3486_v43 = vsub.f32 %v3434_v2, %v3470_v57  ;;  %5442 = vmatpush3.bf16.msra.mxu0 %v5439_v41  ;;  %v1815_v39 = vmul.f32 %v6260_v17, %v10555_v54  ;;  %v10559_v57 = vld [vmem:[#allocation61_spill] sm:$0xff] }
 0x264   : > { %v1851_v14 = vmul.f32 %v6263_v18, %v8332_v19  ;;  %v1899_v62 = vmul.f32 %v6263_v18, %v10556_v59  ;;  %v3570_v28 = vsub.f32 %v3518_v52, %v3554_v51  ;;  %v1935_v50 = vmul.f32 %v6278_v31, %v8335_v11 }
 0x265   : > { %v2575_v13 = vmul.f32 %v6302_v7, %v10557_v29  ;;  %v2611_v44 = vmul.f32 %v10496_v40, %v8332_v19  ;;  %v1831_v6 = vmul.f32 %v1815_v39, %v10558_v36  ;;  %v2659_v41 = vmul.f32 %v10496_v40, %v10555_v54 }
 0x266   : > { %v1867_v2 = vmul.f32 %v1851_v14, %v1311_v25  ;;  %v1915_v0 = vmul.f32 %v1899_v62, %v1311_v25  ;;  %4321 = vmatprep.mubr.f32.mxu1 %v3570_v28  ;;  %v1951_v5 = vmul.f32 %v1935_v50, %v1327_v45  ;;  %v2695_v55 = vmul.f32 %v10500_v23, %v8335_v11 }
 0x267   : > { %v2591_v52 = vmul.f32 %v2575_v13, %v10559_v57  ;;  %v3335_v51 = vmul.f32 %v10502_v49, %v10557_v29  ;;  %4322 = vmatmul.mubr.f32.gmra.mrb[36].mxu1 %v3486_v43  ;;  %v3371_v39 = vmul.f32 %v10503_v10, %v8335_v11  ;;  %v8368_v25 = vsub.f32 %v5633_v46, %v10505_v35 }
 0x268   : > { %v1883_v56 = vsub.f32 %v1831_v6, %v1867_v2  ;;  %v603_v14 = vsub.f32 %v5633_v46, %v10507_v1  ;;  %v1967_v62 = vsub.f32 %v1915_v0, %v1951_v5  ;;  %vm1071_vm15 = vcmp.ge.f32.partialorder %v5633_v46, %v10505_v35 }
 0x269   : > { %10560 = vst [vmem:[#allocation38_spill] sm:$0xff] %v8368_v25  ;;  %vm1119_vm0 = vcmp.ge.f32.partialorder %v5633_v46, %v10507_v1  ;;  %v1983_v28 = vmul.f32 %v6278_v31, %v8332_v19  ;;  %v4847_v43 = vsel %vm1071_vm15, 1.0, %v10377_v8  ;;  %v2019_v46 = vmul.f32 %v10510_v30, %v8368_v25 }
 0x26a   : > { %v2627_v50 = vmul.f32 %v2611_v44, %v1883_v56  ;;  %v2675_v29 = vmul.f32 %v2659_v41, %v1883_v56  ;;  %v8377_v13 = vsel %vm1119_vm0, 1.0, %v10377_v8  ;;  %v2711_v36 = vmul.f32 %v2695_v55, %v1967_v62 }
 0x26b   : > { %10561 = vst [vmem:[#allocation39_spill] sm:$0xff] %v8377_v13  ;;  %v1343_v6 = vsub.f32 %v4831_v20, %v4847_v43  ;;  %v8380_v2 = vsub.f32 %v4847_v43, %v8377_v13  ;;  %v1999_v0 = vmul.f32 %v1983_v28, %v1327_v45  ;;  %v2067_v57 = vmul.f32 %v10510_v30, %v8335_v11 }
 0x26c   : > { %v2643_v5 = vsub.f32 %v2591_v52, %v2627_v50  ;;  %v2103_v44 = vmul.f32 %v10512_v63, %v603_v14  ;;  %v2727_v41 = vsub.f32 %v2675_v29, %v2711_v36  ;;  %v2743_v56 = vmul.f32 %v10500_v23, %v10556_v59 }
 0x26d   : > { %10562 = vst [vmem:[#allocation44_spill] sm:$0xff] %v8380_v2  ;;  %v2779_v20 = vmul.f32 %v10513_v37, %v8368_v25  ;;  %v2827_v55 = vmul.f32 %v10513_v37, %v8332_v19  ;;  %v2035_v52 = vmul.f32 %v2019_v46, %v1343_v6  ;;  %v2083_v28 = vmul.f32 %v2067_v57, %v1343_v6 }
 0x26e   : > { %v3351_v45 = vmul.f32 %v3335_v51, %v2643_v5  ;;  %v2119_v50 = vmul.f32 %v2103_v44, %v8380_v2  ;;  %v3387_v43 = vmul.f32 %v3371_v39, %v2727_v41  ;;  %v2759_v13 = vmul.f32 %v2743_v56, %v1967_v62  ;;  %v10565_v44 = vld [vmem:[#allocation62_spill] sm:$0xff] }
 0x26f   : > { %v2863_v11 = vmul.f32 %v10514_v60, %v603_v14  ;;  %v3503_v29 = vmul.f32 %v10515_v16, %v10556_v59  ;;  %v2051_v36 = vsub.f32 %v1999_v0, %v2035_v52  ;;  %v3539_v32 = vmul.f32 %v10517_v61, %v603_v14 }
 0x270   : > { %v8397_v15 = vsub.f32 %v2083_v28, %v2119_v50  ;;  %v3251_v51 = vmul.f32 %v6332_v4, %v10564_v27  ;;  %v3403_v46 = vsub.f32 %v3351_v45, %v3387_v43  ;;  %v3287_v6 = vmul.f32 %v10502_v49, %v8332_v19  ;;  %v5634_v27 = vld [vmem:[%s6096_s9 + $0x20] sm:$0xff] }
 0x271   : > { %v3419_v39 = vmul.f32 %v10503_v10, %v10555_v54  ;;  %v3455_v62 = vmul.f32 %v10515_v16, %v8368_v25  ;;  %v2795_v59 = vmul.f32 %v2779_v20, %v2051_v36  ;;  %v2843_v57 = vmul.f32 %v2827_v55, %v2051_v36  ;;  %v10579_v25 = vld [vmem:[#allocation63_spill] sm:$0xff] }
 0x272   : > { %10563 = vst [vmem:[#allocation45_spill] sm:$0xff] %v8397_v15  ;;  %v2879_v0 = vmul.f32 %v2863_v11, %v8397_v15  ;;  %v3267_v56 = vmul.f32 %v3251_v51, %v10565_v44  ;;  %4181 = vmatprep.mubr.f32.mxu0 %v3403_v46  ;;  %v3303_v14 = vmul.f32 %v3287_v6, %v2643_v5  ;;  %v10570_v46 = vld [vmem:[#allocation67_spill] sm:$0xff]  ;;  %v10573_v15 = vld [vmem:[#allocation64_spill] sm:$0xff] }
 0x273   : > { %v3435_v52 = vmul.f32 %v3419_v39, %v2727_v41  ;;  %v8412_v45 = vsub.f32 %v5634_v27, %v10518_v42  ;;  %v8415_v28 = vsub.f32 %v5634_v27, %v6210_v58  ;;  %v2811_v54 = vsub.f32 %v2759_v13, %v2795_v59  ;;  %v10569_v41 = vld [vmem:[#allocation65_spill] sm:$0xff]  ;;  %v10571_v39 = vld [vmem:[#allocation68_spill] sm:$0xff] }
 0x274   : > { %v8417_v50 = vsub.f32 %v2843_v57, %v2879_v0  ;;  %vm976_vm1 = vcmp.ge.f32.partialorder %v5634_v27, %v10518_v42  ;;  %vm1024_vm2 = vcmp.ge.f32.partialorder %v5634_v27, %v6210_v58  ;;  %v3319_v11 = vsub.f32 %v3267_v56, %v3303_v14  ;;  %v10572_v0 = vld [vmem:[#allocation66_spill] sm:$0xff] }
 0x275   : > { %10566 = vst [vmem:[#allocation43_spill] sm:$0xff] %v8412_v45  ;;  %10567 = vst [vmem:[#allocation41_spill] sm:$0xff] %v8415_v28  ;;  %v4816_v20 = vsel %vm976_vm1, 1.0, %v10377_v8  ;;  %v4832_v5 = vsel %vm1024_vm2, 1.0, %v10377_v8  ;;  %v1816_v55 = vmul.f32 %v6260_v17, %v10569_v41  ;;  %v3519_v43 = vmul.f32 %v3503_v29, %v2811_v54 }
 0x276   : > { %10568 = vst [vmem:[#allocation46_spill] sm:$0xff] %v8417_v50  ;;  %v3555_v36 = vmul.f32 %v3539_v32, %v8417_v50  ;;  %v3471_v51 = vmul.f32 %v3455_v62, %v2811_v54  ;;  %v1312_v13 = vsub.f32 %v10570_v46, %v4816_v20  ;;  %4182 = vmatmul.mubr.f32.gmra.mrb[38].mxu0 %v3319_v11  ;;  %v10574_v46 = vld [vmem:[#allocation69_spill] sm:$0xff] }
 0x277   : > { %v1328_v6 = vsub.f32 %v4816_v20, %v4832_v5  ;;  %v1832_v59 = vmul.f32 %v1816_v55, %v10571_v39  ;;  %v1852_v57 = vmul.f32 %v6263_v18, %v8412_v45  ;;  %v1900_v44 = vmul.f32 %v6263_v18, %v10572_v0 }
 0x278   : > { %v3571_v56 = vsub.f32 %v3519_v43, %v3555_v36  ;;  %v3487_v14 = vsub.f32 %v3435_v52, %v3471_v51  ;;  %v1936_v29 = vmul.f32 %v6278_v31, %v8415_v28  ;;  %v2576_v32 = vmul.f32 %v6302_v7, %v10573_v15 }
 0x279   : > { %v1868_v62 = vmul.f32 %v1852_v57, %v1312_v13  ;;  %v1916_v54 = vmul.f32 %v1900_v44, %v1312_v13  ;;  %v2612_v11 = vmul.f32 %v10496_v40, %v8412_v45  ;;  %v2660_v20 = vmul.f32 %v10496_v40, %v10569_v41 }
 0x27a   : > { %4326 = vmatprep.mubr.f32.mxu1 %v3571_v56  ;;  %v1952_v55 = vmul.f32 %v1936_v29, %v1328_v6  ;;  %v2592_v39 = vmul.f32 %v2576_v32, %v10574_v46  ;;  %v2696_v52 = vmul.f32 %v10500_v23, %v8415_v28  ;;  %v3336_v43 = vmul.f32 %v10502_v49, %v10573_v15 }
 0x27b   : > { %4327 = vmatmul.mubr.f32.gmra.mrb[38].mxu1 %v3487_v14  ;;  %v1884_v36 = vsub.f32 %v1832_v59, %v1868_v62  ;;  %v3372_v51 = vmul.f32 %v10503_v10, %v8415_v28  ;;  %v8448_v13 = vsub.f32 %v5634_v27, %v10505_v35  ;;  %v604_v57 = vsub.f32 %v5634_v27, %v10507_v1 }
 0x27c   : > { %v1968_v44 = vsub.f32 %v1916_v54, %v1952_v55  ;;  %vm1072_vm3 = vcmp.ge.f32.partialorder %v5634_v27, %v10505_v35  ;;  %vm1120_vm4 = vcmp.ge.f32.partialorder %v5634_v27, %v10507_v1  ;;  %v1984_v56 = vmul.f32 %v6278_v31, %v8412_v45 }
 0x27d   : > { %10575 = vst [vmem:[#allocation15_spill] sm:$0xff] %v8448_v13  ;;  %v2628_v29 = vmul.f32 %v2612_v11, %v1884_v36  ;;  %v2676_v15 = vmul.f32 %v2660_v20, %v1884_v36  ;;  %v4848_v59 = vsel %vm1072_vm3, 1.0, %v10377_v8  ;;  %v8457_v14 = vsel %vm1120_vm4, 1.0, %v10377_v8 }
 0x27e   : > { %10576 = vst [vmem:[#allocation40_spill] sm:$0xff] %v8457_v14  ;;  %v2712_v32 = vmul.f32 %v2696_v52, %v1968_v44  ;;  %v1344_v62 = vsub.f32 %v4832_v5, %v4848_v59  ;;  %v8460_v46 = vsub.f32 %v4848_v59, %v8457_v14  ;;  %v2000_v54 = vmul.f32 %v1984_v56, %v1328_v6 }
 0x27f   : > { %v2644_v55 = vsub.f32 %v2592_v39, %v2628_v29  ;;  %v2020_v27 = vmul.f32 %v10510_v30, %v8448_v13  ;;  %v2068_v50 = vmul.f32 %v10510_v30, %v8415_v28  ;;  %v2104_v11 = vmul.f32 %v10512_v63, %v604_v57 }
 0x280   : > { %10577 = vst [vmem:[#allocation49_spill] sm:$0xff] %v8460_v46  ;;  %v2728_v20 = vsub.f32 %v2676_v15, %v2712_v32  ;;  %v2744_v36 = vmul.f32 %v10500_v23, %v10572_v0  ;;  %v2780_v5 = vmul.f32 %v10513_v37, %v8448_v13  ;;  %v2828_v52 = vmul.f32 %v10513_v37, %v8412_v45 }
 0x281   : > { %v3352_v6 = vmul.f32 %v3336_v43, %v2644_v55  ;;  %v2036_v39 = vmul.f32 %v2020_v27, %v1344_v62  ;;  %v2084_v56 = vmul.f32 %v2068_v50, %v1344_v62  ;;  %v2120_v29 = vmul.f32 %v2104_v11, %v8460_v46  ;;  %v3800_v27 = vld [vmem:[#allocation8 + $0x420] sm:$0xff]  ;;  %v3801_v50 = vld [vmem:[#allocation8 + $0x428] sm:$0xff] }
 0x282   : > { %v3388_v59 = vmul.f32 %v3372_v51, %v2728_v20  ;;  %v2760_v14 = vmul.f32 %v2744_v36, %v1968_v44  ;;  %v2864_v28 = vmul.f32 %v10514_v60, %v604_v57  ;;  %v3504_v15 = vmul.f32 %v10515_v16, %v10572_v0  ;;  %v10580_v36 = vld [vmem:[#allocation70_spill] sm:$0xff] }
 0x283   : > { %v2052_v32 = vsub.f32 %v2000_v54, %v2036_v39  ;;  %v8477_v19 = vsub.f32 %v2084_v56, %v2120_v29  ;;  %v3540_v2 = vmul.f32 %v10517_v61, %v604_v57  ;;  %v3252_v43 = vmul.f32 %v6332_v4, %v10579_v25 }
 0x284   : > { %v3404_v62 = vsub.f32 %v3352_v6, %v3388_v59  ;;  %v3288_v51 = vmul.f32 %v10502_v49, %v8412_v45  ;;  %v3420_v44 = vmul.f32 %v10503_v10, %v10569_v41  ;;  %v3456_v0 = vmul.f32 %v10515_v16, %v8448_v13  ;;  %v5635_v6 = vld [vmem:[%s6096_s9 + $0x28] sm:$0xff] }
 0x285   : > { %10578 = vst [vmem:[#allocation51_spill] sm:$0xff] %v8477_v19  ;;  %v2796_v54 = vmul.f32 %v2780_v5, %v2052_v32  ;;  %v2844_v11 = vmul.f32 %v2828_v52, %v2052_v32  ;;  %v2880_v57 = vmul.f32 %v2864_v28, %v8477_v19  ;;  %v3268_v39 = vmul.f32 %v3252_v43, %v10580_v36  ;;  %v10587_v36 = vld [vmem:[#allocation74_spill] sm:$0xff] }
 0x286   : > { %4186 = vmatprep.mubr.f32.mxu0 %v3404_v62  ;;  %v3304_v25 = vmul.f32 %v3288_v51, %v2644_v55  ;;  %v3436_v56 = vmul.f32 %v3420_v44, %v2728_v20  ;;  %v5443_v29 = vpack.c.bf16 %v3801_v50, %v3800_v27  ;;  %v8492_v59 = vsub.f32 %v5635_v6, %v10518_v42  ;;  %v10584_v55 = vld [vmem:[#allocation73_spill] sm:$0xff]  ;;  %v10585_v27 = vld [vmem:[#allocation75_spill] sm:$0xff]  ;;  %v10586_v51 = vld [vmem:[#allocation76_spill] sm:$0xff] }
 0x287   : > { %v2812_v46 = vsub.f32 %v2760_v14, %v2796_v54  ;;  %v8494_v45 = vsub.f32 %v2844_v11, %v2880_v57  ;;  %v8497_v41 = vsub.f32 %v5635_v6, %v6210_v58  ;;  %vm977_vm5 = vcmp.ge.f32.partialorder %v5635_v6, %v10518_v42 }
 0x288   : > { %10581 = vst [vmem:[#allocation52_spill] sm:$0xff] %v8492_v59  ;;  %v3320_v5 = vsub.f32 %v3268_v39, %v3304_v25  ;;  %5444 = vmatprep.subr.bf16.mxu0 %v5443_v29  ;;  %5469 = vmatprep.subr.bf16.mxu1 %v5443_v29  ;;  %v4817_v28 = vsel %vm977_vm5, 1.0, %v10377_v8  ;;  %vm1025_vm6 = vcmp.ge.f32.partialorder %v5635_v6, %v6210_v58 }
 0x289   : > { %10582 = vst [vmem:[#allocation50_spill] sm:$0xff] %v8494_v45  ;;  %10583 = vst [vmem:[#allocation48_spill] sm:$0xff] %v8497_v41  ;;  %v1817_v20 = vmul.f32 %v6260_v17, %v10584_v55  ;;  %v3520_v52 = vmul.f32 %v3504_v15, %v2812_v46  ;;  %v3556_v14 = vmul.f32 %v3540_v2, %v8494_v45  ;;  %5446 = vmatpush3.bf16.msra.mxu0 %v5443_v29 }
 0x28a   : > { %v3472_v32 = vmul.f32 %v3456_v0, %v2812_v46  ;;  %5477 = vmatpush3.bf16.msra.mxu1 %v5443_v29  ;;  %v4833_v43 = vsel %vm1025_vm6, 1.0, %v10377_v8  ;;  %4187 = vmatmul.mubr.f32.gmra.mrb[40].mxu0 %v3320_v5  ;;  %v1313_v50 = vsub.f32 %v10585_v27, %v4817_v28  ;;  %v1853_v54 = vmul.f32 %v6263_v18, %v8492_v59  ;;  %v10588_v0 = vld [vmem:[#allocation72_spill] sm:$0xff] }
 0x28b   : > { %v1329_v62 = vsub.f32 %v4817_v28, %v4833_v43  ;;  %v1833_v44 = vmul.f32 %v1817_v20, %v10586_v51  ;;  %v3572_v11 = vsub.f32 %v3520_v52, %v3556_v14  ;;  %v1901_v15 = vmul.f32 %v6263_v18, %v10587_v36  ;;  %v10589_v14 = vld [vmem:[#allocation77_spill] sm:$0xff] }
 0x28c   : > { %v3488_v57 = vsub.f32 %v3436_v56, %v3472_v32  ;;  %v1937_v2 = vmul.f32 %v6278_v31, %v8497_v41  ;;  %v1869_v46 = vmul.f32 %v1853_v54, %v1313_v50  ;;  %v2577_v39 = vmul.f32 %v6302_v7, %v10588_v0 }
 0x28d   : > { %v2613_v25 = vmul.f32 %v10496_v40, %v8492_v59  ;;  %v2661_v29 = vmul.f32 %v10496_v40, %v10584_v55  ;;  %4331 = vmatprep.mubr.f32.mxu1 %v3572_v11  ;;  %v1917_v5 = vmul.f32 %v1901_v15, %v1313_v50  ;;  %v2697_v56 = vmul.f32 %v10500_v23, %v8497_v41 }
 0x28e   : > { %v1953_v28 = vmul.f32 %v1937_v2, %v1329_v62  ;;  %v3337_v20 = vmul.f32 %v10502_v49, %v10588_v0  ;;  %4332 = vmatmul.mubr.f32.gmra.mrb[40].mxu1 %v3488_v57  ;;  %v1885_v52 = vsub.f32 %v1833_v44, %v1869_v46  ;;  %v2593_v32 = vmul.f32 %v2577_v39, %v10589_v14 }
 0x28f   : > { %v3373_v27 = vmul.f32 %v10503_v10, %v8497_v41  ;;  %v8528_v51 = vsub.f32 %v5635_v6, %v10505_v35  ;;  %v605_v50 = vsub.f32 %v5635_v6, %v10507_v1  ;;  %vm1073_vm7 = vcmp.ge.f32.partialorder %v5635_v6, %v10505_v35 }
 0x290   : > { %v1969_v54 = vsub.f32 %v1917_v5, %v1953_v28  ;;  %vm1121_vm8 = vcmp.ge.f32.partialorder %v5635_v6, %v10507_v1  ;;  %v2629_v11 = vmul.f32 %v2613_v25, %v1885_v52  ;;  %v2677_v15 = vmul.f32 %v2661_v29, %v1885_v52 }
 0x291   : > { %10590 = vst [vmem:[#allocation53_spill] sm:$0xff] %v8528_v51  ;;  %v4849_v57 = vsel %vm1073_vm7, 1.0, %v10377_v8  ;;  %v8535_v44 = vsel %vm1121_vm8, 1.0, %v10377_v8  ;;  %v1985_v39 = vmul.f32 %v6278_v31, %v8492_v59  ;;  %v2021_v28 = vmul.f32 %v10510_v30, %v8528_v51 }
 0x292   : > { %10591 = vst [vmem:[#allocation47_spill] sm:$0xff] %v8535_v44  ;;  %v2713_v2 = vmul.f32 %v2697_v56, %v1969_v54  ;;  %v1345_v46 = vsub.f32 %v4833_v43, %v4849_v57  ;;  %v8538_v0 = vsub.f32 %v4849_v57, %v8535_v44  ;;  %v2645_v5 = vsub.f32 %v2593_v32, %v2629_v11 }
 0x293   : > { %v2069_v6 = vmul.f32 %v10510_v30, %v8497_v41  ;;  %v2105_v25 = vmul.f32 %v10512_v63, %v605_v50  ;;  %v2001_v52 = vmul.f32 %v1985_v39, %v1329_v62  ;;  %v2745_v43 = vmul.f32 %v10500_v23, %v10587_v36 }
 0x294   : > { %10592 = vst [vmem:[#allocation54_spill] sm:$0xff] %v8538_v0  ;;  %v2729_v29 = vsub.f32 %v2677_v15, %v2713_v2  ;;  %v2781_v56 = vmul.f32 %v10513_v37, %v8528_v51  ;;  %v3353_v14 = vmul.f32 %v3337_v20, %v2645_v5  ;;  %v2037_v57 = vmul.f32 %v2021_v28, %v1345_v46 }
 0x295   : > { %v2085_v44 = vmul.f32 %v2069_v6, %v1345_v46  ;;  %v2121_v32 = vmul.f32 %v2105_v25, %v8538_v0  ;;  %v2761_v45 = vmul.f32 %v2745_v43, %v1969_v54  ;;  %v2829_v41 = vmul.f32 %v10513_v37, %v8492_v59  ;;  %v10594_v46 = vld [vmem:[#allocation71_spill] sm:$0xff] }
 0x296   : > { %v3389_v11 = vmul.f32 %v3373_v27, %v2729_v29  ;;  %v2865_v19 = vmul.f32 %v10514_v60, %v605_v50  ;;  %v2053_v15 = vsub.f32 %v2001_v52, %v2037_v57  ;;  %v3505_v2 = vmul.f32 %v10515_v16, %v10587_v36  ;;  %v10595_v36 = vld [vmem:[#allocation80_spill] sm:$0xff]  ;;  %v5636_v57 = vld [vmem:[%s6096_s9 + $0x30] sm:$0xff] }
 0x297   : > { %v8555_v62 = vsub.f32 %v2085_v44, %v2121_v32  ;;  %v3541_v20 = vmul.f32 %v10517_v61, %v605_v50  ;;  %v3253_v28 = vmul.f32 %v6332_v4, %v10594_v46  ;;  %v3289_v27 = vmul.f32 %v10502_v49, %v8492_v59 }
 0x298   : > { %v3405_v39 = vsub.f32 %v3353_v14, %v3389_v11  ;;  %v3421_v54 = vmul.f32 %v10503_v10, %v10584_v55  ;;  %v2797_v6 = vmul.f32 %v2781_v56, %v2053_v15  ;;  %v2845_v25 = vmul.f32 %v2829_v41, %v2053_v15  ;;  %v10599_v56 = vld [vmem:[#allocation81_spill] sm:$0xff] }
 0x299   : > { %10593 = vst [vmem:[#allocation59_spill] sm:$0xff] %v8555_v62  ;;  %v2881_v44 = vmul.f32 %v2865_v19, %v8555_v62  ;;  %v3457_v52 = vmul.f32 %v10515_v16, %v8528_v51  ;;  %v3269_v50 = vmul.f32 %v3253_v28, %v10595_v36  ;;  %v3305_v43 = vmul.f32 %v3289_v27, %v2645_v5  ;;  %v10600_v28 = vld [vmem:[#allocation83_spill] sm:$0xff] }
 0x29a   : > { %4191 = vmatprep.mubr.f32.mxu0 %v3405_v39  ;;  %v3437_v14 = vmul.f32 %v3421_v54, %v2729_v29  ;;  %v8572_v32 = vsub.f32 %v5636_v57, %v10518_v42  ;;  %v2813_v11 = vsub.f32 %v2761_v45, %v2797_v6  ;;  %v8577_v55 = vsub.f32 %v5636_v57, %v6210_v58  ;;  %v10601_v6 = vld [vmem:[#allocation84_spill] sm:$0xff] }
 0x29b   : > { %v8574_v46 = vsub.f32 %v2845_v25, %v2881_v44  ;;  %vm978_vm9 = vcmp.ge.f32.partialorder %v5636_v57, %v10518_v42  ;;  %v3321_v19 = vsub.f32 %v3269_v50, %v3305_v43  ;;  %vm1026_vm10 = vcmp.ge.f32.partialorder %v5636_v57, %v6210_v58  ;;  %v10602_v43 = vld [vmem:[#allocation82_spill] sm:$0xff] }
 0x29c   : > { %10596 = vst [vmem:[#allocation57_spill] sm:$0xff] %v8572_v32  ;;  %10598 = vst [vmem:[#allocation56_spill] sm:$0xff] %v8577_v55  ;;  %v4818_v41 = vsel %vm978_vm9, 1.0, %v10377_v8  ;;  %v1818_v5 = vmul.f32 %v6260_v17, %v10599_v56  ;;  %v3521_v29 = vmul.f32 %v3505_v2, %v2813_v11  ;;  %v3473_v39 = vmul.f32 %v3457_v52, %v2813_v11  ;;  %v10603_v52 = vld [vmem:[#allocation79_spill] sm:$0xff] }
 0x29d   : > { %10597 = vst [vmem:[#allocation58_spill] sm:$0xff] %v8574_v46  ;;  %v3557_v15 = vmul.f32 %v3541_v20, %v8574_v46  ;;  %v4834_v45 = vsel %vm1026_vm10, 1.0, %v10377_v8  ;;  %4192 = vmatmul.mubr.f32.gmra.mrb[42].mxu0 %v3321_v19  ;;  %v1314_v27 = vsub.f32 %v10600_v28, %v4818_v41  ;;  %v1854_v44 = vmul.f32 %v6263_v18, %v8572_v32  ;;  %v10604_v28 = vld [vmem:[#allocation85_spill] sm:$0xff] }
 0x29e   : > { %v1330_v54 = vsub.f32 %v4818_v41, %v4834_v45  ;;  %v1834_v25 = vmul.f32 %v1818_v5, %v10601_v6  ;;  %v3489_v50 = vsub.f32 %v3437_v14, %v3473_v39  ;;  %v1902_v62 = vmul.f32 %v6263_v18, %v10602_v43 }
 0x29f   : > { %v3573_v36 = vsub.f32 %v3521_v29, %v3557_v15  ;;  %v1938_v2 = vmul.f32 %v6278_v31, %v8577_v55  ;;  %v1870_v20 = vmul.f32 %v1854_v44, %v1314_v27  ;;  %v2578_v11 = vmul.f32 %v6302_v7, %v10603_v52 }
 0x2a0   : > { %v2614_v19 = vmul.f32 %v10496_v40, %v8572_v32  ;;  %v2662_v41 = vmul.f32 %v10496_v40, %v10599_v56  ;;  %v1918_v5 = vmul.f32 %v1902_v62, %v1314_v27  ;;  %v2698_v14 = vmul.f32 %v10500_v23, %v8577_v55 }
 0x2a1   : > { %4336 = vmatprep.mubr.f32.mxu1 %v3573_v36  ;;  %v1954_v29 = vmul.f32 %v1938_v2, %v1330_v54  ;;  %v3338_v15 = vmul.f32 %v10502_v49, %v10603_v52  ;;  %v1886_v39 = vsub.f32 %v1834_v25, %v1870_v20  ;;  %v2594_v6 = vmul.f32 %v2578_v11, %v10604_v28 }
 0x2a2   : > { %4337 = vmatmul.mubr.f32.gmra.mrb[42].mxu1 %v3489_v50  ;;  %v3374_v44 = vmul.f32 %v10503_v10, %v8577_v55  ;;  %v8608_v46 = vsub.f32 %v5636_v57, %v10505_v35  ;;  %v606_v62 = vsub.f32 %v5636_v57, %v10507_v1  ;;  %vm1074_vm11 = vcmp.ge.f32.partialorder %v5636_v57, %v10505_v35 }
 0x2a3   : > { %v1970_v59 = vsub.f32 %v1918_v5, %v1954_v29  ;;  %vm1122_vm12 = vcmp.ge.f32.partialorder %v5636_v57, %v10507_v1  ;;  %v2630_v27 = vmul.f32 %v2614_v19, %v1886_v39  ;;  %v2678_v36 = vmul.f32 %v2662_v41, %v1886_v39 }
 0x2a4   : > { %10605 = vst [vmem:[#allocation60_spill] sm:$0xff] %v8608_v46  ;;  %v4850_v50 = vsel %vm1074_vm11, 1.0, %v10377_v8  ;;  %v8615_v25 = vsel %vm1122_vm12, 1.0, %v10377_v8  ;;  %v1986_v11 = vmul.f32 %v6278_v31, %v8572_v32  ;;  %v2022_v29 = vmul.f32 %v10510_v30, %v8608_v46 }
 0x2a5   : > { %10606 = vst [vmem:[#allocation61_spill] sm:$0xff] %v8615_v25  ;;  %v2714_v2 = vmul.f32 %v2698_v14, %v1970_v59  ;;  %v1346_v20 = vsub.f32 %v4834_v45, %v4850_v50  ;;  %v8618_v52 = vsub.f32 %v4850_v50, %v8615_v25  ;;  %v2646_v5 = vsub.f32 %v2594_v6, %v2630_v27 }
 0x2a6   : > { %v2070_v57 = vmul.f32 %v10510_v30, %v8577_v55  ;;  %v2106_v19 = vmul.f32 %v10512_v63, %v606_v62  ;;  %v2002_v39 = vmul.f32 %v1986_v11, %v1330_v54  ;;  %v2746_v45 = vmul.f32 %v10500_v23, %v10602_v43 }
 0x2a7   : > { %10607 = vst [vmem:[#allocation55_spill] sm:$0xff] %v8618_v52  ;;  %v2730_v41 = vsub.f32 %v2678_v36, %v2714_v2  ;;  %v2782_v14 = vmul.f32 %v10513_v37, %v8608_v46  ;;  %v3354_v28 = vmul.f32 %v3338_v15, %v2646_v5  ;;  %v2038_v50 = vmul.f32 %v2022_v29, %v1346_v20  ;;  %v3802_v15 = vld [vmem:[#allocation8 + $0x430] sm:$0xff]  ;;  %v3803_v29 = vld [vmem:[#allocation8 + $0x438] sm:$0xff] }
 0x2a8   : > { %v2086_v25 = vmul.f32 %v2070_v57, %v1346_v20  ;;  %v2122_v6 = vmul.f32 %v2106_v19, %v8618_v52  ;;  %v2762_v0 = vmul.f32 %v2746_v45, %v1970_v59  ;;  %v2830_v55 = vmul.f32 %v10513_v37, %v8572_v32  ;;  %v10609_v57 = vld [vmem:[#allocation78_spill] sm:$0xff] }
 0x2a9   : > { %v3390_v27 = vmul.f32 %v3374_v44, %v2730_v41  ;;  %v2866_v51 = vmul.f32 %v10514_v60, %v606_v62  ;;  %v2054_v36 = vsub.f32 %v2002_v39, %v2038_v50  ;;  %v3506_v2 = vmul.f32 %v10515_v16, %v10602_v43 }
 0x2aa   : > { %v8635_v54 = vsub.f32 %v2086_v25, %v2122_v6  ;;  %v3542_v11 = vmul.f32 %v10517_v61, %v606_v62  ;;  %v3254_v59 = vmul.f32 %v6332_v4, %v10609_v57  ;;  %v3290_v44 = vmul.f32 %v10502_v49, %v8572_v32  ;;  %v10610_v62 = vld [vmem:[#allocation86_spill] sm:$0xff]  ;;  %v5637_v32 = vld [vmem:[%s6096_s9 + $0x38] sm:$0xff] }
 0x2ab   : > { %v3406_v20 = vsub.f32 %v3354_v28, %v3390_v27  ;;  %v3422_v19 = vmul.f32 %v10503_v10, %v10599_v56  ;;  %v2798_v25 = vmul.f32 %v2782_v14, %v2054_v36  ;;  %v2846_v39 = vmul.f32 %v2830_v55, %v2054_v36  ;;  %v10614_v36 = vld [vmem:[#allocation91_spill] sm:$0xff] }
 0x2ac   : > { %10608 = vst [vmem:[#allocation62_spill] sm:$0xff] %v8635_v54  ;;  %v2882_v45 = vmul.f32 %v2866_v51, %v8635_v54  ;;  %v3458_v43 = vmul.f32 %v10515_v16, %v8608_v46  ;;  %v3270_v50 = vmul.f32 %v3254_v59, %v10610_v62  ;;  %v3306_v28 = vmul.f32 %v3290_v44, %v2646_v5 }
 0x2ad   : > { %4196 = vmatprep.mubr.f32.mxu0 %v3406_v20  ;;  %v3438_v6 = vmul.f32 %v3422_v19, %v2730_v41  ;;  %v5447_v27 = vpack.c.bf16 %v3803_v29, %v3802_v15  ;;  %v2814_v57 = vsub.f32 %v2762_v0, %v2798_v25  ;;  %v8654_v13 = vsub.f32 %v5637_v32, %v10518_v42  ;;  %v10615_v29 = vld [vmem:[#allocation89_spill] sm:$0xff] }
 0x2ae   : > { %v8650_v52 = vsub.f32 %v2846_v39, %v2882_v45  ;;  %v8657_v55 = vsub.f32 %v5637_v32, %v6210_v58  ;;  %v3322_v51 = vsub.f32 %v3270_v50, %v3306_v28  ;;  %vm979_vm13 = vcmp.ge.f32.partialorder %v5637_v32, %v10518_v42  ;;  %v10617_v39 = vld [vmem:[#allocation92_spill] sm:$0xff] }
 0x2af   : > { %10612 = vst [vmem:[#allocation67_spill] sm:$0xff] %v8654_v13  ;;  %5448 = vmatprep.subr.bf16.mxu0 %v5447_v27  ;;  %5470 = vmatprep.subr.bf16.mxu1 %v5447_v27  ;;  %vm1027_vm14 = vcmp.ge.f32.partialorder %v5637_v32, %v6210_v58  ;;  %v3522_v56 = vmul.f32 %v3506_v2, %v2814_v57  ;;  %v4819_v41 = vsel %vm979_vm13, 1.0, %v10377_v8  ;;  %v10618_v50 = vld [vmem:[#allocation88_spill] sm:$0xff] }
 0x2b0   : > { %10611 = vst [vmem:[#allocation65_spill] sm:$0xff] %v8650_v52  ;;  %10613 = vst [vmem:[#allocation68_spill] sm:$0xff] %v8657_v55  ;;  %v3558_v5 = vmul.f32 %v3542_v11, %v8650_v52  ;;  %v3474_v0 = vmul.f32 %v3458_v43, %v2814_v57  ;;  %5450 = vmatpush3.bf16.msra.mxu0 %v5447_v27  ;;  %5478 = vmatpush3.bf16.msra.mxu1 %v5447_v27  ;;  %v4835_v14 = vsel %vm1027_vm14, 1.0, %v10377_v8  ;;  %v10616_v11 = vld [vmem:[#allocation90_spill] sm:$0xff] }
 0x2b1   : > { %4197 = vmatmul.mubr.f32.gmra.mrb[44].mxu0 %v3322_v51  ;;  %v1315_v15 = vsub.f32 %v10614_v36, %v4819_v41  ;;  %v1819_v20 = vmul.f32 %v6260_v17, %v10615_v29  ;;  %v1855_v59 = vmul.f32 %v6263_v18, %v8654_v13  ;;  %v1331_v19 = vsub.f32 %v4819_v41, %v4835_v14 }
 0x2b2   : > { %v3574_v44 = vsub.f32 %v3522_v56, %v3558_v5  ;;  %v3490_v2 = vsub.f32 %v3438_v6, %v3474_v0  ;;  %v1903_v25 = vmul.f32 %v6263_v18, %v10616_v11  ;;  %v1939_v62 = vmul.f32 %v6278_v31, %v8657_v55  ;;  %v10619_v0 = vld [vmem:[#allocation93_spill] sm:$0xff] }
 0x2b3   : > { %v1835_v45 = vmul.f32 %v1819_v20, %v10617_v39  ;;  %v1871_v43 = vmul.f32 %v1855_v59, %v1315_v15  ;;  %v2579_v28 = vmul.f32 %v6302_v7, %v10618_v50  ;;  %v2615_v57 = vmul.f32 %v10496_v40, %v8654_v13 }
 0x2b4   : > { %4341 = vmatprep.mubr.f32.mxu1 %v3574_v44  ;;  %v1919_v27 = vmul.f32 %v1903_v25, %v1315_v15  ;;  %v2663_v6 = vmul.f32 %v10496_v40, %v10615_v29  ;;  %v2699_v51 = vmul.f32 %v10500_v23, %v8657_v55  ;;  %v1955_v5 = vmul.f32 %v1939_v62, %v1331_v19 }
 0x2b5   : > { %4342 = vmatmul.mubr.f32.gmra.mrb[44].mxu1 %v3490_v2  ;;  %v1887_v56 = vsub.f32 %v1835_v45, %v1871_v43  ;;  %v2595_v41 = vmul.f32 %v2579_v28, %v10619_v0  ;;  %v3339_v36 = vmul.f32 %v10502_v49, %v10618_v50  ;;  %v3375_v15 = vmul.f32 %v10503_v10, %v8657_v55 }
 0x2b6   : > { %v8688_v20 = vsub.f32 %v5637_v32, %v10505_v35  ;;  %v607_v59 = vsub.f32 %v5637_v32, %v10507_v1  ;;  %vm1075_vm15 = vcmp.ge.f32.partialorder %v5637_v32, %v10505_v35  ;;  %v1971_v44 = vsub.f32 %v1919_v27, %v1955_v5 }
 0x2b7   : > { %v2631_v25 = vmul.f32 %v2615_v57, %v1887_v56  ;;  %v2679_v2 = vmul.f32 %v2663_v6, %v1887_v56  ;;  %v4851_v39 = vsel %vm1075_vm15, 1.0, %v10377_v8  ;;  %vm1123_vm0 = vcmp.ge.f32.partialorder %v5637_v32, %v10507_v1 }
 0x2b8   : > { %10620 = vst [vmem:[#allocation66_spill] sm:$0xff] %v8688_v20  ;;  %v1347_v45 = vsub.f32 %v4835_v14, %v4851_v39  ;;  %v1987_v43 = vmul.f32 %v6278_v31, %v8654_v13  ;;  %v2023_v62 = vmul.f32 %v10510_v30, %v8688_v20  ;;  %v2715_v28 = vmul.f32 %v2699_v51, %v1971_v44 }
 0x2b9   : > { %v2647_v50 = vsub.f32 %v2595_v41, %v2631_v25  ;;  %v8699_v0 = vsel %vm1123_vm0, 1.0, %v10377_v8  ;;  %v2071_v27 = vmul.f32 %v10510_v30, %v8657_v55  ;;  %v2107_v14 = vmul.f32 %v10512_v63, %v607_v59 }
 0x2ba   : > { %10621 = vst [vmem:[#allocation64_spill] sm:$0xff] %v8699_v0  ;;  %v8704_v57 = vsub.f32 %v4851_v39, %v8699_v0  ;;  %v2003_v6 = vmul.f32 %v1987_v43, %v1331_v19  ;;  %v2039_v32 = vmul.f32 %v2023_v62, %v1347_v45  ;;  %v2731_v56 = vsub.f32 %v2679_v2, %v2715_v28 }
 0x2bb   : > { %v3355_v5 = vmul.f32 %v3339_v36, %v2647_v50  ;;  %v2087_v52 = vmul.f32 %v2071_v27, %v1347_v45  ;;  %v2747_v41 = vmul.f32 %v10500_v23, %v10616_v11  ;;  %v2783_v54 = vmul.f32 %v10513_v37, %v8688_v20 }
 0x2bc   : > { %10622 = vst [vmem:[#allocation69_spill] sm:$0xff] %v8704_v57  ;;  %v2055_v51 = vsub.f32 %v2003_v6, %v2039_v32  ;;  %v2123_v25 = vmul.f32 %v2107_v14, %v8704_v57  ;;  %v2831_v39 = vmul.f32 %v10513_v37, %v8654_v13  ;;  %v3391_v19 = vmul.f32 %v3375_v15, %v2731_v56  ;;  %v10624_v32 = vld [vmem:[#allocation87_spill] sm:$0xff] }
 0x2bd   : > { %v2763_v43 = vmul.f32 %v2747_v41, %v1971_v44  ;;  %v2867_v62 = vmul.f32 %v10514_v60, %v607_v59  ;;  %v3507_v36 = vmul.f32 %v10515_v16, %v10616_v11  ;;  %v3543_v27 = vmul.f32 %v10517_v61, %v607_v59  ;;  %v10626_v59 = vld [vmem:[#allocation94_spill] sm:$0xff] }
 0x2be   : > { %v8717_v2 = vsub.f32 %v2087_v52, %v2123_v25  ;;  %v2799_v45 = vmul.f32 %v2783_v54, %v2055_v51  ;;  %v2847_v28 = vmul.f32 %v2831_v39, %v2055_v51  ;;  %v3407_v6 = vsub.f32 %v3355_v5, %v3391_v19  ;;  %v5638_v54 = vld [vmem:[%s6096_s9 + $0x40] sm:$0xff] }
 0x2bf   : > { %v3255_v14 = vmul.f32 %v6332_v4, %v10624_v32  ;;  %v3291_v57 = vmul.f32 %v10502_v49, %v8654_v13  ;;  %v3423_v15 = vmul.f32 %v10503_v10, %v10615_v29  ;;  %v3459_v52 = vmul.f32 %v10515_v16, %v8688_v20  ;;  %v10629_v32 = vld [vmem:[#allocation97_spill] sm:$0xff] }
 0x2c0   : > { %10623 = vst [vmem:[#allocation63_spill] sm:$0xff] %v8717_v2  ;;  %v2815_v44 = vsub.f32 %v2763_v43, %v2799_v45  ;;  %v2883_v41 = vmul.f32 %v2867_v62, %v8717_v2  ;;  %v8731_v11 = vsub.f32 %v5638_v54, %v10518_v42  ;;  %4201 = vmatprep.mubr.f32.mxu0 %v3407_v6 }
 0x2c1   : > { %v3271_v5 = vmul.f32 %v3255_v14, %v10626_v59  ;;  %v3307_v51 = vmul.f32 %v3291_v57, %v2647_v50  ;;  %v3439_v25 = vmul.f32 %v3423_v15, %v2731_v56  ;;  %v8735_v39 = vsub.f32 %v5638_v54, %v6210_v58  ;;  %v10630_v14 = vld [vmem:[#allocation99_spill] sm:$0xff]  ;;  %v10631_v15 = vld [vmem:[#allocation100_spill] sm:$0xff] }
 0x2c2   : > { %10625 = vst [vmem:[#allocation70_spill] sm:$0xff] %v8731_v11  ;;  %v8737_v19 = vsub.f32 %v2847_v28, %v2883_v41  ;;  %v3523_v29 = vmul.f32 %v3507_v36, %v2815_v44  ;;  %v3475_v43 = vmul.f32 %v3459_v52, %v2815_v44  ;;  %vm980_vm1 = vcmp.ge.f32.partialorder %v5638_v54, %v10518_v42  ;;  %v10632_v52 = vld [vmem:[#allocation98_spill] sm:$0xff] }
 0x2c3   : > { %10627 = vst [vmem:[#allocation73_spill] sm:$0xff] %v8735_v39  ;;  %v3323_v62 = vsub.f32 %v3271_v5, %v3307_v51  ;;  %v4820_v45 = vsel %vm980_vm1, 1.0, %v10377_v8  ;;  %vm1028_vm2 = vcmp.ge.f32.partialorder %v5638_v54, %v6210_v58  ;;  %v1820_v6 = vmul.f32 %v6260_v17, %v10629_v32 }
 0x2c4   : > { %10628 = vst [vmem:[#allocation75_spill] sm:$0xff] %v8737_v19  ;;  %v3559_v50 = vmul.f32 %v3543_v27, %v8737_v19  ;;  %v3491_v57 = vsub.f32 %v3439_v25, %v3475_v43  ;;  %v4836_v56 = vsel %vm1028_vm2, 1.0, %v10377_v8  ;;  %v1316_v28 = vsub.f32 %v10630_v14, %v4820_v45  ;;  %v10633_v27 = vld [vmem:[#allocation96_spill] sm:$0xff] }
 0x2c5   : > { %4202 = vmatmul.mubr.f32.gmra.mrb[46].mxu0 %v3323_v62  ;;  %v1332_v36 = vsub.f32 %v4820_v45, %v4836_v56  ;;  %v1836_v44 = vmul.f32 %v1820_v6, %v10631_v15  ;;  %v1856_v41 = vmul.f32 %v6263_v18, %v8731_v11  ;;  %v1904_v59 = vmul.f32 %v6263_v18, %v10632_v52 }
 0x2c6   : > { %v3575_v5 = vsub.f32 %v3523_v29, %v3559_v50  ;;  %v1940_v51 = vmul.f32 %v6278_v31, %v8735_v39  ;;  %v2580_v25 = vmul.f32 %v6302_v7, %v10633_v27  ;;  %v2616_v43 = vmul.f32 %v10496_v40, %v8731_v11  ;;  %v10634_v29 = vld [vmem:[#allocation101_spill] sm:$0xff] }
 0x2c7   : > { %v1872_v62 = vmul.f32 %v1856_v41, %v1316_v28  ;;  %v1920_v45 = vmul.f32 %v1904_v59, %v1316_v28  ;;  %v2664_v6 = vmul.f32 %v10496_v40, %v10629_v32  ;;  %v2700_v14 = vmul.f32 %v10500_v23, %v8735_v39 }
 0x2c8   : > { %4346 = vmatprep.mubr.f32.mxu1 %v3575_v5  ;;  %v1956_v15 = vmul.f32 %v1940_v51, %v1332_v36  ;;  %v2596_v50 = vmul.f32 %v2580_v25, %v10634_v29  ;;  %v3340_v19 = vmul.f32 %v10502_v49, %v10633_v27  ;;  %v3376_v2 = vmul.f32 %v10503_v10, %v8735_v39 }
 0x2c9   : > { %4347 = vmatmul.mubr.f32.gmra.mrb[46].mxu1 %v3491_v57  ;;  %v1888_v13 = vsub.f32 %v1836_v44, %v1872_v62  ;;  %v8768_v28 = vsub.f32 %v5638_v54, %v10505_v35  ;;  %v608_v41 = vsub.f32 %v5638_v54, %v10507_v1  ;;  %vm1076_vm3 = vcmp.ge.f32.partialorder %v5638_v54, %v10505_v35 }
 0x2ca   : > { %v1972_v59 = vsub.f32 %v1920_v45, %v1956_v15  ;;  %v4852_v5 = vsel %vm1076_vm3, 1.0, %v10377_v8  ;;  %vm1124_vm4 = vcmp.ge.f32.partialorder %v5638_v54, %v10507_v1  ;;  %v1988_v51 = vmul.f32 %v6278_v31, %v8731_v11 }
 0x2cb   : > { %10635 = vst [vmem:[#allocation76_spill] sm:$0xff] %v8768_v28  ;;  %v2632_v27 = vmul.f32 %v2616_v43, %v1888_v13  ;;  %v2680_v25 = vmul.f32 %v2664_v6, %v1888_v13  ;;  %v8777_v57 = vsel %vm1124_vm4, 1.0, %v10377_v8  ;;  %v1348_v44 = vsub.f32 %v4836_v56, %v4852_v5 }
 0x2cc   : > { %10636 = vst [vmem:[#allocation74_spill] sm:$0xff] %v8777_v57  ;;  %v2716_v62 = vmul.f32 %v2700_v14, %v1972_v59  ;;  %v8780_v29 = vsub.f32 %v4852_v5, %v8777_v57  ;;  %v2004_v55 = vmul.f32 %v1988_v51, %v1332_v36  ;;  %v2024_v45 = vmul.f32 %v10510_v30, %v8768_v28 }
 0x2cd   : > { %v2648_v15 = vsub.f32 %v2596_v50, %v2632_v27  ;;  %v2072_v54 = vmul.f32 %v10510_v30, %v8735_v39  ;;  %v2108_v0 = vmul.f32 %v10512_v63, %v608_v41  ;;  %v2748_v13 = vmul.f32 %v10500_v23, %v10632_v52 }
 0x2ce   : > { %10637 = vst [vmem:[#allocation72_spill] sm:$0xff] %v8780_v29  ;;  %v2732_v43 = vsub.f32 %v2680_v25, %v2716_v62  ;;  %v2040_v6 = vmul.f32 %v2024_v45, %v1348_v44  ;;  %v2784_v56 = vmul.f32 %v10513_v37, %v8768_v28  ;;  %v2832_v36 = vmul.f32 %v10513_v37, %v8731_v11  ;;  %v10639_v45 = vld [vmem:[#allocation95_spill] sm:$0xff] }
 0x2cf   : > { %v3356_v14 = vmul.f32 %v3340_v19, %v2648_v15  ;;  %v2088_v5 = vmul.f32 %v2072_v54, %v1348_v44  ;;  %v2124_v50 = vmul.f32 %v2108_v0, %v8780_v29  ;;  %v2764_v51 = vmul.f32 %v2748_v13, %v1972_v59  ;;  %v3804_v0 = vld [vmem:[#allocation8 + $0x440] sm:$0xff]  ;;  %v3805_v59 = vld [vmem:[#allocation8 + $0x448] sm:$0xff]  ;;  %v10640_v13 = vld [vmem:[#allocation102_spill] sm:$0xff] }
 0x2d0   : > { %v3392_v27 = vmul.f32 %v3376_v2, %v2732_v43  ;;  %v2056_v20 = vsub.f32 %v2004_v55, %v2040_v6  ;;  %v2868_v46 = vmul.f32 %v10514_v60, %v608_v41  ;;  %v3508_v22 = vmul.f32 %v10515_v16, %v10632_v52  ;;  %v5639_v29 = vld [vmem:[%s6096_s9 + $0x48] sm:$0xff] }
 0x2d1   : > { %v8797_v25 = vsub.f32 %v2088_v5, %v2124_v50  ;;  %v3544_v62 = vmul.f32 %v10517_v61, %v608_v41  ;;  %v3256_v48 = vmul.f32 %v6332_v4, %v10639_v45  ;;  %v3292_v19 = vmul.f32 %v10502_v49, %v8731_v11 }
 0x2d2   : > { %v3408_v2 = vsub.f32 %v3356_v14, %v3392_v27  ;;  %v2800_v55 = vmul.f32 %v2784_v56, %v2056_v20  ;;  %v2848_v44 = vmul.f32 %v2832_v36, %v2056_v20  ;;  %v3424_v54 = vmul.f32 %v10503_v10, %v10629_v32 }
 0x2d3   : > { %10638 = vst [vmem:[#allocation77_spill] sm:$0xff] %v8797_v25  ;;  %v2884_v52 = vmul.f32 %v2868_v46, %v8797_v25  ;;  %v3272_v6 = vmul.f32 %v3256_v48, %v10640_v13  ;;  %v3308_v41 = vmul.f32 %v3292_v19, %v2648_v15  ;;  %v3460_v5 = vmul.f32 %v10515_v16, %v8768_v28  ;;  %v10643_v19 = vld [vmem:[#allocation105_spill] sm:$0xff] }
 0x2d4   : > { %4206 = vmatprep.mubr.f32.mxu0 %v3408_v2  ;;  %v2816_v50 = vsub.f32 %v2764_v51, %v2800_v55  ;;  %v3440_v45 = vmul.f32 %v3424_v54, %v2732_v43  ;;  %v5451_v11 = vpack.c.bf16 %v3805_v59, %v3804_v0  ;;  %v8812_v14 = vsub.f32 %v5639_v29, %v10518_v42  ;;  %v10642_v51 = vld [vmem:[#allocation107_spill] sm:$0xff]  ;;  %v10644_v55 = vld [vmem:[#allocation106_spill] sm:$0xff] }
 0x2d5   : > { %v8814_v20 = vsub.f32 %v2848_v44, %v2884_v52  ;;  %v3324_v56 = vsub.f32 %v3272_v6, %v3308_v41  ;;  %v8817_v32 = vsub.f32 %v5639_v29, %v6210_v58  ;;  %vm981_vm5 = vcmp.ge.f32.partialorder %v5639_v29, %v10518_v42  ;;  %v10646_v6 = vld [vmem:[#allocation104_spill] sm:$0xff] }
 0x2d6   : > { %v3524_v48 = vmul.f32 %v3508_v22, %v2816_v50  ;;  %v3476_v46 = vmul.f32 %v3460_v5, %v2816_v50  ;;  %5452 = vmatprep.subr.bf16.mxu0 %v5451_v11  ;;  %5471 = vmatprep.subr.bf16.mxu1 %v5451_v11  ;;  %v4821_v15 = vsel %vm981_vm5, 1.0, %v10377_v8  ;;  %vm1029_vm6 = vcmp.ge.f32.partialorder %v5639_v29, %v6210_v58 }
 0x2d7   : > { %10641 = vst [vmem:[#allocation71_spill] sm:$0xff] %v8814_v20  ;;  %v3560_v43 = vmul.f32 %v3544_v62, %v8814_v20  ;;  %4207 = vmatmul.mubr.f32.gmra.mrb[48].mxu0 %v3324_v56  ;;  %5479 = vmatpush3.bf16.msra.mxu1 %v5451_v11  ;;  %v4837_v36 = vsel %vm1029_vm6, 1.0, %v10377_v8  ;;  %v1317_v27 = vsub.f32 %v10642_v51, %v4821_v15  ;;  %v10645_v62 = vld [vmem:[#allocation108_spill] sm:$0xff] }
 0x2d8   : > { %v1821_v0 = vmul.f32 %v6260_v17, %v10643_v19  ;;  %v3492_v59 = vsub.f32 %v3440_v45, %v3476_v46  ;;  %5454 = vmatpush3.bf16.msra.mxu0 %v5451_v11  ;;  %v1333_v22 = vsub.f32 %v4821_v15, %v4837_v36  ;;  %v1857_v2 = vmul.f32 %v6263_v18, %v8812_v14  ;;  %v10647_v46 = vld [vmem:[#allocation109_spill] sm:$0xff] }
 0x2d9   : > { %v1905_v44 = vmul.f32 %v6263_v18, %v10644_v55  ;;  %v3576_v54 = vsub.f32 %v3524_v48, %v3560_v43  ;;  %v1941_v13 = vmul.f32 %v6278_v31, %v8817_v32  ;;  %v2581_v41 = vmul.f32 %v6302_v7, %v10646_v6 }
 0x2da   : > { %v1837_v52 = vmul.f32 %v1821_v0, %v10645_v62  ;;  %v1873_v5 = vmul.f32 %v1857_v2, %v1317_v27  ;;  %v2617_v11 = vmul.f32 %v10496_v40, %v8812_v14  ;;  %v2665_v45 = vmul.f32 %v10496_v40, %v10643_v19 }
 0x2db   : > { %v1921_v50 = vmul.f32 %v1905_v44, %v1317_v27  ;;  %4351 = vmatprep.mubr.f32.mxu1 %v3576_v54  ;;  %v1957_v56 = vmul.f32 %v1941_v13, %v1333_v22  ;;  %v2597_v48 = vmul.f32 %v2581_v41, %v10647_v46  ;;  %v2701_v15 = vmul.f32 %v10500_v23, %v8817_v32 }
 0x2dc   : > { %v3341_v43 = vmul.f32 %v10502_v49, %v10646_v6  ;;  %4352 = vmatmul.mubr.f32.gmra.mrb[48].mxu1 %v3492_v59  ;;  %v1889_v51 = vsub.f32 %v1837_v52, %v1873_v5  ;;  %v3377_v27 = vmul.f32 %v10503_v10, %v8817_v32  ;;  %v589_v0 = vsub.f32 %v5639_v29, %v10505_v35 }
 0x2dd   : > { %v609_v2 = vsub.f32 %v5639_v29, %v10507_v1  ;;  %v1973_v44 = vsub.f32 %v1921_v50, %v1957_v56  ;;  %v8850_v54 = vsub.f32 %v5639_v29, %v10529_v12  ;;  %vm1077_vm7 = vcmp.ge.f32.partialorder %v5639_v29, %v10505_v35 }
 0x2de   : > { %vm1125_vm8 = vcmp.ge.f32.partialorder %v5639_v29, %v10507_v1  ;;  %v2633_v62 = vmul.f32 %v2617_v11, %v1889_v51  ;;  %v2681_v13 = vmul.f32 %v2665_v45, %v1889_v51  ;;  %v4853_v59 = vsel %vm1077_vm7, 1.0, %v10377_v8 }
 0x2df   : > { %v4869_v52 = vsel %vm1125_vm8, 1.0, %v10377_v8  ;;  %v2717_v6 = vmul.f32 %v2701_v15, %v1973_v44  ;;  %vm1173_vm9 = vcmp.ge.f32.partialorder %v5639_v29, %v10529_v12  ;;  %v1349_v41 = vsub.f32 %v4837_v36, %v4853_v59 }
 0x2e0   : > { %v1365_v5 = vsub.f32 %v4853_v59, %v4869_v52  ;;  %v2649_v46 = vsub.f32 %v2597_v48, %v2633_v62  ;;  %v4885_v50 = vsel %vm1173_vm9, 1.0, %v10377_v8  ;;  %v1989_v56 = vmul.f32 %v6278_v31, %v8812_v14 }
 0x2e1   : > { %v2025_v20 = vmul.f32 %v10510_v30, %v589_v0  ;;  %v2733_v25 = vsub.f32 %v2681_v13, %v2717_v6  ;;  %v1381_v11 = vsub.f32 %v4869_v52, %v4885_v50  ;;  %v2073_v45 = vmul.f32 %v10510_v30, %v8817_v32 }
 0x2e2   : > { %v2109_v51 = vmul.f32 %v10512_v63, %v609_v2  ;;  %v3357_v15 = vmul.f32 %v3341_v43, %v2649_v46  ;;  %v2005_v39 = vmul.f32 %v1989_v56, %v1333_v22  ;;  %v2157_v36 = vmul.f32 %v10512_v63, %v589_v0 }
 0x2e3   : > { %v2041_v29 = vmul.f32 %v2025_v20, %v1349_v41  ;;  %v3393_v48 = vmul.f32 %v3377_v27, %v2733_v25  ;;  %v2089_v62 = vmul.f32 %v2073_v45, %v1349_v41  ;;  %v2193_v57 = vmul.f32 %v8220_v38, %v8850_v54 }
 0x2e4   : > { %v2125_v59 = vmul.f32 %v2109_v51, %v1365_v5  ;;  %v8867_v12 = vmul.f32 %v2157_v36, %v1365_v5  ;;  %v2749_v13 = vmul.f32 %v10500_v23, %v10644_v55  ;;  %v2785_v52 = vmul.f32 %v10513_v37, %v589_v0  ;;  %v5640_v36 = vld [vmem:[%s6096_s9 + $0x50] sm:$0xff] }
 0x2e5   : > { %v2057_v28 = vsub.f32 %v2005_v39, %v2041_v29  ;;  %v3409_v6 = vsub.f32 %v3357_v15, %v3393_v48  ;;  %v8872_v22 = vmul.f32 %v2193_v57, %v1381_v11  ;;  %v2833_v20 = vmul.f32 %v10513_v37, %v8812_v14  ;;  %v10649_v15 = vld [vmem:[#allocation103_spill] sm:$0xff] }
 0x2e6   : > { %v2141_v43 = vsub.f32 %v2089_v62, %v2125_v59  ;;  %v2765_v27 = vmul.f32 %v2749_v13, %v1973_v44  ;;  %v2869_v50 = vmul.f32 %v10514_v60, %v609_v2  ;;  %v2917_v39 = vmul.f32 %v10514_v60, %v8817_v32  ;;  %v10651_v59 = vld [vmem:[#allocation112_spill] sm:$0xff] }
 0x2e7   : > { %v2801_v41 = vmul.f32 %v2785_v52, %v2057_v28  ;;  %4211 = vmatprep.mubr.f32.mxu0 %v3409_v6  ;;  %v2849_v5 = vmul.f32 %v2833_v20, %v2057_v28  ;;  %v3509_v56 = vmul.f32 %v10515_v16, %v10644_v55  ;;  %v3545_v45 = vmul.f32 %v10517_v61, %v609_v2 }
 0x2e8   : > { %v3593_v57 = vmul.f32 %v10517_v61, %v8812_v14  ;;  %v2885_v51 = vmul.f32 %v2869_v50, %v2141_v43  ;;  %v8884_v44 = vmul.f32 %v2917_v39, %v2141_v43  ;;  %v3257_v29 = vmul.f32 %v6332_v4, %v10649_v15  ;;  %v10654_v39 = vld [vmem:[#allocation115_spill] sm:$0xff] }
 0x2e9   : > { %v2817_v11 = vsub.f32 %v2765_v27, %v2801_v41  ;;  %v3293_v32 = vmul.f32 %v10502_v49, %v8812_v14  ;;  %v3425_v28 = vmul.f32 %v10503_v10, %v10643_v19  ;;  %v3461_v55 = vmul.f32 %v10515_v16, %v589_v0 }
 0x2ea   : > { %10648 = vst [vmem:[#allocation80_spill] sm:$0xff] %v8884_v44  ;;  %v8895_v2 = vsub.f32 %v5640_v36, %v10518_v42  ;;  %v2901_v48 = vsub.f32 %v2849_v5, %v2885_v51  ;;  %v3273_v13 = vmul.f32 %v3257_v29, %v10651_v59  ;;  %v8899_v52 = vsub.f32 %v5640_v36, %v6210_v58  ;;  %v10657_v29 = vld [vmem:[#allocation111_spill] sm:$0xff]  ;;  %v10664_v44 = vld [vmem:[#allocation110_spill] sm:$0xff] }
 0x2eb   : > { %v3525_v62 = vmul.f32 %v3509_v56, %v2817_v11  ;;  %v3309_v6 = vmul.f32 %v3293_v32, %v2649_v46  ;;  %v3441_v43 = vmul.f32 %v3425_v28, %v2733_v25  ;;  %v3477_v20 = vmul.f32 %v3461_v55, %v2817_v11  ;;  %v10655_v46 = vld [vmem:[#allocation113_spill] sm:$0xff]  ;;  %v10658_v55 = vld [vmem:[#allocation116_spill] sm:$0xff] }
 0x2ec   : > { %10650 = vst [vmem:[#allocation81_spill] sm:$0xff] %v8895_v2  ;;  %10652 = vst [vmem:[#allocation83_spill] sm:$0xff] %v8899_v52  ;;  %vm982_vm10 = vcmp.ge.f32.partialorder %v5640_v36, %v10518_v42  ;;  %v3561_v14 = vmul.f32 %v3545_v45, %v2901_v48  ;;  %v8902_v19 = vmul.f32 %v3593_v57, %v2901_v48  ;;  %v10656_v57 = vld [vmem:[#allocation114_spill] sm:$0xff] }
 0x2ed   : > { %v4822_v0 = vsel %vm982_vm10, 1.0, %v10377_v8  ;;  %vm1030_vm11 = vcmp.ge.f32.partialorder %v5640_v36, %v6210_v58  ;;  %v3325_v27 = vsub.f32 %v3273_v13, %v3309_v6  ;;  %v3493_v41 = vsub.f32 %v3441_v43, %v3477_v20  ;;  %v10659_v20 = vld [vmem:[#allocation117_spill] sm:$0xff] }
 0x2ee   : > { %10653 = vst [vmem:[#allocation84_spill] sm:$0xff] %v8902_v19  ;;  %v4838_v50 = vsel %vm1030_vm11, 1.0, %v10377_v8  ;;  %v1318_v5 = vsub.f32 %v10654_v39, %v4822_v0  ;;  %v3577_v56 = vsub.f32 %v3525_v62, %v3561_v14  ;;  %v1822_v25 = vmul.f32 %v6260_v17, %v10655_v46 }
 0x2ef   : > { %v1334_v51 = vsub.f32 %v4822_v0, %v4838_v50  ;;  %v1858_v45 = vmul.f32 %v6263_v18, %v8895_v2  ;;  %4212 = vmatmul.mubr.f32.gmra.mrb[50].mxu0 %v3325_v27  ;;  %v1906_v11 = vmul.f32 %v6263_v18, %v10656_v57  ;;  %v1942_v15 = vmul.f32 %v6278_v31, %v8899_v52 }
 0x2f0   : > { %v2582_v32 = vmul.f32 %v6302_v7, %v10657_v29  ;;  %v2618_v28 = vmul.f32 %v10496_v40, %v8895_v2  ;;  %4356 = vmatprep.mubr.f32.mxu1 %v3577_v56  ;;  %v1838_v48 = vmul.f32 %v1822_v25, %v10658_v55  ;;  %v2666_v59 = vmul.f32 %v10496_v40, %v10655_v46 }
 0x2f1   : > { %v1874_v62 = vmul.f32 %v1858_v45, %v1318_v5  ;;  %v2702_v13 = vmul.f32 %v10500_v23, %v8899_v52  ;;  %4357 = vmatmul.mubr.f32.gmra.mrb[50].mxu1 %v3493_v41  ;;  %v1922_v6 = vmul.f32 %v1906_v11, %v1318_v5  ;;  %v1958_v43 = vmul.f32 %v1942_v15, %v1334_v51 }
 0x2f2   : > { %v2598_v14 = vmul.f32 %v2582_v32, %v10659_v20  ;;  %v3342_v0 = vmul.f32 %v10502_v49, %v10657_v29  ;;  %v3378_v39 = vmul.f32 %v10503_v10, %v8899_v52  ;;  %v8931_v56 = vsub.f32 %v5640_v36, %v10505_v35 }
 0x2f3   : > { %v1890_v27 = vsub.f32 %v1838_v48, %v1874_v62  ;;  %v610_v25 = vsub.f32 %v5640_v36, %v10507_v1  ;;  %v1974_v45 = vsub.f32 %v1922_v6, %v1958_v43  ;;  %vm1078_vm12 = vcmp.ge.f32.partialorder %v5640_v36, %v10505_v35 }
 0x2f4   : > { %10660 = vst [vmem:[#allocation82_spill] sm:$0xff] %v8931_v56  ;;  %vm1126_vm13 = vcmp.ge.f32.partialorder %v5640_v36, %v10507_v1  ;;  %v1990_v41 = vmul.f32 %v6278_v31, %v8895_v2  ;;  %v4854_v15 = vsel %vm1078_vm12, 1.0, %v10377_v8  ;;  %v2026_v36 = vmul.f32 %v10510_v30, %v8931_v56 }
 0x2f5   : > { %v2634_v5 = vmul.f32 %v2618_v28, %v1890_v27  ;;  %v2682_v11 = vmul.f32 %v2666_v59, %v1890_v27  ;;  %v8940_v29 = vsel %vm1126_vm13, 1.0, %v10377_v8  ;;  %v2718_v32 = vmul.f32 %v2702_v13, %v1974_v45 }
 0x2f6   : > { %10661 = vst [vmem:[#allocation79_spill] sm:$0xff] %v8940_v29  ;;  %v1350_v55 = vsub.f32 %v4838_v50, %v4854_v15  ;;  %v8943_v48 = vsub.f32 %v4854_v15, %v8940_v29  ;;  %v2006_v62 = vmul.f32 %v1990_v41, %v1334_v51  ;;  %v2074_v43 = vmul.f32 %v10510_v30, %v8899_v52 }
 0x2f7   : > { %v2650_v6 = vsub.f32 %v2598_v14, %v2634_v5  ;;  %v2110_v28 = vmul.f32 %v10512_v63, %v610_v25  ;;  %v2734_v59 = vsub.f32 %v2682_v11, %v2718_v32  ;;  %v2750_v20 = vmul.f32 %v10500_v23, %v10656_v57 }
 0x2f8   : > { %10662 = vst [vmem:[#allocation85_spill] sm:$0xff] %v8943_v48  ;;  %v2786_v50 = vmul.f32 %v10513_v37, %v8931_v56  ;;  %v2834_v13 = vmul.f32 %v10513_v37, %v8895_v2  ;;  %v2042_v14 = vmul.f32 %v2026_v36, %v1350_v55  ;;  %v2090_v27 = vmul.f32 %v2074_v43, %v1350_v55  ;;  %v3806_v36 = vld [vmem:[#allocation8 + $0x450] sm:$0xff]  ;;  %v3807_v55 = vld [vmem:[#allocation8 + $0x458] sm:$0xff] }
 0x2f9   : > { %v3358_v51 = vmul.f32 %v3342_v0, %v2650_v6  ;;  %v2126_v41 = vmul.f32 %v2110_v28, %v8943_v48  ;;  %v3394_v5 = vmul.f32 %v3378_v39, %v2734_v59  ;;  %v2766_v15 = vmul.f32 %v2750_v20, %v1974_v45  ;;  %v10665_v20 = vld [vmem:[#allocation118_spill] sm:$0xff] }
 0x2fa   : > { %v2870_v52 = vmul.f32 %v10514_v60, %v610_v25  ;;  %v3510_v11 = vmul.f32 %v10515_v16, %v10656_v57  ;;  %v2058_v32 = vsub.f32 %v2006_v62, %v2042_v14  ;;  %v3546_v19 = vmul.f32 %v10517_v61, %v610_v25 }
 0x2fb   : > { %v8960_v29 = vsub.f32 %v2090_v27, %v2126_v41  ;;  %v3258_v0 = vmul.f32 %v6332_v4, %v10664_v44  ;;  %v3410_v43 = vsub.f32 %v3358_v51, %v3394_v5  ;;  %v3294_v39 = vmul.f32 %v10502_v49, %v8895_v2  ;;  %v5641_v51 = vld [vmem:[%s6096_s9 + $0x58] sm:$0xff] }
 0x2fc   : > { %v3426_v45 = vmul.f32 %v10503_v10, %v10655_v46  ;;  %v3462_v57 = vmul.f32 %v10515_v16, %v8931_v56  ;;  %v2802_v62 = vmul.f32 %v2786_v50, %v2058_v32  ;;  %v2850_v28 = vmul.f32 %v2834_v13, %v2058_v32 }
 0x2fd   : > { %10663 = vst [vmem:[#allocation78_spill] sm:$0xff] %v8960_v29  ;;  %v2886_v25 = vmul.f32 %v2870_v52, %v8960_v29  ;;  %v3274_v14 = vmul.f32 %v3258_v0, %v10665_v20  ;;  %4216 = vmatprep.mubr.f32.mxu0 %v3410_v43  ;;  %v3310_v44 = vmul.f32 %v3294_v39, %v2650_v6  ;;  %v10669_v6 = vld [vmem:[#allocation121_spill] sm:$0xff]  ;;  %v10671_v39 = vld [vmem:[#allocation124_spill] sm:$0xff]  ;;  %v10672_v20 = vld [vmem:[#allocation122_spill] sm:$0xff] }
 0x2fe   : > { %v3442_v27 = vmul.f32 %v3426_v45, %v2734_v59  ;;  %v5455_v41 = vpack.c.bf16 %v3807_v55, %v3806_v36  ;;  %v8975_v5 = vsub.f32 %v5641_v51, %v10518_v42  ;;  %v2818_v2 = vsub.f32 %v2766_v15, %v2802_v62  ;;  %v10670_v36 = vld [vmem:[#allocation123_spill] sm:$0xff] }
 0x2ff   : > { %v8977_v48 = vsub.f32 %v2850_v28, %v2886_v25  ;;  %v8980_v46 = vsub.f32 %v5641_v51, %v6210_v58  ;;  %vm983_vm14 = vcmp.ge.f32.partialorder %v5641_v51, %v10518_v42  ;;  %v3326_v50 = vsub.f32 %v3274_v14, %v3310_v44 }
 0x300   : > { %10666 = vst [vmem:[#allocation86_spill] sm:$0xff] %v8975_v5  ;;  %5456 = vmatprep.subr.bf16.mxu0 %v5455_v41  ;;  %5472 = vmatprep.subr.bf16.mxu1 %v5455_v41  ;;  %v4823_v52 = vsel %vm983_vm14, 1.0, %v10377_v8  ;;  %vm1031_vm15 = vcmp.ge.f32.partialorder %v5641_v51, %v6210_v58  ;;  %v1823_v59 = vmul.f32 %v6260_v17, %v10669_v6 }
 0x301   : > { %10667 = vst [vmem:[#allocation91_spill] sm:$0xff] %v8977_v48  ;;  %10668 = vst [vmem:[#allocation89_spill] sm:$0xff] %v8980_v46  ;;  %v3526_v13 = vmul.f32 %v3510_v11, %v2818_v2  ;;  %v3562_v15 = vmul.f32 %v3546_v19, %v8977_v48  ;;  %v3478_v32 = vmul.f32 %v3462_v57, %v2818_v2  ;;  %5458 = vmatpush3.bf16.msra.mxu0 %v5455_v41  ;;  %v10673_v57 = vld [vmem:[#allocation120_spill] sm:$0xff] }
 0x302   : > { %5480 = vmatpush3.bf16.msra.mxu1 %v5455_v41  ;;  %v4839_v0 = vsel %vm1031_vm15, 1.0, %v10377_v8  ;;  %4217 = vmatmul.mubr.f32.gmra.mrb[52].mxu0 %v3326_v50  ;;  %v1319_v55 = vsub.f32 %v10670_v36, %v4823_v52  ;;  %v1839_v45 = vmul.f32 %v1823_v59, %v10671_v39  ;;  %v1859_v62 = vmul.f32 %v6263_v18, %v8975_v5 }
 0x303   : > { %v1335_v43 = vsub.f32 %v4823_v52, %v4839_v0  ;;  %v3578_v28 = vsub.f32 %v3526_v13, %v3562_v15  ;;  %v3494_v25 = vsub.f32 %v3442_v27, %v3478_v32  ;;  %v1907_v11 = vmul.f32 %v6263_v18, %v10672_v20  ;;  %v10674_v15 = vld [vmem:[#allocation125_spill] sm:$0xff] }
 0x304   : > { %v1943_v2 = vmul.f32 %v6278_v31, %v8980_v46  ;;  %v1875_v19 = vmul.f32 %v1859_v62, %v1319_v55  ;;  %v2583_v14 = vmul.f32 %v6302_v7, %v10673_v57  ;;  %v2619_v44 = vmul.f32 %v10496_v40, %v8975_v5 }
 0x305   : > { %v2667_v41 = vmul.f32 %v10496_v40, %v10669_v6  ;;  %4361 = vmatprep.mubr.f32.mxu1 %v3578_v28  ;;  %v1923_v50 = vmul.f32 %v1907_v11, %v1319_v55  ;;  %v2703_v27 = vmul.f32 %v10500_v23, %v8980_v46  ;;  %v3343_v59 = vmul.f32 %v10502_v49, %v10673_v57 }
 0x306   : > { %v1959_v52 = vmul.f32 %v1943_v2, %v1335_v43  ;;  %4362 = vmatmul.mubr.f32.gmra.mrb[52].mxu1 %v3494_v25  ;;  %v1891_v13 = vsub.f32 %v1839_v45, %v1875_v19  ;;  %v2599_v32 = vmul.f32 %v2583_v14, %v10674_v15  ;;  %v3379_v36 = vmul.f32 %v10503_v10, %v8980_v46 }
 0x307   : > { %v9011_v39 = vsub.f32 %v5641_v51, %v10505_v35  ;;  %v611_v55 = vsub.f32 %v5641_v51, %v10507_v1  ;;  %vm1079_vm0 = vcmp.ge.f32.partialorder %v5641_v51, %v10505_v35  ;;  %vm1127_vm1 = vcmp.ge.f32.partialorder %v5641_v51, %v10507_v1 }
 0x308   : > { %v1975_v62 = vsub.f32 %v1923_v50, %v1959_v52  ;;  %v2635_v28 = vmul.f32 %v2619_v44, %v1891_v13  ;;  %v2683_v11 = vmul.f32 %v2667_v41, %v1891_v13  ;;  %v4855_v25 = vsel %vm1079_vm0, 1.0, %v10377_v8 }
 0x309   : > { %10675 = vst [vmem:[#allocation90_spill] sm:$0xff] %v9011_v39  ;;  %v9018_v45 = vsel %vm1127_vm1, 1.0, %v10377_v8  ;;  %v1351_v19 = vsub.f32 %v4839_v0, %v4855_v25  ;;  %v1991_v14 = vmul.f32 %v6278_v31, %v8975_v5  ;;  %v2027_v52 = vmul.f32 %v10510_v30, %v9011_v39 }
 0x30a   : > { %10676 = vst [vmem:[#allocation92_spill] sm:$0xff] %v9018_v45  ;;  %v2719_v2 = vmul.f32 %v2703_v27, %v1975_v62  ;;  %v9021_v57 = vsub.f32 %v4855_v25, %v9018_v45  ;;  %v2651_v50 = vsub.f32 %v2599_v32, %v2635_v28  ;;  %v2075_v51 = vmul.f32 %v10510_v30, %v8980_v46 }
 0x30b   : > { %v2111_v44 = vmul.f32 %v10512_v63, %v611_v55  ;;  %v2007_v13 = vmul.f32 %v1991_v14, %v1335_v43  ;;  %v2751_v0 = vmul.f32 %v10500_v23, %v10672_v20  ;;  %v2787_v27 = vmul.f32 %v10513_v37, %v9011_v39 }
 0x30c   : > { %10677 = vst [vmem:[#allocation88_spill] sm:$0xff] %v9021_v57  ;;  %v2735_v41 = vsub.f32 %v2683_v11, %v2719_v2  ;;  %v3359_v15 = vmul.f32 %v3343_v59, %v2651_v50  ;;  %v2043_v25 = vmul.f32 %v2027_v52, %v1351_v19  ;;  %v2091_v45 = vmul.f32 %v2075_v51, %v1351_v19  ;;  %v10679_v19 = vld [vmem:[#allocation119_spill] sm:$0xff] }
 0x30d   : > { %v2127_v32 = vmul.f32 %v2111_v44, %v9021_v57  ;;  %v2767_v48 = vmul.f32 %v2751_v0, %v1975_v62  ;;  %v2835_v46 = vmul.f32 %v10513_v37, %v8975_v5  ;;  %v2871_v29 = vmul.f32 %v10514_v60, %v611_v55 }
 0x30e   : > { %v3395_v28 = vmul.f32 %v3379_v36, %v2735_v41  ;;  %v2059_v11 = vsub.f32 %v2007_v13, %v2043_v25  ;;  %v3511_v2 = vmul.f32 %v10515_v16, %v10672_v20  ;;  %v3547_v59 = vmul.f32 %v10517_v61, %v611_v55  ;;  %v10680_v20 = vld [vmem:[#allocation126_spill] sm:$0xff]  ;;  %v5642_v25 = vld [vmem:[%s6096_s9 + $0x60] sm:$0xff] }
 0x30f   : > { %v9038_v43 = vsub.f32 %v2091_v45, %v2127_v32  ;;  %v3259_v52 = vmul.f32 %v6332_v4, %v10679_v19  ;;  %v3295_v36 = vmul.f32 %v10502_v49, %v8975_v5  ;;  %v3427_v62 = vmul.f32 %v10503_v10, %v10669_v6 }
 0x310   : > { %v3411_v14 = vsub.f32 %v3359_v15, %v3395_v28  ;;  %v2803_v51 = vmul.f32 %v2787_v27, %v2059_v11  ;;  %v2851_v44 = vmul.f32 %v2835_v46, %v2059_v11  ;;  %v3463_v13 = vmul.f32 %v10515_v16, %v9011_v39  ;;  %v10684_v27 = vld [vmem:[#allocation129_spill] sm:$0xff] }
 0x311   : > { %10678 = vst [vmem:[#allocation93_spill] sm:$0xff] %v9038_v43  ;;  %v2887_v45 = vmul.f32 %v2871_v29, %v9038_v43  ;;  %v3275_v55 = vmul.f32 %v3259_v52, %v10680_v20  ;;  %v3311_v0 = vmul.f32 %v3295_v36, %v2651_v50  ;;  %v3443_v15 = vmul.f32 %v3427_v62, %v2735_v41  ;;  %v10685_v52 = vld [vmem:[#allocation131_spill] sm:$0xff] }
 0x312   : > { %4221 = vmatprep.mubr.f32.mxu0 %v3411_v14  ;;  %v9055_v32 = vsub.f32 %v5642_v25, %v10518_v42  ;;  %v2819_v28 = vsub.f32 %v2767_v48, %v2803_v51  ;;  %v9060_v6 = vsub.f32 %v5642_v25, %v6210_v58  ;;  %vm984_vm2 = vcmp.ge.f32.partialorder %v5642_v25, %v10518_v42  ;;  %v10686_v51 = vld [vmem:[#allocation132_spill] sm:$0xff] }
 0x313   : > { %v9057_v19 = vsub.f32 %v2851_v44, %v2887_v45  ;;  %v3327_v29 = vsub.f32 %v3275_v55, %v3311_v0  ;;  %v4824_v46 = vsel %vm984_vm2, 1.0, %v10377_v8  ;;  %vm1032_vm3 = vcmp.ge.f32.partialorder %v5642_v25, %v6210_v58  ;;  %v10687_v0 = vld [vmem:[#allocation130_spill] sm:$0xff] }
 0x314   : > { %10681 = vst [vmem:[#allocation87_spill] sm:$0xff] %v9055_v32  ;;  %10683 = vst [vmem:[#allocation97_spill] sm:$0xff] %v9060_v6  ;;  %v1824_v50 = vmul.f32 %v6260_v17, %v10684_v27  ;;  %v3527_v41 = vmul.f32 %v3511_v2, %v2819_v28  ;;  %v3479_v14 = vmul.f32 %v3463_v13, %v2819_v28  ;;  %v4840_v48 = vsel %vm1032_vm3, 1.0, %v10377_v8  ;;  %v10688_v13 = vld [vmem:[#allocation128_spill] sm:$0xff] }
 0x315   : > { %10682 = vst [vmem:[#allocation94_spill] sm:$0xff] %v9057_v19  ;;  %v3563_v11 = vmul.f32 %v3547_v59, %v9057_v19  ;;  %4222 = vmatmul.mubr.f32.gmra.mrb[54].mxu0 %v3327_v29  ;;  %v1320_v36 = vsub.f32 %v10685_v52, %v4824_v46  ;;  %v1336_v62 = vsub.f32 %v4824_v46, %v4840_v48  ;;  %v10689_v52 = vld [vmem:[#allocation133_spill] sm:$0xff] }
 0x316   : > { %v1840_v44 = vmul.f32 %v1824_v50, %v10686_v51  ;;  %v1860_v45 = vmul.f32 %v6263_v18, %v9055_v32  ;;  %v3495_v55 = vsub.f32 %v3443_v15, %v3479_v14  ;;  %v1908_v5 = vmul.f32 %v6263_v18, %v10687_v0 }
 0x317   : > { %v3579_v20 = vsub.f32 %v3527_v41, %v3563_v11  ;;  %v1944_v2 = vmul.f32 %v6278_v31, %v9060_v6  ;;  %v2584_v28 = vmul.f32 %v6302_v7, %v10688_v13  ;;  %v2620_v29 = vmul.f32 %v10496_v40, %v9055_v32 }
 0x318   : > { %v1876_v59 = vmul.f32 %v1860_v45, %v1320_v36  ;;  %v2668_v46 = vmul.f32 %v10496_v40, %v10684_v27  ;;  %v1924_v50 = vmul.f32 %v1908_v5, %v1320_v36  ;;  %v2704_v15 = vmul.f32 %v10500_v23, %v9060_v6 }
 0x319   : > { %4366 = vmatprep.mubr.f32.mxu1 %v3579_v20  ;;  %v1960_v41 = vmul.f32 %v1944_v2, %v1336_v62  ;;  %v3344_v11 = vmul.f32 %v10502_v49, %v10688_v13  ;;  %v2600_v51 = vmul.f32 %v2584_v28, %v10689_v52  ;;  %v3380_v45 = vmul.f32 %v10503_v10, %v9060_v6 }
 0x31a   : > { %4367 = vmatmul.mubr.f32.gmra.mrb[54].mxu1 %v3495_v55  ;;  %v1892_v14 = vsub.f32 %v1840_v44, %v1876_v59  ;;  %v9091_v19 = vsub.f32 %v5642_v25, %v10505_v35  ;;  %v612_v5 = vsub.f32 %v5642_v25, %v10507_v1  ;;  %vm1080_vm4 = vcmp.ge.f32.partialorder %v5642_v25, %v10505_v35 }
 0x31b   : > { %v1976_v43 = vsub.f32 %v1924_v50, %v1960_v41  ;;  %vm1128_vm5 = vcmp.ge.f32.partialorder %v5642_v25, %v10507_v1  ;;  %v4856_v55 = vsel %vm1080_vm4, 1.0, %v10377_v8  ;;  %v1992_v28 = vmul.f32 %v6278_v31, %v9055_v32 }
 0x31c   : > { %v2636_v36 = vmul.f32 %v2620_v29, %v1892_v14  ;;  %v2684_v20 = vmul.f32 %v2668_v46, %v1892_v14  ;;  %v9098_v44 = vsel %vm1128_vm5, 1.0, %v10377_v8  ;;  %v1352_v59 = vsub.f32 %v4840_v48, %v4856_v55 }
 0x31d   : > { %10690 = vst [vmem:[#allocation99_spill] sm:$0xff] %v9098_v44  ;;  %v2720_v2 = vmul.f32 %v2704_v15, %v1976_v43  ;;  %v9101_v13 = vsub.f32 %v4856_v55, %v9098_v44  ;;  %v2028_v41 = vmul.f32 %v10510_v30, %v9091_v19  ;;  %v2076_v25 = vmul.f32 %v10510_v30, %v9060_v6 }
 0x31e   : > { %v2652_v50 = vsub.f32 %v2600_v51, %v2636_v36  ;;  %v2112_v29 = vmul.f32 %v10512_v63, %v612_v5  ;;  %v2008_v14 = vmul.f32 %v1992_v28, %v1336_v62  ;;  %v2752_v48 = vmul.f32 %v10500_v23, %v10687_v0 }
 0x31f   : > { %10691 = vst [vmem:[#allocation100_spill] sm:$0xff] %v9101_v13  ;;  %v2736_v46 = vsub.f32 %v2684_v20, %v2720_v2  ;;  %v2788_v15 = vmul.f32 %v10513_v37, %v9091_v19  ;;  %v2044_v55 = vmul.f32 %v2028_v41, %v1352_v59  ;;  %v2092_v44 = vmul.f32 %v2076_v25, %v1352_v59  ;;  %v3809_v41 = vld [vmem:[#allocation8 + $0x468] sm:$0xff]  ;;  %v10693_v25 = vld [vmem:[#allocation127_spill] sm:$0xff] }
 0x320   : > { %v3360_v52 = vmul.f32 %v3344_v11, %v2652_v50  ;;  %v2128_v51 = vmul.f32 %v2112_v29, %v9101_v13  ;;  %v2768_v57 = vmul.f32 %v2752_v48, %v1976_v43  ;;  %v2836_v6 = vmul.f32 %v10513_v37, %v9055_v32  ;;  %v3808_v11 = vld [vmem:[#allocation8 + $0x460] sm:$0xff] }
 0x321   : > { %v3396_v36 = vmul.f32 %v3380_v45, %v2736_v46  ;;  %v2872_v39 = vmul.f32 %v10514_v60, %v612_v5  ;;  %v2060_v20 = vsub.f32 %v2008_v14, %v2044_v55  ;;  %v3512_v2 = vmul.f32 %v10515_v16, %v10687_v0 }
 0x322   : > { %v9118_v62 = vsub.f32 %v2092_v44, %v2128_v51  ;;  %v3548_v28 = vmul.f32 %v10517_v61, %v612_v5  ;;  %v3260_v43 = vmul.f32 %v6332_v4, %v10693_v25  ;;  %v3296_v45 = vmul.f32 %v10502_v49, %v9055_v32  ;;  %v10694_v5 = vld [vmem:[#allocation134_spill] sm:$0xff] }
 0x323   : > { %v3412_v59 = vsub.f32 %v3360_v52, %v3396_v36  ;;  %v3428_v29 = vmul.f32 %v10503_v10, %v10684_v27  ;;  %v2804_v44 = vmul.f32 %v2788_v15, %v2060_v20  ;;  %v2852_v14 = vmul.f32 %v2836_v6, %v2060_v20  ;;  %v5643_v32 = vld [vmem:[%s6096_s9 + $0x68] sm:$0xff]  ;;  %v10698_v20 = vld [vmem:[#allocation139_spill] sm:$0xff] }
 0x324   : > { %10692 = vst [vmem:[#allocation98_spill] sm:$0xff] %v9118_v62  ;;  %v2888_v48 = vmul.f32 %v2872_v39, %v9118_v62  ;;  %v3464_v0 = vmul.f32 %v10515_v16, %v9091_v19  ;;  %v3276_v55 = vmul.f32 %v3260_v43, %v10694_v5  ;;  %v3312_v52 = vmul.f32 %v3296_v45, %v2652_v50 }
 0x325   : > { %4226 = vmatprep.mubr.f32.mxu0 %v3412_v59  ;;  %v3444_v51 = vmul.f32 %v3428_v29, %v2736_v46  ;;  %v5459_v36 = vpack.c.bf16 %v3809_v41, %v3808_v11  ;;  %v2820_v25 = vsub.f32 %v2768_v57, %v2804_v44  ;;  %v9137_v56 = vsub.f32 %v5643_v32, %v10518_v42  ;;  %v10699_v41 = vld [vmem:[#allocation137_spill] sm:$0xff] }
 0x326   : > { %v9133_v13 = vsub.f32 %v2852_v14, %v2888_v48  ;;  %v9140_v6 = vsub.f32 %v5643_v32, %v6210_v58  ;;  %v3328_v39 = vsub.f32 %v3276_v55, %v3312_v52  ;;  %vm985_vm6 = vcmp.ge.f32.partialorder %v5643_v32, %v10518_v42  ;;  %v10701_v14 = vld [vmem:[#allocation140_spill] sm:$0xff] }
 0x327   : > { %10696 = vst [vmem:[#allocation101_spill] sm:$0xff] %v9137_v56  ;;  %5460 = vmatprep.subr.bf16.mxu0 %v5459_v36  ;;  %5473 = vmatprep.subr.bf16.mxu1 %v5459_v36  ;;  %vm1033_vm7 = vcmp.ge.f32.partialorder %v5643_v32, %v6210_v58  ;;  %v3528_v27 = vmul.f32 %v3512_v2, %v2820_v25  ;;  %v4825_v46 = vsel %vm985_vm6, 1.0, %v10377_v8  ;;  %v10702_v55 = vld [vmem:[#allocation136_spill] sm:$0xff] }
 0x328   : > { %10695 = vst [vmem:[#allocation96_spill] sm:$0xff] %v9133_v13  ;;  %10697 = vst [vmem:[#allocation95_spill] sm:$0xff] %v9140_v6  ;;  %v3564_v50 = vmul.f32 %v3548_v28, %v9133_v13  ;;  %v3480_v57 = vmul.f32 %v3464_v0, %v2820_v25  ;;  %5462 = vmatpush3.bf16.msra.mxu0 %v5459_v36  ;;  %5481 = vmatpush3.bf16.msra.mxu1 %v5459_v36  ;;  %v4841_v15 = vsel %vm1033_vm7, 1.0, %v10377_v8  ;;  %v10700_v28 = vld [vmem:[#allocation138_spill] sm:$0xff] }
 0x329   : > { %4227 = vmatmul.mubr.f32.gmra.mrb[56].mxu0 %v3328_v39  ;;  %v1321_v11 = vsub.f32 %v10698_v20, %v4825_v46  ;;  %v1825_v59 = vmul.f32 %v6260_v17, %v10699_v41  ;;  %v1861_v43 = vmul.f32 %v6263_v18, %v9137_v56  ;;  %v1337_v29 = vsub.f32 %v4825_v46, %v4841_v15 }
 0x32a   : > { %v3580_v45 = vsub.f32 %v3528_v27, %v3564_v50  ;;  %v3496_v2 = vsub.f32 %v3444_v51, %v3480_v57  ;;  %v1909_v44 = vmul.f32 %v6263_v18, %v10700_v28  ;;  %v1945_v5 = vmul.f32 %v6278_v31, %v9140_v6  ;;  %v10703_v57 = vld [vmem:[#allocation141_spill] sm:$0xff] }
 0x32b   : > { %v1841_v48 = vmul.f32 %v1825_v59, %v10701_v14  ;;  %v1877_v0 = vmul.f32 %v1861_v43, %v1321_v11  ;;  %v2585_v52 = vmul.f32 %v6302_v7, %v10702_v55  ;;  %v2621_v25 = vmul.f32 %v10496_v40, %v9137_v56 }
 0x32c   : > { %4371 = vmatprep.mubr.f32.mxu1 %v3580_v45  ;;  %v1925_v36 = vmul.f32 %v1909_v44, %v1321_v11  ;;  %v2669_v51 = vmul.f32 %v10496_v40, %v10699_v41  ;;  %v2705_v39 = vmul.f32 %v10500_v23, %v9140_v6  ;;  %v1961_v50 = vmul.f32 %v1945_v5, %v1337_v29 }
 0x32d   : > { %4372 = vmatmul.mubr.f32.gmra.mrb[56].mxu1 %v3496_v2  ;;  %v1893_v27 = vsub.f32 %v1841_v48, %v1877_v0  ;;  %v2601_v46 = vmul.f32 %v2585_v52, %v10703_v57  ;;  %v3345_v20 = vmul.f32 %v10502_v49, %v10702_v55  ;;  %v3381_v11 = vmul.f32 %v10503_v10, %v9140_v6 }
 0x32e   : > { %v9171_v59 = vsub.f32 %v5643_v32, %v10505_v35  ;;  %v613_v43 = vsub.f32 %v5643_v32, %v10507_v1  ;;  %vm1081_vm8 = vcmp.ge.f32.partialorder %v5643_v32, %v10505_v35  ;;  %v1977_v45 = vsub.f32 %v1925_v36, %v1961_v50 }
 0x32f   : > { %v2637_v44 = vmul.f32 %v2621_v25, %v1893_v27  ;;  %v2685_v2 = vmul.f32 %v2669_v51, %v1893_v27  ;;  %v4857_v14 = vsel %vm1081_vm8, 1.0, %v10377_v8  ;;  %vm1129_vm9 = vcmp.ge.f32.partialorder %v5643_v32, %v10507_v1  ;;  %v9186_v25 = vpop.f32.mrb[0].mxu0  ;;  %v9188_v51 = vpop.f32.mrb[0].mxu1 }
 0x330   : > { %10704 = vst [vmem:[#allocation102_spill] sm:$0xff] %v9171_v59  ;;  %v1353_v48 = vsub.f32 %v4841_v15, %v4857_v14  ;;  %v1993_v0 = vmul.f32 %v6278_v31, %v9137_v56  ;;  %v2029_v5 = vmul.f32 %v10510_v30, %v9171_v59  ;;  %v2721_v52 = vmul.f32 %v2705_v39, %v1977_v45  ;;  %v9194_v13 = vpop.f32.mrb[1].mxu0  ;;  %v9196_v39 = vpop.f32.mrb[1].mxu1 }
 0x331   : > { %v2653_v55 = vsub.f32 %v2601_v46, %v2637_v44  ;;  %v9182_v57 = vsel %vm1129_vm9, 1.0, %v10377_v8  ;;  %v2077_v36 = vmul.f32 %v10510_v30, %v9140_v6  ;;  %10706 = vst [vmem:[#allocation105_spill] sm:$0xff] %v9186_v25  ;;  %10707 = vst [vmem:[#allocation106_spill] sm:$0xff] %v9188_v51  ;;  %v2113_v50 = vmul.f32 %v10512_v63, %v613_v43  ;;  %v9200_v25 = vpop.f32.mrb[2].mxu0  ;;  %v9202_v51 = vpop.f32.mrb[2].mxu1 }
 0x332   : > { %10705 = vst [vmem:[#allocation107_spill] sm:$0xff] %v9182_v57  ;;  %v9191_v32 = vsub.f32 %v4857_v14, %v9182_v57  ;;  %v2009_v15 = vmul.f32 %v1993_v0, %v1337_v29  ;;  %v2045_v27 = vmul.f32 %v2029_v5, %v1353_v48  ;;  %10709 = vst [vmem:[#allocation104_spill] sm:$0xff] %v9194_v13 }
 0x333   : > { %10710 = vst [vmem:[#allocation109_spill] sm:$0xff] %v9196_v39  ;;  %v2737_v46 = vsub.f32 %v2685_v2, %v2721_v52  ;;  %v3361_v44 = vmul.f32 %v3345_v20, %v2653_v55  ;;  %v2093_v62 = vmul.f32 %v2077_v36, %v1353_v48  ;;  %v2753_v6 = vmul.f32 %v10500_v23, %v10700_v28  ;;  %v9209_v39 = vpop.f32.mrb[3].mxu0  ;;  %v9211_v20 = vpop.f32.mrb[3].mxu1 }
 0x334   : > { %10708 = vst [vmem:[#allocation108_spill] sm:$0xff] %v9191_v32  ;;  %10711 = vst [vmem:[#allocation103_spill] sm:$0xff] %v9200_v25  ;;  %v2061_v14 = vsub.f32 %v2009_v15, %v2045_v27  ;;  %v2129_v29 = vmul.f32 %v2113_v50, %v9191_v32  ;;  %v2789_v0 = vmul.f32 %v10513_v37, %v9171_v59  ;;  %v9216_v15 = vpop.f32.mrb[4].mxu0  ;;  %v9218_v27 = vpop.f32.mrb[4].mxu1 }
 0x335   : > { %10712 = vst [vmem:[#allocation112_spill] sm:$0xff] %v9202_v51  ;;  %v2837_v5 = vmul.f32 %v10513_v37, %v9137_v56  ;;  %10713 = vst [vmem:[#allocation115_spill] sm:$0xff] %v9209_v39  ;;  %v3397_v2 = vmul.f32 %v3381_v11, %v2737_v46  ;;  %v2769_v48 = vmul.f32 %v2753_v6, %v1977_v45  ;;  %v9223_v13 = vpop.f32.mrb[5].mxu0  ;;  %v9225_v11 = vpop.f32.mrb[5].mxu1  ;;  %v10720_v45 = vld [vmem:[#allocation135_spill] sm:$0xff] }
 0x336   : > { %10714 = vst [vmem:[#allocation113_spill] sm:$0xff] %v9211_v20  ;;  %v2873_v52 = vmul.f32 %v10514_v60, %v613_v43  ;;  %v3513_v36 = vmul.f32 %v10515_v16, %v10700_v28  ;;  %10715 = vst [vmem:[#allocation114_spill] sm:$0xff] %v9216_v15  ;;  %v9220_v50 = vsub.f32 %v2093_v62, %v2129_v29  ;;  %v9233_v62 = vpop.f32.mrb[6].mxu0  ;;  %v9235_v29 = vpop.f32.mrb[6].mxu1 }
 0x337   : > { %10716 = vst [vmem:[#allocation111_spill] sm:$0xff] %v9218_v27  ;;  %v2805_v51 = vmul.f32 %v2789_v0, %v2061_v14  ;;  %v2853_v25 = vmul.f32 %v2837_v5, %v2061_v14  ;;  %v3549_v39 = vmul.f32 %v10517_v61, %v613_v43  ;;  %10718 = vst [vmem:[#allocation117_spill] sm:$0xff] %v9223_v13 }
 0x338   : > { %10717 = vst [vmem:[#allocation116_spill] sm:$0xff] %v9220_v50  ;;  %10719 = vst [vmem:[#allocation110_spill] sm:$0xff] %v9225_v11  ;;  %v3413_v6 = vsub.f32 %v3361_v44, %v3397_v2  ;;  %v3261_v20 = vmul.f32 %v6332_v4, %v10720_v45  ;;  %v3297_v28 = vmul.f32 %v10502_v49, %v9137_v56  ;;  %v9241_v44 = vld [vmem:[%s6096_s9 + $0x70] sm:$0xff]  ;;  %v9247_v2 = vpop.f32.mrb[7].mxu0  ;;  %v9249_v45 = vpop.f32.mrb[7].mxu1 }
 0x339   : > { %v3429_v27 = vmul.f32 %v10503_v10, %v10699_v41  ;;  %10721 = vst [vmem:[#allocation118_spill] sm:$0xff] %v9233_v62  ;;  %10722 = vst [vmem:[#allocation121_spill] sm:$0xff] %v9235_v29  ;;  %v2821_v14 = vsub.f32 %v2769_v48, %v2805_v51  ;;  %v2889_v43 = vmul.f32 %v2873_v52, %v9220_v50  ;;  %v10726_v41 = vld [vmem:[#allocation144_spill] sm:$0xff]  ;;  %v9256_v52 = vpop.f32.mrb[8].mxu0  ;;  %v9258_v11 = vpop.f32.mrb[8].mxu1 }
 0x33a   : > { %v3465_v0 = vmul.f32 %v10515_v16, %v9171_v59  ;;  %10723 = vst [vmem:[#allocation123_spill] sm:$0xff] %v9241_v44  ;;  %v9245_v5 = vsub.f32 %v9241_v44, %v10518_v42  ;;  %10724 = vst [vmem:[#allocation124_spill] sm:$0xff] %v9247_v2  ;;  %4231 = vmatprep.mubr.f32.mxu0 %v3413_v6  ;;  %v3277_v62 = vmul.f32 %v3261_v20, %v10726_v41  ;;  %v9264_v6 = vpop.f32.mrb[9].mxu0  ;;  %v9266_v20 = vpop.f32.mrb[9].mxu1 }
 0x33b   : > { %10725 = vst [vmem:[#allocation122_spill] sm:$0xff] %v9249_v45  ;;  %v3313_v29 = vmul.f32 %v3297_v28, %v2653_v55  ;;  %v3445_v51 = vmul.f32 %v3429_v27, %v2737_v46  ;;  %v9254_v48 = vsub.f32 %v9241_v44, %v6210_v58  ;;  %10728 = vst [vmem:[#allocation125_spill] sm:$0xff] %v9256_v52  ;;  %v10739_v52 = vld [vmem:[#allocation145_spill] sm:$0xff] }
 0x33c   : > { %10729 = vst [vmem:[#allocation119_spill] sm:$0xff] %v9258_v11  ;;  %v9260_v13 = vsub.f32 %v2853_v25, %v2889_v43  ;;  %v3529_v15 = vmul.f32 %v3513_v36, %v2821_v14  ;;  %v3481_v56 = vmul.f32 %v3465_v0, %v2821_v14  ;;  %vm986_vm10 = vcmp.ge.f32.partialorder %v9241_v44, %v10518_v42  ;;  %v9273_v25 = vpop.f32.mrb[10].mxu0  ;;  %v9275_v36 = vpop.f32.mrb[10].mxu1  ;;  %v10735_v0 = vld [vmem:[#allocation146_spill] sm:$0xff]  ;;  %v10738_v11 = vld [vmem:[#allocation147_spill] sm:$0xff] }
 0x33d   : > { %10727 = vst [vmem:[#allocation120_spill] sm:$0xff] %v9254_v48  ;;  %10731 = vst [vmem:[#allocation129_spill] sm:$0xff] %v9264_v6  ;;  %v3329_v55 = vsub.f32 %v3277_v62, %v3313_v29  ;;  %v4826_v46 = vsel %vm986_vm10, 1.0, %v10377_v8  ;;  %vm1034_vm11 = vcmp.ge.f32.partialorder %v9241_v44, %v6210_v58  ;;  %v1826_v27 = vmul.f32 %v6260_v17, %v7941_v3  ;;  %v9280_v62 = vpop.f32.mrb[11].mxu0  ;;  %v9282_v29 = vpop.f32.mrb[11].mxu1 }
 0x33e   : > { %10730 = vst [vmem:[#allocation126_spill] sm:$0xff] %v9260_v13  ;;  %10732 = vst [vmem:[#allocation131_spill] sm:$0xff] %v9266_v20  ;;  %v3565_v28 = vmul.f32 %v3549_v39, %v9260_v13  ;;  %v3497_v14 = vsub.f32 %v3445_v51, %v3481_v56  ;;  %v4842_v43 = vsel %vm1034_vm11, 1.0, %v10377_v8  ;;  %v1322_v41 = vsub.f32 %v10735_v0, %v4826_v46  ;;  %v9289_v39 = vpop.f32.mrb[12].mxu0  ;;  %v9291_v56 = vpop.f32.mrb[12].mxu1 }
 0x33f   : > { %10733 = vst [vmem:[#allocation132_spill] sm:$0xff] %v9273_v25  ;;  %10734 = vst [vmem:[#allocation130_spill] sm:$0xff] %v9275_v36  ;;  %4232 = vmatmul.mubr.f32.gmra.mrb[58].mxu0 %v3329_v55  ;;  %v1338_v20 = vsub.f32 %v4826_v46, %v4842_v43  ;;  %v1842_v6 = vmul.f32 %v1826_v27, %v10738_v11  ;;  %v1862_v25 = vmul.f32 %v6263_v18, %v9245_v5  ;;  %v9299_v46 = vpop.f32.mrb[13].mxu0  ;;  %v9301_v27 = vpop.f32.mrb[13].mxu1 }
 0x340   : > { %10736 = vst [vmem:[#allocation128_spill] sm:$0xff] %v9280_v62  ;;  %10737 = vst [vmem:[#allocation133_spill] sm:$0xff] %v9282_v29  ;;  %v1910_v36 = vmul.f32 %v6263_v18, %v10739_v52  ;;  %v3581_v51 = vsub.f32 %v3529_v15, %v3565_v28  ;;  %v1946_v0 = vmul.f32 %v6278_v31, %v9254_v48  ;;  %v10742_v62 = vld [vmem:[#allocation143_spill] sm:$0xff]  ;;  %v9307_v28 = vpop.f32.mrb[14].mxu0 }
 0x341   : > { %10740 = vst [vmem:[#allocation127_spill] sm:$0xff] %v9289_v39  ;;  %10741 = vst [vmem:[#allocation134_spill] sm:$0xff] %v9291_v56  ;;  %v2586_v55 = vmul.f32 %v6302_v7, %v10742_v62  ;;  %v2622_v11 = vmul.f32 %v10496_v40, %v9245_v5  ;;  %v1878_v29 = vmul.f32 %v1862_v25, %v1322_v41  ;;  %v9309_v56 = vpop.f32.mrb[14].mxu1 }
 0x342   : > { %10743 = vst [vmem:[#allocation139_spill] sm:$0xff] %v9299_v46  ;;  %10744 = vst [vmem:[#allocation137_spill] sm:$0xff] %v9301_v27  ;;  %v1926_v45 = vmul.f32 %v1910_v36, %v1322_v41  ;;  %v2670_v39 = vmul.f32 %v10496_v40, %v7941_v3  ;;  %v2706_v15 = vmul.f32 %v10500_v23, %v9254_v48  ;;  %4376 = vmatprep.mubr.f32.mxu1 %v3581_v51  ;;  %v9316_v36 = vpop.f32.mrb[15].mxu0  ;;  %v9318_v41 = vpop.f32.mrb[15].mxu1 }
 0x343   : > { %10745 = vst [vmem:[#allocation138_spill] sm:$0xff] %v9307_v28  ;;  %10746 = vst [vmem:[#allocation140_spill] sm:$0xff] %v9309_v56  ;;  %v1962_v2 = vmul.f32 %v1946_v0, %v1338_v20  ;;  %v2602_v13 = vmul.f32 %v2586_v55, %v7983_v53  ;;  %v3346_v46 = vmul.f32 %v10502_v49, %v10742_v62  ;;  %4377 = vmatmul.mubr.f32.gmra.mrb[58].mxu1 %v3497_v14  ;;  %v9328_v53 = vpop.f32.mrb[16].mxu0  ;;  %v9330_v62 = vpop.f32.mrb[16].mxu1 }
 0x344   : > { %v3382_v25 = vmul.f32 %v10503_v10, %v9254_v48  ;;  %10747 = vst [vmem:[#allocation136_spill] sm:$0xff] %v9316_v36  ;;  %10748 = vst [vmem:[#allocation141_spill] sm:$0xff] %v9318_v41  ;;  %v1894_v27 = vsub.f32 %v1842_v6, %v1878_v29  ;;  %v9322_v28 = vsub.f32 %v9241_v44, %v10505_v35  ;;  %v9337_v14 = vpop.f32.mrb[17].mxu0  ;;  %v9339_v29 = vpop.f32.mrb[17].mxu1 }
 0x345   : > { %v614_v51 = vsub.f32 %v9241_v44, %v10507_v1  ;;  %vm1082_vm12 = vcmp.ge.f32.partialorder %v9241_v44, %v10505_v35  ;;  %10749 = vst [vmem:[#allocation135_spill] sm:$0xff] %v9328_v53  ;;  %10750 = vst [vmem:[#allocation144_spill] sm:$0xff] %v9330_v62  ;;  %v1978_v0 = vsub.f32 %v1926_v45, %v1962_v2  ;;  %v9344_v62 = vpop.f32.mrb[18].mxu0  ;;  %v9346_v2 = vpop.f32.mrb[18].mxu1 }
 0x346   : > { %v4858_v55 = vsel %vm1082_vm12, 1.0, %v10377_v8  ;;  %vm1130_vm13 = vcmp.ge.f32.partialorder %v9241_v44, %v10507_v1  ;;  %v1994_v6 = vmul.f32 %v6278_v31, %v9245_v5  ;;  %10751 = vst [vmem:[#allocation146_spill] sm:$0xff] %v9337_v14  ;;  %10752 = vst [vmem:[#allocation147_spill] sm:$0xff] %v9339_v29  ;;  %v2638_v41 = vmul.f32 %v2622_v11, %v1894_v27  ;;  %v9353_v32 = vpop.f32.mrb[19].mxu0  ;;  %v9355_v11 = vpop.f32.mrb[19].mxu1 }
 0x347   : > { %v2686_v56 = vmul.f32 %v2670_v39, %v1894_v27  ;;  %v9342_v36 = vsel %vm1130_vm13, 1.0, %v10377_v8  ;;  %v1354_v53 = vsub.f32 %v4842_v43, %v4858_v55  ;;  %10754 = vst [vmem:[#allocation143_spill] sm:$0xff] %v9344_v62  ;;  %10755 = vst [vmem:[#allocation151_spill] sm:$0xff] %v9346_v2  ;;  %v2722_v45 = vmul.f32 %v2706_v15, %v1978_v0  ;;  %v9362_v2 = vpop.f32.mrb[20].mxu0 }
 0x348   : > { %10753 = vst [vmem:[#allocation145_spill] sm:$0xff] %v9342_v36  ;;  %v9349_v44 = vsub.f32 %v4858_v55, %v9342_v36  ;;  %v2010_v50 = vmul.f32 %v1994_v6, %v1338_v20  ;;  %v2030_v14 = vmul.f32 %v10510_v30, %v9322_v28  ;;  %10756 = vst [vmem:[#allocation152_spill] sm:$0xff] %v9353_v32  ;;  %v9364_v55 = vpop.f32.mrb[20].mxu1 }
 0x349   : > { %10757 = vst [vmem:[#allocation153_spill] sm:$0xff] %v9355_v11  ;;  %v2654_v39 = vsub.f32 %v2602_v13, %v2638_v41  ;;  %v2078_v43 = vmul.f32 %v10510_v30, %v9254_v48  ;;  %v2114_v27 = vmul.f32 %v10512_v63, %v614_v51  ;;  %v2754_v15 = vmul.f32 %v10500_v23, %v10739_v52  ;;  %v9370_v41 = vpop.f32.mrb[21].mxu0  ;;  %v9372_v11 = vpop.f32.mrb[21].mxu1 }
 0x34a   : > { %10758 = vst [vmem:[#allocation154_spill] sm:$0xff] %v9362_v2  ;;  %10759 = vst [vmem:[#allocation155_spill] sm:$0xff] %v9364_v55  ;;  %v2738_v20 = vsub.f32 %v2686_v56, %v2722_v45  ;;  %v2046_v6 = vmul.f32 %v2030_v14, %v1354_v53  ;;  %v2790_v32 = vmul.f32 %v10513_v37, %v9322_v28  ;;  %v9375_v2 = vpop.f32.mrb[22].mxu0  ;;  %v9377_v55 = vpop.f32.mrb[22].mxu1 }
 0x34b   : > { %v2838_v13 = vmul.f32 %v10513_v37, %v9245_v5  ;;  %10760 = vst [vmem:[#allocation156_spill] sm:$0xff] %v9370_v41  ;;  %v3362_v62 = vmul.f32 %v3346_v46, %v2654_v39  ;;  %v2094_v29 = vmul.f32 %v2078_v43, %v1354_v53  ;;  %v2130_v36 = vmul.f32 %v2114_v27, %v9349_v44  ;;  %v9382_v59 = vpop.f32.mrb[23].mxu0  ;;  %v9384_v41 = vpop.f32.mrb[23].mxu1  ;;  %v3811_v27 = vld [vmem:[#allocation8 + $0x478] sm:$0xff] }
 0x34c   : > { %v2770_v48 = vmul.f32 %v2754_v15, %v1978_v0  ;;  %10761 = vst [vmem:[#allocation157_spill] sm:$0xff] %v9375_v2  ;;  %10762 = vst [vmem:[#allocation158_spill] sm:$0xff] %v9377_v55  ;;  %v3398_v56 = vmul.f32 %v3382_v25, %v2738_v20  ;;  %v2062_v14 = vsub.f32 %v2010_v50, %v2046_v6  ;;  %v10765_v0 = vld [vmem:[#allocation142_spill] sm:$0xff]  ;;  %v3810_v50 = vld [vmem:[#allocation8 + $0x470] sm:$0xff]  ;;  %v9393_v15 = vpop.f32.mrb[24].mxu0  ;;  %v9395_v6 = vpop.f32.mrb[24].mxu1 }
 0x34d   : > { %v2874_v45 = vmul.f32 %v10514_v60, %v614_v51  ;;  %v3514_v57 = vmul.f32 %v10515_v16, %v10739_v52  ;;  %10763 = vst [vmem:[#allocation159_spill] sm:$0xff] %v9382_v59  ;;  %10764 = vst [vmem:[#allocation160_spill] sm:$0xff] %v9384_v41  ;;  %v9386_v46 = vsub.f32 %v2094_v29, %v2130_v36  ;;  %v9401_v29 = vpop.f32.mrb[25].mxu1 }
 0x34e   : > { %v3550_v53 = vmul.f32 %v10517_v61, %v614_v51  ;;  %v3262_v43 = vmul.f32 %v6332_v4, %v10765_v0  ;;  %v3298_v25 = vmul.f32 %v10502_v49, %v9245_v5  ;;  %10766 = vst [vmem:[#allocation142_spill] sm:$0xff] %v9393_v15  ;;  %10767 = vst [vmem:[#allocation161_spill] sm:$0xff] %v9395_v6  ;;  %v9399_v51 = vpop.f32.mrb[25].mxu0 }
 0x34f   : > { %v3414_v52 = vsub.f32 %v3362_v62, %v3398_v56  ;;  %v2806_v55 = vmul.f32 %v2790_v32, %v2062_v14  ;;  %v2854_v41 = vmul.f32 %v2838_v13, %v2062_v14  ;;  %v3430_v36 = vmul.f32 %v10503_v10, %v7941_v3  ;;  %v9407_v6 = vpop.f32.mrb[26].mxu0  ;;  %v9409_v62 = vpop.f32.mrb[26].mxu1  ;;  %v9412_v56 = vld [vmem:[%s6096_s9 + $0x78] sm:$0xff] }
 0x350   : > { %v2890_v0 = vmul.f32 %v2874_v45, %v9386_v46  ;;  %v3278_v59 = vmul.f32 %v3262_v43, %v7994_v34  ;;  %v3314_v2 = vmul.f32 %v3298_v25, %v2654_v39  ;;  %v3466_v15 = vmul.f32 %v10515_v16, %v9322_v28  ;;  %v9418_v45 = vpop.f32.mrb[27].mxu0  ;;  %v9420_v34 = vpop.f32.mrb[27].mxu1 }
 0x351   : > { %4236 = vmatprep.mubr.f32.mxu0 %v3414_v52  ;;  %v2822_v32 = vsub.f32 %v2770_v48, %v2806_v55  ;;  %v3446_v13 = vmul.f32 %v3430_v36, %v2738_v20  ;;  %v5463_v3 = vpack.c.bf16 %v3811_v27, %v3810_v50  ;;  %v9416_v14 = vsub.f32 %v9412_v56, %v10518_v42  ;;  %v9430_v48 = vpop.f32.mrb[28].mxu0  ;;  %v9432_v55 = vpop.f32.mrb[28].mxu1 }
 0x352   : > { %v9422_v39 = vsub.f32 %v2854_v41, %v2890_v0  ;;  %v3330_v43 = vsub.f32 %v3278_v59, %v3314_v2  ;;  %v9426_v25 = vsub.f32 %v9412_v56, %v6210_v58  ;;  %vm987_vm14 = vcmp.ge.f32.partialorder %v9412_v56, %v10518_v42  ;;  %v9437_v59 = vpop.f32.mrb[29].mxu0  ;;  %v9439_v2 = vpop.f32.mrb[29].mxu1 }
 0x353   : > { %v3530_v20 = vmul.f32 %v3514_v57, %v2822_v32  ;;  %v3482_v50 = vmul.f32 %v3466_v15, %v2822_v32  ;;  %5464 = vmatprep.subr.bf16.mxu0 %v5463_v3  ;;  %5474 = vmatprep.subr.bf16.mxu1 %v5463_v3  ;;  %v4827_v27 = vsel %vm987_vm14, 1.0, %v10377_v8  ;;  %vm1035_vm15 = vcmp.ge.f32.partialorder %v9412_v56, %v6210_v58  ;;  %v9446_v52 = vpop.f32.mrb[30].mxu0  ;;  %v9448_v36 = vpop.f32.mrb[30].mxu1 }
 0x354   : > { %10768 = vst [vmem:[#allocation162_spill] sm:$0xff] %v9439_v2  ;;  %v3566_v41 = vmul.f32 %v3550_v53, %v9422_v39  ;;  %4237 = vmatmul.mubr.f32.gmra.mrb[60].mxu0 %v3330_v43  ;;  %5482 = vmatpush3.bf16.msra.mxu1 %v5463_v3  ;;  %v4843_v42 = vsel %vm1035_vm15, 1.0, %v10377_v8  ;;  %v1323_v57 = vsub.f32 %v8067_v47, %v4827_v27  ;;  %10769 = vst [vmem:[#allocation163_spill] sm:$0xff] %v9446_v52  ;;  %v9454_v43 = vpop.f32.mrb[31].mxu0  ;;  %v9456_v2 = vpop.f32.mrb[31].mxu1 }
 0x355   : > { %v1827_v15 = vmul.f32 %v6260_v17, %v8051_v26  ;;  %10770 = vst [vmem:[#allocation164_spill] sm:$0xff] %v9448_v36  ;;  %v3498_v58 = vsub.f32 %v3446_v13, %v3482_v50  ;;  %5466 = vmatpush3.bf16.msra.mxu0 %v5463_v3  ;;  %v1339_v0 = vsub.f32 %v4827_v27, %v4843_v42  ;;  %10771 = vst [vmem:[#allocation165_spill] sm:$0xff] %v9456_v2  ;;  %v9463_v3 = vpop.f32.mrb[32].mxu0  ;;  %v9465_v50 = vpop.f32.mrb[32].mxu1  ;;  %v10788_v2 = vld [vmem:[#allocation148_spill] sm:$0xff] }
 0x356   : > { %v1863_v32 = vmul.f32 %v6263_v18, %v9416_v14  ;;  %v1911_v53 = vmul.f32 %v6263_v18, %v8055_v21  ;;  %v3582_v47 = vsub.f32 %v3530_v20, %v3566_v41  ;;  %v1947_v52 = vmul.f32 %v6278_v31, %v9426_v25  ;;  %10772 = vst [vmem:[#allocation166_spill] sm:$0xff] %v9463_v3  ;;  %v9471_v41 = vpop.f32.mrb[33].mxu0 }
 0x357   : > { %v1843_v17 = vmul.f32 %v1827_v15, %v8070_v33  ;;  %v2587_v13 = vmul.f32 %v6302_v7, %v8011_v24  ;;  %10773 = vst [vmem:[#allocation167_spill] sm:$0xff] %v9465_v50  ;;  %v2623_v18 = vmul.f32 %v10496_v40, %v9416_v14  ;;  %v2671_v20 = vmul.f32 %v10496_v40, %v8051_v26  ;;  %v9473_v33 = vpop.f32.mrb[33].mxu1 }
 0x358   : > { %v1879_v27 = vmul.f32 %v1863_v32, %v1323_v57  ;;  %v1927_v36 = vmul.f32 %v1911_v53, %v1323_v57  ;;  %10774 = vst [vmem:[#allocation168_spill] sm:$0xff] %v9471_v41  ;;  %10775 = vst [vmem:[#allocation169_spill] sm:$0xff] %v9473_v33  ;;  %4381 = vmatprep.mubr.f32.mxu1 %v3582_v47  ;;  %v1963_v15 = vmul.f32 %v1947_v52, %v1339_v0  ;;  %v9480_v32 = vpop.f32.mrb[34].mxu0  ;;  %v9482_v53 = vpop.f32.mrb[34].mxu1 }
 0x359   : > { %v2603_v7 = vmul.f32 %v2587_v13, %v8085_v9  ;;  %v2707_v3 = vmul.f32 %v10500_v23, %v9426_v25  ;;  %v3347_v57 = vmul.f32 %v10502_v49, %v8011_v24  ;;  %10776 = vst [vmem:[#allocation170_spill] sm:$0xff] %v9480_v32  ;;  %10777 = vst [vmem:[#allocation171_spill] sm:$0xff] %v9482_v53  ;;  %4382 = vmatmul.mubr.f32.gmra.mrb[60].mxu1 %v3498_v58  ;;  %v9492_v47 = vpop.f32.mrb[35].mxu0  ;;  %v9494_v13 = vpop.f32.mrb[35].mxu1 }
 0x35a   : > { %v1895_v40 = vsub.f32 %v1843_v17, %v1879_v27  ;;  %v3383_v50 = vmul.f32 %v10503_v10, %v9426_v25  ;;  %v9488_v52 = vsub.f32 %v9412_v56, %v10505_v35  ;;  %v615_v9 = vsub.f32 %v9412_v56, %v10507_v1  ;;  %10778 = vst [vmem:[#allocation172_spill] sm:$0xff] %v9492_v47  ;;  %v9502_v17 = vpop.f32.mrb[36].mxu0  ;;  %v9504_v27 = vpop.f32.mrb[36].mxu1 }
 0x35b   : > { %10779 = vst [vmem:[#allocation173_spill] sm:$0xff] %v9494_v13  ;;  %v1979_v24 = vsub.f32 %v1927_v36, %v1963_v15  ;;  %vm1083_vm0 = vcmp.ge.f32.partialorder %v9412_v56, %v10505_v35  ;;  %vm1131_vm1 = vcmp.ge.f32.partialorder %v9412_v56, %v10507_v1  ;;  %v1995_v58 = vmul.f32 %v6278_v31, %v9416_v14  ;;  %v9510_v36 = vpop.f32.mrb[37].mxu0  ;;  %v9512_v35 = vpop.f32.mrb[37].mxu1 }
 0x35c   : > { %10780 = vst [vmem:[#allocation174_spill] sm:$0xff] %v9502_v17  ;;  %10781 = vst [vmem:[#allocation175_spill] sm:$0xff] %v9504_v27  ;;  %v2639_v53 = vmul.f32 %v2623_v18, %v1895_v40  ;;  %v2687_v32 = vmul.f32 %v2671_v20, %v1895_v40  ;;  %v4859_v47 = vsel %vm1083_vm0, 1.0, %v10377_v8  ;;  %v9508_v13 = vsel %vm1131_vm1, 1.0, %v10377_v8  ;;  %v9517_v17 = vpop.f32.mrb[38].mxu0  ;;  %v9519_v27 = vpop.f32.mrb[38].mxu1 }
 0x35d   : > { %10782 = vst [vmem:[#allocation176_spill] sm:$0xff] %v9510_v36  ;;  %10783 = vst [vmem:[#allocation177_spill] sm:$0xff] %v9512_v35  ;;  %v2723_v15 = vmul.f32 %v2707_v3, %v1979_v24  ;;  %v1355_v1 = vsub.f32 %v4843_v42, %v4859_v47  ;;  %v9515_v33 = vsub.f32 %v4859_v47, %v9508_v13  ;;  %v9526_v35 = vpop.f32.mrb[39].mxu0  ;;  %v9528_v42 = vpop.f32.mrb[39].mxu1 }
 0x35e   : > { %v2011_v31 = vmul.f32 %v1995_v58, %v1339_v0  ;;  %10784 = vst [vmem:[#allocation178_spill] sm:$0xff] %v9517_v17  ;;  %10785 = vst [vmem:[#allocation179_spill] sm:$0xff] %v9519_v27  ;;  %v2655_v18 = vsub.f32 %v2603_v7, %v2639_v53  ;;  %v2031_v20 = vmul.f32 %v10510_v30, %v9488_v52 }
 0x35f   : > { %v2079_v40 = vmul.f32 %v10510_v30, %v9426_v25  ;;  %v2115_v36 = vmul.f32 %v10512_v63, %v615_v9  ;;  %10786 = vst [vmem:[#allocation180_spill] sm:$0xff] %v9526_v35  ;;  %10787 = vst [vmem:[#allocation181_spill] sm:$0xff] %v9528_v42  ;;  %v2739_v3 = vsub.f32 %v2687_v32, %v2723_v15 }
 0x360   : > { %v2755_v0 = vmul.f32 %v10500_v23, %v8055_v21  ;;  %v2791_v47 = vmul.f32 %v10513_v37, %v9488_v52  ;;  %v2839_v7 = vmul.f32 %v10513_v37, %v9416_v14  ;;  %v3363_v53 = vmul.f32 %v3347_v57, %v2655_v18 }
 0x361   : > { %v2047_v58 = vmul.f32 %v2031_v20, %v1355_v1  ;;  %v2095_v27 = vmul.f32 %v2079_v40, %v1355_v1  ;;  %v2131_v30 = vmul.f32 %v2115_v36, %v9515_v33  ;;  %v3399_v17 = vmul.f32 %v3383_v50, %v2739_v3 }
 0x362   : > { %v2771_v41 = vmul.f32 %v2755_v0, %v1979_v24  ;;  %v2875_v35 = vmul.f32 %v10514_v60, %v615_v9  ;;  %v3515_v32 = vmul.f32 %v10515_v16, %v8055_v21  ;;  %v3551_v42 = vmul.f32 %v10517_v61, %v615_v9 }
 0x363   : > { %v2063_v23 = vsub.f32 %v2011_v31, %v2047_v58  ;;  %v9540_v15 = vsub.f32 %v2095_v27, %v2131_v30  ;;  %v3263_v37 = vmul.f32 %v6332_v4, %v10788_v2  ;;  %v3415_v57 = vsub.f32 %v3363_v53, %v3399_v17  ;;  %v10789_v31 = vld [vmem:[#allocation150_spill] sm:$0xff]  ;;  %v5646_v4 = vld [vmem:[%s6096_s9] sm:$0xff] }
 0x364   : > { %v3299_v36 = vmul.f32 %v10502_v49, %v9416_v14  ;;  %v3431_v50 = vmul.f32 %v10503_v10, %v8051_v26  ;;  %v3467_v24 = vmul.f32 %v10515_v16, %v9488_v52  ;;  %v10790_v2 = vld [vmem:[#allocation22_spill] sm:$0xff]  ;;  %v10791_v10 = vld [vmem:[#allocation25_spill] sm:$0xff] }
 0x365   : > { %v2807_v21 = vmul.f32 %v2791_v47, %v2063_v23  ;;  %v2855_v1 = vmul.f32 %v2839_v7, %v2063_v23  ;;  %v2891_v27 = vmul.f32 %v2875_v35, %v9540_v15  ;;  %v3279_v20 = vmul.f32 %v3263_v37, %v10789_v31  ;;  %4241 = vmatprep.mubr.f32.mxu0 %v3415_v57  ;;  %v9561_v47 = vpop.f32.mrb[40].mxu0  ;;  %v10792_v7 = vld [vmem:[#allocation34_spill] sm:$0xff]  ;;  %v10794_v57 = vld [vmem:[#allocation35_spill] sm:$0xff]  ;;  %v10796_v31 = vld [vmem:[#allocation16_spill] sm:$0xff] }
 0x366   : > { %v3315_v9 = vmul.f32 %v3299_v36, %v2655_v18  ;;  %v3447_v40 = vmul.f32 %v3431_v50, %v2739_v3  ;;  %v620_v17 = vsub.f32 %v5646_v4, %v10790_v2  ;;  %vm1164_vm2 = vcmp.ge.f32.partialorder %v5646_v4, %v10790_v2  ;;  %v10793_v3 = vld [vmem:[#allocation149_spill] sm:$0xff]  ;;  %v9567_v30 = vpop.f32.mrb[41].mxu0 }
 0x367   : > { %v2823_v49 = vsub.f32 %v2771_v41, %v2807_v21  ;;  %v9556_v0 = vsub.f32 %v2855_v1, %v2891_v27  ;;  %v4876_v26 = vsel %vm1164_vm2, 1.0, %v10377_v8  ;;  %v2148_v16 = vmul.f32 %v10512_v63, %v10791_v10  ;;  %v10795_v21 = vld [vmem:[#allocation36_spill] sm:$0xff]  ;;  %v5647_v27 = vld [vmem:[#allocation7 + $0x10] sm:$0xff] }
 0x368   : > { %v3331_v35 = vsub.f32 %v3279_v20, %v3315_v9  ;;  %v1372_v53 = vsub.f32 %v10792_v7, %v4876_v26  ;;  %v2184_v18 = vmul.f32 %v8220_v38, %v620_v17  ;;  %v2908_v58 = vmul.f32 %v10514_v60, %v10793_v3  ;;  %v10797_v9 = vld [vmem:[#allocation33_spill] sm:$0xff]  ;;  %v5648_v7 = vld [vmem:[#allocation7 + $0x18] sm:$0x3f] }
 0x369   : > { %v3531_v41 = vmul.f32 %v3515_v32, %v2823_v49  ;;  %v3567_v23 = vmul.f32 %v3551_v42, %v9556_v0  ;;  %v3483_v37 = vmul.f32 %v3467_v24, %v2823_v49  ;;  %v2164_v36 = vmul.f32 %v2148_v16, %v10794_v57  ;;  %v10798_v32 = vld [vmem:[#allocation17_spill] sm:$0xff]  ;;  %v9582_v49 = vpop.f32.mrb[40].mxu1 }
 0x36a   : > { %4242 = vmatmul.mubr.f32.gmra.mrb[62].mxu0 %v3331_v35  ;;  %v2200_v50 = vmul.f32 %v2184_v18, %v1372_v53  ;;  %v2924_v1 = vmul.f32 %v2908_v58, %v10795_v21  ;;  %v9573_v20 = vrot.slane %v5647_v27, %v10796_v31  ;;  %v3584_v4 = vmul.f32 %v10517_v61, %v10797_v9  ;;  %v5649_v42 = vld [vmem:[%s6096_s9 + $0x40] sm:$0xff]  ;;  %v10800_v53 = vld [vmem:[#allocation26_spill] sm:$0xff]  ;;  %v9587_v58 = vpop.f32.mrb[41].mxu1 }
 0x36b   : > { %v3583_v26 = vsub.f32 %v3531_v41, %v3567_v23  ;;  %v3499_v10 = vsub.f32 %v3447_v40, %v3483_v37  ;;  %v9578_v3 = vrot.slane %v5648_v7, %v10798_v32  ;;  %v628_v24 = vsub.f32 %v5649_v42, %v10790_v2  ;;  %10799 = vst [vmem:[#allocation148_spill] sm:$0xff] %v9582_v49  ;;  %v10802_v23 = vld [vmem:[#allocation76_spill] sm:$0xff]  ;;  %v10804_v27 = vld [vmem:[#allocation73_spill] sm:$0xff]  ;;  %v10806_v7 = vld [vmem:[#allocation70_spill] sm:$0xff] }
 0x36c   : > { %v2216_v16 = vsub.f32 %v2164_v36, %v2200_v50  ;;  %v2944_v35 = vmul.f32 %v9573_v20, %v620_v17  ;;  %v3600_v18 = vmul.f32 %v3584_v4, %v10800_v53  ;;  %vm1172_vm3 = vcmp.ge.f32.partialorder %v5649_v42, %v10790_v2  ;;  %10801 = vst [vmem:[#allocation150_spill] sm:$0xff] %v9587_v58  ;;  %v10803_v50 = vld [vmem:[#allocation74_spill] sm:$0xff]  ;;  %v10805_v4 = vld [vmem:[#allocation72_spill] sm:$0xff]  ;;  %v10808_v53 = vld [vmem:[#allocation29_spill] sm:$0xff] }
 0x36d   : > { %4386 = vmatprep.mubr.f32.mxu1 %v3583_v26  ;;  %v3620_v40 = vmul.f32 %v9578_v3, %v620_v17  ;;  %v4884_v41 = vsel %vm1172_vm3, 1.0, %v10377_v8  ;;  %v2156_v37 = vmul.f32 %v10512_v63, %v10802_v23  ;;  %v2192_v57 = vmul.f32 %v8220_v38, %v628_v24  ;;  %v10807_v42 = vld [vmem:[#allocation30_spill] sm:$0xff]  ;;  %v10811_v58 = vld [vmem:[#allocation71_spill] sm:$0xff] }
 0x36e   : > { %4387 = vmatmul.mubr.f32.gmra.mrb[62].mxu1 %v3499_v10  ;;  %v2960_v36 = vmul.f32 %v2944_v35, %v2216_v16  ;;  %v1380_v21 = vsub.f32 %v10803_v50, %v4884_v41  ;;  %v2916_v31 = vmul.f32 %v10514_v60, %v10804_v27  ;;  %v2952_v9 = vmul.f32 %v9573_v20, %v628_v24  ;;  %v10809_v35 = vld [vmem:[#allocation77_spill] sm:$0xff]  ;;  %v10810_v50 = vld [vmem:[#allocation19_spill] sm:$0xff] }
 0x36f   : > { %v2172_v26 = vmul.f32 %v2156_v37, %v10805_v4  ;;  %v3592_v17 = vmul.f32 %v10517_v61, %v10806_v7  ;;  %v3628_v32 = vmul.f32 %v9578_v3, %v628_v24  ;;  %v2217_v23 = vsub.f32 %v10808_v53, %v10807_v42 }
 0x370   : > { %v2976_v10 = vsub.f32 %v2924_v1, %v2960_v36  ;;  %v2208_v16 = vmul.f32 %v2192_v57, %v1380_v21  ;;  %v2932_v41 = vmul.f32 %v2916_v31, %v10809_v35  ;;  %v2945_v27 = vmul.f32 %v9573_v20, %v10810_v50  ;;  %v5650_v21 = vld [vmem:[%s6096_s9 + $0x10] sm:$0xff] }
 0x371   : > { %v3608_v49 = vmul.f32 %v3592_v17, %v10811_v58  ;;  %v3621_v37 = vmul.f32 %v9578_v3, %v10810_v50  ;;  %v2225_v4 = vsub.f32 %v8867_v12, %v8872_v22  ;;  %v2953_v24 = vmul.f32 %v9573_v20, %v8850_v54  ;;  %v10812_v58 = vld [vmem:[#allocation24_spill] sm:$0xff]  ;;  %v10813_v22 = vld [vmem:[#allocation37_spill] sm:$0xff] }
 0x372   : > { %v3636_v7 = vmul.f32 %v3620_v40, %v2976_v10  ;;  %v2224_v42 = vsub.f32 %v2172_v26, %v2208_v16  ;;  %v2961_v1 = vmul.f32 %v2945_v27, %v2217_v23  ;;  %v3629_v57 = vmul.f32 %v9578_v3, %v8850_v54  ;;  %v10814_v26 = vld [vmem:[#allocation80_spill] sm:$0xff]  ;;  %v10815_v10 = vld [vmem:[#allocation27_spill] sm:$0xff] }
 0x373   : > { %v2969_v36 = vmul.f32 %v2953_v24, %v2225_v4  ;;  %v622_v31 = vsub.f32 %v5650_v21, %v10790_v2  ;;  %vm1166_vm4 = vcmp.ge.f32.partialorder %v5650_v21, %v10790_v2  ;;  %v2150_v17 = vmul.f32 %v10512_v63, %v10812_v58  ;;  %v10816_v16 = vld [vmem:[#allocation28_spill] sm:$0xff]  ;;  %v10817_v21 = vld [vmem:[#allocation21_spill] sm:$0xff] }
 0x374   : > { %v3652_v53 = vsub.f32 %v3600_v18, %v3636_v7  ;;  %v2968_v12 = vmul.f32 %v2952_v9, %v2224_v42  ;;  %v2977_v35 = vsub.f32 %v10813_v22, %v2961_v1  ;;  %v4878_v40 = vsel %vm1166_vm4, 1.0, %v10377_v8  ;;  %v10818_v1 = vld [vmem:[#allocation20_spill] sm:$0xff] }
 0x375   : > { %v2985_v23 = vsub.f32 %v10814_v26, %v2969_v36  ;;  %v1374_v54 = vsub.f32 %v10815_v10, %v4878_v40  ;;  %v2166_v50 = vmul.f32 %v2150_v17, %v10816_v16  ;;  %v2186_v27 = vmul.f32 %v8220_v38, %v622_v31  ;;  %v10819_v40 = vld [vmem:[#allocation23_spill] sm:$0xff]  ;;  %v10822_v16 = vld [vmem:[#allocation42_spill] sm:$0xff] }
 0x376   : > { %5283 = vmatprep.mubr.f32.mxu0 %v3652_v53  ;;  %v2984_v4 = vsub.f32 %v2932_v41, %v2968_v12  ;;  %v3637_v24 = vmul.f32 %v3621_v37, %v2977_v35  ;;  %v2910_v18 = vmul.f32 %v10514_v60, %v10817_v21  ;;  %v2946_v9 = vmul.f32 %v9573_v20, %v622_v31  ;;  %v10820_v26 = vld [vmem:[#allocation31_spill] sm:$0xff]  ;;  %v10821_v37 = vld [vmem:[#allocation84_spill] sm:$0xff] }
 0x377   : > { %v3645_v7 = vmul.f32 %v3629_v57, %v2985_v23  ;;  %v2202_v42 = vmul.f32 %v2186_v27, %v1374_v54  ;;  %v3586_v36 = vmul.f32 %v10517_v61, %v10818_v1  ;;  %v3622_v58 = vmul.f32 %v9578_v3, %v622_v31  ;;  %v5651_v53 = vld [vmem:[%s6096_s9 + $0x50] sm:$0xff]  ;;  %v9644_v27 = vpop.f32.mrb[42].mxu0 }
 0x378   : > { %v3644_v22 = vmul.f32 %v3628_v32, %v2984_v4  ;;  %v3653_v17 = vsub.f32 %v10819_v40, %v3637_v24  ;;  %v2926_v10 = vmul.f32 %v2910_v18, %v10820_v26  ;;  %v630_v41 = vsub.f32 %v5651_v53, %v10790_v2  ;;  %v10823_v32 = vld [vmem:[#allocation82_spill] sm:$0xff]  ;;  %10824 = vst [vmem:[#allocation22_spill] sm:$0xff] %v9644_v27  ;;  %v10825_v24 = vld [vmem:[#allocation79_spill] sm:$0xff]  ;;  %v9650_v1 = vpop.f32.mrb[43].mxu0  ;;  %v5652_v26 = vld [vmem:[%s6096_s9 + $0x18] sm:$0xff] }
 0x379   : > { %v3661_v12 = vsub.f32 %v10821_v37, %v3645_v7  ;;  %v2218_v35 = vsub.f32 %v2166_v50, %v2202_v42  ;;  %v3602_v21 = vmul.f32 %v3586_v36, %v10822_v16  ;;  %vm1174_vm5 = vcmp.ge.f32.partialorder %v5651_v53, %v10790_v2  ;;  %v10826_v50 = vld [vmem:[#allocation83_spill] sm:$0xff]  ;;  %10827 = vst [vmem:[#allocation25_spill] sm:$0xff] %v9650_v1 }
 0x37a   : > { %v3660_v57 = vsub.f32 %v3608_v49, %v3644_v22  ;;  %5284 = vmatmul.mubr.f32.vlgmr.msra.gmra.mrb[64].mxu0 %v3653_v17  ;;  %v4886_v31 = vsel %vm1174_vm5, 1.0, %v10377_v8  ;;  %v2158_v23 = vmul.f32 %v10512_v63, %v10823_v32  ;;  %v2194_v54 = vmul.f32 %v8220_v38, %v630_v41  ;;  %v10828_v49 = vld [vmem:[#allocation85_spill] sm:$0xff] }
 0x37b   : > { %v2962_v4 = vmul.f32 %v2946_v9, %v2218_v35  ;;  %v1382_v18 = vsub.f32 %v10825_v24, %v4886_v31  ;;  %v2918_v7 = vmul.f32 %v10514_v60, %v10826_v50  ;;  %v2954_v42 = vmul.f32 %v9573_v20, %v630_v41  ;;  %v10829_v22 = vld [vmem:[#allocation81_spill] sm:$0xff]  ;;  %v10830_v35 = vld [vmem:[#allocation78_spill] sm:$0xff]  ;;  %v10831_v31 = vld [vmem:[#allocation91_spill] sm:$0xff] }
 0x37c   : > { %5295 = vmatprep.mubr.f32.mxu1 %v3660_v57  ;;  %v2174_v36 = vmul.f32 %v2158_v23, %v10828_v49  ;;  %v3594_v40 = vmul.f32 %v10517_v61, %v10829_v22  ;;  %v3630_v17 = vmul.f32 %v9578_v3, %v630_v41  ;;  %v623_v9 = vsub.f32 %v5652_v26, %v10790_v2  ;;  %v10832_v23 = vld [vmem:[#allocation38_spill] sm:$0xff]  ;;  %v9665_v41 = vpop.f32.mrb[42].mxu1  ;;  %v10837_v22 = vld [vmem:[#allocation44_spill] sm:$0xff] }
 0x37d   : > { %5296 = vmatmul.mubr.f32.vlgmr.msra.gmra.mrb[64].mxu1 %v3661_v12  ;;  %v2978_v53 = vsub.f32 %v2926_v10, %v2962_v4  ;;  %v2210_v37 = vmul.f32 %v2194_v54, %v1382_v18  ;;  %v2934_v16 = vmul.f32 %v2918_v7, %v10830_v35  ;;  %vm1167_vm6 = vcmp.ge.f32.partialorder %v5652_v26, %v10790_v2  ;;  %v10834_v10 = vld [vmem:[#allocation39_spill] sm:$0xff]  ;;  %v10835_v4 = vld [vmem:[#allocation18_spill] sm:$0xff]  ;;  %v9670_v7 = vpop.f32.mrb[43].mxu1  ;;  %v10838_v35 = vld [vmem:[#allocation32_spill] sm:$0xff] }
 0x37e   : > { %v3610_v32 = vmul.f32 %v3594_v40, %v10831_v31  ;;  %v4879_v57 = vsel %vm1167_vm6, 1.0, %v10377_v8  ;;  %v2151_v24 = vmul.f32 %v10512_v63, %v10832_v23  ;;  %v2187_v50 = vmul.f32 %v8220_v38, %v623_v9  ;;  %10833 = vst [vmem:[#allocation34_spill] sm:$0xff] %v9665_v41  ;;  %10836 = vst [vmem:[#allocation149_spill] sm:$0xff] %v9670_v7 }
 0x37f   : > { %v3638_v49 = vmul.f32 %v3622_v58, %v2978_v53  ;;  %v2226_v12 = vsub.f32 %v2174_v36, %v2210_v37  ;;  %v1375_v54 = vsub.f32 %v10834_v10, %v4879_v57  ;;  %v2911_v18 = vmul.f32 %v10514_v60, %v10835_v4  ;;  %v10839_v36 = vld [vmem:[#allocation45_spill] sm:$0xff]  ;;  %v10840_v37 = vld [vmem:[#allocation46_spill] sm:$0xff]  ;;  %v5653_v10 = vld [vmem:[%s6096_s9 + $0x58] sm:$0xff] }
 0x380   : > { %v2167_v40 = vmul.f32 %v2151_v24, %v10837_v22  ;;  %v2947_v26 = vmul.f32 %v9573_v20, %v623_v9  ;;  %v3587_v31 = vmul.f32 %v10517_v61, %v10838_v35  ;;  %v3623_v23 = vmul.f32 %v9578_v3, %v623_v9  ;;  %v10841_v24 = vld [vmem:[#allocation90_spill] sm:$0xff] }
 0x381   : > { %v3654_v1 = vsub.f32 %v3602_v21, %v3638_v49  ;;  %v2970_v41 = vmul.f32 %v2954_v42, %v2226_v12  ;;  %v2203_v58 = vmul.f32 %v2187_v50, %v1375_v54  ;;  %v2927_v53 = vmul.f32 %v2911_v18, %v10839_v36  ;;  %v10842_v42 = vld [vmem:[#allocation89_spill] sm:$0xff]  ;;  %v10843_v50 = vld [vmem:[#allocation92_spill] sm:$0xff] }
 0x382   : > { %v3603_v57 = vmul.f32 %v3587_v31, %v10840_v37  ;;  %v631_v4 = vsub.f32 %v5653_v10, %v10790_v2  ;;  %vm1175_vm7 = vcmp.ge.f32.partialorder %v5653_v10, %v10790_v2  ;;  %v2159_v22 = vmul.f32 %v10512_v63, %v10841_v24  ;;  %v10844_v12 = vld [vmem:[#allocation88_spill] sm:$0xff]  ;;  %v10845_v10 = vld [vmem:[#allocation93_spill] sm:$0xff] }
 0x383   : > { %5286 = vmatprep.mubr.f32.mxu0 %v3654_v1  ;;  %v2986_v35 = vsub.f32 %v2934_v16, %v2970_v41  ;;  %v2219_v7 = vsub.f32 %v2167_v40, %v2203_v58  ;;  %v4887_v21 = vsel %vm1175_vm7, 1.0, %v10377_v8  ;;  %v2919_v9 = vmul.f32 %v10514_v60, %v10842_v42  ;;  %v10846_v1 = vld [vmem:[#allocation86_spill] sm:$0xff]  ;;  %v5654_v58 = vld [vmem:[%s6096_s9 + $0x20] sm:$0xff] }
 0x384   : > { %v1383_v49 = vsub.f32 %v10843_v50, %v4887_v21  ;;  %v2175_v54 = vmul.f32 %v2159_v22, %v10844_v12  ;;  %v2195_v18 = vmul.f32 %v8220_v38, %v631_v4  ;;  %v2955_v31 = vmul.f32 %v9573_v20, %v631_v4  ;;  %v10847_v50 = vld [vmem:[#allocation94_spill] sm:$0xff] }
 0x385   : > { %v3646_v36 = vmul.f32 %v3630_v17, %v2986_v35  ;;  %v2963_v37 = vmul.f32 %v2947_v26, %v2219_v7  ;;  %v2935_v24 = vmul.f32 %v2919_v9, %v10845_v10  ;;  %v3595_v16 = vmul.f32 %v10517_v61, %v10846_v1  ;;  %v10848_v26 = vld [vmem:[#allocation40_spill] sm:$0xff]  ;;  %v10849_v9 = vld [vmem:[#allocation15_spill] sm:$0xff]  ;;  %v10850_v10 = vld [vmem:[#allocation41_spill] sm:$0xff] }
 0x386   : > { %v2211_v41 = vmul.f32 %v2195_v18, %v1383_v49  ;;  %v3631_v40 = vmul.f32 %v9578_v3, %v631_v4  ;;  %v624_v42 = vsub.f32 %v5654_v58, %v10790_v2  ;;  %vm1168_vm8 = vcmp.ge.f32.partialorder %v5654_v58, %v10790_v2 }
 0x387   : > { %v3662_v22 = vsub.f32 %v3610_v32, %v3646_v36  ;;  %v2979_v21 = vsub.f32 %v2927_v53, %v2963_v37  ;;  %v3611_v12 = vmul.f32 %v3595_v16, %v10847_v50  ;;  %v4880_v17 = vsel %vm1168_vm8, 1.0, %v10377_v8  ;;  %v10851_v53 = vld [vmem:[#allocation43_spill] sm:$0xff] }
 0x388   : > { %v2227_v7 = vsub.f32 %v2175_v54, %v2211_v41  ;;  %v1376_v35 = vsub.f32 %v10848_v26, %v4880_v17  ;;  %v2152_v49 = vmul.f32 %v10512_v63, %v10849_v9  ;;  %v2188_v4 = vmul.f32 %v8220_v38, %v624_v42  ;;  %v10852_v54 = vld [vmem:[#allocation49_spill] sm:$0xff]  ;;  %v10853_v17 = vld [vmem:[#allocation51_spill] sm:$0xff]  ;;  %v10854_v9 = vld [vmem:[#allocation50_spill] sm:$0xff] }
 0x389   : > { %5298 = vmatprep.mubr.f32.mxu1 %v3662_v22  ;;  %v3639_v18 = vmul.f32 %v3623_v23, %v2979_v21  ;;  %v2912_v1 = vmul.f32 %v10514_v60, %v10850_v10  ;;  %v2948_v32 = vmul.f32 %v9573_v20, %v624_v42  ;;  %v3588_v36 = vmul.f32 %v10517_v61, %v10851_v53  ;;  %v5655_v23 = vld [vmem:[%s6096_s9 + $0x60] sm:$0xff] }
 0x38a   : > { %v2971_v37 = vmul.f32 %v2955_v31, %v2227_v7  ;;  %v2168_v16 = vmul.f32 %v2152_v49, %v10852_v54  ;;  %v2204_v41 = vmul.f32 %v2188_v4, %v1376_v35  ;;  %v3624_v58 = vmul.f32 %v9578_v3, %v624_v42  ;;  %v10855_v42 = vld [vmem:[#allocation97_spill] sm:$0xff]  ;;  %v9723_v4 = vpop.f32.mrb[44].mxu0 }
 0x38b   : > { %v3655_v50 = vsub.f32 %v3603_v57, %v3639_v18  ;;  %v2928_v26 = vmul.f32 %v2912_v1, %v10853_v17  ;;  %v3604_v22 = vmul.f32 %v3588_v36, %v10854_v9  ;;  %v632_v21 = vsub.f32 %v5655_v23, %v10790_v2  ;;  %10856 = vst [vmem:[#allocation35_spill] sm:$0xff] %v9723_v4  ;;  %v10857_v1 = vld [vmem:[#allocation99_spill] sm:$0xff]  ;;  %v10858_v36 = vld [vmem:[#allocation100_spill] sm:$0xff]  ;;  %v9727_v54 = vpop.f32.mrb[45].mxu0  ;;  %v5656_v9 = vld [vmem:[%s6096_s9 + $0x28] sm:$0xff] }
 0x38c   : > { %v2987_v10 = vsub.f32 %v2935_v24, %v2971_v37  ;;  %v2220_v27 = vsub.f32 %v2168_v16, %v2204_v41  ;;  %vm1176_vm9 = vcmp.ge.f32.partialorder %v5655_v23, %v10790_v2  ;;  %v2160_v31 = vmul.f32 %v10512_v63, %v9091_v19  ;;  %v10859_v19 = vld [vmem:[#allocation98_spill] sm:$0xff]  ;;  %v10860_v41 = vld [vmem:[#allocation87_spill] sm:$0xff] }
 0x38d   : > { %5287 = vmatmul.mubr.f32.gmra.mrb[66].mxu0 %v3655_v50  ;;  %v4888_v7 = vsel %vm1176_vm9, 1.0, %v10377_v8  ;;  %v2196_v57 = vmul.f32 %v8220_v38, %v632_v21  ;;  %v2920_v35 = vmul.f32 %v10514_v60, %v10855_v42  ;;  %v2956_v49 = vmul.f32 %v9573_v20, %v632_v21 }
 0x38e   : > { %v3647_v24 = vmul.f32 %v3631_v40, %v2987_v10  ;;  %v2964_v18 = vmul.f32 %v2948_v32, %v2220_v27  ;;  %v1384_v53 = vsub.f32 %v10857_v1, %v4888_v7  ;;  %v2176_v37 = vmul.f32 %v2160_v31, %v10858_v36  ;;  %v10861_v27 = vld [vmem:[#allocation96_spill] sm:$0xff]  ;;  %v10862_v31 = vld [vmem:[#allocation53_spill] sm:$0xff]  ;;  %v9741_v1 = vpop.f32.mrb[44].mxu1 }
 0x38f   : > { %v2936_v16 = vmul.f32 %v2920_v35, %v10859_v19  ;;  %v3596_v50 = vmul.f32 %v10517_v61, %v10860_v41  ;;  %v3632_v17 = vmul.f32 %v9578_v3, %v632_v21  ;;  %v625_v23 = vsub.f32 %v5656_v9, %v10790_v2  ;;  %10863 = vst [vmem:[#allocation36_spill] sm:$0xff] %v9741_v1 }
 0x390   : > { %v3663_v42 = vsub.f32 %v3611_v12, %v3647_v24  ;;  %v2980_v4 = vsub.f32 %v2928_v26, %v2964_v18  ;;  %v2212_v40 = vmul.f32 %v2196_v57, %v1384_v53  ;;  %vm1169_vm10 = vcmp.ge.f32.partialorder %v5656_v9, %v10790_v2  ;;  %v10864_v12 = vld [vmem:[#allocation47_spill] sm:$0xff]  ;;  %v10865_v57 = vld [vmem:[#allocation48_spill] sm:$0xff]  ;;  %v9746_v18 = vpop.f32.mrb[45].mxu1  ;;  %v10867_v53 = vld [vmem:[#allocation54_spill] sm:$0xff] }
 0x391   : > { %v3612_v32 = vmul.f32 %v3596_v50, %v10861_v27  ;;  %v4881_v10 = vsel %vm1169_vm10, 1.0, %v10377_v8  ;;  %v2153_v7 = vmul.f32 %v10512_v63, %v10862_v31  ;;  %v2189_v35 = vmul.f32 %v8220_v38, %v625_v23  ;;  %10866 = vst [vmem:[#allocation16_spill] sm:$0xff] %v9746_v18  ;;  %v10868_v50 = vld [vmem:[#allocation52_spill] sm:$0xff] }
 0x392   : > { %5299 = vmatmul.mubr.f32.gmra.mrb[66].mxu1 %v3663_v42  ;;  %v3640_v21 = vmul.f32 %v3624_v58, %v2980_v4  ;;  %v2228_v36 = vsub.f32 %v2176_v37, %v2212_v40  ;;  %v1377_v26 = vsub.f32 %v10864_v12, %v4881_v10  ;;  %v2913_v24 = vmul.f32 %v10514_v60, %v10865_v57  ;;  %v10869_v4 = vld [vmem:[#allocation59_spill] sm:$0xff]  ;;  %v10870_v40 = vld [vmem:[#allocation58_spill] sm:$0xff] }
 0x393   : > { %v2169_v19 = vmul.f32 %v2153_v7, %v10867_v53  ;;  %v2949_v41 = vmul.f32 %v9573_v20, %v625_v23  ;;  %v3589_v9 = vmul.f32 %v10517_v61, %v10868_v50  ;;  %v3625_v27 = vmul.f32 %v9578_v3, %v625_v23  ;;  %v5657_v12 = vld [vmem:[%s6096_s9 + $0x68] sm:$0xff] }
 0x394   : > { %v3656_v31 = vsub.f32 %v3604_v22, %v3640_v21  ;;  %v2972_v42 = vmul.f32 %v2956_v49, %v2228_v36  ;;  %v2205_v58 = vmul.f32 %v2189_v35, %v1377_v26  ;;  %v2929_v37 = vmul.f32 %v2913_v24, %v10869_v4  ;;  %v10871_v7 = vld [vmem:[#allocation102_spill] sm:$0xff]  ;;  %v10872_v49 = vld [vmem:[#allocation95_spill] sm:$0xff]  ;;  %v10874_v36 = vld [vmem:[#allocation108_spill] sm:$0xff] }
 0x395   : > { %v3605_v10 = vmul.f32 %v3589_v9, %v10870_v40  ;;  %v633_v57 = vsub.f32 %v5657_v12, %v10790_v2  ;;  %vm1177_vm11 = vcmp.ge.f32.partialorder %v5657_v12, %v10790_v2  ;;  %v2161_v53 = vmul.f32 %v10512_v63, %v10871_v7  ;;  %v10873_v35 = vld [vmem:[#allocation107_spill] sm:$0xff]  ;;  %v10875_v12 = vld [vmem:[#allocation116_spill] sm:$0xff] }
 0x396   : > { %5289 = vmatprep.mubr.f32.mxu0 %v3656_v31  ;;  %v2988_v50 = vsub.f32 %v2936_v16, %v2972_v42  ;;  %v2221_v18 = vsub.f32 %v2169_v19, %v2205_v58  ;;  %v4889_v22 = vsel %vm1177_vm11, 1.0, %v10377_v8  ;;  %v2921_v23 = vmul.f32 %v10514_v60, %v10872_v49  ;;  %v10876_v31 = vld [vmem:[#allocation101_spill] sm:$0xff]  ;;  %v5658_v58 = vld [vmem:[%s6096_s9 + $0x30] sm:$0xff] }
 0x397   : > { %v1385_v21 = vsub.f32 %v10873_v35, %v4889_v22  ;;  %v2177_v26 = vmul.f32 %v2161_v53, %v10874_v36  ;;  %v2197_v24 = vmul.f32 %v8220_v38, %v633_v57  ;;  %v2957_v9 = vmul.f32 %v9573_v20, %v633_v57  ;;  %v10877_v35 = vld [vmem:[#allocation126_spill] sm:$0xff] }
 0x398   : > { %v3648_v4 = vmul.f32 %v3632_v17, %v2988_v50  ;;  %v2965_v40 = vmul.f32 %v2949_v41, %v2221_v18  ;;  %v2937_v7 = vmul.f32 %v2921_v23, %v10875_v12  ;;  %v3597_v16 = vmul.f32 %v10517_v61, %v10876_v31  ;;  %v10878_v41 = vld [vmem:[#allocation61_spill] sm:$0xff]  ;;  %v10879_v23 = vld [vmem:[#allocation60_spill] sm:$0xff] }
 0x399   : > { %v2213_v19 = vmul.f32 %v2197_v24, %v1385_v21  ;;  %v3633_v42 = vmul.f32 %v9578_v3, %v633_v57  ;;  %v626_v49 = vsub.f32 %v5658_v58, %v10790_v2  ;;  %vm1170_vm12 = vcmp.ge.f32.partialorder %v5658_v58, %v10790_v2  ;;  %v10880_v24 = vld [vmem:[#allocation56_spill] sm:$0xff] }
 0x39a   : > { %v3664_v53 = vsub.f32 %v3612_v32, %v3648_v4  ;;  %v2981_v22 = vsub.f32 %v2929_v37, %v2965_v40  ;;  %v3613_v36 = vmul.f32 %v3597_v16, %v10877_v35  ;;  %v4882_v17 = vsel %vm1170_vm12, 1.0, %v10377_v8  ;;  %v10881_v37 = vld [vmem:[#allocation57_spill] sm:$0xff]  ;;  %v10882_v16 = vld [vmem:[#allocation55_spill] sm:$0xff] }
 0x39b   : > { %v2229_v18 = vsub.f32 %v2177_v26, %v2213_v19  ;;  %v1378_v50 = vsub.f32 %v10878_v41, %v4882_v17  ;;  %v2154_v12 = vmul.f32 %v10512_v63, %v10879_v23  ;;  %v2190_v21 = vmul.f32 %v8220_v38, %v626_v49  ;;  %v10883_v17 = vld [vmem:[#allocation62_spill] sm:$0xff]  ;;  %v10884_v23 = vld [vmem:[#allocation65_spill] sm:$0xff] }
 0x39c   : > { %5301 = vmatprep.mubr.f32.mxu1 %v3664_v53  ;;  %v3641_v57 = vmul.f32 %v3625_v27, %v2981_v22  ;;  %v2914_v31 = vmul.f32 %v10514_v60, %v10880_v24  ;;  %v2950_v32 = vmul.f32 %v9573_v20, %v626_v49  ;;  %v3590_v4 = vmul.f32 %v10517_v61, %v10881_v37  ;;  %v10885_v27 = vld [vmem:[#allocation123_spill] sm:$0xff] }
 0x39d   : > { %v2973_v40 = vmul.f32 %v2957_v9, %v2229_v18  ;;  %v2170_v26 = vmul.f32 %v2154_v12, %v10882_v16  ;;  %v2206_v19 = vmul.f32 %v2190_v21, %v1378_v50  ;;  %v3626_v58 = vmul.f32 %v9578_v3, %v626_v49  ;;  %v10886_v18 = vld [vmem:[#allocation120_spill] sm:$0xff] }
 0x39e   : > { %v3657_v35 = vsub.f32 %v3605_v10, %v3641_v57  ;;  %v2930_v41 = vmul.f32 %v2914_v31, %v10883_v17  ;;  %v3606_v53 = vmul.f32 %v3590_v4, %v10884_v23  ;;  %v634_v22 = vsub.f32 %v10885_v27, %v10790_v2  ;;  %v10887_v57 = vld [vmem:[#allocation145_spill] sm:$0xff]  ;;  %v9802_v4 = vpop.f32.mrb[46].mxu0 }
 0x39f   : > { %v2989_v24 = vsub.f32 %v2937_v7, %v2973_v40  ;;  %v2222_v1 = vsub.f32 %v2170_v26, %v2206_v19  ;;  %vm1178_vm13 = vcmp.ge.f32.partialorder %v10885_v27, %v10790_v2  ;;  %v2162_v9 = vmul.f32 %v10512_v63, %v9322_v28  ;;  %v5659_v26 = vld [vmem:[%s6096_s9 + $0x38] sm:$0xff] }
 0x3a0   : > { %5290 = vmatmul.mubr.f32.gmra.mrb[68].mxu0 %v3657_v35  ;;  %v4890_v49 = vsel %vm1178_vm13, 1.0, %v10377_v8  ;;  %v2198_v10 = vmul.f32 %v8220_v38, %v634_v22  ;;  %v2922_v50 = vmul.f32 %v10514_v60, %v10886_v18  ;;  %v2958_v12 = vmul.f32 %v9573_v20, %v634_v22  ;;  %v9810_v35 = vpop.f32.mrb[47].mxu0 }
 0x3a1   : > { %v3649_v21 = vmul.f32 %v3633_v42, %v2989_v24  ;;  %v2966_v7 = vmul.f32 %v2950_v32, %v2222_v1  ;;  %v1386_v31 = vsub.f32 %v10887_v57, %v4890_v49  ;;  %v2178_v37 = vmul.f32 %v2162_v9, %v9349_v44  ;;  %v10889_v24 = vld [vmem:[#allocation64_spill] sm:$0xff] }
 0x3a2   : > { %v2938_v28 = vmul.f32 %v2922_v50, %v9386_v46  ;;  %v3598_v40 = vmul.f32 %v10517_v61, %v9245_v5  ;;  %v3634_v16 = vmul.f32 %v9578_v3, %v634_v22  ;;  %v627_v19 = vsub.f32 %v5659_v26, %v10790_v2  ;;  %v10888_v46 = vld [vmem:[#allocation66_spill] sm:$0xff]  ;;  %v10890_v49 = vld [vmem:[#allocation68_spill] sm:$0xff]  ;;  %v10892_v50 = vld [vmem:[#allocation67_spill] sm:$0xff] }
 0x3a3   : > { %v3665_v42 = vsub.f32 %v3613_v36, %v3649_v21  ;;  %v2982_v1 = vsub.f32 %v2930_v41, %v2966_v7  ;;  %v2214_v32 = vmul.f32 %v2198_v10, %v1386_v31  ;;  %vm1171_vm14 = vcmp.ge.f32.partialorder %v5659_v26, %v10790_v2  ;;  %v9821_v41 = vpop.f32.mrb[46].mxu1  ;;  %v10891_v10 = vld [vmem:[#allocation69_spill] sm:$0xff] }
 0x3a4   : > { %v3614_v44 = vmul.f32 %v3598_v40, %v9422_v39  ;;  %v4883_v17 = vsel %vm1171_vm14, 1.0, %v10377_v8  ;;  %v2155_v23 = vmul.f32 %v10512_v63, %v10888_v46  ;;  %v2191_v5 = vmul.f32 %v8220_v38, %v627_v19  ;;  %v9828_v57 = vpop.f32.mrb[47].mxu1  ;;  %v10893_v40 = vld [vmem:[#allocation63_spill] sm:$0xff] }
 0x3a5   : > { %5302 = vmatmul.mubr.f32.gmra.mrb[68].mxu1 %v3665_v42  ;;  %v3642_v27 = vmul.f32 %v3626_v58, %v2982_v1  ;;  %v2230_v22 = vsub.f32 %v2178_v37, %v2214_v32  ;;  %v1379_v9 = vsub.f32 %v10889_v24, %v4883_v17  ;;  %v2915_v36 = vmul.f32 %v10514_v60, %v10890_v49  ;;  %v10894_v42 = vld [vmem:[#allocation75_spill] sm:$0xff]  ;;  %v10895_v24 = vld [vmem:[#allocation105_spill] sm:$0xff] }
 0x3a6   : > { %v2171_v18 = vmul.f32 %v2155_v23, %v10891_v10  ;;  %v2951_v39 = vmul.f32 %v9573_v20, %v627_v19  ;;  %v3591_v21 = vmul.f32 %v10517_v61, %v10892_v50  ;;  %v3627_v7 = vmul.f32 %v9578_v3, %v627_v19  ;;  %v10904_v50 = vld [vmem:[#allocation117_spill] sm:$0xff] }
 0x3a7   : > { %v3658_v58 = vsub.f32 %v3606_v53, %v3642_v27  ;;  %v2974_v31 = vmul.f32 %v2958_v12, %v2230_v22  ;;  %v2207_v37 = vmul.f32 %v2191_v5, %v1379_v9  ;;  %v2931_v26 = vmul.f32 %v2915_v36, %v10893_v40  ;;  %v10898_v9 = vld [vmem:[#allocation109_spill] sm:$0xff]  ;;  %v10900_v36 = vld [vmem:[#allocation115_spill] sm:$0xff]  ;;  %v10907_v40 = vld [vmem:[#allocation118_spill] sm:$0xff] }
 0x3a8   : > { %v3607_v1 = vmul.f32 %v3591_v21, %v10894_v42  ;;  %v635_v32 = vsub.f32 %v9412_v56, %v10790_v2  ;;  %vm1179_vm15 = vcmp.ge.f32.partialorder %v9412_v56, %v10790_v2  ;;  %v2163_v17 = vmul.f32 %v10512_v63, %v9488_v52  ;;  %v10909_v42 = vld [vmem:[#allocation121_spill] sm:$0xff] }
 0x3a9   : > { %5292 = vmatprep.mubr.f32.mxu0 %v3658_v58  ;;  %v2990_v19 = vsub.f32 %v2938_v28, %v2974_v31  ;;  %v2223_v46 = vsub.f32 %v2171_v18, %v2207_v37  ;;  %v4891_v53 = vsel %vm1179_vm15, 1.0, %v10377_v8  ;;  %v2923_v12 = vmul.f32 %v10514_v60, %v9426_v25  ;;  %v10896_v60 = vld [vmem:[#allocation104_spill] sm:$0xff]  ;;  %v10905_v31 = vld [vmem:[#allocation111_spill] sm:$0xff]  ;;  %v10906_v37 = vld [vmem:[#allocation110_spill] sm:$0xff] }
 0x3aa   : > { %v1387_v23 = vsub.f32 %v9508_v13, %v4891_v53  ;;  %v2179_v5 = vmul.f32 %v2163_v17, %v9515_v33  ;;  %v2199_v27 = vmul.f32 %v8220_v38, %v635_v32  ;;  %v2959_v22 = vmul.f32 %v9573_v20, %v635_v32  ;;  %v10897_v13 = vld [vmem:[#allocation106_spill] sm:$0xff]  ;;  %v10911_v53 = vld [vmem:[#allocation125_spill] sm:$0xff] }
 0x3ab   : > { %v3650_v56 = vmul.f32 %v3634_v16, %v2990_v19  ;;  %v2967_v2 = vmul.f32 %v2951_v39, %v2223_v46  ;;  %v2939_v63 = vmul.f32 %v2923_v12, %v9540_v15  ;;  %v3599_v52 = vmul.f32 %v10517_v61, %v9416_v14  ;;  %v10899_v16 = vld [vmem:[#allocation103_spill] sm:$0xff]  ;;  %v10901_v61 = vld [vmem:[#allocation112_spill] sm:$0xff]  ;;  %v10902_v14 = vld [vmem:[#allocation113_spill] sm:$0xff] }
 0x3ac   : > { %v2215_v28 = vmul.f32 %v2199_v27, %v1387_v23  ;;  %v3635_v8 = vmul.f32 %v9578_v3, %v635_v32  ;;  %v4933_v25 = vadd.f32 %v10896_v60, %v10895_v24  ;;  %v5013_v33 = vadd.f32 %v10898_v9, %v10897_v13  ;;  %v10903_v3 = vld [vmem:[#allocation114_spill] sm:$0xff]  ;;  %v10912_v12 = vld [vmem:[#allocation129_spill] sm:$0xff]  ;;  %v10914_v27 = vld [vmem:[#allocation131_spill] sm:$0xff] }
 0x3ad   : > { %v3666_v49 = vsub.f32 %v3614_v44, %v3650_v56  ;;  %v2983_v38 = vsub.f32 %v2931_v26, %v2967_v2  ;;  %v3615_v20 = vmul.f32 %v3599_v52, %v9556_v0  ;;  %v4936_v10 = vadd.f32 %v10900_v36, %v10899_v16  ;;  %v10908_v26 = vld [vmem:[#allocation124_spill] sm:$0xff]  ;;  %v10910_v32 = vld [vmem:[#allocation122_spill] sm:$0xff] }
 0x3ae   : > { %v2231_v15 = vsub.f32 %v2179_v5, %v2215_v28  ;;  %v9856_v18 = vadd.f32 %v5013_v33, %v4933_v25  ;;  %v5016_v39 = vadd.f32 %v10902_v14, %v10901_v61  ;;  %v4939_v21 = vadd.f32 %v10904_v50, %v10903_v3  ;;  %v10913_v5 = vld [vmem:[#allocation119_spill] sm:$0xff]  ;;  %v10915_v28 = vld [vmem:[#allocation132_spill] sm:$0xff]  ;;  %v10917_v9 = vld [vmem:[#allocation130_spill] sm:$0xff] }
 0x3af   : > { %5304 = vmatprep.mubr.f32.mxu1 %v3666_v49  ;;  %v3643_v58 = vmul.f32 %v3627_v7, %v2983_v38  ;;  %v5019_v44 = vadd.f32 %v10906_v37, %v10905_v31  ;;  %v4942_v0 = vadd.f32 %v10908_v26, %v10907_v40  ;;  %v5022_v17 = vadd.f32 %v10910_v32, %v10909_v42  ;;  %v10916_v24 = vld [vmem:[#allocation128_spill] sm:$0xff]  ;;  %v10918_v33 = vld [vmem:[#allocation133_spill] sm:$0xff]  ;;  %v10919_v38 = vld [vmem:[#allocation127_spill] sm:$0xff]  ;;  %v5115_v31 = vpop.f32.mrb[48].mxu0 }
 0x3b0   : > { %v2975_v19 = vmul.f32 %v2959_v22, %v2231_v15  ;;  %v4029_v46 = vadd.f32 %v5016_v39, %v4936_v10  ;;  %v4945_v23 = vadd.f32 %v10912_v12, %v10911_v53  ;;  %v5025_v56 = vadd.f32 %v10914_v27, %v10913_v5  ;;  %v10920_v22 = vld [vmem:[#allocation139_spill] sm:$0xff]  ;;  %v10921_v36 = vld [vmem:[#allocation134_spill] sm:$0xff]  ;;  %v10922_v10 = vld [vmem:[#allocation137_spill] sm:$0xff] }
 0x3b1   : > { %v3659_v2 = vsub.f32 %v3607_v1, %v3643_v58  ;;  %v4034_v52 = vadd.f32 %v5019_v44, %v4939_v21  ;;  %v4039_v7 = vadd.f32 %v5022_v17, %v4942_v0  ;;  %v4948_v60 = vadd.f32 %v10916_v24, %v10915_v28  ;;  %v10923_v61 = vld [vmem:[#allocation138_spill] sm:$0xff]  ;;  %v10924_v14 = vld [vmem:[#allocation136_spill] sm:$0xff]  ;;  %v10926_v3 = vld [vmem:[#allocation141_spill] sm:$0xff] }
 0x3b2   : > { %v2991_v25 = vsub.f32 %v2939_v63, %v2975_v19  ;;  %v4044_v13 = vadd.f32 %v5025_v56, %v4945_v23  ;;  %v5028_v49 = vadd.f32 %v10918_v33, %v10917_v9  ;;  %v4951_v16 = vadd.f32 %v10920_v22, %v10919_v38  ;;  %v10925_v39 = vld [vmem:[#allocation140_spill] sm:$0xff]  ;;  %v10927_v21 = vld [vmem:[#allocation135_spill] sm:$0xff]  ;;  %v10928_v58 = vld [vmem:[#allocation146_spill] sm:$0xff]  ;;  %v5116_v19 = vpop.f32.mrb[49].mxu0 }
 0x3b3   : > { %5293 = vmatmul.mubr.f32.gmra.mrb[70].mxu0 %v3659_v2  ;;  %v5031_v15 = vadd.f32 %v10922_v10, %v10921_v36  ;;  %v4954_v1 = vadd.f32 %v10924_v14, %v10923_v61  ;;  %v5034_v50 = vadd.f32 %v10926_v3, %v10925_v39  ;;  %v4957_v63 = vadd.f32 %v10928_v58, %v10927_v21  ;;  %v10929_v40 = vld [vmem:[#allocation144_spill] sm:$0xff]  ;;  %v10930_v26 = vld [vmem:[#allocation147_spill] sm:$0xff]  ;;  %v10934_v5 = vld [vmem:[#allocation153_spill] sm:$0xff]  ;;  %v5195_v3 = vpop.f32.mrb[48].mxu1 }
 0x3b4   : > { %v3651_v37 = vmul.f32 %v3635_v8, %v2991_v25  ;;  %v4049_v44 = vadd.f32 %v5028_v49, %v4948_v60  ;;  %v5037_v0 = vadd.f32 %v10930_v26, %v10929_v40  ;;  %v10931_v42 = vld [vmem:[#allocation143_spill] sm:$0xff]  ;;  %v10932_v32 = vld [vmem:[#allocation152_spill] sm:$0xff]  ;;  %v10935_v56 = vld [vmem:[#allocation154_spill] sm:$0xff]  ;;  %v4975_v39 = vadd.f32 %v9437_v59, %v9430_v48 }
 0x3b5   : > { %v4960_v17 = vadd.f32 %v10932_v32, %v10931_v42  ;;  %v4054_v53 = vadd.f32 %v5031_v15, %v4951_v16  ;;  %v4059_v12 = vadd.f32 %v5034_v50, %v4954_v1  ;;  %v10933_v23 = vld [vmem:[#allocation151_spill] sm:$0xff]  ;;  %v10936_v2 = vld [vmem:[#allocation156_spill] sm:$0xff]  ;;  %v10938_v60 = vld [vmem:[#allocation157_spill] sm:$0xff] }
 0x3b6   : > { %v5040_v27 = vadd.f32 %v10934_v5, %v10933_v23  ;;  %v4963_v28 = vadd.f32 %v10936_v2, %v10935_v56  ;;  %v3667_v24 = vsub.f32 %v3615_v20, %v3651_v37  ;;  %v4064_v9 = vadd.f32 %v5037_v0, %v4957_v63  ;;  %v10937_v33 = vld [vmem:[#allocation155_spill] sm:$0xff]  ;;  %v10940_v22 = vld [vmem:[#allocation158_spill] sm:$0xff]  ;;  %v10941_v36 = vld [vmem:[#allocation160_spill] sm:$0xff]  ;;  %v5196_v37 = vpop.f32.mrb[49].mxu1 }
 0x3b7   : > { %v5043_v8 = vadd.f32 %v9372_v11, %v10937_v33  ;;  %v10939_v25 = vld [vmem:[#allocation159_spill] sm:$0xff]  ;;  %v5046_v10 = vadd.f32 %v10941_v36, %v10940_v22  ;;  %v10942_v16 = vld [vmem:[#allocation142_spill] sm:$0xff]  ;;  %v10943_v61 = vld [vmem:[#allocation161_spill] sm:$0xff]  ;;  %v4972_v20 = vadd.f32 %v9418_v45, %v9407_v6  ;;  %v5052_v11 = vadd.f32 %v9420_v34, %v9409_v62 }
 0x3b8   : > { %v4966_v49 = vadd.f32 %v10939_v25, %v10938_v60  ;;  %v4069_v38 = vadd.f32 %v5040_v27, %v4960_v17  ;;  %v4969_v15 = vadd.f32 %v9399_v51, %v10942_v16  ;;  %v5049_v14 = vadd.f32 %v9401_v29, %v10943_v61  ;;  %5305 = vmatmul.mubr.f32.gmra.mrb[70].mxu1 %v3667_v24  ;;  %v10944_v51 = vld [vmem:[#allocation162_spill] sm:$0xff]  ;;  %v10945_v29 = vld [vmem:[#allocation163_spill] sm:$0xff]  ;;  %v10946_v6 = vld [vmem:[#allocation164_spill] sm:$0xff] }
 0x3b9   : > { %v4074_v1 = vadd.f32 %v5043_v8, %v4963_v28  ;;  %v5055_v58 = vadd.f32 %v10944_v51, %v9432_v55  ;;  %v4978_v63 = vadd.f32 %v9454_v43, %v10945_v29  ;;  %v9918_v40 = vadd.f32 %v5052_v11, %v4972_v20  ;;  %v10947_v45 = vld [vmem:[#allocation165_spill] sm:$0xff]  ;;  %v10948_v34 = vld [vmem:[#allocation166_spill] sm:$0xff]  ;;  %v10949_v26 = vld [vmem:[#allocation168_spill] sm:$0xff] }
 0x3ba   : > { %v9910_v50 = vadd.f32 %v5046_v10, %v4966_v49  ;;  %v9912_v21 = vadd.f32 %v5049_v14, %v4969_v15  ;;  %v5058_v62 = vadd.f32 %v10947_v45, %v10946_v6  ;;  %v5093_v48 = vadd.f32 %v10949_v26, %v10948_v34  ;;  %v10950_v59 = vld [vmem:[#allocation167_spill] sm:$0xff]  ;;  %v10951_v0 = vld [vmem:[#allocation169_spill] sm:$0xff]  ;;  %v10952_v17 = vld [vmem:[#allocation170_spill] sm:$0xff] }
 0x3bb   : > { %v5173_v42 = vadd.f32 %v10951_v0, %v10950_v59  ;;  %v9926_v32 = vadd.f32 %v5055_v58, %v4975_v39  ;;  %v10953_v23 = vld [vmem:[#allocation172_spill] sm:$0xff]  ;;  %v10954_v5 = vld [vmem:[#allocation171_spill] sm:$0xff]  ;;  %v10955_v27 = vld [vmem:[#allocation173_spill] sm:$0xff]  ;;  %v5105_v20 = vadd.f32 %v9567_v30, %v9561_v47  ;;  %v5114_v47 = vadd.f32 %v9810_v35, %v9802_v4 }
 0x3bc   : > { %v5096_v55 = vadd.f32 %v10953_v23, %v10952_v17  ;;  %v5176_v43 = vadd.f32 %v10955_v27, %v10954_v5  ;;  %v10956_v56 = vld [vmem:[#allocation174_spill] sm:$0xff]  ;;  %v10957_v2 = vld [vmem:[#allocation176_spill] sm:$0xff]  ;;  %v9934_v24 = vadd.f32 %v5058_v62, %v4978_v63  ;;  %v4169_v33 = vadd.f32 %v5093_v48, %v9856_v18  ;;  %v10958_v8 = vld [vmem:[#allocation175_spill] sm:$0xff] }
 0x3bd   : > { %v5099_v28 = vadd.f32 %v10957_v2, %v10956_v56  ;;  %v10959_v60 = vld [vmem:[#allocation177_spill] sm:$0xff]  ;;  %v10960_v49 = vld [vmem:[#allocation178_spill] sm:$0xff]  ;;  %v10961_v22 = vld [vmem:[#allocation180_spill] sm:$0xff]  ;;  %v4189_v34 = vadd.f32 %v5105_v20, %v4044_v13  ;;  %v5117_v0 = vadd.f32 %v5116_v19, %v5115_v31  ;;  %v5197_v17 = vadd.f32 %v5196_v37, %v5195_v3 }
 0x3be   : > { %v5179_v25 = vadd.f32 %v10959_v60, %v10958_v8  ;;  %v5102_v36 = vadd.f32 %v10961_v22, %v10960_v49  ;;  %v4174_v10 = vadd.f32 %v5096_v55, %v4029_v46  ;;  %v10962_v15 = vld [vmem:[#allocation179_spill] sm:$0xff]  ;;  %v10963_v61 = vld [vmem:[#allocation181_spill] sm:$0xff]  ;;  %v10964_v39 = vld [vmem:[#allocation148_spill] sm:$0xff]  ;;  %v4204_v55 = vadd.f32 %v5114_v47, %v4059_v12 }
 0x3bf   : > { %v4179_v16 = vadd.f32 %v5099_v28, %v4034_v52  ;;  %v5182_v14 = vadd.f32 %v10963_v61, %v10962_v15  ;;  %v10965_v51 = vld [vmem:[#allocation150_spill] sm:$0xff]  ;;  %v10967_v18 = vld [vmem:[#allocation25_spill] sm:$0xff]  ;;  %v10970_v26 = vld [vmem:[#allocation35_spill] sm:$0xff]  ;;  %v4209_v5 = vadd.f32 %v5117_v0, %v4064_v9  ;;  %v9961_v13 = vadd.f32 %v5173_v42, %v4169_v33 }
 0x3c0   : > { %v4184_v11 = vadd.f32 %v5102_v36, %v4039_v7  ;;  %v5185_v58 = vadd.f32 %v10965_v51, %v10964_v39  ;;  %v10966_v29 = vld [vmem:[#allocation22_spill] sm:$0xff]  ;;  %v10969_v45 = vld [vmem:[#allocation149_spill] sm:$0xff]  ;;  %v5111_v46 = vadd.f32 %v9727_v54, %v10970_v26  ;;  %v10971_v52 = vld [vmem:[#allocation36_spill] sm:$0xff]  ;;  %v5194_v7 = vadd.f32 %v9828_v57, %v9821_v41 }
 0x3c1   : > { %v5108_v63 = vadd.f32 %v10967_v18, %v10966_v29  ;;  %v10968_v6 = vld [vmem:[#allocation34_spill] sm:$0xff]  ;;  %v10972_v48 = vld [vmem:[#allocation16_spill] sm:$0xff]  ;;  %v9959_v27 = vadd.f32 %v5176_v43, %v4174_v10  ;;  %v9963_v8 = vadd.f32 %v5179_v25, %v4179_v16  ;;  %v9967_v57 = vadd.f32 %v5197_v17, %v4209_v5 }
 0x3c2   : > { %v5188_v62 = vadd.f32 %v10969_v45, %v10968_v6  ;;  %v5191_v59 = vadd.f32 %v10972_v48, %v10971_v52  ;;  %v4199_v23 = vadd.f32 %v5111_v46, %v4054_v53  ;;  %v5118_v54 = vpop.f32.mrb[50].mxu0  ;;  %v9965_v41 = vadd.f32 %v5182_v14, %v4184_v11 }
 0x3c3   : > { %v4194_v30 = vadd.f32 %v5108_v63, %v4049_v44  ;;  %v5119_v56 = vpop.f32.mrb[51].mxu0  ;;  %v9969_v31 = vadd.f32 %v5185_v58, %v4189_v34  ;;  %v9975_v43 = vadd.f32 %v5194_v7, %v4204_v55 }
 0x3c4   : > { %v5198_v2 = vpop.f32.mrb[50].mxu1  ;;  %v5120_v28 = vadd.f32 %v5119_v56, %v5118_v54  ;;  %v9973_v12 = vadd.f32 %v5191_v59, %v4199_v23 }
 0x3c5   : > { %v5199_v4 = vpop.f32.mrb[51].mxu1  ;;  %v9971_v19 = vadd.f32 %v5188_v62, %v4194_v30 }
 0x3c6   : > { %v4214_v35 = vadd.f32 %v5120_v28, %v4069_v38  ;;  %v5200_v44 = vadd.f32 %v5199_v4, %v5198_v2 }
 0x3c8   : > { %v4359_v60 = vadd.f32 %v5200_v44, %v4214_v35 }
 0x3d5   : > { %v5121_v53 = vpop.f32.mrb[52].mxu0 }
 0x3d6   : > { %v5122_v9 = vpop.f32.mrb[53].mxu0 }
 0x3d7   : > { %v5123_v3 = vadd.f32 %v5122_v9, %v5121_v53 }
 0x3d9   : > { %v5201_v37 = vpop.f32.mrb[52].mxu1  ;;  %v4219_v42 = vadd.f32 %v5123_v3, %v4074_v1 }
 0x3da   : > { %v5202_v38 = vpop.f32.mrb[53].mxu1 }
 0x3db   : > { %v5203_v33 = vadd.f32 %v5202_v38, %v5201_v37 }
 0x3dd   : > { %v9977_v25 = vadd.f32 %v5203_v33, %v4219_v42 }
 0x3e8   : > { %v5124_v49 = vpop.f32.mrb[54].mxu0 }
 0x3e9   : > { %v5125_v22 = vpop.f32.mrb[55].mxu0 }
 0x3ea   : > { %v5126_v36 = vadd.f32 %v5125_v22, %v5124_v49 }
 0x3ec   : > { %v4224_v16 = vadd.f32 %v5126_v36, %v9910_v50 }
 0x3ed   : > { %v5204_v10 = vpop.f32.mrb[54].mxu1 }
 0x3ee   : > { %v5205_v15 = vpop.f32.mrb[55].mxu1 }
 0x3ef   : > { %v5206_v61 = vadd.f32 %v5205_v15, %v5204_v10 }
 0x3f1   : > { %v4369_v14 = vadd.f32 %v5206_v61, %v4224_v16 }
 0x3fc   : > { %v5127_v20 = vpop.f32.mrb[56].mxu0 }
 0x3fd   : > { %v5128_v11 = vpop.f32.mrb[57].mxu0 }
 0x3fe   : > { %v5129_v39 = vadd.f32 %v5128_v11, %v5127_v20 }
 0x400   : > { %v5207_v51 = vpop.f32.mrb[56].mxu1  ;;  %v4229_v1 = vadd.f32 %v5129_v39, %v9912_v21 }
 0x401   : > { %v5208_v58 = vpop.f32.mrb[57].mxu1 }
 0x402   : > { %v5209_v29 = vadd.f32 %v5208_v58, %v5207_v51 }
 0x404   : > { %v4374_v18 = vadd.f32 %v5209_v29, %v4229_v1 }
 0x412   : > { %v5130_v63 = vpop.f32.mrb[58].mxu0 }
 0x413   : > { %v5131_v6 = vpop.f32.mrb[59].mxu0 }
 0x414   : > { %v5132_v45 = vadd.f32 %v5131_v6, %v5130_v63 }
 0x416   : > { %v5210_v62 = vpop.f32.mrb[58].mxu1  ;;  %v4234_v34 = vadd.f32 %v5132_v45, %v9918_v40 }
 0x417   : > { %v5211_v26 = vpop.f32.mrb[59].mxu1 }
 0x418   : > { %v5212_v50 = vadd.f32 %v5211_v26, %v5210_v62 }
 0x41a   : > { %v4379_v46 = vadd.f32 %v5212_v50, %v4234_v34 }
 0x427   : > { %v5133_v52 = vpop.f32.mrb[60].mxu0 }
 0x428   : > { %v5134_v48 = vpop.f32.mrb[61].mxu0 }
 0x429   : > { %v5135_v59 = vadd.f32 %v5134_v48, %v5133_v52 }
 0x42b   : > { %v4239_v47 = vadd.f32 %v5135_v59, %v9926_v32 }
 0x42c   : > { %v5213_v30 = vpop.f32.mrb[60].mxu1 }
 0x42d   : > { %v5214_v21 = vpop.f32.mrb[61].mxu1 }
 0x42e   : > { %v5215_v7 = vadd.f32 %v5214_v21, %v5213_v30 }
 0x430   : > { %v4384_v0 = vadd.f32 %v5215_v7, %v4239_v47 }
 0x43d   : > { %v5136_v17 = vpop.f32.mrb[62].mxu0 }
 0x43e   : > { %v5137_v23 = vpop.f32.mrb[63].mxu0 }
 0x43f   : > { %v5138_v55 = vadd.f32 %v5137_v23, %v5136_v17 }
 0x441   : > { %v5216_v5 = vpop.f32.mrb[62].mxu1  ;;  %v4244_v54 = vadd.f32 %v5138_v55, %v9934_v24 }
 0x442   : > { %v5217_v40 = vpop.f32.mrb[63].mxu1 }
 0x443   : > { %v5218_v56 = vadd.f32 %v5217_v40, %v5216_v5 }
 0x445   : > { %v4389_v2 = vadd.f32 %v5218_v56, %v4244_v54 }
 0x44d   : > { %v5285_v28 = vpop.f32.mrb[64].mxu0 }
 0x44e   : > { %v4464_v4 = vadd.f32 %v5285_v28, %v9959_v27  ;;  %v4458_v35 = vpop.f32.mrb[65].mxu0 }
 0x44f   : > { %v4459_v32 = vadd.f32 %v4458_v35, %v9961_v13 }
 0x450   : > { %4538 = vst [vmem:[%s9988_s21 + $0x8] sm:$0xff] %v4464_v4  ;;  %v5297_v24 = vpop.f32.mrb[64].mxu1 }
 0x451   : > { %v4504_v44 = vadd.f32 %v5297_v24, %v4359_v60  ;;  %4537 = vst [vmem:[%s9988_s21] sm:$0xff] %v4459_v32  ;;  %v4498_v53 = vpop.f32.mrb[65].mxu1 }
 0x452   : > { %v4499_v27 = vadd.f32 %v4498_v53, %v9967_v57 }
 0x453   : > { %4546 = vst [vmem:[%s9988_s21 + $0x48] sm:$0xff] %v4504_v44 }
 0x454   : > { %4545 = vst [vmem:[%s9988_s21 + $0x40] sm:$0xff] %v4499_v27 }
 0x460   : > { %v5288_v13 = vpop.f32.mrb[66].mxu0 }
 0x461   : > { %v4474_v9 = vadd.f32 %v5288_v13, %v9965_v41  ;;  %v4468_v3 = vpop.f32.mrb[67].mxu0 }
 0x462   : > { %v4469_v37 = vadd.f32 %v4468_v3, %v9963_v8 }
 0x463   : > { %4540 = vst [vmem:[%s9988_s21 + $0x18] sm:$0xff] %v4474_v9 }
 0x464   : > { %4539 = vst [vmem:[%s9988_s21 + $0x10] sm:$0xff] %v4469_v37 }
 0x465   : > { %v5300_v42 = vpop.f32.mrb[66].mxu1 }
 0x466   : > { %v4514_v60 = vadd.f32 %v5300_v42, %v4369_v14  ;;  %v4508_v38 = vpop.f32.mrb[67].mxu1 }
 0x467   : > { %v4509_v33 = vadd.f32 %v4508_v38, %v9977_v25 }
 0x468   : > { %4548 = vst [vmem:[%s9988_s21 + $0x58] sm:$0xff] %v4514_v60 }
 0x469   : > { %4547 = vst [vmem:[%s9988_s21 + $0x50] sm:$0xff] %v4509_v33 }
 0x473   : > { %v5291_v57 = vpop.f32.mrb[68].mxu0 }
 0x474   : > { %v4484_v49 = vadd.f32 %v5291_v57, %v9971_v19  ;;  %v4478_v41 = vpop.f32.mrb[69].mxu0 }
 0x475   : > { %v4479_v8 = vadd.f32 %v4478_v41, %v9969_v31 }
 0x476   : > { %4542 = vst [vmem:[%s9988_s21 + $0x28] sm:$0xff] %v4484_v49 }
 0x477   : > { %4541 = vst [vmem:[%s9988_s21 + $0x20] sm:$0xff] %v4479_v8 }
 0x478   : > { %v5303_v22 = vpop.f32.mrb[68].mxu1 }
 0x479   : > { %v4524_v36 = vadd.f32 %v5303_v22, %v4379_v46  ;;  %v4518_v10 = vpop.f32.mrb[69].mxu1 }
 0x47a   : > { %v4519_v16 = vadd.f32 %v4518_v10, %v4374_v18 }
 0x47b   : > { %4550 = vst [vmem:[%s9988_s21 + $0x68] sm:$0xff] %v4524_v36 }
 0x47c   : > { %4549 = vst [vmem:[%s9988_s21 + $0x60] sm:$0xff] %v4519_v16 }
 0x486   : > { %v5294_v25 = vpop.f32.mrb[70].mxu0 }
 0x487   : > { %v4494_v19 = vadd.f32 %v5294_v25, %v9975_v43  ;;  %v4488_v15 = vpop.f32.mrb[71].mxu0 }
 0x488   : > { %v4489_v61 = vadd.f32 %v4488_v15, %v9973_v12 }
 0x489   : > { %4544 = vst [vmem:[%s9988_s21 + $0x38] sm:$0xff] %v4494_v19 }
 0x48a   : > { %4543 = vst [vmem:[%s9988_s21 + $0x30] sm:$0xff] %v4489_v61 }
 0x48b   : > { %v5306_v31 = vpop.f32.mrb[70].mxu1 }
 0x48c   : > { %v4534_v14 = vadd.f32 %v5306_v31, %v4389_v2  ;;  %v4528_v20 = vpop.f32.mrb[71].mxu1 }
 0x48d   : > { %v4529_v43 = vadd.f32 %v4528_v20, %v4384_v0 }
 0x48e   : > { %4552 = vst [vmem:[%s9988_s21 + $0x78] sm:$0xff] %v4534_v14 }
 0x48f   : > { %4551 = vst [vmem:[%s9988_s21 + $0x70] sm:$0xff] %v4529_v43 }
 0x490   : > { %5787 = shalt.err (!%p5784_p4)
}
 0x491   : > { %s5788_s5 = scalar_lea.hbm %s10017_s8, 2048  ;;  %s5792_s25 = scalar_lea.hbm %s10069_s4, 4096 }
 0x492   : > { %p5789_p9 = scmp.ne.s32.totalorder %s10017_s8, %s5788_s5  ;;  %p5793_p8 = scmp.lt.u32.totalorder %s10017_s8, %s10069_s4 }
 0x493   : > { %p5794_p13 = scmp.lt.u32.totalorder %s5792_s25, %s5788_s5  ;;  %p5796_p10 = scmp.lt.u32.totalorder %s5788_s5, %s10017_s8 }
 0x494   : > { %p5790_p0 = pnand %p5789_p9, %p6039_p5 }
 0x495   : > { %p5795_p6 = por %p5794_p13, %p5793_p8 }
 0x496   : > { %p5791_p11 = pneg %p5790_p0 }
 0x497   : > { %p5797_p3 = por %p5796_p10, %p5795_p6 }
 0x499   : > { %p5798_p7 = pnand %p5797_p3, %p5791_p11 }
 0x49b   : > { %5801 = shalt.err (!%p5798_p7)
}
 0x49c   : > { %s5858_s21 = smov 128   ;;  %s5859_s23 = smov 8  }
 0x49d   : > { %5497 = dma.vmem_to_hbm [thread:$0]  (%p6039_p5), %s10019_s14, 2048, %s10017_s8, %s4554_s28, %s5858_s21, %s5858_s21, %s5859_s23  }
 0x49e PF: > { %s4582_s20 = sand.u32 1, %s5836_s15   ;;  %p10973_p12 = scmp.ne.s32.totalorder %s10345_s22, 0 }
 0x49f   : > { %p10974_p1 = scmp.ge.s32.totalorder %s5848_s18, 2  ;;  %s4583_s6 = scalar_lea.sflag [#allocation4], %s4582_s20 }
 0x4a1   : > { %p5514_p2 = pnand %p10974_p1, %p10973_p12 }
 0x4a3   : > { %5831 = dma.done.wait (!%p5514_p2), %s4583_s6, 2048  }
 0x4a4   : > { %5833 = vsyncadd (!%p5514_p2), %s4583_s6, 4294965248  ;;  %p19_p4 = scmp.ge.s32.totalorder %s6025_s10, 4   ;;  %s10975_s15 = smov %s5840_s16 }
 0x4a5   : > { %s10976_s16 = smov %s5844_s17  ;;  %s10977_s17 = smov %s6035_s12 }
 0x4a6   : > { %s10978_s18 = smov %s6025_s10  ;;  %21 = sbr.rel (!%p19_p4) target bundleno = 7 (0x7), region = 93 }
 0x4ad   :  { %4588 = vsyncpa [#allocation3], 1 }
 0x4ae   :  { %4590 = vsyncpa [#allocation3 + $0x1], 1 }
 0x4af   :  { %4591 = vsyncpa [#allocation6], 1 }
 0x4b0   :  { %4592 = vsyncpa [#allocation9], 1 }
 0x4b1   :  { %4593 = vsyncpa [#allocation4], 1 }
 0x4b2   :  { %4595 = vsyncpa [#allocation4 + $0x1], 1 }

</bundles_post_ra>
